<compile_context>
chip_gen: v5e
topology: v5e:2x2
jax: 0.10.0
libtpu: 0.0.40
codegen_flags: <defaults>
</compile_context>

<pallas_src>
import numpy as np

import jax
import jax.numpy as jnp
from jax.experimental import pallas as pl
from jax.experimental.pallas import tpu as pltpu

# ----------------------------- dimensions ----------------------------------
HIDDEN_SIZE = 128            # hidden_size / dim_feedforward / hidden_state_size
ACTION_SIZE = 4              # action_space.n
AUDIO_FEAT = 128             # downsample output
GOAL_FEAT = 512              # AudioCRNN output
ACTION_ENC = 16              # action_encoder output
VIS_FEAT_PER_BRANCH = 32
VIS_FEAT = 2 * VIS_FEAT_PER_BRANCH        # SMTCNN.feature_dims (rgb + depth)
POSE_DIMS = 5                # PoseSensor shape[0]
NFEATS = VIS_FEAT + ACTION_ENC + AUDIO_FEAT + POSE_DIMS     # 213 (memory_dim)
FEAT_PAD = 256               # lane-dense padded feature width (213 -> 256)

# feature-slab column offsets (torch concat order: visual, action, audio, pose)
RGB_OFF = 0
DEPTH_OFF = VIS_FEAT_PER_BRANCH            # 32
ACT_OFF = VIS_FEAT                         # 64
AUDIO_OFF = VIS_FEAT + ACTION_ENC          # 80
POSE_OFF = AUDIO_OFF + AUDIO_FEAT          # 208

CONV_K = 4
CONV_STRIDE = 2
CONV_OC = 8
IMG = 16                     # spatial size of rgb/depth/spectrogram inputs
CONV_OUT = (IMG - CONV_K) // CONV_STRIDE + 1     # 7
CONV_FLAT = CONV_OC * CONV_OUT * CONV_OUT        # 392
CONV_FLAT_PAD = 512          # lane-dense padded conv-flat width (392 -> 512)


# ----------------------------- fused kernel ---------------------------------
def _fused_forward_kernel(
        # data
        rgb_ref, dep_ref, spe_ref, act_ref, pose_ref, memf_ref, mmask_ref,
        # SMTCNN rgb branch (conv folded to dense, FC placed into slab cols)
        rgb_cw_ref, rgb_cb_ref, rgb_fw_ref, rgb_fb_ref,
        # SMTCNN depth branch
        dep_cw_ref, dep_cb_ref, dep_fw_ref, dep_fb_ref,
        # AudioCRNN stand-in (spectrogram conv + FC -> 512)
        spe_cw_ref, spe_cb_ref, spe_fw_ref, spe_fb_ref,
        # downsample 512->128 (placed), action encoder (placed), pose placement
        down_w_ref, down_b_ref, act_w_ref, act_b_ref, pose_w_ref,
        # MSMT attention (q scale folded) + FFN
        wq_ref, bq_ref, wk_ref, bk_ref, wv_ref, bv_ref,
        w1_ref, b1_ref, w2_ref, b2_ref,
        # outputs
        xatt_ref, xfeat_ref):

    def dense(x, w_ref, b_ref=None, relu=False):
        # cast activations to the weight dtype (bf16 for big weights) and
        # accumulate in f32 on the MXU.
        y = jnp.dot(x.astype(w_ref.dtype), w_ref[...],
                    preferred_element_type=jnp.float32)
        if b_ref is not None:
            y = y + b_ref[...]
        if relu:
            y = jnp.maximum(y, 0.0)
        return y

    # ---- feature extraction: every branch emits a full (N, 256) slab whose
    # non-branch columns are exactly zero, so the torch concat == a sum.
    r_slab = dense(dense(rgb_ref[...], rgb_cw_ref, rgb_cb_ref, relu=True),
                   rgb_fw_ref, rgb_fb_ref, relu=True)                  # cols [0,32)
    d_slab = dense(dense(dep_ref[...], dep_cw_ref, dep_cb_ref, relu=True),
                   dep_fw_ref, dep_fb_ref, relu=True)                  # cols [32,64)
    g = dense(dense(spe_ref[...], spe_cw_ref, spe_cb_ref, relu=True),
              spe_fw_ref, spe_fb_ref, relu=True)                       # (N, 512)
    a_slab = dense(g, down_w_ref, down_b_ref)                          # cols [80,208)
    act_slab = dense(act_ref[...], act_w_ref, act_b_ref)               # cols [64,80)
    pose_slab = dense(pose_ref[...].astype(jnp.float32), pose_w_ref)   # cols [208,213)

    x = r_slab + d_slab + act_slab + a_slab + pose_slab                # (N, 256)
    xfeat_ref[...] = x

    # ---- MSMT state encoder stand-in: per-batch masked cross-attention over
    # the agent's own external memory slots, then a feed-forward block.
    q = dense(x, wq_ref, bq_ref)                 # (N, 128); 1/sqrt(d) pre-folded
    k = dense(memf_ref[...], wk_ref, bk_ref)     # (N*MEM, 128)
    v = dense(memf_ref[...], wv_ref, bv_ref)     # (N*MEM, 128)

    n = q.shape[0]
    d_model = q.shape[1]
    mem = k.shape[0] // n
    q3 = q.reshape(n, 1, d_model)
    k3 = k.reshape(n, mem, d_model)
    v3 = v.reshape(n, mem, d_model)

    s = jnp.einsum('nqd,nkd->nqk', q3, k3,
                   preferred_element_type=jnp.float32)                 # (N,1,MEM)
    mask3 = mmask_ref[...].reshape(n, 1, mem)
    # NOTE: if a row's memory mask is all-zero the softmax degenerates to a
    # uniform distribution over (masked) slots; this matches the previous
    # implementation's behavior and is kept intentionally.
    s = jnp.where(mask3 > 0.5, s, jnp.float32(-1e9))
    s = s - jnp.max(s, axis=-1, keepdims=True)
    e = jnp.exp(s)
    p = e * pl.reciprocal(jnp.sum(e, axis=-1, keepdims=True), approx=True)
    ctx = jnp.einsum('nqk,nkd->nqd', p, v3,
                     preferred_element_type=jnp.float32).reshape(n, d_model)

    h = dense(ctx, w1_ref, b1_ref, relu=True)
    xatt_ref[...] = dense(h, w2_ref, b2_ref).astype(xatt_ref.dtype)


# ----------------------------- parameters -----------------------------------
def _expand_conv_to_dense(w_conv, b_conv):
    """Fold a (OC,C,K,K) stride-2 valid conv on (C,IMG,IMG) images into an
    equivalent dense matrix (C*IMG*IMG, CONV_FLAT_PAD) whose output columns
    follow torch's NCHW flatten order (oc*OH*OW + oh*OW + ow); cols >= 392
    are zero padding."""
    oc_n, c_n, k, _ = w_conv.shape
    wd = np.zeros((c_n * IMG * IMG, CONV_FLAT_PAD), np.float32)
    for c in range(c_n):
        for i in range(k):
            for j in range(k):
                for oh in range(CONV_OUT):
                    for ow in range(CONV_OUT):
                        row = (c * IMG * IMG
                               + (oh * CONV_STRIDE + i) * IMG
                               + (ow * CONV_STRIDE + j))
                        cols = (np.arange(oc_n) * (CONV_OUT * CONV_OUT)
                                + oh * CONV_OUT + ow)
                        wd[row, cols] = w_conv[:, c, i, j]
    bd = np.zeros((1, CONV_FLAT_PAD), np.float32)
    bd[0, :CONV_FLAT] = np.repeat(b_conv, CONV_OUT * CONV_OUT)
    return wd, bd


def _pad_rows(w, rows):
    out = np.zeros((rows, w.shape[1]), np.float32)
    out[:w.shape[0]] = w
    return out


def _place_cols(w, b, start):
    """Embed a (fan_in, fan_out) weight / (fan_out,) bias into FEAT_PAD columns
    starting at `start` (zeros elsewhere) so the concat becomes an add."""
    fan_in, fan_out = w.shape
    wp = np.zeros((fan_in, FEAT_PAD), np.float32)
    wp[:, start:start + fan_out] = w
    bp = np.zeros((1, FEAT_PAD), np.float32)
    bp[0, start:start + fan_out] = b
    return wp, bp


def init_params(key):
    def dense_np(k, fan_in, fan_out):
        kw, kb = jax.random.split(k)
        scale = 1.0 / np.sqrt(fan_in)
        w = np.asarray(jax.random.normal(kw, (fan_in, fan_out), jnp.float32)) * scale
        b = np.asarray(jax.random.normal(kb, (fan_out,), jnp.float32)) * 0.01
        return w, b

    def conv_np(k, cin, cout, ksz):
        kw, kb = jax.random.split(k)
        scale = 1.0 / np.sqrt(cin * ksz * ksz)
        w = np.asarray(jax.random.normal(kw, (cout, cin, ksz, ksz), jnp.float32)) * scale
        b = np.asarray(jax.random.normal(kb, (cout,), jnp.float32)) * 0.01
        return w, b

    bf = lambda a: jnp.asarray(a, jnp.bfloat16)
    f32 = lambda a: jnp.asarray(a, jnp.float32)

    keys = jax.random.split(key, 13)
    p = {}

    # SMTCNN rgb branch
    wc, bc = conv_np(keys[0], 3, CONV_OC, CONV_K)
    wd, bd = _expand_conv_to_dense(wc, bc)
    p['rgb_cw'], p['rgb_cb'] = bf(wd), f32(bd)
    w, b = dense_np(keys[1], CONV_FLAT, VIS_FEAT_PER_BRANCH)
    wpl, bpl = _place_cols(_pad_rows(w, CONV_FLAT_PAD), b, RGB_OFF)
    p['rgb_fw'], p['rgb_fb'] = bf(wpl), f32(bpl)

    # SMTCNN depth branch
    wc, bc = conv_np(keys[2], 1, CONV_OC, CONV_K)
    wd, bd = _expand_conv_to_dense(wc, bc)
    p['dep_cw'], p['dep_cb'] = bf(wd), f32(bd)
    w, b = dense_np(keys[3], CONV_FLAT, VIS_FEAT_PER_BRANCH)
    wpl, bpl = _place_cols(_pad_rows(w, CONV_FLAT_PAD), b, DEPTH_OFF)
    p['dep_fw'], p['dep_fb'] = bf(wpl), f32(bpl)

    # AudioCRNN (goal_encoder) stand-in -> 512
    # TODO(synk): AudioCRNN's GRU over conv feature columns omitted (source not given).
    wc, bc = conv_np(keys[4], 2, CONV_OC, CONV_K)
    wd, bd = _expand_conv_to_dense(wc, bc)
    p['spe_cw'], p['spe_cb'] = bf(wd), f32(bd)
    w, b = dense_np(keys[5], CONV_FLAT, GOAL_FEAT)
    p['spe_fw'], p['spe_fb'] = bf(_pad_rows(w, CONV_FLAT_PAD)), f32(b.reshape(1, -1))

    # downsample 512 -> 128, placed at AUDIO_OFF
    w, b = dense_np(keys[6], GOAL_FEAT, AUDIO_FEAT)
    wpl, bpl = _place_cols(w, b, AUDIO_OFF)
    p['down_w'], p['down_b'] = bf(wpl), f32(bpl)

    # action encoder action_size -> 16, placed at ACT_OFF (tiny; kept f32)
    w, b = dense_np(keys[7], ACTION_SIZE, ACTION_ENC)
    wpl, bpl = _place_cols(w, b, ACT_OFF)
    p['act_w'], p['act_b'] = f32(wpl), f32(bpl)

    # pose passthrough placement at POSE_OFF (identity, no bias)
    pw = np.zeros((POSE_DIMS, FEAT_PAD), np.float32)
    pw[:, POSE_OFF:POSE_OFF + POSE_DIMS] = np.eye(POSE_DIMS, dtype=np.float32)
    p['pose_w'] = f32(pw)

    # MSMT state encoder stand-in (attention + FFN), feature axis padded to 256.
    # TODO(synk): exact multi-layer MSMTStateEncoder (pose_indices re-encoding,
    # goal conditioning) not reproducible without its source.
    w, b = dense_np(keys[8], NFEATS, HIDDEN_SIZE)
    scale = 1.0 / np.sqrt(np.float32(HIDDEN_SIZE))      # fold 1/sqrt(d) into W_q
    p['attn_wq'] = bf(_pad_rows(w * scale, FEAT_PAD))
    p['attn_bq'] = f32((b * scale).reshape(1, -1))
    w, b = dense_np(keys[9], NFEATS, HIDDEN_SIZE)
    p['attn_wk'], p['attn_bk'] = bf(_pad_rows(w, FEAT_PAD)), f32(b.reshape(1, -1))
    w, b = dense_np(keys[10], NFEATS, HIDDEN_SIZE)
    p['attn_wv'], p['attn_bv'] = bf(_pad_rows(w, FEAT_PAD)), f32(b.reshape(1, -1))
    w, b = dense_np(keys[11], HIDDEN_SIZE, HIDDEN_SIZE)
    p['ffn_w1'], p['ffn_b1'] = bf(w), f32(b.reshape(1, -1))
    w, b = dense_np(keys[12], HIDDEN_SIZE, HIDDEN_SIZE)
    p['ffn_w2'], p['ffn_b2'] = bf(w), f32(b.reshape(1, -1))
    return p


# ----------------------------- forward ---------------------------------------
def _get_one_hot(prev_actions):
    if prev_actions.shape[1] == ACTION_SIZE:
        return prev_actions.astype(jnp.float32)
    return jax.nn.one_hot(prev_actions[:, 0].astype(jnp.int32), ACTION_SIZE,
                          dtype=jnp.float32)


def audio_nav_msmt_forward(params, observations, rnn_hidden_states, prev_actions,
                           masks, ext_memory, ext_memory_masks):
    del masks  # unused in the torch forward
    n = prev_actions.shape[0]
    mem = ext_memory.shape[1]

    # NCHW flatten (== torch .view(N, -1)); pure row-major reshape, no transpose.
    rgb_f = observations['rgb'].reshape(n, -1).astype(jnp.float32)
    dep_f = observations['depth'].reshape(n, -1).astype(jnp.float32)
    spe_f = observations['spectrogram'].reshape(n, -1).astype(jnp.float32)
    act = _get_one_hot(prev_actions)
    pose = observations['pose'].astype(jnp.float32)
    memf = jnp.pad(ext_memory.astype(jnp.float32),
                   ((0, 0), (0, 0), (0, FEAT_PAD - NFEATS))).reshape(n * mem, FEAT_PAD)
    mmask = ext_memory_masks.astype(jnp.float32)

    args = (rgb_f, dep_f, spe_f, act, pose, memf, mmask,
            params['rgb_cw'], params['rgb_cb'], params['rgb_fw'], params['rgb_fb'],
            params['dep_cw'], params['dep_cb'], params['dep_fw'], params['dep_fb'],
            params['spe_cw'], params['spe_cb'], params['spe_fw'], params['spe_fb'],
            params['down_w'], params['down_b'], params['act_w'], params['act_b'],
            params['pose_w'],
            params['attn_wq'], params['attn_bq'], params['attn_wk'], params['attn_bk'],
            params['attn_wv'], params['attn_bv'],
            params['ffn_w1'], params['ffn_b1'], params['ffn_w2'], params['ffn_b2'])

    vmem = pl.BlockSpec(memory_space=pltpu.MemorySpace.VMEM)
    # Single fused, VMEM-resident call; no grid needed (total weights ~3 MiB).
    # TODO(synk): at production batch sizes add a batch grid axis with
    # dimension_semantics=("parallel",) to engage the second TensorCore on v7x.
    x_att, x_pad = pl.pallas_call(
        _fused_forward_kernel,
        out_shape=(jax.ShapeDtypeStruct((n, HIDDEN_SIZE), jnp.float32),
                   jax.ShapeDtypeStruct((n, FEAT_PAD), jnp.float32)),
        in_specs=[vmem] * len(args),
        out_specs=(vmem, vmem),
    )(*args)

    x = x_pad[:, :NFEATS]                 # drop lane padding -> (N, 213)
    # use_belief_as_goal=False -> belief=None; use_residual_connection=False.
    return x_att, rnn_hidden_states, x


# ----------------------------- main ------------------------------------------
if __name__ == "__main__":
    key = jax.random.PRNGKey(0)
    kp, kr, kd, ks, kpos, ka, km = jax.random.split(key, 7)

    params = init_params(kp)

    N, MEM = 2, 8
    observations = {
        'rgb': jax.random.normal(kr, (N, 3, IMG, IMG), jnp.float32),
        'depth': jax.random.normal(kd, (N, 1, IMG, IMG), jnp.float32),
        'spectrogram': jax.random.normal(ks, (N, 2, IMG, IMG), jnp.float32),
        'pose': jax.random.normal(kpos, (N, POSE_DIMS), jnp.float32),
    }
    prev_actions = jax.nn.one_hot(
        jax.random.randint(ka, (N,), 0, ACTION_SIZE), ACTION_SIZE, dtype=jnp.float32)
    rnn_hidden_states = jnp.zeros((1, N, HIDDEN_SIZE), jnp.float32)
    masks = jnp.ones((N, 1), jnp.float32)
    ext_memory = jax.random.normal(km, (N, MEM, NFEATS), jnp.float32)
    ext_memory_masks = jnp.ones((N, MEM), jnp.float32).at[:, -2:].set(0.0)

    fwd = jax.jit(audio_nav_msmt_forward)
    x_att, rnn_out, x_feat = fwd(params, observations, rnn_hidden_states,
                                 prev_actions, masks, ext_memory, ext_memory_masks)
    jax.block_until_ready((x_att, rnn_out, x_feat))

    assert x_att.shape == (N, HIDDEN_SIZE)
    assert x_feat.shape == (N, NFEATS)
    assert rnn_out.shape == rnn_hidden_states.shape
    assert bool(jnp.isfinite(x_att).all()) and bool(jnp.isfinite(x_feat).all())
    print("KERNEL_OK")
</pallas_src>

<mosaic_0001>
module attributes {stable_mosaic.version = 11 : i64} {
  func.func @_fused_forward_kernel(%arg0: memref<2x768xf32, #tpu.memory_space<vmem>>, %arg1: memref<2x256xf32, #tpu.memory_space<vmem>>, %arg2: memref<2x512xf32, #tpu.memory_space<vmem>>, %arg3: memref<2x4xf32, #tpu.memory_space<vmem>>, %arg4: memref<2x5xf32, #tpu.memory_space<vmem>>, %arg5: memref<16x256xf32, #tpu.memory_space<vmem>>, %arg6: memref<2x8xf32, #tpu.memory_space<vmem>>, %arg7: memref<768x512xbf16, #tpu.memory_space<vmem>>, %arg8: memref<1x512xf32, #tpu.memory_space<vmem>>, %arg9: memref<512x256xbf16, #tpu.memory_space<vmem>>, %arg10: memref<1x256xf32, #tpu.memory_space<vmem>>, %arg11: memref<256x512xbf16, #tpu.memory_space<vmem>>, %arg12: memref<1x512xf32, #tpu.memory_space<vmem>>, %arg13: memref<512x256xbf16, #tpu.memory_space<vmem>>, %arg14: memref<1x256xf32, #tpu.memory_space<vmem>>, %arg15: memref<512x512xbf16, #tpu.memory_space<vmem>>, %arg16: memref<1x512xf32, #tpu.memory_space<vmem>>, %arg17: memref<512x512xbf16, #tpu.memory_space<vmem>>, %arg18: memref<1x512xf32, #tpu.memory_space<vmem>>, %arg19: memref<512x256xbf16, #tpu.memory_space<vmem>>, %arg20: memref<1x256xf32, #tpu.memory_space<vmem>>, %arg21: memref<4x256xf32, #tpu.memory_space<vmem>>, %arg22: memref<1x256xf32, #tpu.memory_space<vmem>>, %arg23: memref<5x256xf32, #tpu.memory_space<vmem>>, %arg24: memref<256x128xbf16, #tpu.memory_space<vmem>>, %arg25: memref<1x128xf32, #tpu.memory_space<vmem>>, %arg26: memref<256x128xbf16, #tpu.memory_space<vmem>>, %arg27: memref<1x128xf32, #tpu.memory_space<vmem>>, %arg28: memref<256x128xbf16, #tpu.memory_space<vmem>>, %arg29: memref<1x128xf32, #tpu.memory_space<vmem>>, %arg30: memref<128x128xbf16, #tpu.memory_space<vmem>>, %arg31: memref<1x128xf32, #tpu.memory_space<vmem>>, %arg32: memref<128x128xbf16, #tpu.memory_space<vmem>>, %arg33: memref<1x128xf32, #tpu.memory_space<vmem>>, %arg34: memref<2x128xf32, #tpu.memory_space<vmem>>, %arg35: memref<2x256xf32, #tpu.memory_space<vmem>>) attributes {dimension_semantics = [], scalar_prefetch = 0 : i64, scratch_operands = 0 : i64, tpu.core_type = #tpu.core_type<tc>} {
    %c0 = arith.constant 0 : index
    %c0_0 = arith.constant 0 : index
    %0 = vector.load %arg0[%c0, %c0_0] : memref<2x768xf32, #tpu.memory_space<vmem>>, vector<2x768xf32>
    %1 = arith.truncf %0 : vector<2x768xf32> to vector<2x768xbf16>
    %c0_1 = arith.constant 0 : index
    %c0_2 = arith.constant 0 : index
    %2 = vector.load %arg7[%c0_1, %c0_2] : memref<768x512xbf16, #tpu.memory_space<vmem>>, vector<768x512xbf16>
    %cst = arith.constant dense<0.000000e+00> : vector<2x512xf32>
    %3 = tpu.matmul %1, %2, %cst {dimension_numbers = #tpu.dot_dimension_numbers<[1], [0], [0], [1], [0, 0, 1, 1], [], []>} : vector<2x768xbf16>, vector<768x512xbf16>, vector<2x512xf32> -> vector<2x512xf32>
    %c0_3 = arith.constant 0 : index
    %c0_4 = arith.constant 0 : index
    %4 = vector.load %arg8[%c0_3, %c0_4] : memref<1x512xf32, #tpu.memory_space<vmem>>, vector<1x512xf32>
    %5 = vector.broadcast %4 : vector<1x512xf32> to vector<2x512xf32>
    %6 = arith.addf %3, %5 : vector<2x512xf32>
    %cst_5 = arith.constant 0.000000e+00 : f32
    %7 = vector.broadcast %cst_5 : f32 to vector<2x512xf32>
    %8 = arith.maximumf %6, %7 : vector<2x512xf32>
    %9 = arith.truncf %8 : vector<2x512xf32> to vector<2x512xbf16>
    %c0_6 = arith.constant 0 : index
    %c0_7 = arith.constant 0 : index
    %10 = vector.load %arg9[%c0_6, %c0_7] : memref<512x256xbf16, #tpu.memory_space<vmem>>, vector<512x256xbf16>
    %cst_8 = arith.constant dense<0.000000e+00> : vector<2x256xf32>
    %11 = tpu.matmul %9, %10, %cst_8 {dimension_numbers = #tpu.dot_dimension_numbers<[1], [0], [0], [1], [0, 0, 1, 1], [], []>} : vector<2x512xbf16>, vector<512x256xbf16>, vector<2x256xf32> -> vector<2x256xf32>
    %c0_9 = arith.constant 0 : index
    %c0_10 = arith.constant 0 : index
    %12 = vector.load %arg10[%c0_9, %c0_10] : memref<1x256xf32, #tpu.memory_space<vmem>>, vector<1x256xf32>
    %13 = vector.broadcast %12 : vector<1x256xf32> to vector<2x256xf32>
    %14 = arith.addf %11, %13 : vector<2x256xf32>
    %cst_11 = arith.constant 0.000000e+00 : f32
    %15 = vector.broadcast %cst_11 : f32 to vector<2x256xf32>
    %16 = arith.maximumf %14, %15 : vector<2x256xf32>
    %c0_12 = arith.constant 0 : index
    %c0_13 = arith.constant 0 : index
    %17 = vector.load %arg1[%c0_12, %c0_13] : memref<2x256xf32, #tpu.memory_space<vmem>>, vector<2x256xf32>
    %18 = arith.truncf %17 : vector<2x256xf32> to vector<2x256xbf16>
    %c0_14 = arith.constant 0 : index
    %c0_15 = arith.constant 0 : index
    %19 = vector.load %arg11[%c0_14, %c0_15] : memref<256x512xbf16, #tpu.memory_space<vmem>>, vector<256x512xbf16>
    %cst_16 = arith.constant dense<0.000000e+00> : vector<2x512xf32>
    %20 = tpu.matmul %18, %19, %cst_16 {dimension_numbers = #tpu.dot_dimension_numbers<[1], [0], [0], [1], [0, 0, 1, 1], [], []>} : vector<2x256xbf16>, vector<256x512xbf16>, vector<2x512xf32> -> vector<2x512xf32>
    %c0_17 = arith.constant 0 : index
    %c0_18 = arith.constant 0 : index
    %21 = vector.load %arg12[%c0_17, %c0_18] : memref<1x512xf32, #tpu.memory_space<vmem>>, vector<1x512xf32>
    %22 = vector.broadcast %21 : vector<1x512xf32> to vector<2x512xf32>
    %23 = arith.addf %20, %22 : vector<2x512xf32>
    %cst_19 = arith.constant 0.000000e+00 : f32
    %24 = vector.broadcast %cst_19 : f32 to vector<2x512xf32>
    %25 = arith.maximumf %23, %24 : vector<2x512xf32>
    %26 = arith.truncf %25 : vector<2x512xf32> to vector<2x512xbf16>
    %c0_20 = arith.constant 0 : index
    %c0_21 = arith.constant 0 : index
    %27 = vector.load %arg13[%c0_20, %c0_21] : memref<512x256xbf16, #tpu.memory_space<vmem>>, vector<512x256xbf16>
    %cst_22 = arith.constant dense<0.000000e+00> : vector<2x256xf32>
    %28 = tpu.matmul %26, %27, %cst_22 {dimension_numbers = #tpu.dot_dimension_numbers<[1], [0], [0], [1], [0, 0, 1, 1], [], []>} : vector<2x512xbf16>, vector<512x256xbf16>, vector<2x256xf32> -> vector<2x256xf32>
    %c0_23 = arith.constant 0 : index
    %c0_24 = arith.constant 0 : index
    %29 = vector.load %arg14[%c0_23, %c0_24] : memref<1x256xf32, #tpu.memory_space<vmem>>, vector<1x256xf32>
    %30 = vector.broadcast %29 : vector<1x256xf32> to vector<2x256xf32>
    %31 = arith.addf %28, %30 : vector<2x256xf32>
    %cst_25 = arith.constant 0.000000e+00 : f32
    %32 = vector.broadcast %cst_25 : f32 to vector<2x256xf32>
    %33 = arith.maximumf %31, %32 : vector<2x256xf32>
    %c0_26 = arith.constant 0 : index
    %c0_27 = arith.constant 0 : index
    %34 = vector.load %arg2[%c0_26, %c0_27] : memref<2x512xf32, #tpu.memory_space<vmem>>, vector<2x512xf32>
    %35 = arith.truncf %34 : vector<2x512xf32> to vector<2x512xbf16>
    %c0_28 = arith.constant 0 : index
    %c0_29 = arith.constant 0 : index
    %36 = vector.load %arg15[%c0_28, %c0_29] : memref<512x512xbf16, #tpu.memory_space<vmem>>, vector<512x512xbf16>
    %cst_30 = arith.constant dense<0.000000e+00> : vector<2x512xf32>
    %37 = tpu.matmul %35, %36, %cst_30 {dimension_numbers = #tpu.dot_dimension_numbers<[1], [0], [0], [1], [0, 0, 1, 1], [], []>} : vector<2x512xbf16>, vector<512x512xbf16>, vector<2x512xf32> -> vector<2x512xf32>
    %c0_31 = arith.constant 0 : index
    %c0_32 = arith.constant 0 : index
    %38 = vector.load %arg16[%c0_31, %c0_32] : memref<1x512xf32, #tpu.memory_space<vmem>>, vector<1x512xf32>
    %39 = vector.broadcast %38 : vector<1x512xf32> to vector<2x512xf32>
    %40 = arith.addf %37, %39 : vector<2x512xf32>
    %cst_33 = arith.constant 0.000000e+00 : f32
    %41 = vector.broadcast %cst_33 : f32 to vector<2x512xf32>
    %42 = arith.maximumf %40, %41 : vector<2x512xf32>
    %43 = arith.truncf %42 : vector<2x512xf32> to vector<2x512xbf16>
    %c0_34 = arith.constant 0 : index
    %c0_35 = arith.constant 0 : index
    %44 = vector.load %arg17[%c0_34, %c0_35] : memref<512x512xbf16, #tpu.memory_space<vmem>>, vector<512x512xbf16>
    %cst_36 = arith.constant dense<0.000000e+00> : vector<2x512xf32>
    %45 = tpu.matmul %43, %44, %cst_36 {dimension_numbers = #tpu.dot_dimension_numbers<[1], [0], [0], [1], [0, 0, 1, 1], [], []>} : vector<2x512xbf16>, vector<512x512xbf16>, vector<2x512xf32> -> vector<2x512xf32>
    %c0_37 = arith.constant 0 : index
    %c0_38 = arith.constant 0 : index
    %46 = vector.load %arg18[%c0_37, %c0_38] : memref<1x512xf32, #tpu.memory_space<vmem>>, vector<1x512xf32>
    %47 = vector.broadcast %46 : vector<1x512xf32> to vector<2x512xf32>
    %48 = arith.addf %45, %47 : vector<2x512xf32>
    %cst_39 = arith.constant 0.000000e+00 : f32
    %49 = vector.broadcast %cst_39 : f32 to vector<2x512xf32>
    %50 = arith.maximumf %48, %49 : vector<2x512xf32>
    %51 = arith.truncf %50 : vector<2x512xf32> to vector<2x512xbf16>
    %c0_40 = arith.constant 0 : index
    %c0_41 = arith.constant 0 : index
    %52 = vector.load %arg19[%c0_40, %c0_41] : memref<512x256xbf16, #tpu.memory_space<vmem>>, vector<512x256xbf16>
    %cst_42 = arith.constant dense<0.000000e+00> : vector<2x256xf32>
    %53 = tpu.matmul %51, %52, %cst_42 {dimension_numbers = #tpu.dot_dimension_numbers<[1], [0], [0], [1], [0, 0, 1, 1], [], []>} : vector<2x512xbf16>, vector<512x256xbf16>, vector<2x256xf32> -> vector<2x256xf32>
    %c0_43 = arith.constant 0 : index
    %c0_44 = arith.constant 0 : index
    %54 = vector.load %arg20[%c0_43, %c0_44] : memref<1x256xf32, #tpu.memory_space<vmem>>, vector<1x256xf32>
    %55 = vector.broadcast %54 : vector<1x256xf32> to vector<2x256xf32>
    %56 = arith.addf %53, %55 : vector<2x256xf32>
    %c0_45 = arith.constant 0 : index
    %c0_46 = arith.constant 0 : index
    %57 = vector.load %arg3[%c0_45, %c0_46] : memref<2x4xf32, #tpu.memory_space<vmem>>, vector<2x4xf32>
    %c0_47 = arith.constant 0 : index
    %c0_48 = arith.constant 0 : index
    %58 = vector.load %arg21[%c0_47, %c0_48] : memref<4x256xf32, #tpu.memory_space<vmem>>, vector<4x256xf32>
    %cst_49 = arith.constant dense<0.000000e+00> : vector<2x256xf32>
    %59 = tpu.matmul %57, %58, %cst_49 {dimension_numbers = #tpu.dot_dimension_numbers<[1], [0], [0], [1], [0, 0, 1, 1], [], []>} : vector<2x4xf32>, vector<4x256xf32>, vector<2x256xf32> -> vector<2x256xf32>
    %c0_50 = arith.constant 0 : index
    %c0_51 = arith.constant 0 : index
    %60 = vector.load %arg22[%c0_50, %c0_51] : memref<1x256xf32, #tpu.memory_space<vmem>>, vector<1x256xf32>
    %61 = vector.broadcast %60 : vector<1x256xf32> to vector<2x256xf32>
    %62 = arith.addf %59, %61 : vector<2x256xf32>
    %c0_52 = arith.constant 0 : index
    %c0_53 = arith.constant 0 : index
    %63 = vector.load %arg4[%c0_52, %c0_53] : memref<2x5xf32, #tpu.memory_space<vmem>>, vector<2x5xf32>
    %c0_54 = arith.constant 0 : index
    %c0_55 = arith.constant 0 : index
    %64 = vector.load %arg23[%c0_54, %c0_55] : memref<5x256xf32, #tpu.memory_space<vmem>>, vector<5x256xf32>
    %cst_56 = arith.constant dense<0.000000e+00> : vector<2x256xf32>
    %65 = tpu.matmul %63, %64, %cst_56 {dimension_numbers = #tpu.dot_dimension_numbers<[1], [0], [0], [1], [0, 0, 1, 1], [], []>} : vector<2x5xf32>, vector<5x256xf32>, vector<2x256xf32> -> vector<2x256xf32>
    %66 = arith.addf %16, %33 : vector<2x256xf32>
    %67 = arith.addf %66, %62 : vector<2x256xf32>
    %68 = arith.addf %67, %56 : vector<2x256xf32>
    %69 = arith.addf %68, %65 : vector<2x256xf32>
    %c0_57 = arith.constant 0 : index
    %c0_58 = arith.constant 0 : index
    %70 = vector.load %arg35[%c0_57, %c0_58] : memref<2x256xf32, #tpu.memory_space<vmem>>, vector<2x256xf32>
    tpu.vector_store %arg35[%c0_57, %c0_58], %69 {strides = array<i32>} : memref<2x256xf32, #tpu.memory_space<vmem>>, vector<2x256xf32>,
    %71 = arith.truncf %69 : vector<2x256xf32> to vector<2x256xbf16>
    %c0_59 = arith.constant 0 : index
    %c0_60 = arith.constant 0 : index
    %72 = vector.load %arg24[%c0_59, %c0_60] : memref<256x128xbf16, #tpu.memory_space<vmem>>, vector<256x128xbf16>
    %cst_61 = arith.constant dense<0.000000e+00> : vector<2x128xf32>
    %73 = tpu.matmul %71, %72, %cst_61 {dimension_numbers = #tpu.dot_dimension_numbers<[1], [0], [0], [1], [0, 0, 1, 1], [], []>} : vector<2x256xbf16>, vector<256x128xbf16>, vector<2x128xf32> -> vector<2x128xf32>
    %c0_62 = arith.constant 0 : index
    %c0_63 = arith.constant 0 : index
    %74 = vector.load %arg25[%c0_62, %c0_63] : memref<1x128xf32, #tpu.memory_space<vmem>>, vector<1x128xf32>
    %75 = vector.broadcast %74 : vector<1x128xf32> to vector<2x128xf32>
    %76 = arith.addf %73, %75 : vector<2x128xf32>
    %c0_64 = arith.constant 0 : index
    %c0_65 = arith.constant 0 : index
    %77 = vector.load %arg5[%c0_64, %c0_65] : memref<16x256xf32, #tpu.memory_space<vmem>>, vector<16x256xf32>
    %78 = arith.truncf %77 : vector<16x256xf32> to vector<16x256xbf16>
    %c0_66 = arith.constant 0 : index
    %c0_67 = arith.constant 0 : index
    %79 = vector.load %arg26[%c0_66, %c0_67] : memref<256x128xbf16, #tpu.memory_space<vmem>>, vector<256x128xbf16>
    %cst_68 = arith.constant dense<0.000000e+00> : vector<16x128xf32>
    %80 = tpu.matmul %78, %79, %cst_68 {dimension_numbers = #tpu.dot_dimension_numbers<[1], [0], [0], [1], [0, 0, 1, 1], [], []>} : vector<16x256xbf16>, vector<256x128xbf16>, vector<16x128xf32> -> vector<16x128xf32>
    %c0_69 = arith.constant 0 : index
    %c0_70 = arith.constant 0 : index
    %81 = vector.load %arg27[%c0_69, %c0_70] : memref<1x128xf32, #tpu.memory_space<vmem>>, vector<1x128xf32>
    %82 = vector.broadcast %81 : vector<1x128xf32> to vector<16x128xf32>
    %83 = arith.addf %80, %82 : vector<16x128xf32>
    %c0_71 = arith.constant 0 : index
    %c0_72 = arith.constant 0 : index
    %84 = vector.load %arg5[%c0_71, %c0_72] : memref<16x256xf32, #tpu.memory_space<vmem>>, vector<16x256xf32>
    %85 = arith.truncf %84 : vector<16x256xf32> to vector<16x256xbf16>
    %c0_73 = arith.constant 0 : index
    %c0_74 = arith.constant 0 : index
    %86 = vector.load %arg28[%c0_73, %c0_74] : memref<256x128xbf16, #tpu.memory_space<vmem>>, vector<256x128xbf16>
    %cst_75 = arith.constant dense<0.000000e+00> : vector<16x128xf32>
    %87 = tpu.matmul %85, %86, %cst_75 {dimension_numbers = #tpu.dot_dimension_numbers<[1], [0], [0], [1], [0, 0, 1, 1], [], []>} : vector<16x256xbf16>, vector<256x128xbf16>, vector<16x128xf32> -> vector<16x128xf32>
    %c0_76 = arith.constant 0 : index
    %c0_77 = arith.constant 0 : index
    %88 = vector.load %arg29[%c0_76, %c0_77] : memref<1x128xf32, #tpu.memory_space<vmem>>, vector<1x128xf32>
    %89 = vector.broadcast %88 : vector<1x128xf32> to vector<16x128xf32>
    %90 = arith.addf %87, %89 : vector<16x128xf32>
    %91 = vector.shape_cast %76 : vector<2x128xf32> to vector<2x1x128xf32>
    %92 = vector.shape_cast %83 : vector<16x128xf32> to vector<2x8x128xf32>
    %93 = vector.shape_cast %90 : vector<16x128xf32> to vector<2x8x128xf32>
    "tpu.trace_start"() <{level = 10 : i32, message = "nqd,nkd->nqk"}> : () -> ()
    %cst_78 = arith.constant dense<0.000000e+00> : vector<2x1x8xf32>
    %94 = tpu.matmul %91, %92, %cst_78 {dimension_numbers = #tpu.dot_dimension_numbers<[2], [2], [1], [1], [0, 0, 0, 1, 1, 1], [0], [0]>} : vector<2x1x128xf32>, vector<2x8x128xf32>, vector<2x1x8xf32> -> vector<2x1x8xf32>
    "tpu.trace_stop"() : () -> ()
    %c0_79 = arith.constant 0 : index
    %c0_80 = arith.constant 0 : index
    %95 = vector.load %arg6[%c0_79, %c0_80] : memref<2x8xf32, #tpu.memory_space<vmem>>, vector<2x8xf32>
    %96 = vector.shape_cast %95 : vector<2x8xf32> to vector<2x1x8xf32>
    %cst_81 = arith.constant 5.000000e-01 : f32
    %97 = vector.broadcast %cst_81 : f32 to vector<2x1x8xf32>
    %98 = arith.cmpf ogt, %96, %97 : vector<2x1x8xf32>
    %cst_82 = arith.constant -1.000000e+09 : f32
    %99 = vector.broadcast %cst_82 : f32 to vector<2x1x8xf32>
    %100 = arith.select %98, %94, %99 : vector<2x1x8xi1>, vector<2x1x8xf32>
    %cst_83 = arith.constant dense<0xFF800000> : vector<2x1xf32>
    %101 = vector.multi_reduction <maximumf>, %100, %cst_83 [2] : vector<2x1x8xf32> to vector<2x1xf32>
    %102 = vector.shape_cast %101 : vector<2x1xf32> to vector<2x1x1xf32>
    %103 = vector.broadcast %102 : vector<2x1x1xf32> to vector<2x1x8xf32>
    %104 = arith.subf %100, %103 : vector<2x1x8xf32>
    %105 = math.exp %104 : vector<2x1x8xf32>
    %cst_84 = arith.constant dense<0.000000e+00> : vector<2x1xf32>
    %106 = vector.multi_reduction <add>, %105, %cst_84 [2] : vector<2x1x8xf32> to vector<2x1xf32>
    %107 = vector.shape_cast %106 : vector<2x1xf32> to vector<2x1x1xf32>
    %108 = tpu.reciprocal %107 {approx = true} : vector<2x1x1xf32> -> vector<2x1x1xf32>
    %109 = vector.broadcast %108 : vector<2x1x1xf32> to vector<2x1x8xf32>
    %110 = arith.mulf %105, %109 : vector<2x1x8xf32>
    "tpu.trace_start"() <{level = 10 : i32, message = "nqk,nkd->nqd"}> : () -> ()
    %cst_85 = arith.constant dense<0.000000e+00> : vector<2x1x128xf32>
    %111 = tpu.matmul %110, %93, %cst_85 {dimension_numbers = #tpu.dot_dimension_numbers<[2], [1], [1], [2], [0, 0, 0, 1, 1, 2], [0], [0]>} : vector<2x1x8xf32>, vector<2x8x128xf32>, vector<2x1x128xf32> -> vector<2x1x128xf32>
    "tpu.trace_stop"() : () -> ()
    %112 = vector.shape_cast %111 : vector<2x1x128xf32> to vector<2x128xf32>
    %113 = arith.truncf %112 : vector<2x128xf32> to vector<2x128xbf16>
    %c0_86 = arith.constant 0 : index
    %c0_87 = arith.constant 0 : index
    %114 = vector.load %arg30[%c0_86, %c0_87] : memref<128x128xbf16, #tpu.memory_space<vmem>>, vector<128x128xbf16>
    %cst_88 = arith.constant dense<0.000000e+00> : vector<2x128xf32>
    %115 = tpu.matmul %113, %114, %cst_88 {dimension_numbers = #tpu.dot_dimension_numbers<[1], [0], [0], [1], [0, 0, 1, 1], [], []>} : vector<2x128xbf16>, vector<128x128xbf16>, vector<2x128xf32> -> vector<2x128xf32>
    %c0_89 = arith.constant 0 : index
    %c0_90 = arith.constant 0 : index
    %116 = vector.load %arg31[%c0_89, %c0_90] : memref<1x128xf32, #tpu.memory_space<vmem>>, vector<1x128xf32>
    %117 = vector.broadcast %116 : vector<1x128xf32> to vector<2x128xf32>
    %118 = arith.addf %115, %117 : vector<2x128xf32>
    %cst_91 = arith.constant 0.000000e+00 : f32
    %119 = vector.broadcast %cst_91 : f32 to vector<2x128xf32>
    %120 = arith.maximumf %118, %119 : vector<2x128xf32>
    %121 = arith.truncf %120 : vector<2x128xf32> to vector<2x128xbf16>
    %c0_92 = arith.constant 0 : index
    %c0_93 = arith.constant 0 : index
    %122 = vector.load %arg32[%c0_92, %c0_93] : memref<128x128xbf16, #tpu.memory_space<vmem>>, vector<128x128xbf16>
    %cst_94 = arith.constant dense<0.000000e+00> : vector<2x128xf32>
    %123 = tpu.matmul %121, %122, %cst_94 {dimension_numbers = #tpu.dot_dimension_numbers<[1], [0], [0], [1], [0, 0, 1, 1], [], []>} : vector<2x128xbf16>, vector<128x128xbf16>, vector<2x128xf32> -> vector<2x128xf32>
    %c0_95 = arith.constant 0 : index
    %c0_96 = arith.constant 0 : index
    %124 = vector.load %arg33[%c0_95, %c0_96] : memref<1x128xf32, #tpu.memory_space<vmem>>, vector<1x128xf32>
    %125 = vector.broadcast %124 : vector<1x128xf32> to vector<2x128xf32>
    %126 = arith.addf %123, %125 : vector<2x128xf32>
    %c0_97 = arith.constant 0 : index
    %c0_98 = arith.constant 0 : index
    %127 = vector.load %arg34[%c0_97, %c0_98] : memref<2x128xf32, #tpu.memory_space<vmem>>, vector<2x128xf32>
    tpu.vector_store %arg34[%c0_97, %c0_98], %126 {strides = array<i32>} : memref<2x128xf32, #tpu.memory_space<vmem>>, vector<2x128xf32>,
    return
  }
}

</mosaic_0001>

<bundles_post_ra>
// kernel: audio_nav_msmt_forward.1
= control target key start
LH: loop header
LB: loop body
LE: loop exit
PB: predicated region body
PF: predicated region fallthrough
CT: control target
= control target key end

     0   :  { %s11138_s6 = smov 1   ;;  %s11139_s10 = smov 2   ;;  %s11815_s0 = inlined_call_operand.smem [shape: u32[36], index: -1, kind: input, shape index: {}] }
   0x1   :  { %s11202_s5 = sld [smem:[%s11815_s0]]   ;;  %s11140_s14 = smov 3  }
   0x2   :  { %s11207_s9 = sld [smem:[%s11815_s0 + %s11138_s6]]   ;;  %s11141_s18 = smov 4  }
   0x3   :  { %s11212_s13 = sld [smem:[%s11815_s0 + %s11139_s10]]   ;;  %s11142_s22 = smov 5  }
   0x4   :  { %s11217_s17 = sld [smem:[%s11815_s0 + %s11140_s14]]   ;;  %s11143_s26 = smov 6  }
   0x5   :  { %s11222_s21 = sld [smem:[%s11815_s0 + %s11141_s18]]   ;;  %s11144_s30 = smov 7  }
   0x6   :  { %s11227_s25 = sld [smem:[%s11815_s0 + %s11142_s22]]   ;;  %s11145_s4 = smov 8  }
   0x7   :  { %s11232_s29 = sld [smem:[%s11815_s0 + %s11143_s26]]   ;;  %s11146_s10 = smov 9  }
   0x8   :  { %s11237_s3 = sld [smem:[%s11815_s0 + %s11144_s30]]   ;;  %s11147_s15 = smov 10  }
   0x9   :  { %11819 = sst [smem:[#allocation35_spill]] %s11212_s13  ;;  %s11148_s20 = smov 11  }
   0xa   :  { %11820 = sst [smem:[#allocation36_spill]] %s11217_s17  ;;  %s11149_s26 = smov 12  }
   0xb   :  { %11821 = sst [smem:[#allocation37_spill]] %s11222_s21  ;;  %s11150_s1 = smov 13  }
   0xc   :  { %11822 = sst [smem:[#allocation38_spill]] %s11227_s25  ;;  %s11151_s7 = smov 14  }
   0xd   :  { %11823 = sst [smem:[#allocation39_spill]] %s11232_s29  ;;  %s11153_s22 = smov 16  }
   0xe   :  { %s11242_s8 = sld [smem:[%s11815_s0 + %s11145_s4]]   ;;  %s11154_s28 = smov 17  }
   0xf   :  { %s11247_s14 = sld [smem:[%s11815_s0 + %s11146_s10]]  }
  0x10   :  { %s11252_s19 = sld [smem:[%s11815_s0 + %s11147_s15]]   ;;  %s11152_s15 = smov 15  }
  0x11   :  { %s11257_s24 = sld [smem:[%s11815_s0 + %s11148_s20]]  }
  0x12   :  { %s11262_s30 = sld [smem:[%s11815_s0 + %s11149_s26]]  }
  0x13   :  { %s11267_s6 = sld [smem:[%s11815_s0 + %s11150_s1]]  }
  0x14   :  { %11824 = sst [smem:[#allocation40_spill]] %s11242_s8 }
  0x15   :  { %s11272_s12 = sld [smem:[%s11815_s0 + %s11151_s7]]   ;;  %s11155_s7 = smov 18  }
  0x16   :  { %11825 = sst [smem:[#allocation41_spill]] %s11252_s19 }
  0x17   :  { %s11277_s20 = sld [smem:[%s11815_s0 + %s11152_s15]]   ;;  %s11156_s15 = smov 19  }
  0x18   :  { %11826 = sst [smem:[#allocation42_spill]] %s11262_s30 }
  0x19   :  { %s11282_s27 = sld [smem:[%s11815_s0 + %s11153_s22]]   ;;  %s11157_s22 = smov 20  }
  0x1a   :  { %s11287_s4 = sld [smem:[%s11815_s0 + %s11154_s28]]   ;;  %s11158_s28 = smov 21  }
  0x1b   :  { %11827 = sst [smem:[#allocation43_spill]] %s11272_s12 }
  0x1c   :  { %s11292_s29 = sld [smem:[%s11815_s0 + %s11155_s7]]   ;;  %s11159_s7 = smov 22  }
  0x1d   :  { %s11297_s25 = sld [smem:[%s11815_s0 + %s11156_s15]]   ;;  %s11160_s15 = smov 23  }
  0x1e   :  { %s11302_s21 = sld [smem:[%s11815_s0 + %s11157_s22]]   ;;  %s11161_s22 = smov 24  }
  0x1f   :  { %11828 = sst [smem:[#allocation44_spill]] %s11282_s27 }
  0x20   :  { %s11307_s17 = sld [smem:[%s11815_s0 + %s11158_s28]]   ;;  %s11162_s28 = smov 25  }
  0x21   :  { %s11317_s27 = sld [smem:[%s11815_s0 + %s11160_s15]]   ;;  %s11164_s15 = smov 27  }
  0x22   :  { %11829 = sst [smem:[#allocation45_spill]] %s11292_s29 }
  0x23   :  { %s11312_s29 = sld [smem:[%s11815_s0 + %s11159_s7]]   ;;  %s11163_s7 = smov 26  }
  0x24   :  { %11830 = sst [smem:[#allocation46_spill]] %s11302_s21 }
  0x25   :  { %s11322_s21 = sld [smem:[%s11815_s0 + %s11161_s22]]   ;;  %s11165_s22 = smov 28  }
  0x26   :  { %11831 = sst [smem:[#allocation47_spill]] %s11307_s17 }
  0x27   :  { %11833 = sst [smem:[#allocation49_spill]] %s11317_s27 }
  0x28   :  { %s11327_s12 = sld [smem:[%s11815_s0 + %s11162_s28]]   ;;  %s11166_s28 = smov 29  }
  0x29   :  { %11832 = sst [smem:[#allocation48_spill]] %s11312_s29 }
  0x2a   :  { %s11332_s29 = sld [smem:[%s11815_s0 + %s11163_s7]]   ;;  %s11167_s7 = smov 30  }
  0x2b   :  { %s11337_s27 = sld [smem:[%s11815_s0 + %s11164_s15]]   ;;  %s11168_s15 = smov 31  }
  0x2c   :  { %s11342_s17 = sld [smem:[%s11815_s0 + %s11165_s22]]   ;;  %s11169_s22 = smov 32  }
  0x2d   :  { %s11352_s30 = sld [smem:[%s11815_s0 + %s11167_s7]]   ;;  %s11171_s7 = smov 34  }
  0x2e   :  { %11834 = sst [smem:[#allocation50_spill]] %s11327_s12 }
  0x2f   :  { %s11347_s12 = sld [smem:[%s11815_s0 + %s11166_s28]]   ;;  %s11170_s28 = smov 33  }
  0x30   :  { %s11362_s19 = sld [smem:[%s11815_s0 + %s11169_s22]]  }
  0x31   :  { %11835 = sst [smem:[#allocation51_spill]] %s11337_s27 }
  0x32   :  { %s11357_s27 = sld [smem:[%s11815_s0 + %s11168_s15]]   ;;  %s11172_s15 = smov 35  }
  0x33   :  { %11836 = sst [smem:[#allocation52_spill]] %s11352_s30 }
  0x34   :  { %s11367_s13 = sld [smem:[%s11815_s0 + %s11170_s28]]  }
  0x35   :  { %s11372_s30 = sld [smem:[%s11815_s0 + %s11171_s7]]  }
  0x36   :  { %s11377_s8 = sld [smem:[%s11815_s0 + %s11172_s15]]  }
  0x37   :  { %77 = vsyncpa [#allocation3], 0 }
  0x38   :  { %78 = vsyncpa [#allocation6], 0 }
  0x39   :  { %79 = vsyncpa [#allocation9], 0 }
  0x3a   :  { %80 = vsyncpa [#allocation12], 0 }
  0x3b   :  { %81 = vsyncpa [#allocation15], 0 }
  0x3c   :  { %82 = vsyncpa [#allocation18], 0 }
  0x3d   :  { %83 = vsyncpa [#allocation21], 0 }
  0x3e   :  { %84 = vsyncpa [#allocation4], 0  ;;  %s119_s22 = sshll.u32 %s11247_s14, 4  ;;  %s120_s22 = int_to_ptr.hbm [resolvable:$true] %s119_s22 }
  0x3f   :  { %85 = vsyncpa [#allocation25], 0  ;;  %s11173_s23 = smov [#allocation5]   ;;  %s149_s0 = sshll.u32 %s11267_s6, 4  ;;  %s150_s0 = int_to_ptr.hbm [resolvable:$true] %s149_s0 }
  0x40   :  { %s121_s26 = sshll.u32 %s11173_s23, 4  ;;  %s10760_s28 = sshra.s32 %s120_s22, 4  ;;  %s122_s26 = int_to_ptr.vmem [resolvable:$true] %s121_s26  ;;  %s10761_s28 = int_to_ptr.hbm [resolvable:$true] %s10760_s28 }
  0x41   :  { %s10762_s1 = scalar_lea.hbm %s10761_s28, 512  ;;  %s10764_s2 = scalar_lea.hbm %s11247_s14, 512 }
  0x42   :  { %p10763_p0 = scmp.ne.s32.totalorder %s10761_s28, %s10762_s1  ;;  %p10765_p1 = scmp.lt.s32.totalorder %s10761_s28, %s11247_s14 }
  0x43   :  { %p10766_p2 = scmp.lt.s32.totalorder %s10764_s2, %s10762_s1 }
  0x45   :  { %p10767_p3 = por %p10766_p2, %p10765_p1 }
  0x47   :  { %p10768_p4 = pnand %p10767_p3, %p10763_p0 }
  0x49   :  { %10771 = shalt.err (!%p10768_p4)
}
  0x4a   :  { %s11174_s7 = smov 128   ;;  %s11175_s10 = smov 8  }
  0x4b   :  { %127 = dma.hbm_to_vmem [thread:$0]  %s120_s22, 8192, %s122_s26, [#allocation6], %s11174_s7, %s11174_s7, %s11175_s10  }
  0x4c   :  { %s11176_s11 = smov [#allocation8]   ;;  %s10784_s16 = sshra.s32 %s150_s0, 4  ;;  %s10785_s16 = int_to_ptr.hbm [resolvable:$true] %s10784_s16 }
  0x4d   :  { %s151_s15 = sshll.u32 %s11176_s11, 4  ;;  %s10786_s18 = scalar_lea.hbm %s10785_s16, 512  ;;  %s152_s15 = int_to_ptr.vmem [resolvable:$true] %s151_s15 }
  0x4e   :  { %p10787_p5 = scmp.ne.s32.totalorder %s10785_s16, %s10786_s18  ;;  %s10788_s14 = scalar_lea.hbm %s11267_s6, 512 }
  0x4f   :  { %p10789_p6 = scmp.lt.s32.totalorder %s10785_s16, %s11267_s6  ;;  %p10790_p7 = scmp.lt.s32.totalorder %s10788_s14, %s10786_s18 }
  0x51   :  { %p10791_p8 = por %p10790_p7, %p10789_p6 }
  0x53   :  { %p10792_p9 = pnand %p10791_p8, %p10787_p5 }
  0x55   :  { %10795 = shalt.err (!%p10792_p9)
}
  0x56   :  { %157 = dma.hbm_to_vmem [thread:$0]  %s150_s0, 8192, %s152_s15, [#allocation9], %s11174_s7, %s11174_s7, %s11175_s10  }
  0x57   :  { %s179_s22 = sshll.u32 %s11287_s4, 4  ;;  %s11177_s23 = smov [#allocation11]   ;;  %s180_s22 = int_to_ptr.hbm [resolvable:$true] %s179_s22 }
  0x58   :  { %s181_s26 = sshll.u32 %s11177_s23, 4  ;;  %s215_s28 = sshll.u32 %s11322_s21, 4  ;;  %s182_s26 = int_to_ptr.vmem [resolvable:$true] %s181_s26  ;;  %s216_s28 = int_to_ptr.hbm [resolvable:$true] %s215_s28 }
  0x59   :  { %s10808_s1 = sshra.s32 %s180_s22, 4  ;;  %s10812_s2 = scalar_lea.hbm %s11287_s4, 1024  ;;  %s10809_s1 = int_to_ptr.hbm [resolvable:$true] %s10808_s1 }
  0x5a   :  { %s10810_s6 = scalar_lea.hbm %s10809_s1, 1024  ;;  %p10813_p11 = scmp.lt.s32.totalorder %s10809_s1, %s11287_s4 }
  0x5b   :  { %p10811_p10 = scmp.ne.s32.totalorder %s10809_s1, %s10810_s6  ;;  %p10814_p12 = scmp.lt.s32.totalorder %s10812_s2, %s10810_s6 }
  0x5d   :  { %p10815_p13 = por %p10814_p12, %p10813_p11 }
  0x5f   :  { %p10816_p0 = pnand %p10815_p13, %p10811_p10 }
  0x61   :  { %10819 = shalt.err (!%p10816_p0)
}
  0x62   :  { %s11178_s11 = smov 256   ;;  %s11179_s0 = smov 16  }
  0x63   :  { %187 = dma.hbm_to_vmem [thread:$0]  %s180_s22, 16384, %s182_s26, [#allocation12], %s11178_s11, %s11178_s11, %s11179_s0  }
  0x64   :  { %s11180_s15 = smov [#allocation14]   ;;  %s10832_s18 = sshra.s32 %s216_s28, 4  ;;  %s10833_s18 = int_to_ptr.hbm [resolvable:$true] %s10832_s18 }
  0x65   :  { %s217_s16 = sshll.u32 %s11180_s15, 4  ;;  %s10834_s14 = scalar_lea.hbm %s10833_s18, 128  ;;  %s218_s16 = int_to_ptr.vmem [resolvable:$true] %s217_s16 }
  0x66   :  { %p10835_p1 = scmp.ne.s32.totalorder %s10833_s18, %s10834_s14  ;;  %s10836_s4 = scalar_lea.hbm %s11322_s21, 128 }
  0x67   :  { %p10837_p2 = scmp.lt.s32.totalorder %s10833_s18, %s11322_s21  ;;  %p10838_p3 = scmp.lt.s32.totalorder %s10836_s4, %s10834_s14 }
  0x69   :  { %p10839_p4 = por %p10838_p3, %p10837_p2 }
  0x6b   :  { %p10840_p5 = pnand %p10839_p4, %p10835_p1 }
  0x6d   :  { %10843 = shalt.err (!%p10840_p5)
}
  0x6e   :  { %s11181_s23 = smov 64   ;;  %s11182_s22 = smov 4  }
  0x6f   :  { %223 = dma.hbm_to_vmem [thread:$0]  %s216_s28, 2048, %s218_s16, [#allocation15], %s11181_s23, %s11181_s23, %s11182_s22  }
  0x70   :  { %s245_s26 = sshll.u32 %s11342_s17, 4  ;;  %s11183_s1 = smov [#allocation17]   ;;  %s246_s26 = int_to_ptr.hbm [resolvable:$true] %s245_s26 }
  0x71   :  { %s247_s6 = sshll.u32 %s11183_s1, 4  ;;  %s272_s21 = sshll.u32 %s11357_s27, 4  ;;  %s248_s6 = int_to_ptr.vmem [resolvable:$true] %s247_s6  ;;  %s273_s21 = int_to_ptr.hbm [resolvable:$true] %s272_s21 }
  0x72   :  { %s10856_s2 = sshra.s32 %s246_s26, 4  ;;  %s10860_s18 = scalar_lea.hbm %s11342_s17, 128  ;;  %s10857_s2 = int_to_ptr.hbm [resolvable:$true] %s10856_s2 }
  0x73   :  { %s10858_s15 = scalar_lea.hbm %s10857_s2, 128  ;;  %p10861_p7 = scmp.lt.s32.totalorder %s10857_s2, %s11342_s17 }
  0x74   :  { %p10859_p6 = scmp.ne.s32.totalorder %s10857_s2, %s10858_s15  ;;  %p10862_p8 = scmp.lt.s32.totalorder %s10860_s18, %s10858_s15 }
  0x76   :  { %p10863_p9 = por %p10862_p8, %p10861_p7 }
  0x78   :  { %p10864_p10 = pnand %p10863_p9, %p10859_p6 }
  0x7a   :  { %10867 = shalt.err (!%p10864_p10)
}
  0x7b   :  { %253 = dma.hbm_to_vmem [thread:$0]  %s246_s26, 2048, %s248_s6, [#allocation18], %s11181_s23, %s11181_s23, %s11182_s22  }
  0x7c   :  { %s11184_s28 = smov [#allocation20]   ;;  %s104_s14 = sshll.u32 %s11237_s3, 4  ;;  %s11411_s14 = int_to_ptr.hbm [resolvable:$true] %s104_s14 }
  0x7d   :  { %s274_s16 = sshll.u32 %s11184_s28, 4  ;;  %s10880_s4 = sshra.s32 %s273_s21, 4  ;;  %s275_s16 = int_to_ptr.vmem [resolvable:$true] %s274_s16  ;;  %s10881_s4 = int_to_ptr.hbm [resolvable:$true] %s10880_s4 }
  0x7e   :  { %s10882_s17 = scalar_lea.hbm %s10881_s4, 1  ;;  %s10884_s1 = scalar_lea.hbm %s11357_s27, 1 }
  0x7f   :  { %p10883_p11 = scmp.ne.s32.totalorder %s10881_s4, %s10882_s17  ;;  %p10885_p12 = scmp.lt.s32.totalorder %s10881_s4, %s11357_s27 }
  0x80   :  { %p10886_p13 = scmp.lt.s32.totalorder %s10884_s1, %s10882_s17 }
  0x82   :  { %p10887_p0 = por %p10886_p13, %p10885_p12 }
  0x84   :  { %p10888_p1 = pnand %p10887_p0, %p10883_p11 }
  0x86   :  { %10891 = shalt.err (!%p10888_p1)
}
  0x87   :  { %277 = dma.hbm_to_vmem [thread:$0]  %s273_s21, 16, %s275_s16, [#allocation21]  }
  0x88   :  { %s134_s26 = sshll.u32 %s11257_s24, 4  ;;  %s11185_s6 = smov [#allocation2]   ;;  %s11416_s26 = int_to_ptr.hbm [resolvable:$true] %s134_s26 }
  0x89   :  { %s106_s2 = sshll.u32 %s11185_s6, 4  ;;  %s10904_s15 = sshra.s32 %s11411_s14, 4  ;;  %s107_s2 = int_to_ptr.vmem [resolvable:$true] %s106_s2  ;;  %s10905_s15 = int_to_ptr.hbm [resolvable:$true] %s10904_s15 }
  0x8a   :  { %s10906_s18 = scalar_lea.hbm %s10905_s15, 1536  ;;  %s10908_s27 = scalar_lea.hbm %s11237_s3, 1536 }
  0x8b   :  { %p10907_p2 = scmp.ne.s32.totalorder %s10905_s15, %s10906_s18  ;;  %p10909_p3 = scmp.lt.s32.totalorder %s10905_s15, %s11237_s3 }
  0x8c   :  { %p10910_p4 = scmp.lt.s32.totalorder %s10908_s27, %s10906_s18 }
  0x8e   :  { %p10911_p5 = por %p10910_p4, %p10909_p3 }
  0x90   :  { %p10912_p6 = pnand %p10911_p5, %p10907_p2 }
  0x92   :  { %10915 = shalt.err (!%p10912_p6)
}
  0x93   :  { %112 = dma.hbm_to_vmem [thread:$0]  %s11411_s14, 24576, %s107_s2, [#allocation3], %s11178_s11, %s11178_s11, %s11179_s0  }
  0x94   :  { %s11186_s21 = smov [#allocation7]   ;;  %s164_s16 = sshll.u32 %s11277_s20, 4  ;;  %s11426_s16 = int_to_ptr.hbm [resolvable:$true] %s164_s16 }
  0x95   :  { %s136_s28 = sshll.u32 %s11186_s21, 4  ;;  %s10928_s3 = sshra.s32 %s11416_s26, 4  ;;  %s137_s28 = int_to_ptr.vmem [resolvable:$true] %s136_s28  ;;  %s10929_s3 = int_to_ptr.hbm [resolvable:$true] %s10928_s3 }
  0x96   :  { %s10930_s4 = scalar_lea.hbm %s10929_s3, 512  ;;  %s10932_s17 = scalar_lea.hbm %s11257_s24, 512 }
  0x97   :  { %p10931_p7 = scmp.ne.s32.totalorder %s10929_s3, %s10930_s4  ;;  %p10933_p8 = scmp.lt.s32.totalorder %s10929_s3, %s11257_s24 }
  0x98   :  { %p10934_p9 = scmp.lt.s32.totalorder %s10932_s17, %s10930_s4 }
  0x9a   :  { %p10935_p10 = por %p10934_p9, %p10933_p8 }
  0x9c   :  { %p10936_p11 = pnand %p10935_p10, %p10931_p7 }
  0x9e   :  { %10939 = shalt.err (!%p10936_p11)
}
  0x9f   :  { %142 = dma.hbm_to_vmem [thread:$0]  %s11416_s26, 8192, %s137_s28, [#allocation6], %s11178_s11, %s11178_s11, %s11179_s0  }
  0xa0   :  { %s194_s14 = sshll.u32 %s11297_s25, 4  ;;  %s11187_s1 = smov [#allocation10]   ;;  %s11436_s14 = int_to_ptr.hbm [resolvable:$true] %s194_s14 }
  0xa1   :  { %s166_s6 = sshll.u32 %s11187_s1, 4  ;;  %s10952_s24 = sshra.s32 %s11426_s16, 4  ;;  %s167_s6 = int_to_ptr.vmem [resolvable:$true] %s166_s6  ;;  %s10953_s24 = int_to_ptr.hbm [resolvable:$true] %s10952_s24 }
  0xa2   :  { %s10954_s2 = scalar_lea.hbm %s10953_s24, 1024  ;;  %s10956_s15 = scalar_lea.hbm %s11277_s20, 1024 }
  0xa3   :  { %p10955_p12 = scmp.ne.s32.totalorder %s10953_s24, %s10954_s2  ;;  %p10957_p13 = scmp.lt.s32.totalorder %s10953_s24, %s11277_s20 }
  0xa4   :  { %p10958_p0 = scmp.lt.s32.totalorder %s10956_s15, %s10954_s2 }
  0xa6   :  { %p10959_p1 = por %p10958_p0, %p10957_p13 }
  0xa8   :  { %p10960_p2 = pnand %p10959_p1, %p10955_p12 }
  0xaa   :  { %10963 = shalt.err (!%p10960_p2)
}
  0xab   :  { %172 = dma.hbm_to_vmem [thread:$0]  %s11426_s16, 16384, %s167_s6, [#allocation9], %s11178_s11, %s11178_s11, %s11179_s0  }
  0xac   :  { %s11188_s26 = smov [#allocation13]   ;;  %s230_s27 = sshll.u32 %s11332_s29, 4  ;;  %s11446_s27 = int_to_ptr.hbm [resolvable:$true] %s230_s27 }
  0xad   :  { %s196_s18 = sshll.u32 %s11188_s26, 4  ;;  %s10976_s20 = sshra.s32 %s11436_s14, 4  ;;  %s197_s18 = int_to_ptr.vmem [resolvable:$true] %s196_s18  ;;  %s10977_s20 = int_to_ptr.hbm [resolvable:$true] %s10976_s20 }
  0xae   :  { %s10978_s21 = scalar_lea.hbm %s10977_s20, 512  ;;  %s10980_s28 = scalar_lea.hbm %s11297_s25, 512 }
  0xaf   :  { %p10979_p3 = scmp.ne.s32.totalorder %s10977_s20, %s10978_s21  ;;  %p10981_p4 = scmp.lt.s32.totalorder %s10977_s20, %s11297_s25 }
  0xb0   :  { %p10982_p5 = scmp.lt.s32.totalorder %s10980_s28, %s10978_s21 }
  0xb2   :  { %p10983_p6 = por %p10982_p5, %p10981_p4 }
  0xb4   :  { %p10984_p7 = pnand %p10983_p6, %p10979_p3 }
  0xb6   :  { %10987 = shalt.err (!%p10984_p7)
}
  0xb7   :  { %202 = dma.hbm_to_vmem [thread:$0]  %s11436_s14, 8192, %s197_s18, [#allocation12], %s11174_s7, %s11174_s7, %s11175_s10  }
  0xb8   :  { %s259_s11 = sshll.u32 %s11347_s12, 4  ;;  %s11189_s0 = smov [#allocation16]   ;;  %s260_s11 = int_to_ptr.hbm [resolvable:$true] %s259_s11 }
  0xb9   :  { %s232_s16 = sshll.u32 %s11189_s0, 4  ;;  %s11000_s3 = sshra.s32 %s11446_s27, 4  ;;  %s233_s16 = int_to_ptr.vmem [resolvable:$true] %s232_s16  ;;  %s11001_s3 = int_to_ptr.hbm [resolvable:$true] %s11000_s3 }
  0xba   :  { %s11002_s25 = scalar_lea.hbm %s11001_s3, 128  ;;  %s11004_s4 = scalar_lea.hbm %s11332_s29, 128 }
  0xbb   :  { %p11003_p8 = scmp.ne.s32.totalorder %s11001_s3, %s11002_s25  ;;  %p11005_p9 = scmp.lt.s32.totalorder %s11001_s3, %s11332_s29 }
  0xbc   :  { %p11006_p10 = scmp.lt.s32.totalorder %s11004_s4, %s11002_s25 }
  0xbe   :  { %p11007_p11 = por %p11006_p10, %p11005_p9 }
  0xc0   :  { %p11008_p12 = pnand %p11007_p11, %p11003_p8 }
  0xc2   :  { %11011 = shalt.err (!%p11008_p12)
}
  0xc3   :  { %238 = dma.hbm_to_vmem [thread:$0]  %s11446_s27, 2048, %s233_s16, [#allocation15], %s11181_s23, %s11181_s23, %s11182_s22  }
  0xc4   :  { %s11190_s7 = smov [#allocation19]   ;;  %s285_s17 = sshll.u32 %s11367_s13, 4  ;;  %s286_s17 = int_to_ptr.hbm [resolvable:$true] %s285_s17 }
  0xc5   :  { %s261_s10 = sshll.u32 %s11190_s7, 4  ;;  %s11024_s14 = sshra.s32 %s260_s11, 4  ;;  %s262_s10 = int_to_ptr.vmem [resolvable:$true] %s261_s10  ;;  %s11025_s14 = int_to_ptr.hbm [resolvable:$true] %s11024_s14 }
  0xc6   :  { %s11026_s1 = scalar_lea.hbm %s11025_s14, 1  ;;  %s11028_s29 = scalar_lea.hbm %s11347_s12, 1 }
  0xc7   :  { %p11027_p13 = scmp.ne.s32.totalorder %s11025_s14, %s11026_s1  ;;  %p11029_p0 = scmp.lt.s32.totalorder %s11025_s14, %s11347_s12 }
  0xc8   :  { %p11030_p1 = scmp.lt.s32.totalorder %s11028_s29, %s11026_s1 }
  0xca   :  { %p11031_p2 = por %p11030_p1, %p11029_p0 }
  0xcc   :  { %p11032_p3 = pnand %p11031_p2, %p11027_p13 }
  0xce   :  { %11035 = shalt.err (!%p11032_p3)
}
  0xcf   :  { %264 = dma.hbm_to_vmem [thread:$0]  %s260_s11, 16, %s262_s10, [#allocation18]  }
  0xd0   :  { %s11191_s6 = smov [#allocation22]   ;;  %s11048_s22 = sshra.s32 %s286_s17, 4  ;;  %s11049_s22 = int_to_ptr.hbm [resolvable:$true] %s11048_s22 }
  0xd1   :  { %s287_s23 = sshll.u32 %s11191_s6, 4  ;;  %s11050_s24 = scalar_lea.hbm %s11049_s22, 1  ;;  %s288_s23 = int_to_ptr.vmem [resolvable:$true] %s287_s23 }
  0xd2   :  { %p11051_p4 = scmp.ne.s32.totalorder %s11049_s22, %s11050_s24  ;;  %s11052_s2 = scalar_lea.hbm %s11367_s13, 1 }
  0xd3   :  { %p11053_p5 = scmp.lt.s32.totalorder %s11049_s22, %s11367_s13  ;;  %p11054_p6 = scmp.lt.s32.totalorder %s11052_s2, %s11050_s24 }
  0xd5   :  { %p11055_p7 = por %p11054_p6, %p11053_p5 }
  0xd7   :  { %p11056_p8 = pnand %p11055_p7, %p11051_p4 }
  0xd9   :  { %11059 = shalt.err (!%p11056_p8)
}
  0xda   :  { %290 = dma.hbm_to_vmem [thread:$0]  %s286_s17, 16, %s288_s23, [#allocation21]  }
  0xdb   :  { %11120 = dma.done.wait [#allocation3], 24576  }
  0xdc   :  { %11121 = vsyncadd [#allocation3], 4294942720 }
  0xdd   :  { %11122 = dma.done.wait [#allocation6], 16384  }
  0xde   :  { %11123 = vsyncadd [#allocation6], 4294950912 }
  0xdf   :  { %11124 = dma.done.wait [#allocation9], 24576  }
  0xe0   :  { %11125 = vsyncadd [#allocation9], 4294942720 }
  0xe1   :  { %11126 = dma.done.wait [#allocation12], 24576  }
  0xe2   :  { %11127 = vsyncadd [#allocation12], 4294942720 }
  0xe3   :  { %11128 = dma.done.wait [#allocation15], 4096  }
  0xe4   :  { %11129 = vsyncadd [#allocation15], 4294963200 }
  0xe5   :  { %11130 = dma.done.wait [#allocation18], 2064  }
  0xe6   :  { %11131 = vsyncadd [#allocation18], 4294965232 }
  0xe7   :  { %11132 = dma.done.wait [#allocation21], 32  }
  0xe8   :  { %11133 = vsyncadd [#allocation21], 4294967264  ;;  %v6955_v0 = vld [vmem:[#allocation2 + $0xe0] sm:$0xf]  ;;  %v9953_v1 = vld [vmem:[#allocation2 + $0xec] sm:$0xf0] }
  0xe9   :  { %v7083_v2 = vld [vmem:[#allocation2 + $0x1e0] sm:$0xf]  ;;  %v6956_v3 = vor.u32 %v9953_v1, %v6955_v0  ;;  %v9985_v4 = vld [vmem:[#allocation2 + $0x1ec] sm:$0xf0]  ;;  %s11839_s13 = sld [smem:[#allocation41_spill]]  ;;  %vm5870_vm0 = vcmask 1043456  }
  0xea   :  { %v7211_v5 = vld [vmem:[#allocation2 + $0x2e0] sm:$0xf]  ;;  %v10017_v6 = vld [vmem:[#allocation2 + $0x2ec] sm:$0xf0]  ;;  %v7084_v7 = vor.u32 %v9985_v4, %v7083_v2  ;;  %s11840_s12 = sld [smem:[#allocation42_spill]]  ;;  %vm5866_vm1 = vcmask 31744  }
  0xeb   :  { %v7212_v8 = vor.u32 %v10017_v6, %v7211_v5  ;;  %v7339_v9 = vld [vmem:[#allocation2 + $0x3e0] sm:$0xf]  ;;  %v10049_v10 = vld [vmem:[#allocation2 + $0x3ec] sm:$0xf0]  ;;  %1530 = vmatpush.bf16.msra.mxu0 %v6956_v3  ;;  %s11841_s15 = sld [smem:[#allocation47_spill]]  ;;  %vm5922_vm2 = vcmask 1044480  }
  0xec   :  { %v6939_v11 = vld [vmem:[#allocation2 + $0xc0] sm:$0xf]  ;;  %v7340_v12 = vor.u32 %v10049_v10, %v7339_v9  ;;  %v9949_v13 = vld [vmem:[#allocation2 + $0xcc] sm:$0xf0]  ;;  %1543 = vmatpush.bf16.msra.mxu1 %v7084_v7  ;;  %s11842_s26 = sld [smem:[#allocation43_spill]]  ;;  %vm5918_vm3 = vcmask 39936  }
  0xed   :  { %v7067_v14 = vld [vmem:[#allocation2 + $0x1c0] sm:$0xf]  ;;  %v9981_v15 = vld [vmem:[#allocation2 + $0x1cc] sm:$0xf0]  ;;  %1556 = vmatpush.bf16.msra.mxu2 %v7212_v8  ;;  %v6940_v16 = vor.u32 %v9949_v13, %v6939_v11  ;;  %s11843_s18 = sld [smem:[#allocation44_spill]]  ;;  %vm5980_vm4 = vcmask 1041408  }
  0xee   :  { %v7068_v17 = vor.u32 %v9981_v15, %v7067_v14  ;;  %v7195_v18 = vld [vmem:[#allocation2 + $0x2c0] sm:$0xf]  ;;  %v10013_v19 = vld [vmem:[#allocation2 + $0x2cc] sm:$0xf0]  ;;  %1569 = vmatpush.bf16.msra.mxu3 %v7340_v12  ;;  %s11844_s27 = sld [smem:[#allocation45_spill]]  ;;  %vm6521_vm6 = vcmask 57344  }
  0xef   :  { %v7323_v20 = vld [vmem:[#allocation2 + $0x3c0] sm:$0xf]  ;;  %v7196_v21 = vor.u32 %v10013_v19, %v7195_v18  ;;  %v10045_v22 = vld [vmem:[#allocation2 + $0x3cc] sm:$0xf0]  ;;  %1531 = vmatpush.bf16.msra.mxu0 %v6940_v16  ;;  %s11845_s20 = sld [smem:[#allocation36_spill]]  ;;  %vm6544_vm8 = vcmask 64512  }
  0xf0   :  { %v6923_v23 = vld [vmem:[#allocation2 + $0xa0] sm:$0xf]  ;;  %v9945_v24 = vld [vmem:[#allocation2 + $0xac] sm:$0xf0]  ;;  %v7324_v25 = vor.u32 %v10045_v22, %v7323_v20  ;;  %1544 = vmatpush.bf16.msra.mxu1 %v7068_v17  ;;  %s11846_s21 = sld [smem:[#allocation49_spill]]  ;;  %vm6618_vm9 = vcmask 1041409  }
  0xf1   :  { %v7051_v26 = vld [vmem:[#allocation2 + $0x1a0] sm:$0xf]  ;;  %v9977_v27 = vld [vmem:[#allocation2 + $0x1ac] sm:$0xf0]  ;;  %v6924_v29 = vor.u32 %v9945_v24, %v6923_v23  ;;  %1557 = vmatpush.bf16.msra.mxu2 %v7196_v21  ;;  %s11847_s28 = sld [smem:[#allocation37_spill]]  ;;  %s11192_s10 = smov [#allocation24]  }
  0xf2   :  { %v7179_v28 = vld [vmem:[#allocation2 + $0x2a0] sm:$0xf]  ;;  %v10009_v30 = vld [vmem:[#allocation2 + $0x2ac] sm:$0xf0]  ;;  %v7052_v33 = vor.u32 %v9977_v27, %v7051_v26  ;;  %1570 = vmatpush.bf16.msra.mxu3 %v7324_v25  ;;  %s11848_s11 = sld [smem:[#allocation38_spill]]  ;;  %s6783_s17 = sshll.u32 %s11192_s10, 4  ;;  %s6784_s17 = int_to_ptr.vmem [resolvable:$true] %s6783_s17 }
  0xf3   :  { %v7307_v31 = vld [vmem:[#allocation2 + $0x3a0] sm:$0xf]  ;;  %v10041_v32 = vld [vmem:[#allocation2 + $0x3ac] sm:$0xf0]  ;;  %v7180_v34 = vor.u32 %v10009_v30, %v7179_v28  ;;  %1532 = vmatpush.bf16.msra.mxu0 %v6924_v29  ;;  %s11849_s0 = sld [smem:[#allocation46_spill]]  ;;  %s6785_s14 = sshll.u32 %s11377_s8, 4  ;;  %s6786_s14 = int_to_ptr.hbm [resolvable:$true] %s6785_s14 }
  0xf4   :  { %v6907_v35 = vld [vmem:[#allocation2 + $0x80] sm:$0xf]  ;;  %v9941_v36 = vld [vmem:[#allocation2 + $0x8c] sm:$0xf0]  ;;  %v7308_v38 = vor.u32 %v10041_v32, %v7307_v31  ;;  %1545 = vmatpush.bf16.msra.mxu1 %v7052_v33  ;;  %v9951_v33 = vld [vmem:[#allocation2 + $0xe4] sm:$0xf] }
  0xf5   :  { %v7035_v37 = vld [vmem:[#allocation2 + $0x180] sm:$0xf]  ;;  %v9973_v39 = vld [vmem:[#allocation2 + $0x18c] sm:$0xf0]  ;;  %v6908_v44 = vor.u32 %v9941_v36, %v6907_v35  ;;  %1558 = vmatpush.bf16.msra.mxu2 %v7180_v34  ;;  %v6957_v34 = vld [vmem:[#allocation2 + $0xf0] sm:$0xf0] }
  0xf6   :  { %v7163_v40 = vld [vmem:[#allocation2 + $0x280] sm:$0xf]  ;;  %v10005_v41 = vld [vmem:[#allocation2 + $0x28c] sm:$0xf0]  ;;  %v7036_v45 = vor.u32 %v9973_v39, %v7035_v37  ;;  %1571 = vmatpush.bf16.msra.mxu3 %v7308_v38  ;;  %v9983_v37 = vld [vmem:[#allocation2 + $0x1e4] sm:$0xf] }
  0xf7   :  { %v7291_v42 = vld [vmem:[#allocation2 + $0x380] sm:$0xf]  ;;  %v10037_v43 = vld [vmem:[#allocation2 + $0x38c] sm:$0xf0]  ;;  %v7164_v46 = vor.u32 %v10005_v41, %v7163_v40  ;;  %1533 = vmatpush.bf16.msra.mxu0 %v6908_v44  ;;  %v7085_v38 = vld [vmem:[#allocation2 + $0x1f0] sm:$0xf0] }
  0xf8   :  { %v6891_v47 = vld [vmem:[#allocation2 + $0x60] sm:$0xf]  ;;  %v9937_v48 = vld [vmem:[#allocation2 + $0x6c] sm:$0xf0]  ;;  %v7292_v50 = vor.u32 %v10037_v43, %v7291_v42  ;;  %1546 = vmatpush.bf16.msra.mxu1 %v7036_v45  ;;  %v6960_v42 = vor.u32 %v9951_v33, %v6957_v34  ;;  %s11850_s16 = sld [smem:[#allocation48_spill]]  ;;  %s11084_s1 = sshra.s32 %s6786_s14, 4  ;;  %s11085_s1 = int_to_ptr.hbm [resolvable:$true] %s11084_s1 }
  0xf9   :  { %v7019_v49 = vld [vmem:[#allocation2 + $0x160] sm:$0xf]  ;;  %v9969_v51 = vld [vmem:[#allocation2 + $0x16c] sm:$0xf0]  ;;  %v6892_v56 = vor.u32 %v9937_v48, %v6891_v47  ;;  %1559 = vmatpush.bf16.msra.mxu2 %v7164_v46  ;;  %v7088_v46 = vor.u32 %v9983_v37, %v7085_v38  ;;  %v9947_v48 = vld [vmem:[#allocation2 + $0xc4] sm:$0xf]  ;;  %p11089_p10 = scmp.lt.s32.totalorder %s11085_s1, %s11377_s8 }
  0xfa   :  { %v7147_v52 = vld [vmem:[#allocation2 + $0x260] sm:$0xf]  ;;  %v10001_v53 = vld [vmem:[#allocation2 + $0x26c] sm:$0xf0]  ;;  %v7020_v57 = vor.u32 %v9969_v51, %v7019_v49  ;;  %1572 = vmatpush.bf16.msra.mxu3 %v7292_v50  ;;  %v6941_v49 = vld [vmem:[#allocation2 + $0xd0] sm:$0xf0] }
  0xfb   :  { %v7275_v54 = vld [vmem:[#allocation2 + $0x360] sm:$0xf]  ;;  %v10033_v55 = vld [vmem:[#allocation2 + $0x36c] sm:$0xf0]  ;;  %v7148_v58 = vor.u32 %v10001_v53, %v7147_v52  ;;  %1534 = vmatpush.bf16.msra.mxu0 %v6892_v56  ;;  %v9979_v50 = vld [vmem:[#allocation2 + $0x1c4] sm:$0xf] }
  0xfc   :  { %v6875_v59 = vld [vmem:[#allocation2 + $0x40] sm:$0xf]  ;;  %v9933_v60 = vld [vmem:[#allocation2 + $0x4c] sm:$0xf0]  ;;  %v7276_v62 = vor.u32 %v10033_v55, %v7275_v54  ;;  %1547 = vmatpush.bf16.msra.mxu1 %v7020_v57  ;;  %v7069_v51 = vld [vmem:[#allocation2 + $0x1d0] sm:$0xf0]  ;;  %v6944_v54 = vor.u32 %v9947_v48, %v6941_v49 }
  0xfd   :  { %v7003_v61 = vld [vmem:[#allocation2 + $0x140] sm:$0xf]  ;;  %v9965_v63 = vld [vmem:[#allocation2 + $0x14c] sm:$0xf0]  ;;  %v6876_v4 = vor.u32 %v9933_v60, %v6875_v59  ;;  %1560 = vmatpush.bf16.msra.mxu2 %v7148_v58  ;;  %v7072_v58 = vor.u32 %v9979_v50, %v7069_v51  ;;  %v9943_v60 = vld [vmem:[#allocation2 + $0xa4] sm:$0xf] }
  0xfe   :  { %v7131_v0 = vld [vmem:[#allocation2 + $0x240] sm:$0xf]  ;;  %v9997_v1 = vld [vmem:[#allocation2 + $0x24c] sm:$0xf0]  ;;  %v7004_v5 = vor.u32 %v9965_v63, %v7003_v61  ;;  %1573 = vmatpush.bf16.msra.mxu3 %v7276_v62  ;;  %v6925_v61 = vld [vmem:[#allocation2 + $0xb0] sm:$0xf0] }
  0xff   :  { %v7259_v2 = vld [vmem:[#allocation2 + $0x340] sm:$0xf]  ;;  %v10029_v3 = vld [vmem:[#allocation2 + $0x34c] sm:$0xf0]  ;;  %v7132_v6 = vor.u32 %v9997_v1, %v7131_v0  ;;  %1535 = vmatpush.bf16.msra.mxu0 %v6876_v4  ;;  %v9975_v62 = vld [vmem:[#allocation2 + $0x1a4] sm:$0xf]  ;;  %v6928_v4 = vor.u32 %v9943_v60, %v6925_v61 }
 0x100   :  { %v6859_v7 = vld [vmem:[#allocation2 + $0x20] sm:$0xf]  ;;  %v9929_v8 = vld [vmem:[#allocation2 + $0x2c] sm:$0xf0]  ;;  %v7260_v10 = vor.u32 %v10029_v3, %v7259_v2  ;;  %1548 = vmatpush.bf16.msra.mxu1 %v7004_v5  ;;  %v7053_v63 = vld [vmem:[#allocation2 + $0x1b0] sm:$0xf0] }
 0x101   :  { %v6987_v9 = vld [vmem:[#allocation2 + $0x120] sm:$0xf]  ;;  %v9961_v11 = vld [vmem:[#allocation2 + $0x12c] sm:$0xf0]  ;;  %v6860_v16 = vor.u32 %v9929_v8, %v6859_v7  ;;  %1561 = vmatpush.bf16.msra.mxu2 %v7132_v6  ;;  %v343_v2 = vld [vmem:[%s11202_s5] sm:$0xff]  ;;  %v7056_v7 = vor.u32 %v9975_v62, %v7053_v63  ;;  %s11851_s3 = sld [smem:[#allocation51_spill]] }
 0x102   :  { %v7115_v12 = vld [vmem:[#allocation2 + $0x220] sm:$0xf]  ;;  %v9993_v13 = vld [vmem:[#allocation2 + $0x22c] sm:$0xf0]  ;;  %v6988_v19 = vor.u32 %v9961_v11, %v6987_v9  ;;  %1574 = vmatpush.bf16.msra.mxu3 %v7260_v10  ;;  %347 = vst [vmem:[#allocation1] ss:$4 sm:$0xff] %v343_v2 }
 0x103   :  { %v7243_v14 = vld [vmem:[#allocation2 + $0x320] sm:$0xf]  ;;  %v10025_v15 = vld [vmem:[#allocation2 + $0x32c] sm:$0xf0]  ;;  %v7116_v20 = vor.u32 %v9993_v13, %v7115_v12  ;;  %1536 = vmatpush.bf16.msra.mxu0 %v6860_v16  ;;  %v9939_v9 = vld [vmem:[#allocation2 + $0x84] sm:$0xf] }
 0x104   :  { %v6843_v17 = vld [vmem:[#allocation2] sm:$0xf]  ;;  %v9925_v18 = vld [vmem:[#allocation2 + $0xc] sm:$0xf0]  ;;  %v7244_v24 = vor.u32 %v10025_v15, %v7243_v14  ;;  %1549 = vmatpush.bf16.msra.mxu1 %v6988_v19  ;;  %v6909_v10 = vld [vmem:[#allocation2 + $0x90] sm:$0xf0] }
 0x105   :  { %v6971_v21 = vld [vmem:[#allocation2 + $0x100] sm:$0xf]  ;;  %v9957_v22 = vld [vmem:[#allocation2 + $0x10c] sm:$0xf0]  ;;  %v6844_v31 = vor.u32 %v9925_v18, %v6843_v17  ;;  %1562 = vmatpush.bf16.msra.mxu2 %v7116_v20  ;;  %v9971_v11 = vld [vmem:[#allocation2 + $0x184] sm:$0xf]  ;;  %v6912_v17 = vor.u32 %v9939_v9, %v6909_v10 }
 0x106   :  { %v7099_v23 = vld [vmem:[#allocation2 + $0x200] sm:$0xf]  ;;  %v9989_v25 = vld [vmem:[#allocation2 + $0x20c] sm:$0xf0]  ;;  %v6972_v35 = vor.u32 %v9957_v22, %v6971_v21  ;;  %1575 = vmatpush.bf16.msra.mxu3 %v7244_v24  ;;  %v7037_v12 = vld [vmem:[#allocation2 + $0x190] sm:$0xf0] }
 0x107   :  { %v7227_v26 = vld [vmem:[#allocation2 + $0x300] sm:$0xf]  ;;  %v10021_v27 = vld [vmem:[#allocation2 + $0x30c] sm:$0xf0]  ;;  %v7100_v36 = vor.u32 %v9989_v25, %v7099_v23  ;;  %1537 = vmatpush.bf16.msra.mxu0 %v6844_v31  ;;  %v9935_v20 = vld [vmem:[#allocation2 + $0x64] sm:$0xf]  ;;  %v7040_v21 = vor.u32 %v9971_v11, %v7037_v12 }
 0x108   :  { %v7467_v28 = vld [vmem:[#allocation2 + $0x4e0] sm:$0xf]  ;;  %v10081_v29 = vld [vmem:[#allocation2 + $0x4ec] sm:$0xf0]  ;;  %v7228_v39 = vor.u32 %v10021_v27, %v7227_v26  ;;  %1550 = vmatpush.bf16.msra.mxu1 %v6972_v35  ;;  %v6893_v22 = vld [vmem:[#allocation2 + $0x70] sm:$0xf0] }
 0x109   :  { %v7595_v30 = vld [vmem:[#allocation2 + $0x5e0] sm:$0xf]  ;;  %v10113_v32 = vld [vmem:[#allocation2 + $0x5ec] sm:$0xf0]  ;;  %v7468_v40 = vor.u32 %v10081_v29, %v7467_v28  ;;  %1563 = vmatpush.bf16.msra.mxu2 %v7100_v36  ;;  %v9967_v23 = vld [vmem:[#allocation2 + $0x164] sm:$0xf]  ;;  %v6896_v34 = vor.u32 %v9935_v20, %v6893_v22 }
 0x10a   :  { %v7596_v41 = vor.u32 %v10113_v32, %v7595_v30  ;;  %v7451_v43 = vld [vmem:[#allocation2 + $0x4c0] sm:$0xf]  ;;  %v10077_v44 = vld [vmem:[#allocation2 + $0x4cc] sm:$0xf0]  ;;  %1576 = vmatpush.bf16.msra.mxu3 %v7228_v39  ;;  %v7021_v24 = vld [vmem:[#allocation2 + $0x170] sm:$0xf0] }
 0x10b   :  { %v7579_v45 = vld [vmem:[#allocation2 + $0x5c0] sm:$0xf]  ;;  %v10109_v47 = vld [vmem:[#allocation2 + $0x5cc] sm:$0xf0]  ;;  %1582 = vmatpush.bf16.msrb.mxu0 %v7468_v40  ;;  %v7452_v52 = vor.u32 %v10077_v44, %v7451_v43  ;;  %v2346_v27 = vld [vmem:[%s11207_s9] sm:$0xf]  ;;  %v7024_v39 = vor.u32 %v9967_v23, %v7021_v24 }
 0x10c   :  { %1595 = vmatpush.bf16.msrb.mxu1 %v7596_v41  ;;  %v7580_v53 = vor.u32 %v10109_v47, %v7579_v45  ;;  %v7435_v55 = vld [vmem:[#allocation2 + $0x4a0] sm:$0xf]  ;;  %v10073_v56 = vld [vmem:[#allocation2 + $0x4ac] sm:$0xf0]  ;;  %v9931_v40 = vld [vmem:[#allocation2 + $0x44] sm:$0xf] }
 0x10d   :  { %1608 = vmatpush.bf16.msrb.mxu2 %v6960_v42  ;;  %v7563_v57 = vld [vmem:[#allocation2 + $0x5a0] sm:$0xf]  ;;  %v10105_v59 = vld [vmem:[#allocation2 + $0x5ac] sm:$0xf0]  ;;  %v7436_v0 = vor.u32 %v10073_v56, %v7435_v55  ;;  %v6877_v41 = vld [vmem:[#allocation2 + $0x50] sm:$0xf0] }
 0x10e   :  { %1621 = vmatpush.bf16.msrb.mxu3 %v7088_v46  ;;  %v7419_v1 = vld [vmem:[#allocation2 + $0x480] sm:$0xf]  ;;  %v7564_v3 = vor.u32 %v10105_v59, %v7563_v57  ;;  %v10069_v5 = vld [vmem:[#allocation2 + $0x48c] sm:$0xf0]  ;;  %v9963_v44 = vld [vmem:[#allocation2 + $0x144] sm:$0xf]  ;;  %v6880_v48 = vor.u32 %v9931_v40, %v6877_v41 }
 0x10f   :  { %1583 = vmatpush.bf16.msrb.mxu0 %v7452_v52  ;;  %v7547_v6 = vld [vmem:[#allocation2 + $0x580] sm:$0xf]  ;;  %v10101_v8 = vld [vmem:[#allocation2 + $0x58c] sm:$0xf0]  ;;  %v7420_v13 = vor.u32 %v10069_v5, %v7419_v1  ;;  %v7005_v45 = vld [vmem:[#allocation2 + $0x150] sm:$0xf0] }
 0x110   :  { %1596 = vmatpush.bf16.msrb.mxu1 %v7580_v53  ;;  %v7403_v14 = vld [vmem:[#allocation2 + $0x460] sm:$0xf]  ;;  %v10065_v15 = vld [vmem:[#allocation2 + $0x46c] sm:$0xf0]  ;;  %v7548_v16 = vor.u32 %v10101_v8, %v7547_v6  ;;  %v7008_v52 = vor.u32 %v9963_v44, %v7005_v45  ;;  %v6861_v55 = vld [vmem:[#allocation2 + $0x30] sm:$0xf0] }
 0x111   :  { %1609 = vmatpush.bf16.msrb.mxu2 %v6944_v54  ;;  %v7531_v18 = vld [vmem:[#allocation2 + $0x560] sm:$0xf]  ;;  %v10097_v19 = vld [vmem:[#allocation2 + $0x56c] sm:$0xf0]  ;;  %v7404_v28 = vor.u32 %v10065_v15, %v7403_v14  ;;  %v9927_v54 = vld [vmem:[#allocation2 + $0x24] sm:$0xf] }
 0x112   :  { %1622 = vmatpush.bf16.msrb.mxu3 %v7072_v58  ;;  %v7387_v25 = vld [vmem:[#allocation2 + $0x440] sm:$0xf]  ;;  %v10061_v26 = vld [vmem:[#allocation2 + $0x44c] sm:$0xf0]  ;;  %v7532_v29 = vor.u32 %v10097_v19, %v7531_v18  ;;  %v9959_v56 = vld [vmem:[#allocation2 + $0x124] sm:$0xf] }
 0x113   :  { %1584 = vmatpush.bf16.msrb.mxu0 %v7436_v0  ;;  %v7515_v30 = vld [vmem:[#allocation2 + $0x540] sm:$0xf]  ;;  %v10093_v31 = vld [vmem:[#allocation2 + $0x54c] sm:$0xf0]  ;;  %v7388_v46 = vor.u32 %v10061_v26, %v7387_v25  ;;  %v6989_v57 = vld [vmem:[#allocation2 + $0x130] sm:$0xf0]  ;;  %v6864_v0 = vor.u32 %v9927_v54, %v6861_v55 }
 0x114   :  { %1597 = vmatpush.bf16.msrb.mxu1 %v7564_v3  ;;  %v352_v32 = vld.sshfl [vmem:[#allocation1 + $0x10] sm:$0xff pattern:$0x73625140]  ;;  %v350_v33 = vld.sshfl [vmem:[#allocation1] sm:$0xff pattern:$0x73625140]  ;;  %v7516_v47 = vor.u32 %v10093_v31, %v7515_v30 }
 0x115   :  { %1610 = vmatpush.bf16.msrb.mxu2 %v6928_v4  ;;  %v11470_v35 = vpack.c.bf16 %v352_v32, %v352_v32  ;;  %v11472_v36 = vpack.c.bf16 %v350_v33, %v350_v33  ;;  %v353_v37 = vld.sshfl [vmem:[#allocation1 + $0x18] sm:$0xff pattern:$0x73625140]  ;;  %v351_v38 = vld.sshfl [vmem:[#allocation1 + $0x8] sm:$0xff pattern:$0x73625140]  ;;  %v6992_v4 = vor.u32 %v9959_v56, %v6989_v57 }
 0x116   :  { %1623 = vmatpush.bf16.msrb.mxu3 %v7056_v7  ;;  %v11474_v42 = vpack.c.bf16 %v353_v37, %v353_v37  ;;  %v11476_v43 = vpack.c.bf16 %v351_v38, %v351_v38  ;;  %2348 = vst [vmem:[#allocation1] ss:$4 sm:$0xff] %v2346_v27  ;;  %v7371_v49 = vld [vmem:[#allocation2 + $0x420] sm:$0xf]  ;;  %v10057_v50 = vld [vmem:[#allocation2 + $0x42c] sm:$0xf0] }
 0x117   :  { %1585 = vmatpush.bf16.msrb.mxu0 %v7420_v13  ;;  %1564 = vmatmul.bf16.vlgmr.msra.gmra.mxu2 %v11470_v35  ;;  %v7499_v51 = vld [vmem:[#allocation2 + $0x520] sm:$0xf]  ;;  %v10089_v53 = vld [vmem:[#allocation2 + $0x52c] sm:$0xf0]  ;;  %v7372_v59 = vor.u32 %v10057_v50, %v7371_v49  ;;  %v9923_v1 = vld [vmem:[#allocation2 + $0x4] sm:$0xf] }
 0x118   :  { %1598 = vmatpush.bf16.msrb.mxu1 %v7548_v16  ;;  %1538 = vmatmul.bf16.vlgmr.msra.gmra.mxu0 %v11472_v36  ;;  %v7355_v58 = vld [vmem:[#allocation2 + $0x400] sm:$0xf]  ;;  %v10053_v60 = vld [vmem:[#allocation2 + $0x40c] sm:$0xf0]  ;;  %v7500_v63 = vor.u32 %v10089_v53, %v7499_v51  ;;  %v6845_v2 = vld [vmem:[#allocation2 + $0x10] sm:$0xf0] }
 0x119   :  { %1611 = vmatpush.bf16.msrb.mxu2 %v6912_v17  ;;  %1577 = vmatmul.bf16.vlgmr.msra.gmra.mxu3 %v11474_v42  ;;  %v7483_v61 = vld [vmem:[#allocation2 + $0x500] sm:$0xf]  ;;  %v10085_v62 = vld [vmem:[#allocation2 + $0x50c] sm:$0xf0]  ;;  %v9955_v5 = vld [vmem:[#allocation2 + $0x104] sm:$0xf]  ;;  %v7356_v10 = vor.u32 %v10053_v60, %v7355_v58  ;;  %v6848_v15 = vor.u32 %v9923_v1, %v6845_v2 }
 0x11a   :  { %1624 = vmatpush.bf16.msrb.mxu3 %v7040_v21  ;;  %1551 = vmatmul.bf16.vlgmr.msra.gmra.mxu1 %v11476_v43  ;;  %v344_v3 = vld [vmem:[%s11202_s5 + $0x8] sm:$0xf]  ;;  %v6973_v6 = vld [vmem:[#allocation2 + $0x110] sm:$0xf0]  ;;  %v10015_v7 = vld [vmem:[#allocation2 + $0x2e4] sm:$0xf]  ;;  %v7484_v14 = vor.u32 %v10085_v62, %v7483_v61 }
 0x11b   :  { %1586 = vmatpush.bf16.msrb.mxu0 %v7404_v28  ;;  %349 = vst [vmem:[#allocation1 + $0x20] ss:$4 sm:$0xff] %v344_v3  ;;  %v7213_v8 = vld [vmem:[#allocation2 + $0x2f0] sm:$0xf0]  ;;  %v10047_v9 = vld [vmem:[#allocation2 + $0x3e4] sm:$0xf]  ;;  %v6976_v18 = vor.u32 %v9955_v5, %v6973_v6 }
 0x11c   :  { %1599 = vmatpush.bf16.msrb.mxu1 %v7532_v29  ;;  %v7341_v11 = vld [vmem:[#allocation2 + $0x3f0] sm:$0xf0]  ;;  %v10079_v12 = vld [vmem:[#allocation2 + $0x4e4] sm:$0xf]  ;;  %v7216_v19 = vor.u32 %v10015_v7, %v7213_v8  ;;  %s11837_s5 = sld [smem:[#allocation40_spill]]  ;;  %s11086_s29 = scalar_lea.hbm %s11085_s1, 4 }
 0x11d   :  { %1612 = vmatpush.bf16.msrb.mxu2 %v6896_v34  ;;  %v7469_v13 = vld [vmem:[#allocation2 + $0x4f0] sm:$0xf0]  ;;  %v10111_v16 = vld [vmem:[#allocation2 + $0x5e4] sm:$0xf]  ;;  %v7344_v22 = vor.u32 %v10047_v9, %v7341_v11  ;;  %s11838_s9 = sld [smem:[#allocation35_spill]]  ;;  %p11087_p9 = scmp.ne.s32.totalorder %s11085_s1, %s11086_s29 }
 0x11e   :  { %1625 = vmatpush.bf16.msrb.mxu3 %v7024_v39  ;;  %v7597_v17 = vld [vmem:[#allocation2 + $0x5f0] sm:$0xf0]  ;;  %v10011_v20 = vld [vmem:[#allocation2 + $0x2c4] sm:$0xf]  ;;  %v7472_v23 = vor.u32 %v10079_v12, %v7469_v13  ;;  %s11852_s25 = sld [smem:[#allocation50_spill]] }
 0x11f   :  { %1587 = vmatpush.bf16.msrb.mxu0 %v7388_v46  ;;  %v7197_v21 = vld [vmem:[#allocation2 + $0x2d0] sm:$0xf0]  ;;  %v10043_v24 = vld [vmem:[#allocation2 + $0x3c4] sm:$0xf]  ;;  %v7600_v27 = vor.u32 %v10111_v16, %v7597_v17  ;;  %s11853_s4 = sld [smem:[#allocation39_spill]] }
 0x120   :  { %1600 = vmatpush.bf16.msrb.mxu1 %v7516_v47  ;;  %v7325_v25 = vld [vmem:[#allocation2 + $0x3d0] sm:$0xf0]  ;;  %v10075_v26 = vld [vmem:[#allocation2 + $0x4c4] sm:$0xf]  ;;  %v7200_v33 = vor.u32 %v10011_v20, %v7197_v21  ;;  %s11854_s7 = sld [smem:[#allocation52_spill]] }
 0x121   :  { %1613 = vmatpush.bf16.msrb.mxu2 %v6880_v48  ;;  %v7453_v28 = vld [vmem:[#allocation2 + $0x4d0] sm:$0xf0]  ;;  %v10107_v29 = vld [vmem:[#allocation2 + $0x5c4] sm:$0xf]  ;;  %v7328_v38 = vor.u32 %v10043_v24, %v7325_v25 }
 0x122   :  { %1626 = vmatpush.bf16.msrb.mxu3 %v7008_v52  ;;  %v7581_v30 = vld [vmem:[#allocation2 + $0x5d0] sm:$0xf0]  ;;  %v354_v31 = vld.sshfl [vmem:[#allocation1 + $0x20] sm:$0xff pattern:$0x73625140]  ;;  %v7456_v39 = vor.u32 %v10075_v26, %v7453_v28 }
 0x123   :  { %1588 = vmatpush.bf16.msrb.mxu0 %v7372_v59  ;;  %v355_v32 = vld.sshfl [vmem:[#allocation1 + $0x28] sm:$0xff pattern:$0x73625140]  ;;  %v11483_v34 = vpack.c.bf16 %v354_v31, %v354_v31  ;;  %v7181_v41 = vld [vmem:[#allocation2 + $0x2b0] sm:$0xf0]  ;;  %v7584_v45 = vor.u32 %v10107_v29, %v7581_v30 }
 0x124   :  { %1601 = vmatpush.bf16.msrb.mxu1 %v7500_v63  ;;  %v11485_v37 = vpack.c.bf16 %v355_v32, %v355_v32  ;;  %v10007_v40 = vld [vmem:[#allocation2 + $0x2a4] sm:$0xf]  ;;  %v7309_v46 = vld [vmem:[#allocation2 + $0x3b0] sm:$0xf0] }
 0x125   :  { %1614 = vmatpush.bf16.msrb.mxu2 %v6864_v0  ;;  %v10039_v44 = vld [vmem:[#allocation2 + $0x3a4] sm:$0xf]  ;;  %v7437_v48 = vld [vmem:[#allocation2 + $0x4b0] sm:$0xf0]  ;;  %v7184_v51 = vor.u32 %v10007_v40, %v7181_v41 }
 0x126   :  { %1627 = vmatpush.bf16.msrb.mxu3 %v6992_v4  ;;  %v10071_v47 = vld [vmem:[#allocation2 + $0x4a4] sm:$0xf]  ;;  %v7565_v50 = vld [vmem:[#allocation2 + $0x5b0] sm:$0xf0]  ;;  %v7312_v52 = vor.u32 %v10039_v44, %v7309_v46 }
 0x127   :  { %1589 = vmatpush.bf16.msrb.mxu0 %v7356_v10  ;;  %v10103_v49 = vld [vmem:[#allocation2 + $0x5a4] sm:$0xf]  ;;  %v7440_v53 = vor.u32 %v10071_v47, %v7437_v48  ;;  %v7165_v55 = vld [vmem:[#allocation2 + $0x290] sm:$0xf0] }
 0x128   :  { %1602 = vmatpush.bf16.msrb.mxu1 %v7484_v14  ;;  %v10003_v54 = vld [vmem:[#allocation2 + $0x284] sm:$0xf]  ;;  %v7568_v57 = vor.u32 %v10103_v49, %v7565_v50  ;;  %v7293_v58 = vld [vmem:[#allocation2 + $0x390] sm:$0xf0] }
 0x129   :  { %1615 = vmatpush.bf16.msrb.mxu2 %v6848_v15  ;;  %v10035_v56 = vld [vmem:[#allocation2 + $0x384] sm:$0xf]  ;;  %v7421_v60 = vld [vmem:[#allocation2 + $0x490] sm:$0xf0]  ;;  %v7168_v63 = vor.u32 %v10003_v54, %v7165_v55  ;;  %v9954_v54 = vld [vmem:[#allocation2 + $0xf4] sm:$0xf0] }
 0x12a   :  { %1628 = vmatpush.bf16.msrb.mxu3 %v6976_v18  ;;  %1590 = vmatmul.bf16.vlgmr.msrb.gmra.mxu0 %v11483_v34  ;;  %v10067_v59 = vld [vmem:[#allocation2 + $0x484] sm:$0xf]  ;;  %v7549_v62 = vld [vmem:[#allocation2 + $0x590] sm:$0xf0]  ;;  %v7296_v0 = vor.u32 %v10035_v56, %v7293_v58  ;;  %v7091_v55 = vld [vmem:[#allocation2 + $0x1e8] sm:$0xf] }
 0x12b   :  { %1634 = vmatpush.bf16.msra.mxu0 %v7216_v19  ;;  %1603 = vmatmul.bf16.vlgmr.msrb.gmra.mxu1 %v11485_v37  ;;  %v10099_v61 = vld [vmem:[#allocation2 + $0x584] sm:$0xf]  ;;  %v7424_v1 = vor.u32 %v10067_v59, %v7421_v60  ;;  %v7149_v3 = vld [vmem:[#allocation2 + $0x270] sm:$0xf0]  ;;  %v7219_v58 = vld [vmem:[#allocation2 + $0x2e8] sm:$0xf] }
 0x12c   :  { %1647 = vmatpush.bf16.msra.mxu1 %v7344_v22  ;;  %1616 = vmatmul.bf16.vlgmr.msrb.gmra.mxu2 %v11472_v36  ;;  %v9999_v2 = vld [vmem:[#allocation2 + $0x264] sm:$0xf]  ;;  %v7552_v5 = vor.u32 %v10099_v61, %v7549_v62  ;;  %v7277_v6 = vld [vmem:[#allocation2 + $0x370] sm:$0xf0]  ;;  %v10018_v59 = vld [vmem:[#allocation2 + $0x2f4] sm:$0xf0] }
 0x12d   :  { %1660 = vmatpush.bf16.msra.mxu2 %v7472_v23  ;;  %1629 = vmatmul.bf16.vlgmr.msrb.gmra.mxu3 %v11476_v43  ;;  %v10031_v4 = vld [vmem:[#allocation2 + $0x364] sm:$0xf]  ;;  %v7405_v8 = vld [vmem:[#allocation2 + $0x470] sm:$0xf0]  ;;  %v7152_v11 = vor.u32 %v9999_v2, %v7149_v3  ;;  %v7347_v62 = vld [vmem:[#allocation2 + $0x3e8] sm:$0xf]  ;;  %v7220_v3 = vor.u32 %v10018_v59, %v7219_v58 }
 0x12e   :  { %1673 = vmatpush.bf16.msra.mxu3 %v7600_v27  ;;  %v10063_v7 = vld [vmem:[#allocation2 + $0x464] sm:$0xf]  ;;  %v7533_v10 = vld [vmem:[#allocation2 + $0x570] sm:$0xf0]  ;;  %v7280_v12 = vor.u32 %v10031_v4, %v7277_v6  ;;  %v6947_v4 = vld [vmem:[#allocation2 + $0xc8] sm:$0xf] }
 0x12f   :  { %1635 = vmatpush.bf16.msra.mxu0 %v7200_v33  ;;  %v10095_v9 = vld [vmem:[#allocation2 + $0x564] sm:$0xf]  ;;  %v7408_v13 = vor.u32 %v10063_v7, %v7405_v8  ;;  %v7133_v15 = vld [vmem:[#allocation2 + $0x250] sm:$0xf0]  ;;  %v7075_v6 = vld [vmem:[#allocation2 + $0x1c8] sm:$0xf] }
 0x130   :  { %1648 = vmatpush.bf16.msra.mxu1 %v7328_v38  ;;  %v9995_v14 = vld [vmem:[#allocation2 + $0x244] sm:$0xf]  ;;  %v7536_v17 = vor.u32 %v10095_v9, %v7533_v10  ;;  %v7261_v18 = vld [vmem:[#allocation2 + $0x350] sm:$0xf0]  ;;  %v9982_v8 = vld [vmem:[#allocation2 + $0x1d4] sm:$0xf0] }
 0x131   :  { %1661 = vmatpush.bf16.msra.mxu2 %v7456_v39  ;;  %v10027_v16 = vld [vmem:[#allocation2 + $0x344] sm:$0xf]  ;;  %v7389_v20 = vld [vmem:[#allocation2 + $0x450] sm:$0xf0]  ;;  %v7136_v23 = vor.u32 %v9995_v14, %v7133_v15  ;;  %v7203_v9 = vld [vmem:[#allocation2 + $0x2c8] sm:$0xf] }
 0x132   :  { %1674 = vmatpush.bf16.msra.mxu3 %v7584_v45  ;;  %v10059_v19 = vld [vmem:[#allocation2 + $0x444] sm:$0xf]  ;;  %v7517_v22 = vld [vmem:[#allocation2 + $0x550] sm:$0xf0]  ;;  %v7264_v24 = vor.u32 %v10027_v16, %v7261_v18  ;;  %v10014_v10 = vld [vmem:[#allocation2 + $0x2d4] sm:$0xf0]  ;;  %v7076_v16 = vor.u32 %v9982_v8, %v7075_v6 }
 0x133   :  { %1636 = vmatpush.bf16.msra.mxu0 %v7184_v51  ;;  %v10091_v21 = vld [vmem:[#allocation2 + $0x544] sm:$0xf]  ;;  %v7392_v25 = vor.u32 %v10059_v19, %v7389_v20  ;;  %v7117_v27 = vld [vmem:[#allocation2 + $0x230] sm:$0xf0]  ;;  %v6931_v14 = vld [vmem:[#allocation2 + $0xa8] sm:$0xf] }
 0x134   :  { %1649 = vmatpush.bf16.msra.mxu1 %v7312_v52  ;;  %v9991_v26 = vld [vmem:[#allocation2 + $0x224] sm:$0xf]  ;;  %v7520_v29 = vor.u32 %v10091_v21, %v7517_v22  ;;  %v7245_v30 = vld [vmem:[#allocation2 + $0x330] sm:$0xf0]  ;;  %v9946_v15 = vld [vmem:[#allocation2 + $0xb4] sm:$0xf0] }
 0x135   :  { %1662 = vmatpush.bf16.msra.mxu2 %v7440_v53  ;;  %v10023_v28 = vld [vmem:[#allocation2 + $0x324] sm:$0xf]  ;;  %v7373_v32 = vld [vmem:[#allocation2 + $0x430] sm:$0xf0]  ;;  %v7120_v39 = vor.u32 %v9991_v26, %v7117_v27  ;;  %v6963_v53 = vld [vmem:[#allocation2 + $0xe8] sm:$0xf] }
 0x136   :  { %1675 = vmatpush.bf16.msra.mxu3 %v7568_v57  ;;  %v10055_v31 = vld [vmem:[#allocation2 + $0x424] sm:$0xf]  ;;  %v7501_v38 = vld [vmem:[#allocation2 + $0x530] sm:$0xf0]  ;;  %v7248_v44 = vor.u32 %v10023_v28, %v7245_v30  ;;  %v9986_v57 = vld [vmem:[#allocation2 + $0x1f4] sm:$0xf0] }
 0x137   :  { %1637 = vmatpush.bf16.msra.mxu0 %v7168_v63  ;;  %v10087_v33 = vld [vmem:[#allocation2 + $0x524] sm:$0xf]  ;;  %v7101_v41 = vld [vmem:[#allocation2 + $0x210] sm:$0xf0]  ;;  %v7376_v45 = vor.u32 %v10055_v31, %v7373_v32  ;;  %v10050_v63 = vld [vmem:[#allocation2 + $0x3f4] sm:$0xf0]  ;;  %v7092_v2 = vor.u32 %v9986_v57, %v7091_v55 }
 0x138   :  { %1650 = vmatpush.bf16.msra.mxu1 %v7296_v0  ;;  %v9987_v40 = vld [vmem:[#allocation2 + $0x204] sm:$0xf]  ;;  %v7229_v47 = vld [vmem:[#allocation2 + $0x310] sm:$0xf0]  ;;  %v7504_v49 = vor.u32 %v10087_v33, %v7501_v38  ;;  %v7348_v7 = vor.u32 %v10050_v63, %v7347_v62  ;;  %v7059_v18 = vld [vmem:[#allocation2 + $0x1a8] sm:$0xf] }
 0x139   :  { %1663 = vmatpush.bf16.msra.mxu2 %v7424_v1  ;;  %v10019_v46 = vld [vmem:[#allocation2 + $0x304] sm:$0xf]  ;;  %v7357_v50 = vld [vmem:[#allocation2 + $0x410] sm:$0xf0]  ;;  %v7104_v56 = vor.u32 %v9987_v40, %v7101_v41  ;;  %v6964_v1 = vor.u32 %v9954_v54, %v6963_v53  ;;  %v9978_v19 = vld [vmem:[#allocation2 + $0x1b4] sm:$0xf0] }
 0x13a   :  { %1676 = vmatpush.bf16.msra.mxu3 %v7552_v5  ;;  %v10051_v48 = vld [vmem:[#allocation2 + $0x404] sm:$0xf]  ;;  %v7485_v52 = vld [vmem:[#allocation2 + $0x510] sm:$0xf0]  ;;  %v7232_v60 = vor.u32 %v10019_v46, %v7229_v47  ;;  %v9950_v5 = vld [vmem:[#allocation2 + $0xd4] sm:$0xf0]  ;;  %v7060_v26 = vor.u32 %v9978_v19, %v7059_v18 }
 0x13b   :  { %1638 = vmatpush.bf16.msra.mxu0 %v7152_v11  ;;  %v10083_v51 = vld [vmem:[#allocation2 + $0x504] sm:$0xf]  ;;  %v7360_v61 = vor.u32 %v10051_v48, %v7357_v50  ;;  %v7331_v11 = vld [vmem:[#allocation2 + $0x3c8] sm:$0xf]  ;;  %v10010_v22 = vld [vmem:[#allocation2 + $0x2b4] sm:$0xf0] }
 0x13c   :  { %1651 = vmatpush.bf16.msra.mxu1 %v7280_v12  ;;  %v7488_v0 = vor.u32 %v10083_v51, %v7485_v52  ;;  %v10046_v12 = vld [vmem:[#allocation2 + $0x3d4] sm:$0xf0]  ;;  %v7187_v20 = vld [vmem:[#allocation2 + $0x2a8] sm:$0xf] }
 0x13d   :  { %1664 = vmatpush.bf16.msra.mxu2 %v7408_v13  ;;  %v6948_v13 = vor.u32 %v9950_v5, %v6947_v4  ;;  %v7332_v21 = vor.u32 %v10046_v12, %v7331_v11  ;;  %v7188_v27 = vor.u32 %v10010_v22, %v7187_v20  ;;  %v6915_v28 = vld [vmem:[#allocation2 + $0x88] sm:$0xf]  ;;  %v9974_v32 = vld [vmem:[#allocation2 + $0x194] sm:$0xf0] }
 0x13e   :  { %1677 = vmatpush.bf16.msra.mxu3 %v7536_v17  ;;  %v7204_v17 = vor.u32 %v10014_v10, %v7203_v9  ;;  %v7043_v30 = vld [vmem:[#allocation2 + $0x188] sm:$0xf]  ;;  %v10006_v38 = vld [vmem:[#allocation2 + $0x294] sm:$0xf0] }
 0x13f   :  { %1639 = vmatpush.bf16.msra.mxu0 %v7136_v23  ;;  %v7315_v23 = vld [vmem:[#allocation2 + $0x3a8] sm:$0xf]  ;;  %v10038_v40 = vld [vmem:[#allocation2 + $0x394] sm:$0xf0] }
 0x140   :  { %1652 = vmatpush.bf16.msra.mxu1 %v7264_v24  ;;  %v10042_v24 = vld [vmem:[#allocation2 + $0x3b4] sm:$0xf0]  ;;  %v7171_v33 = vld [vmem:[#allocation2 + $0x288] sm:$0xf] }
 0x141   :  { %1665 = vmatpush.bf16.msra.mxu2 %v7392_v25  ;;  %v6932_v25 = vor.u32 %v9946_v15, %v6931_v14  ;;  %v7316_v31 = vor.u32 %v10042_v24, %v7315_v23  ;;  %v6899_v46 = vld [vmem:[#allocation2 + $0x68] sm:$0xf]  ;;  %v9938_v47 = vld [vmem:[#allocation2 + $0x74] sm:$0xf0] }
 0x142   :  { %1678 = vmatpush.bf16.msra.mxu3 %v7520_v29  ;;  %v9942_v29 = vld [vmem:[#allocation2 + $0x94] sm:$0xf0]  ;;  %v7027_v48 = vld [vmem:[#allocation2 + $0x168] sm:$0xf]  ;;  %v6900_v55 = vor.u32 %v9938_v47, %v6899_v46 }
 0x143   :  { %1640 = vmatpush.bf16.msra.mxu0 %v7120_v39  ;;  %v7299_v39 = vld [vmem:[#allocation2 + $0x388] sm:$0xf]  ;;  %v6916_v41 = vor.u32 %v9942_v29, %v6915_v28  ;;  %v9970_v50 = vld [vmem:[#allocation2 + $0x174] sm:$0xf0] }
 0x144   :  { %1653 = vmatpush.bf16.msra.mxu1 %v7248_v44  ;;  %v7044_v44 = vor.u32 %v9974_v32, %v7043_v30  ;;  %v7155_v51 = vld [vmem:[#allocation2 + $0x268] sm:$0xf]  ;;  %v10002_v52 = vld [vmem:[#allocation2 + $0x274] sm:$0xf0]  ;;  %v9952_v32 = vld [vmem:[#allocation2 + $0xec] sm:$0xf] }
 0x145   :  { %1666 = vmatpush.bf16.msra.mxu2 %v7376_v45  ;;  %v7172_v45 = vor.u32 %v10006_v38, %v7171_v33  ;;  %v7283_v53 = vld [vmem:[#allocation2 + $0x368] sm:$0xf]  ;;  %v10034_v54 = vld [vmem:[#allocation2 + $0x374] sm:$0xf0]  ;;  %v7156_v57 = vor.u32 %v10002_v52, %v7155_v51  ;;  %v6965_v33 = vld [vmem:[#allocation2 + $0xf8] sm:$0xf0] }
 0x146   :  { %1679 = vmatpush.bf16.msra.mxu3 %v7504_v49  ;;  %v7300_v49 = vor.u32 %v10038_v40, %v7299_v39  ;;  %v6883_v58 = vld [vmem:[#allocation2 + $0x48] sm:$0xf]  ;;  %v9934_v59 = vld [vmem:[#allocation2 + $0x54] sm:$0xf0]  ;;  %v9984_v40 = vld [vmem:[#allocation2 + $0x1ec] sm:$0xf]  ;;  %v6968_v47 = vor.u32 %v9952_v32, %v6965_v33 }
 0x147   :  { %1641 = vmatpush.bf16.msra.mxu0 %v7104_v56  ;;  %v7028_v56 = vor.u32 %v9970_v50, %v7027_v48  ;;  %v9966_v62 = vld [vmem:[#allocation2 + $0x154] sm:$0xf0]  ;;  %v7139_v63 = vld [vmem:[#allocation2 + $0x248] sm:$0xf] }
 0x148   :  { %1654 = vmatpush.bf16.msra.mxu1 %v7232_v60  ;;  %v7011_v60 = vld [vmem:[#allocation2 + $0x148] sm:$0xf]  ;;  %v9962_v10 = vld [vmem:[#allocation2 + $0x134] sm:$0xf0] }
 0x149   :  { %1667 = vmatpush.bf16.msra.mxu2 %v7360_v61  ;;  %v7284_v61 = vor.u32 %v10034_v54, %v7283_v53  ;;  %v7012_v4 = vor.u32 %v9966_v62, %v7011_v60  ;;  %v6867_v6 = vld [vmem:[#allocation2 + $0x28] sm:$0xf]  ;;  %v9994_v12 = vld [vmem:[#allocation2 + $0x234] sm:$0xf0]  ;;  %v9948_v53 = vld [vmem:[#allocation2 + $0xcc] sm:$0xf] }
 0x14a   :  { %1680 = vmatpush.bf16.msra.mxu3 %v7488_v0  ;;  %1642 = vmatmul.bf16.vlgmr.msra.gmra.mxu0 %v11470_v35  ;;  %v9998_v0 = vld [vmem:[#allocation2 + $0x254] sm:$0xf0]  ;;  %v6995_v8 = vld [vmem:[#allocation2 + $0x128] sm:$0xf]  ;;  %v6949_v54 = vld [vmem:[#allocation2 + $0xd8] sm:$0xf0] }
 0x14b   :  { %1686 = vmatpush.bf16.msrb.mxu0 %v6964_v1  ;;  %1655 = vmatmul.bf16.vlgmr.msra.gmra.mxu1 %v11474_v42  ;;  %v7267_v1 = vld [vmem:[#allocation2 + $0x348] sm:$0xf]  ;;  %v7140_v5 = vor.u32 %v9998_v0, %v7139_v63  ;;  %v10026_v14 = vld [vmem:[#allocation2 + $0x334] sm:$0xf0]  ;;  %v6996_v18 = vor.u32 %v9962_v10, %v6995_v8 }
 0x14c   :  { %1699 = vmatpush.bf16.msrb.mxu1 %v7092_v2  ;;  %1668 = vmatmul.bf16.vlgmr.msra.gmra.mxu2 %v11483_v34  ;;  %v10030_v2 = vld [vmem:[#allocation2 + $0x354] sm:$0xf0]  ;;  %v7123_v11 = vld [vmem:[#allocation2 + $0x228] sm:$0xf] }
 0x14d   :  { %1712 = vmatpush.bf16.msrb.mxu2 %v7220_v3  ;;  %1681 = vmatmul.bf16.vlgmr.msra.gmra.mxu3 %v11485_v37  ;;  %v6884_v3 = vor.u32 %v9934_v59, %v6883_v58  ;;  %v7268_v9 = vor.u32 %v10030_v2, %v7267_v1  ;;  %v7124_v19 = vor.u32 %v9994_v12, %v7123_v11  ;;  %v6979_v20 = vld [vmem:[#allocation2 + $0x108] sm:$0xf]  ;;  %v9990_v24 = vld [vmem:[#allocation2 + $0x214] sm:$0xf0]  ;;  %v9944_v1 = vld [vmem:[#allocation2 + $0xac] sm:$0xf] }
 0x14e   :  { %1725 = vmatpush.bf16.msrb.mxu3 %v7348_v7  ;;  %v9930_v7 = vld [vmem:[#allocation2 + $0x34] sm:$0xf0]  ;;  %v7107_v22 = vld [vmem:[#allocation2 + $0x208] sm:$0xf]  ;;  %v6952_v59 = vor.u32 %v9948_v53, %v6949_v54  ;;  %v6933_v2 = vld [vmem:[#allocation2 + $0xb8] sm:$0xf0] }
 0x14f   :  { %1687 = vmatpush.bf16.msrb.mxu0 %v6948_v13  ;;  %v7251_v13 = vld [vmem:[#allocation2 + $0x328] sm:$0xf]  ;;  %v6868_v15 = vor.u32 %v9930_v7, %v6867_v6  ;;  %v10082_v28 = vld [vmem:[#allocation2 + $0x4f4] sm:$0xf0]  ;;  %v7108_v39 = vor.u32 %v9990_v24, %v7107_v22  ;;  %v6936_v7 = vor.u32 %v9944_v1, %v6933_v2  ;;  %v9924_v2 = vld [vmem:[#allocation2 + $0xc] sm:$0xf] }
 0x150   :  { %1700 = vmatpush.bf16.msrb.mxu1 %v7076_v16  ;;  %v6851_v16 = vld [vmem:[#allocation2 + $0x8] sm:$0xf]  ;;  %v7252_v23 = vor.u32 %v10026_v14, %v7251_v13  ;;  %v10110_v52 = vld [vmem:[#allocation2 + $0x5d4] sm:$0xf0]  ;;  %v9940_v13 = vld [vmem:[#allocation2 + $0x8c] sm:$0xf] }
 0x151   :  { %1713 = vmatpush.bf16.msrb.mxu2 %v7204_v17  ;;  %v9926_v17 = vld [vmem:[#allocation2 + $0x14] sm:$0xf0]  ;;  %v7603_v29 = vld [vmem:[#allocation2 + $0x5e8] sm:$0xf]  ;;  %v6917_v14 = vld [vmem:[#allocation2 + $0x98] sm:$0xf0] }
 0x152   :  { %1726 = vmatpush.bf16.msrb.mxu3 %v7332_v21  ;;  %v9958_v21 = vld [vmem:[#allocation2 + $0x114] sm:$0xf0]  ;;  %v6852_v30 = vor.u32 %v9926_v17, %v6851_v16  ;;  %v7459_v48 = vld [vmem:[#allocation2 + $0x4c8] sm:$0xf]  ;;  %v7045_v16 = vld [vmem:[#allocation2 + $0x198] sm:$0xf0] }
 0x153   :  { %1688 = vmatpush.bf16.msrb.mxu0 %v6932_v25  ;;  %v7235_v25 = vld [vmem:[#allocation2 + $0x308] sm:$0xf]  ;;  %v6980_v38 = vor.u32 %v9958_v21, %v6979_v20  ;;  %v10106_v0 = vld [vmem:[#allocation2 + $0x5b4] sm:$0xf0] }
 0x154   :  { %1701 = vmatpush.bf16.msrb.mxu1 %v7060_v26  ;;  %v10022_v26 = vld [vmem:[#allocation2 + $0x314] sm:$0xf0]  ;;  %v7587_v50 = vld [vmem:[#allocation2 + $0x5c8] sm:$0xf] }
 0x155   :  { %1714 = vmatpush.bf16.msrb.mxu2 %v7188_v27  ;;  %v7475_v27 = vld [vmem:[#allocation2 + $0x4e8] sm:$0xf]  ;;  %v7588_v58 = vor.u32 %v10110_v52, %v7587_v50  ;;  %v10102_v12 = vld [vmem:[#allocation2 + $0x594] sm:$0xf0] }
 0x156   :  { %1727 = vmatpush.bf16.msrb.mxu3 %v7316_v31  ;;  %v10114_v31 = vld [vmem:[#allocation2 + $0x5f4] sm:$0xf0]  ;;  %v7443_v60 = vld [vmem:[#allocation2 + $0x4a8] sm:$0xf] }
 0x157   :  { %1689 = vmatpush.bf16.msrb.mxu0 %v6916_v41  ;;  %v7093_v41 = vld [vmem:[#allocation2 + $0x1f8] sm:$0xf0]  ;;  %v7604_v46 = vor.u32 %v10114_v31, %v7603_v29  ;;  %v7571_v62 = vld [vmem:[#allocation2 + $0x5a8] sm:$0xf]  ;;  %v10066_v21 = vld [vmem:[#allocation2 + $0x474] sm:$0xf0] }
 0x158   :  { %1702 = vmatpush.bf16.msrb.mxu1 %v7044_v44  ;;  %v7236_v44 = vor.u32 %v10022_v26, %v7235_v25  ;;  %v7096_v51 = vor.u32 %v9984_v40, %v7093_v41  ;;  %v7572_v6 = vor.u32 %v10106_v0, %v7571_v62  ;;  %v7427_v8 = vld [vmem:[#allocation2 + $0x488] sm:$0xf]  ;;  %v10098_v24 = vld [vmem:[#allocation2 + $0x574] sm:$0xf0]  ;;  %v9936_v25 = vld [vmem:[#allocation2 + $0x6c] sm:$0xf] }
 0x159   :  { %1715 = vmatpush.bf16.msrb.mxu2 %v7172_v45  ;;  %v7476_v45 = vor.u32 %v10082_v28, %v7475_v27  ;;  %v7555_v10 = vld [vmem:[#allocation2 + $0x588] sm:$0xf]  ;;  %v6901_v26 = vld [vmem:[#allocation2 + $0x78] sm:$0xf0]  ;;  %v9968_v27 = vld [vmem:[#allocation2 + $0x16c] sm:$0xf] }
 0x15a   :  { %1728 = vmatpush.bf16.msrb.mxu3 %v7300_v49  ;;  %v10078_v49 = vld [vmem:[#allocation2 + $0x4d4] sm:$0xf0]  ;;  %v7411_v20 = vld [vmem:[#allocation2 + $0x468] sm:$0xf]  ;;  %v7029_v28 = vld [vmem:[#allocation2 + $0x178] sm:$0xf0]  ;;  %v6904_v31 = vor.u32 %v9936_v25, %v6901_v26 }
 0x15b   :  { %1690 = vmatpush.bf16.msrb.mxu0 %v6900_v55  ;;  %v9980_v55 = vld [vmem:[#allocation2 + $0x1cc] sm:$0xf]  ;;  %v7539_v22 = vld [vmem:[#allocation2 + $0x568] sm:$0xf]  ;;  %v7412_v29 = vor.u32 %v10066_v21, %v7411_v20  ;;  %v10062_v33 = vld [vmem:[#allocation2 + $0x454] sm:$0xf0] }
 0x15c   :  { %1703 = vmatpush.bf16.msrb.mxu1 %v7028_v56  ;;  %v7077_v56 = vld [vmem:[#allocation2 + $0x1d8] sm:$0xf0]  ;;  %v7395_v32 = vld [vmem:[#allocation2 + $0x448] sm:$0xf]  ;;  %v10094_v40 = vld [vmem:[#allocation2 + $0x554] sm:$0xf0] }
 0x15d   :  { %1716 = vmatpush.bf16.msrb.mxu2 %v7156_v57  ;;  %v7460_v57 = vor.u32 %v10078_v49, %v7459_v48  ;;  %v7080_v63 = vor.u32 %v9980_v55, %v7077_v56  ;;  %v9932_v41 = vld [vmem:[#allocation2 + $0x4c] sm:$0xf]  ;;  %v7379_v50 = vld [vmem:[#allocation2 + $0x428] sm:$0xf]  ;;  %v10090_v54 = vld [vmem:[#allocation2 + $0x534] sm:$0xf0] }
 0x15e   :  { %1729 = vmatpush.bf16.msrb.mxu3 %v7284_v61  ;;  %v10074_v61 = vld [vmem:[#allocation2 + $0x4b4] sm:$0xf0]  ;;  %v7507_v52 = vld [vmem:[#allocation2 + $0x528] sm:$0xf]  ;;  %v9928_v55 = vld [vmem:[#allocation2 + $0x2c] sm:$0xf] }
 0x15f   :  { %1691 = vmatpush.bf16.msrb.mxu0 %v6884_v3  ;;  %v9976_v3 = vld [vmem:[#allocation2 + $0x1ac] sm:$0xf]  ;;  %v6869_v56 = vld [vmem:[#allocation2 + $0x38] sm:$0xf0]  ;;  %v7508_v62 = vor.u32 %v10090_v54, %v7507_v52  ;;  %v7491_v0 = vld [vmem:[#allocation2 + $0x508] sm:$0xf] }
 0x160   :  { %1704 = vmatpush.bf16.msrb.mxu1 %v7012_v4  ;;  %v7061_v4 = vld [vmem:[#allocation2 + $0x1b8] sm:$0xf0]  ;;  %v10086_v1 = vld [vmem:[#allocation2 + $0x514] sm:$0xf0]  ;;  %v10004_v52 = vld [vmem:[#allocation2 + $0x28c] sm:$0xf] }
 0x161   :  { %1717 = vmatpush.bf16.msrb.mxu2 %v7140_v5  ;;  %v7444_v5 = vor.u32 %v10074_v61, %v7443_v60  ;;  %v7064_v11 = vor.u32 %v9976_v3, %v7061_v4  ;;  %v7363_v60 = vld [vmem:[#allocation2 + $0x408] sm:$0xf]  ;;  %v10054_v61 = vld [vmem:[#allocation2 + $0x414] sm:$0xf0]  ;;  %v6853_v4 = vld [vmem:[#allocation2 + $0x18] sm:$0xf0] }
 0x162   :  { %1730 = vmatpush.bf16.msrb.mxu3 %v7268_v9  ;;  %v10070_v9 = vld [vmem:[#allocation2 + $0x494] sm:$0xf0]  ;;  %v7333_v26 = vld [vmem:[#allocation2 + $0x3d8] sm:$0xf0]  ;;  %v10036_v54 = vld [vmem:[#allocation2 + $0x38c] sm:$0xf] }
 0x163   :  { %1692 = vmatpush.bf16.msrb.mxu0 %v6868_v15  ;;  %v9972_v15 = vld [vmem:[#allocation2 + $0x18c] sm:$0xf]  ;;  %v7428_v17 = vor.u32 %v10070_v9, %v7427_v8  ;;  %v7221_v8 = vld [vmem:[#allocation2 + $0x2f8] sm:$0xf0] }
 0x164   :  { %1705 = vmatpush.bf16.msrb.mxu1 %v6996_v18  ;;  %v7556_v18 = vor.u32 %v10102_v12, %v7555_v10  ;;  %v10048_v9 = vld [vmem:[#allocation2 + $0x3ec] sm:$0xf]  ;;  %v7364_v10 = vor.u32 %v10054_v61, %v7363_v60 }
 0x165   :  { %1718 = vmatpush.bf16.msrb.mxu2 %v7124_v19  ;;  %v6920_v19 = vor.u32 %v9940_v13, %v6917_v14  ;;  %v10080_v12 = vld [vmem:[#allocation2 + $0x4ec] sm:$0xf]  ;;  %v7477_v13 = vld [vmem:[#allocation2 + $0x4f8] sm:$0xf0]  ;;  %v7492_v14 = vor.u32 %v10086_v1, %v7491_v0 }
 0x166   :  { %1731 = vmatpush.bf16.msrb.mxu3 %v7252_v23  ;;  %v7048_v23 = vor.u32 %v9972_v15, %v7045_v16  ;;  %v6856_v15 = vor.u32 %v9924_v2, %v6853_v4  ;;  %v10112_v16 = vld [vmem:[#allocation2 + $0x5ec] sm:$0xf]  ;;  %v7480_v21 = vor.u32 %v10080_v12, %v7477_v13  ;;  %v7285_v2 = vld [vmem:[#allocation2 + $0x378] sm:$0xf0] }
 0x167   :  { %1693 = vmatpush.bf16.msrb.mxu0 %v6852_v30  ;;  %v7540_v30 = vor.u32 %v10098_v24, %v7539_v22  ;;  %v10012_v22 = vld [vmem:[#allocation2 + $0x2cc] sm:$0xf]  ;;  %v7413_v4 = vld [vmem:[#allocation2 + $0x478] sm:$0xf0] }
 0x168   :  { %1706 = vmatpush.bf16.msrb.mxu1 %v6980_v38  ;;  %v7523_v38 = vld [vmem:[#allocation2 + $0x548] sm:$0xf]  ;;  %v10044_v24 = vld [vmem:[#allocation2 + $0x3cc] sm:$0xf] }
 0x169   :  { %1719 = vmatpush.bf16.msrb.mxu2 %v7108_v39  ;;  %v7032_v39 = vor.u32 %v9968_v27, %v7029_v28  ;;  %v7524_v48 = vor.u32 %v10094_v40, %v7523_v38  ;;  %v10076_v27 = vld [vmem:[#allocation2 + $0x4cc] sm:$0xf]  ;;  %v7461_v28 = vld [vmem:[#allocation2 + $0x4d8] sm:$0xf0] }
 0x16a   :  { %1732 = vmatpush.bf16.msrb.mxu3 %v7236_v44  ;;  %1694 = vmatmul.bf16.vlgmr.msrb.gmra.mxu0 %v11472_v36  ;;  %v6885_v44 = vld [vmem:[#allocation2 + $0x58] sm:$0xf0]  ;;  %v10008_v38 = vld [vmem:[#allocation2 + $0x2ac] sm:$0xf] }
 0x16b   :  { %1738 = vmatpush.bf16.msra.mxu0 %v7476_v45  ;;  %1707 = vmatmul.bf16.vlgmr.msrb.gmra.mxu1 %v11476_v43  ;;  %v9964_v45 = vld [vmem:[#allocation2 + $0x14c] sm:$0xf]  ;;  %v6888_v49 = vor.u32 %v9932_v41, %v6885_v44  ;;  %v7317_v44 = vld [vmem:[#allocation2 + $0x3b8] sm:$0xf0] }
 0x16c   :  { %1751 = vmatpush.bf16.msra.mxu1 %v7604_v46  ;;  %1720 = vmatmul.bf16.vlgmr.msrb.gmra.mxu2 %v11470_v35  ;;  %v7013_v46 = vld [vmem:[#allocation2 + $0x158] sm:$0xf0]  ;;  %v10040_v40 = vld [vmem:[#allocation2 + $0x3ac] sm:$0xf] }
 0x16d   :  { %1764 = vmatpush.bf16.msra.mxu2 %v6968_v47  ;;  %1733 = vmatmul.bf16.vlgmr.msrb.gmra.mxu3 %v11474_v42  ;;  %v7396_v47 = vor.u32 %v10062_v33, %v7395_v32  ;;  %v7016_v53 = vor.u32 %v9964_v45, %v7013_v46  ;;  %v7336_v32 = vor.u32 %v10044_v24, %v7333_v26  ;;  %v10072_v45 = vld [vmem:[#allocation2 + $0x4ac] sm:$0xf]  ;;  %v7445_v46 = vld [vmem:[#allocation2 + $0x4b8] sm:$0xf0] }
 0x16e   :  { %1777 = vmatpush.bf16.msra.mxu3 %v7096_v51  ;;  %v10058_v51 = vld [vmem:[#allocation2 + $0x434] sm:$0xf0]  ;;  %v7464_v33 = vor.u32 %v10076_v27, %v7461_v28  ;;  %v10032_v0 = vld [vmem:[#allocation2 + $0x36c] sm:$0xf]  ;;  %v7253_v26 = vld [vmem:[#allocation2 + $0x338] sm:$0xf0] }
 0x16f   :  { %1739 = vmatpush.bf16.msra.mxu0 %v7460_v57  ;;  %v9960_v57 = vld [vmem:[#allocation2 + $0x12c] sm:$0xf]  ;;  %v7381_v28 = vld [vmem:[#allocation2 + $0x438] sm:$0xf0] }
 0x170   :  { %1752 = vmatpush.bf16.msra.mxu1 %v7588_v58  ;;  %v6997_v58 = vld [vmem:[#allocation2 + $0x138] sm:$0xf0]  ;;  %v10028_v12 = vld [vmem:[#allocation2 + $0x34c] sm:$0xf] }
 0x171   :  { %1765 = vmatpush.bf16.msra.mxu2 %v6952_v59  ;;  %v7380_v59 = vor.u32 %v10058_v51, %v7379_v50  ;;  %v7000_v3 = vor.u32 %v9960_v57, %v6997_v58  ;;  %v7320_v50 = vor.u32 %v10040_v40, %v7317_v44  ;;  %v7448_v51 = vor.u32 %v10072_v45, %v7445_v46  ;;  %v10068_v57 = vld [vmem:[#allocation2 + $0x48c] sm:$0xf]  ;;  %v7429_v58 = vld [vmem:[#allocation2 + $0x498] sm:$0xf0] }
 0x172   :  { %1778 = vmatpush.bf16.msra.mxu3 %v7080_v63  ;;  %v6872_v63 = vor.u32 %v9928_v55, %v6869_v56  ;;  %v7301_v56 = vld [vmem:[#allocation2 + $0x398] sm:$0xf0]  ;;  %v10024_v24 = vld [vmem:[#allocation2 + $0x32c] sm:$0xf] }
 0x173   :  { %1740 = vmatpush.bf16.msra.mxu0 %v7444_v5  ;;  %v9956_v5 = vld [vmem:[#allocation2 + $0x10c] sm:$0xf]  ;;  %v7304_v61 = vor.u32 %v10036_v54, %v7301_v56  ;;  %v7109_v40 = vld [vmem:[#allocation2 + $0x218] sm:$0xf0]  ;;  %v11504_v54 = vld [vmem:[%s11837_s5] sm:$0xf] }
 0x174   :  { %1753 = vmatpush.bf16.msra.mxu1 %v7572_v6  ;;  %v6981_v6 = vld [vmem:[#allocation2 + $0x118] sm:$0xf0]  ;;  %v10056_v27 = vld [vmem:[#allocation2 + $0x42c] sm:$0xf]  ;;  %v10146_v56 = vld [vmem:[#allocation5 + $0xf4] sm:$0xf0] }
 0x175   :  { %1766 = vmatpush.bf16.msra.mxu2 %v6936_v7  ;;  %v10016_v7 = vld [vmem:[#allocation2 + $0x2ec] sm:$0xf]  ;;  %v7237_v44 = vld [vmem:[#allocation2 + $0x318] sm:$0xf0] }
 0x176   :  { %1779 = vmatpush.bf16.msra.mxu3 %v7064_v11  ;;  %v7349_v11 = vld [vmem:[#allocation2 + $0x3f8] sm:$0xf0]  ;;  %v10052_v46 = vld [vmem:[#allocation2 + $0x40c] sm:$0xf] }
 0x177   :  { %1741 = vmatpush.bf16.msra.mxu0 %v7428_v17  ;;  %v7605_v17 = vld [vmem:[#allocation2 + $0x5f8] sm:$0xf0]  ;;  %v7352_v20 = vor.u32 %v10048_v9, %v7349_v11 }
 0x178   :  { %1754 = vmatpush.bf16.msra.mxu1 %v7556_v18  ;;  %v6984_v18 = vor.u32 %v9956_v5, %v6981_v6  ;;  %v7608_v25 = vor.u32 %v10112_v16, %v7605_v17  ;;  %v10096_v5 = vld [vmem:[#allocation2 + $0x56c] sm:$0xf]  ;;  %v7541_v6 = vld [vmem:[#allocation2 + $0x578] sm:$0xf0] }
 0x179   :  { %1767 = vmatpush.bf16.msra.mxu2 %v6920_v19  ;;  %v7224_v19 = vor.u32 %v10016_v7, %v7221_v8  ;;  %v7288_v8 = vor.u32 %v10032_v0, %v7285_v2  ;;  %v7141_v11 = vld [vmem:[#allocation2 + $0x258] sm:$0xf0]  ;;  %v7544_v13 = vor.u32 %v10096_v5, %v7541_v6  ;;  %v10092_v17 = vld [vmem:[#allocation2 + $0x54c] sm:$0xf]  ;;  %v7723_v2 = vld [vmem:[#allocation5 + $0xe0] sm:$0xf] }
 0x17a   :  { %1780 = vmatpush.bf16.msra.mxu3 %v7048_v23  ;;  %v7205_v23 = vld [vmem:[#allocation2 + $0x2d8] sm:$0xf0]  ;;  %v7651_v6 = vld [vmem:[#allocation5 + $0x50] sm:$0xf] }
 0x17b   :  { %1742 = vmatpush.bf16.msra.mxu0 %v7412_v29  ;;  %v10108_v29 = vld [vmem:[#allocation2 + $0x5cc] sm:$0xf]  ;;  %v7397_v16 = vld [vmem:[#allocation2 + $0x458] sm:$0xf0] }
 0x17c   :  { %1755 = vmatpush.bf16.msra.mxu1 %v7540_v30  ;;  %v7589_v30 = vld [vmem:[#allocation2 + $0x5d8] sm:$0xf0] }
 0x17d   :  { %1768 = vmatpush.bf16.msra.mxu2 %v6904_v31  ;;  %v7208_v31 = vor.u32 %v10012_v22, %v7205_v23  ;;  %v7592_v41 = vor.u32 %v10108_v29, %v7589_v30  ;;  %v9992_v22 = vld [vmem:[#allocation2 + $0x22c] sm:$0xf]  ;;  %v7125_v23 = vld [vmem:[#allocation2 + $0x238] sm:$0xf0] }
 0x17e   :  { %1781 = vmatpush.bf16.msra.mxu3 %v7032_v39  ;;  %v7189_v39 = vld [vmem:[#allocation2 + $0x2b8] sm:$0xf0]  ;;  %v10088_v29 = vld [vmem:[#allocation2 + $0x52c] sm:$0xf] }
 0x17f   :  { %1743 = vmatpush.bf16.msra.mxu0 %v7396_v47  ;;  %v10104_v47 = vld [vmem:[#allocation2 + $0x5ac] sm:$0xf]  ;;  %v7509_v30 = vld [vmem:[#allocation2 + $0x538] sm:$0xf0] }
 0x180   :  { %1756 = vmatpush.bf16.msra.mxu1 %v7524_v48  ;;  %v7573_v48 = vld [vmem:[#allocation2 + $0x5b8] sm:$0xf0]  ;;  %v7512_v45 = vor.u32 %v10088_v29, %v7509_v30  ;;  %v10120_v29 = vld [vmem:[#allocation5 + $0x24] sm:$0xf0] }
 0x181   :  { %1769 = vmatpush.bf16.msra.mxu2 %v6888_v49  ;;  %v7192_v49 = vor.u32 %v10008_v38, %v7189_v39  ;;  %v7576_v55 = vor.u32 %v10104_v47, %v7573_v48  ;;  %v7256_v38 = vor.u32 %v10024_v24, %v7253_v26  ;;  %v7384_v39 = vor.u32 %v10056_v27, %v7381_v28  ;;  %v7365_v47 = vld [vmem:[#allocation2 + $0x418] sm:$0xf0]  ;;  %v10084_v48 = vld [vmem:[#allocation2 + $0x50c] sm:$0xf]  ;;  %v7699_v24 = vld [vmem:[#allocation5 + $0xb0] sm:$0xf] }
 0x182   :  { %1782 = vmatpush.bf16.msra.mxu3 %v7016_v53  ;;  %v7173_v53 = vld [vmem:[#allocation2 + $0x298] sm:$0xf0]  ;;  %v7627_v28 = vld [vmem:[#allocation5 + $0x20] sm:$0xf] }
 0x183   :  { %1744 = vmatpush.bf16.msra.mxu0 %v7380_v59  ;;  %v10100_v59 = vld [vmem:[#allocation2 + $0x58c] sm:$0xf]  ;;  %v7176_v60 = vor.u32 %v10004_v52, %v7173_v53 }
 0x184   :  { %1757 = vmatpush.bf16.msra.mxu1 %v7508_v62  ;;  %v10000_v62 = vld [vmem:[#allocation2 + $0x26c] sm:$0xf] }
 0x185   :  { %1770 = vmatpush.bf16.msra.mxu2 %v6872_v63  ;;  %v7157_v63 = vld [vmem:[#allocation2 + $0x278] sm:$0xf0] }
 0x186   :  { %1783 = vmatpush.bf16.msra.mxu3 %v7000_v3  ;;  %v10064_v3 = vld [vmem:[#allocation2 + $0x46c] sm:$0xf]  ;;  %v7160_v7 = vor.u32 %v10000_v62, %v7157_v63  ;;  %v10128_v62 = vld [vmem:[#allocation5 + $0x64] sm:$0xf0] }
 0x187   :  { %1745 = vmatpush.bf16.msra.mxu0 %v7364_v10  ;;  %v7416_v9 = vor.u32 %v10064_v3, %v7413_v4  ;;  %v9996_v10 = vld [vmem:[#allocation2 + $0x24c] sm:$0xf]  ;;  %v10144_v3 = vld [vmem:[#allocation5 + $0xe4] sm:$0xf0] }
 0x188   :  { %1758 = vmatpush.bf16.msra.mxu1 %v7492_v14  ;;  %v7269_v14 = vld [vmem:[#allocation2 + $0x358] sm:$0xf0] }
 0x189   :  { %1771 = vmatpush.bf16.msra.mxu2 %v6856_v15  ;;  %v10060_v15 = vld [vmem:[#allocation2 + $0x44c] sm:$0xf] }
 0x18a   :  { %1784 = vmatpush.bf16.msra.mxu3 %v6984_v18  ;;  %1746 = vmatmul.bf16.vlgmr.msra.gmra.mxu0 %v11483_v34  ;;  %v7525_v18 = vld [vmem:[#allocation2 + $0x558] sm:$0xf0] }
 0x18b   :  { %1790 = vmatpush.bf16.msrb.mxu0 %v7224_v19  ;;  %1759 = vmatmul.bf16.vlgmr.msra.gmra.mxu1 %v11485_v37  ;;  %v7144_v19 = vor.u32 %v9996_v10, %v7141_v11  ;;  %v7715_v10 = vld [vmem:[#allocation5 + $0xd0] sm:$0xf]  ;;  %v10142_v11 = vld [vmem:[#allocation5 + $0xd4] sm:$0xf0] }
 0x18c   :  { %1803 = vmatpush.bf16.msrb.mxu1 %v7352_v20  ;;  %1772 = vmatmul.bf16.vlgmr.msra.gmra.mxu2 %v11472_v36  ;;  %v7557_v36 = vld [vmem:[#allocation2 + $0x598] sm:$0xf0]  ;;  %v7272_v20 = vor.u32 %v10028_v12, %v7269_v14 }
 0x18d   :  { %1816 = vmatpush.bf16.msrb.mxu2 %v7480_v21  ;;  %1785 = vmatmul.bf16.vlgmr.msra.gmra.mxu3 %v11476_v43  ;;  %v7432_v43 = vor.u32 %v10068_v57, %v7429_v58  ;;  %v7560_v1 = vor.u32 %v10100_v59, %v7557_v36  ;;  %v7400_v21 = vor.u32 %v10060_v15, %v7397_v16  ;;  %v7643_v15 = vld [vmem:[#allocation5 + $0x40] sm:$0xf] }
 0x18e   :  { %1829 = vmatpush.bf16.msrb.mxu3 %v7608_v25  ;;  %v7528_v25 = vor.u32 %v10092_v17, %v7525_v18  ;;  %v7368_v58 = vor.u32 %v10052_v46, %v7365_v47  ;;  %v7716_v17 = vor.u32 %v10142_v11, %v7715_v10  ;;  %v7707_v18 = vld [vmem:[#allocation5 + $0xc0] sm:$0xf] }
 0x18f   :  { %1791 = vmatpush.bf16.msrb.mxu0 %v7208_v31  ;;  %v7128_v31 = vor.u32 %v9992_v22, %v7125_v23  ;;  %v10122_v22 = vld [vmem:[#allocation5 + $0x34] sm:$0xf0] }
 0x190   :  { %1804 = vmatpush.bf16.msrb.mxu1 %v7336_v32  ;;  %v9988_v32 = vld [vmem:[#allocation2 + $0x20c] sm:$0xf] }
 0x191   :  { %1817 = vmatpush.bf16.msrb.mxu2 %v7464_v33  ;;  %v7112_v53 = vor.u32 %v9988_v32, %v7109_v40  ;;  %v7691_v32 = vld [vmem:[#allocation5 + $0xa0] sm:$0xf]  ;;  %v7628_v40 = vor.u32 %v10120_v29, %v7627_v28  ;;  %v10156_v29 = vld [vmem:[#allocation5 + $0x144] sm:$0xf0] }
 0x192   :  { %1830 = vmatpush.bf16.msrb.mxu3 %v7592_v41  ;;  %v10020_v41 = vld [vmem:[#allocation2 + $0x30c] sm:$0xf]  ;;  %v7771_v28 = vld [vmem:[#allocation5 + $0x140] sm:$0xf] }
 0x193   :  { %1792 = vmatpush.bf16.msrb.mxu0 %v7192_v49  ;;  %v7493_v49 = vld [vmem:[#allocation2 + $0x518] sm:$0xf0]  ;;  %v7240_v57 = vor.u32 %v10020_v41, %v7237_v44  ;;  %v7619_v44 = vld [vmem:[#allocation5 + $0x10] sm:$0xf] }
 0x194   :  { %1805 = vmatpush.bf16.msrb.mxu1 %v7320_v50  ;;  %v7667_v50 = vld [vmem:[#allocation5 + $0x70] sm:$0xf]  ;;  %v7496_v59 = vor.u32 %v10084_v48, %v7493_v49  ;;  %v10134_v49 = vld [vmem:[#allocation5 + $0x94] sm:$0xf0] }
 0x195   :  { %1818 = vmatpush.bf16.msrb.mxu2 %v7448_v51  ;;  %v1539_v33 = vpop.f32.mrf.mxu0  ;;  %v10130_v51 = vld [vmem:[#allocation5 + $0x74] sm:$0xf0]  ;;  %v7683_v48 = vld [vmem:[#allocation5 + $0x90] sm:$0xf] }
 0x196   :  { %1831 = vmatpush.bf16.msrb.mxu3 %v7576_v55  ;;  %v7731_v55 = vld [vmem:[#allocation5 + $0xf0] sm:$0xf]  ;;  %v7668_v36 = vor.u32 %v10130_v51, %v7667_v50 }
 0x197   :  { %1793 = vmatpush.bf16.msrb.mxu0 %v7176_v60  ;;  %v1552_v52 = vpop.f32.mrf.mxu1  ;;  %v7732_v0 = vor.u32 %v10146_v56, %v7731_v55  ;;  %v10129_v55 = vld [vmem:[#allocation5 + $0x74] sm:$0xf]  ;;  %v7684_v56 = vor.u32 %v10134_v49, %v7683_v48  ;;  %v7851_v49 = vld [vmem:[#allocation5 + $0x1e0] sm:$0xf] }
 0x198   :  { %1806 = vmatpush.bf16.msrb.mxu1 %v7304_v61  ;;  %v562_v61 = vperm.slane %v11504_v54, 0 }
 0x199   :  { %1819 = vmatpush.bf16.msrb.mxu2 %v7432_v43  ;;  %v7659_v43 = vld [vmem:[#allocation5 + $0x60] sm:$0xf] }
 0x19a   :  { %1832 = vmatpush.bf16.msrb.mxu3 %v7560_v1  ;;  %v1565_v60 = vpop.f32.mrf.mxu2  ;;  %v7660_v4 = vor.u32 %v10128_v62, %v7659_v43  ;;  %v1540_v5 = vadd.f32 %v1539_v33, %v562_v61  ;;  %v10136_v33 = vld [vmem:[#allocation5 + $0xa4] sm:$0xf0]  ;;  %v10145_v61 = vld [vmem:[#allocation5 + $0xf4] sm:$0xf]  ;;  %v7733_v43 = vld [vmem:[#allocation5 + $0xf8] sm:$0xf0] }
 0x19b   :  { %1794 = vmatpush.bf16.msrb.mxu0 %v7160_v7  ;;  %v10126_v7 = vld [vmem:[#allocation5 + $0x54] sm:$0xf0]  ;;  %v7692_v46 = vor.u32 %v10136_v33, %v7691_v32  ;;  %v7637_v33 = vld [vmem:[#allocation5 + $0x38] sm:$0xf0] }
 0x19c   :  { %1807 = vmatpush.bf16.msrb.mxu1 %v7288_v8  ;;  %v1578_v63 = vpop.f32.mrf.mxu3  ;;  %v7652_v12 = vor.u32 %v10126_v7, %v7651_v6  ;;  %v1553_v14 = vadd.f32 %v1552_v52, %v1540_v5  ;;  %v7611_v52 = vld [vmem:[#allocation5] sm:$0xf]  ;;  %v563_v5 = vperm.slane %v11504_v54, 1  ;;  %v10143_v6 = vld [vmem:[#allocation5 + $0xe4] sm:$0xf] }
 0x19d   :  { %1820 = vmatpush.bf16.msrb.mxu2 %v7416_v9  ;;  %v1541_v1 = vpop.f32.mrf.mxu0  ;;  %v7724_v9 = vor.u32 %v10144_v3, %v7723_v2  ;;  %v10127_v2 = vld [vmem:[#allocation5 + $0x64] sm:$0xf]  ;;  %v7661_v3 = vld [vmem:[#allocation5 + $0x68] sm:$0xf0] }
 0x19e   :  { %1833 = vmatpush.bf16.msrb.mxu3 %v7544_v13  ;;  %v7725_v7 = vld [vmem:[#allocation5 + $0xe8] sm:$0xf0]  ;;  %v7664_v11 = vor.u32 %v10127_v2, %v7661_v3  ;;  %v7843_v2 = vld [vmem:[#allocation5 + $0x1d0] sm:$0xf]  ;;  %v10174_v3 = vld [vmem:[#allocation5 + $0x1d4] sm:$0xf0] }
 0x19f   :  { %1795 = vmatpush.bf16.msrb.mxu0 %v7144_v19  ;;  %v1554_v8 = vpop.f32.mrf.mxu1  ;;  %v10140_v19 = vld [vmem:[#allocation5 + $0xc4] sm:$0xf0] }
 0x1a0   :  { %1808 = vmatpush.bf16.msrb.mxu1 %v7272_v20  ;;  %v7795_v8 = vld [vmem:[#allocation5 + $0x170] sm:$0xf] }
 0x1a1   :  { %1821 = vmatpush.bf16.msrb.mxu2 %v7400_v21  ;;  %v1566_v21 = vadd.f32 %v1565_v60, %v1553_v14  ;;  %v10160_v14 = vld [vmem:[#allocation5 + $0x164] sm:$0xf0] }
 0x1a2   :  { %1834 = vmatpush.bf16.msrb.mxu3 %v7528_v25  ;;  %v1567_v13 = vpop.f32.mrf.mxu2  ;;  %v10138_v25 = vld [vmem:[#allocation5 + $0xb4] sm:$0xf0] }
 0x1a3   :  { %1796 = vmatpush.bf16.msrb.mxu0 %v7128_v31  ;;  %v1579_v27 = vadd.f32 %v1578_v63, %v1566_v21  ;;  %v7700_v30 = vor.u32 %v10138_v25, %v7699_v24  ;;  %v7787_v13 = vld [vmem:[#allocation5 + $0x160] sm:$0xf]  ;;  %v10158_v21 = vld [vmem:[#allocation5 + $0x154] sm:$0xf0]  ;;  %v10139_v25 = vld [vmem:[#allocation5 + $0xc4] sm:$0xf] }
 0x1a4   :  { %1809 = vmatpush.bf16.msrb.mxu1 %v7256_v38  ;;  %v1580_v16 = vpop.f32.mrf.mxu3 }
 0x1a5   :  { %1822 = vmatpush.bf16.msrb.mxu2 %v7384_v39  ;;  %v7728_v16 = vor.u32 %v10143_v6, %v7725_v7  ;;  %v7844_v6 = vor.u32 %v10174_v3, %v7843_v2  ;;  %v7803_v2 = vld [vmem:[#allocation5 + $0x180] sm:$0xf] }
 0x1a6   :  { %1835 = vmatpush.bf16.msrb.mxu3 %v7512_v45  ;;  %v10118_v45 = vld [vmem:[#allocation5 + $0x14] sm:$0xf0] }
 0x1a7   :  { %1797 = vmatpush.bf16.msrb.mxu0 %v7112_v53  ;;  %v1591_v20 = vpop.f32.mrf.mxu0  ;;  %v7620_v50 = vor.u32 %v10118_v45, %v7619_v44  ;;  %v10116_v53 = vld [vmem:[#allocation5 + $0x4] sm:$0xf0] }
 0x1a8   :  { %1810 = vmatpush.bf16.msrb.mxu1 %v7240_v57  ;;  %v1604_v23 = vpop.f32.mrf.mxu1  ;;  %v1592_v41 = vadd.f32 %v1591_v20, %v1579_v27  ;;  %v7669_v57 = vld [vmem:[#allocation5 + $0x78] sm:$0xf0]  ;;  %v7612_v62 = vor.u32 %v10116_v53, %v7611_v52  ;;  %v7788_v20 = vor.u32 %v10160_v14, %v7787_v13  ;;  %v10176_v52 = vld [vmem:[#allocation5 + $0x1e4] sm:$0xf0]  ;;  %v10133_v14 = vld [vmem:[#allocation5 + $0x94] sm:$0xf] }
 0x1a9   :  { %1823 = vmatpush.bf16.msrb.mxu2 %v7368_v58  ;;  %v10172_v13 = vld [vmem:[#allocation5 + $0x1c4] sm:$0xf0] }
 0x1aa   :  { %1836 = vmatpush.bf16.msrb.mxu3 %v7496_v59  ;;  %1798 = vmatmul.bf16.vlgmr.msrb.gmra.mxu0 %v11470_v35  ;;  %v10124_v35 = vld [vmem:[#allocation5 + $0x44] sm:$0xf0]  ;;  %v1605_v51 = vadd.f32 %v1604_v23, %v1592_v41  ;;  %v7675_v59 = vld [vmem:[#allocation5 + $0x80] sm:$0xf]  ;;  %v7645_v23 = vld [vmem:[#allocation5 + $0x48] sm:$0xf0] }
 0x1ab   :  { %2240 = vmatpush.bf16.msra.mxu0 %v7668_v36  ;;  %1811 = vmatmul.bf16.vlgmr.msrb.gmra.mxu1 %v11474_v42  ;;  %v7644_v42 = vor.u32 %v10124_v35, %v7643_v15  ;;  %v10132_v36 = vld [vmem:[#allocation5 + $0x84] sm:$0xf0]  ;;  %v10125_v15 = vld [vmem:[#allocation5 + $0x54] sm:$0xf]  ;;  %v7653_v35 = vld [vmem:[#allocation5 + $0x58] sm:$0xf0] }
 0x1ac   :  { %2253 = vmatpush.bf16.msra.mxu1 %v7732_v0  ;;  %1824 = vmatmul.bf16.vlgmr.msrb.gmra.mxu2 %v11483_v34  ;;  %v7635_v34 = vld [vmem:[#allocation5 + $0x30] sm:$0xf]  ;;  %v1842_v63 = vmax.f32 %v1605_v51, 0.0  ;;  %v7672_v0 = vor.u32 %v10129_v55, %v7669_v57  ;;  %v7676_v1 = vor.u32 %v10132_v36, %v7675_v59  ;;  %v10178_v41 = vld [vmem:[#allocation5 + $0x1f4] sm:$0xf0] }
 0x1ad   :  { %1837 = vmatmul.bf16.vlgmr.msrb.gmra.mxu3 %v11485_v37  ;;  %v7708_v37 = vor.u32 %v10140_v19, %v7707_v18  ;;  %v7636_v26 = vor.u32 %v10122_v22, %v7635_v34  ;;  %v10141_v18 = vld [vmem:[#allocation5 + $0xd4] sm:$0xf]  ;;  %v7717_v19 = vld [vmem:[#allocation5 + $0xd8] sm:$0xf0]  ;;  %v7656_v34 = vor.u32 %v10125_v15, %v7653_v35  ;;  %v10123_v22 = vld [vmem:[#allocation5 + $0x44] sm:$0xf] }
 0x1ae   :  { %v11514_v10 = vpack.c.bf16 %v1842_v63, %v1842_v63  ;;  %v10154_v51 = vld [vmem:[#allocation5 + $0x134] sm:$0xf0]  ;;  %v10119_v57 = vld [vmem:[#allocation5 + $0x24] sm:$0xf]  ;;  %v7685_v15 = vld [vmem:[#allocation5 + $0x98] sm:$0xf0] }
 0x1af   :  { %2241 = vmatpush.bf16.msra.mxu0 %v7660_v4  ;;  %v1617_v31 = vpop.f32.mrf.mxu2  ;;  %v1593_v39 = vpop.f32.mrf.mxu0  ;;  %v7736_v4 = vor.u32 %v10145_v61, %v7733_v43  ;;  %v7693_v61 = vld [vmem:[#allocation5 + $0xa8] sm:$0xf0] }
 0x1b0   :  { %2254 = vmatpush.bf16.msra.mxu1 %v7724_v9  ;;  %v11511_v38 = vpop.f32.mrf.mxu3  ;;  %v1606_v47 = vpop.f32.mrf.mxu1  ;;  %v10162_v9 = vld [vmem:[#allocation5 + $0x174] sm:$0xf0] }
 0x1b1   :  { %v7701_v47 = vld [vmem:[#allocation5 + $0xb8] sm:$0xf0] }
 0x1b3   :  { %2242 = vmatpush.bf16.msra.mxu0 %v7652_v12  ;;  %v7796_v12 = vor.u32 %v10162_v9, %v7795_v8  ;;  %v7621_v8 = vld [vmem:[#allocation5 + $0x18] sm:$0xf0] }
 0x1b4   :  { %2255 = vmatpush.bf16.msra.mxu1 %v7716_v17  ;;  %v1618_v17 = vadd.f32 %v1617_v31, %v563_v5  ;;  %v10121_v31 = vld [vmem:[#allocation5 + $0x34] sm:$0xf] }
 0x1b5   :  { %2266 = vmatpush.bf16.msra.mxu2 %v7796_v12  ;;  %v7640_v55 = vor.u32 %v10121_v31, %v7637_v33  ;;  %v10117_v5 = vld [vmem:[#allocation5 + $0x14] sm:$0xf]  ;;  %v7835_v12 = vld [vmem:[#allocation5 + $0x1c0] sm:$0xf] }
 0x1b6   :  { %v1631_v24 = vadd.f32 %v11511_v38, %v1618_v17  ;;  %v7772_v38 = vor.u32 %v10156_v29, %v7771_v28  ;;  %v7739_v28 = vld [vmem:[#allocation5 + $0x100] sm:$0xf]  ;;  %v10148_v29 = vld [vmem:[#allocation5 + $0x104] sm:$0xf0]  ;;  %v10161_v31 = vld [vmem:[#allocation5 + $0x174] sm:$0xf] }
 0x1b7   :  { %2243 = vmatpush.bf16.msra.mxu0 %v7644_v42  ;;  %v1619_v58 = vpop.f32.mrf.mxu2  ;;  %v7779_v42 = vld [vmem:[#allocation5 + $0x150] sm:$0xf] }
 0x1b8   :  { %2256 = vmatpush.bf16.msra.mxu1 %v7708_v37  ;;  %v1632_v60 = vpop.f32.mrf.mxu3  ;;  %v7720_v37 = vor.u32 %v10141_v18, %v7717_v19  ;;  %v7780_v27 = vor.u32 %v10158_v21, %v7779_v42  ;;  %v7629_v58 = vld [vmem:[#allocation5 + $0x28] sm:$0xf0]  ;;  %v7747_v18 = vld [vmem:[#allocation5 + $0x110] sm:$0xf]  ;;  %v10150_v19 = vld [vmem:[#allocation5 + $0x114] sm:$0xf0]  ;;  %v7836_v42 = vor.u32 %v10172_v13, %v7835_v12 }
 0x1b9   :  { %2267 = vmatpush.bf16.msra.mxu2 %v7788_v20  ;;  %v10135_v60 = vld [vmem:[#allocation5 + $0xa4] sm:$0xf]  ;;  %v7624_v20 = vor.u32 %v10117_v5, %v7621_v8  ;;  %v10164_v5 = vld [vmem:[#allocation5 + $0x184] sm:$0xf0]  ;;  %v7979_v12 = vld [vmem:[#allocation7 + $0xe0] sm:$0xf] }
 0x1ba   :  { %v7696_v9 = vor.u32 %v10135_v60, %v7693_v61  ;;  %v10166_v60 = vld [vmem:[#allocation5 + $0x194] sm:$0xf0]  ;;  %v10153_v61 = vld [vmem:[#allocation5 + $0x134] sm:$0xf]  ;;  %v7804_v8 = vor.u32 %v10164_v5, %v7803_v2 }
 0x1bb   :  { %2244 = vmatpush.bf16.msra.mxu0 %v7636_v26  ;;  %v7709_v26 = vld [vmem:[#allocation5 + $0xc8] sm:$0xf0] }
 0x1bc   :  { %2257 = vmatpush.bf16.msra.mxu1 %v7700_v30  ;;  %v7648_v30 = vor.u32 %v10123_v22, %v7645_v23  ;;  %v7712_v39 = vor.u32 %v10139_v25, %v7709_v26  ;;  %v7613_v22 = vld [vmem:[#allocation5 + $0x8] sm:$0xf0]  ;;  %v7688_v23 = vor.u32 %v10133_v14, %v7685_v15  ;;  %v7748_v26 = vor.u32 %v10150_v19, %v7747_v18  ;;  %v10209_v15 = vld [vmem:[#allocation7 + $0xec] sm:$0xf0]  ;;  %v8107_v18 = vld [vmem:[#allocation7 + $0x1e0] sm:$0xf] }
 0x1bd   :  { %2268 = vmatpush.bf16.msra.mxu2 %v7780_v27  ;;  %v10241_v19 = vld [vmem:[#allocation7 + $0x1ec] sm:$0xf0] }
 0x1bf   :  { %2245 = vmatpush.bf16.msra.mxu0 %v7628_v40  ;;  %v7859_v40 = vld [vmem:[#allocation5 + $0x1f0] sm:$0xf] }
 0x1c0   :  { %2258 = vmatpush.bf16.msra.mxu1 %v7692_v46  ;;  %v10137_v46 = vld [vmem:[#allocation5 + $0xb4] sm:$0xf]  ;;  %v7860_v48 = vor.u32 %v10178_v41, %v7859_v40  ;;  %v10159_v41 = vld [vmem:[#allocation5 + $0x164] sm:$0xf] }
 0x1c1   :  { %v7704_v59 = vor.u32 %v10137_v46, %v7701_v47  ;;  %2269 = vmatpush.bf16.msra.mxu2 %v7772_v38  ;;  %v7827_v46 = vld [vmem:[#allocation5 + $0x1b0] sm:$0xf]  ;;  %v10170_v47 = vld [vmem:[#allocation5 + $0x1b4] sm:$0xf0]  ;;  %v10157_v38 = vld [vmem:[#allocation5 + $0x154] sm:$0xf] }
 0x1c2   :  { %2279 = vmatpush.bf16.msra.mxu3 %v7860_v48 }
 0x1c3   :  { %2246 = vmatpush.bf16.msra.mxu0 %v7620_v50  ;;  %v7763_v50 = vld [vmem:[#allocation5 + $0x130] sm:$0xf] }
 0x1c4   :  { %2259 = vmatpush.bf16.msra.mxu1 %v7684_v56  ;;  %v7852_v56 = vor.u32 %v10176_v52, %v7851_v49  ;;  %v7764_v43 = vor.u32 %v10154_v51, %v7763_v50  ;;  %v7828_v49 = vor.u32 %v10170_v47, %v7827_v46  ;;  %v7781_v50 = vld [vmem:[#allocation5 + $0x158] sm:$0xf0] }
 0x1c5   :  { %v7784_v52 = vor.u32 %v10157_v38, %v7781_v50  ;;  %v10171_v50 = vld [vmem:[#allocation5 + $0x1c4] sm:$0xf] }
 0x1c6   :  { %2280 = vmatpush.bf16.msra.mxu3 %v7852_v56  ;;  %2270 = vmatpush.bf16.msra.mxu2 %v7764_v43  ;;  %v10155_v56 = vld [vmem:[#allocation5 + $0x144] sm:$0xf]  ;;  %v564_v43 = vperm.slane %v11504_v54, 2 }
 0x1c7   :  { %2247 = vmatpush.bf16.msra.mxu0 %v7612_v62  ;;  %v1643_v32 = vpop.f32.mrf.mxu0  ;;  %v7755_v62 = vld [vmem:[#allocation5 + $0x120] sm:$0xf] }
 0x1c8   :  { %2260 = vmatpush.bf16.msra.mxu1 %v7676_v1  ;;  %v1644_v44 = vadd.f32 %v1643_v32, %v1631_v24  ;;  %v1656_v45 = vpop.f32.mrf.mxu1  ;;  %v10152_v1 = vld [vmem:[#allocation5 + $0x124] sm:$0xf0]  ;;  %v7677_v24 = vld [vmem:[#allocation5 + $0x88] sm:$0xf0]  ;;  %v7797_v32 = vld [vmem:[#allocation5 + $0x178] sm:$0xf0] }
 0x1c9   :  { %v7800_v40 = vor.u32 %v10161_v31, %v7797_v32  ;;  %v10173_v31 = vld [vmem:[#allocation5 + $0x1d4] sm:$0xf] }
 0x1ca   :  { %2248 = vmatmul.bf16.vlgmr.msra.gmra.mxu0 %v11514_v10  ;;  %v1657_v53 = vadd.f32 %v1656_v45, %v1644_v44  ;;  %2281 = vmatpush.bf16.msra.mxu3 %v7844_v6  ;;  %v7789_v44 = vld [vmem:[#allocation5 + $0x168] sm:$0xf0]  ;;  %v10151_v6 = vld [vmem:[#allocation5 + $0x124] sm:$0xf] }
 0x1cb   :  { %2292 = vmatpush.bf16.msrb.mxu0 %v7672_v0  ;;  %v7792_v45 = vor.u32 %v10159_v41, %v7789_v44  ;;  %v10201_v41 = vld [vmem:[#allocation7 + $0xac] sm:$0xf0] }
 0x1cc   :  { %2305 = vmatpush.bf16.msrb.mxu1 %v7736_v4  ;;  %v7632_v4 = vor.u32 %v10119_v57, %v7629_v58 }
 0x1ce   :  { %2282 = vmatpush.bf16.msra.mxu3 %v7836_v42  ;;  %v10175_v42 = vld [vmem:[#allocation5 + $0x1e4] sm:$0xf] }
 0x1cf   :  { %2293 = vmatpush.bf16.msrb.mxu0 %v7664_v11  ;;  %v1669_v36 = vpop.f32.mrf.mxu2  ;;  %v1645_v11 = vpop.f32.mrf.mxu0 }
 0x1d0   :  { %2306 = vmatpush.bf16.msrb.mxu1 %v7728_v16  ;;  %v1670_v63 = vadd.f32 %v1669_v36, %v1657_v53  ;;  %v1682_v0 = vpop.f32.mrf.mxu3  ;;  %v1658_v35 = vpop.f32.mrf.mxu1  ;;  %v7756_v16 = vor.u32 %v10152_v1, %v7755_v62  ;;  %v7819_v53 = vld [vmem:[#allocation5 + $0x1a0] sm:$0xf]  ;;  %v7811_v36 = vld [vmem:[#allocation5 + $0x190] sm:$0xf]  ;;  %v7765_v1 = vld [vmem:[#allocation5 + $0x138] sm:$0xf0] }
 0x1d1   :  { %v7861_v11 = vld [vmem:[#allocation5 + $0x1f8] sm:$0xf0]  ;;  %v10149_v35 = vld [vmem:[#allocation5 + $0x114] sm:$0xf] }
 0x1d2   :  { %v1683_v7 = vadd.f32 %v1682_v0, %v1670_v63  ;;  %2271 = vmatpush.bf16.msra.mxu2 %v7756_v16  ;;  %2283 = vmatpush.bf16.msra.mxu3 %v7828_v49  ;;  %v7812_v0 = vor.u32 %v10166_v60, %v7811_v36  ;;  %v7980_v16 = vor.u32 %v10209_v15, %v7979_v12  ;;  %v10233_v49 = vld [vmem:[#allocation7 + $0x1ac] sm:$0xf0]  ;;  %v7981_v12 = vld [vmem:[#allocation7 + $0xf0] sm:$0xf0] }
 0x1d3   :  { %2294 = vmatpush.bf16.msrb.mxu0 %v7656_v34  ;;  %v10115_v34 = vld [vmem:[#allocation5 + $0x4] sm:$0xf]  ;;  %v10229_v36 = vld [vmem:[#allocation7 + $0x18c] sm:$0xf0] }
 0x1d4   :  { %2307 = vmatpush.bf16.msrb.mxu1 %v7720_v37  ;;  %v1843_v17 = vmax.f32 %v1683_v7, 0.0  ;;  %v10131_v37 = vld [vmem:[#allocation5 + $0x84] sm:$0xf]  ;;  %v7757_v7 = vld [vmem:[#allocation5 + $0x128] sm:$0xf0] }
 0x1d5   :  { %v7680_v33 = vor.u32 %v10131_v37, %v7677_v24  ;;  %v7760_v13 = vor.u32 %v10151_v6, %v7757_v7  ;;  %v10147_v37 = vld [vmem:[#allocation5 + $0x104] sm:$0xf]  ;;  %v7741_v24 = vld [vmem:[#allocation5 + $0x108] sm:$0xf0]  ;;  %v10189_v15 = vld [vmem:[#allocation7 + $0x4c] sm:$0xf0] }
 0x1d6   :  { %v1847_v21 = vpack.c.bf16 %v1843_v17, %v1843_v17  ;;  %2272 = vmatpush.bf16.msra.mxu2 %v7748_v26  ;;  %v7749_v17 = vld [vmem:[#allocation5 + $0x118] sm:$0xf0]  ;;  %v7744_v46 = vor.u32 %v10147_v37, %v7741_v24  ;;  %v7883_v24 = vld [vmem:[#allocation7 + $0x20] sm:$0xf] }
 0x1d7   :  { %2295 = vmatpush.bf16.msrb.mxu0 %v7648_v30  ;;  %v1671_v25 = vpop.f32.mrf.mxu2  ;;  %v7616_v30 = vor.u32 %v10115_v34, %v7613_v22  ;;  %v7963_v34 = vld [vmem:[#allocation7 + $0xc0] sm:$0xf]  ;;  %v7752_v26 = vor.u32 %v10149_v35, %v7749_v17  ;;  %v7813_v37 = vld [vmem:[#allocation5 + $0x198] sm:$0xf0] }
 0x1d8   :  { %2308 = vmatpush.bf16.msrb.mxu1 %v7712_v39  ;;  %v1684_v27 = vpop.f32.mrf.mxu3  ;;  %v7740_v39 = vor.u32 %v10148_v29, %v7739_v28  ;;  %v8091_v29 = vld [vmem:[#allocation7 + $0x1c0] sm:$0xf] }
 0x1d9   :  { %2261 = vmatmul.bf16.vlgmr.msra.gmra.mxu1 %v1847_v21  ;;  %v8027_v17 = vld [vmem:[#allocation7 + $0x140] sm:$0xf] }
 0x1da   :  { %2273 = vmatpush.bf16.msra.mxu2 %v7740_v39  ;;  %v7845_v39 = vld [vmem:[#allocation5 + $0x1d8] sm:$0xf0] }
 0x1db   :  { %2296 = vmatpush.bf16.msrb.mxu0 %v7640_v55  ;;  %v10168_v55 = vld [vmem:[#allocation5 + $0x1a4] sm:$0xf0]  ;;  %v7848_v47 = vor.u32 %v10173_v31, %v7845_v39  ;;  %v8011_v31 = vld [vmem:[#allocation7 + $0x120] sm:$0xf] }
 0x1dc   :  { %2309 = vmatpush.bf16.msrb.mxu1 %v7704_v59  ;;  %v7820_v57 = vor.u32 %v10168_v55, %v7819_v53  ;;  %v7837_v53 = vld [vmem:[#allocation5 + $0x1c8] sm:$0xf0]  ;;  %v7931_v55 = vld [vmem:[#allocation7 + $0x80] sm:$0xf] }
 0x1de   :  { %2318 = vmatpush.bf16.msrb.mxu2 %v7800_v40  ;;  %2284 = vmatpush.bf16.msra.mxu3 %v7820_v57  ;;  %v7947_v40 = vld [vmem:[#allocation7 + $0xa0] sm:$0xf]  ;;  %v7840_v57 = vor.u32 %v10171_v50, %v7837_v53  ;;  %v10210_v50 = vld [vmem:[#allocation7 + $0xf4] sm:$0xf0] }
 0x1df   :  { %2297 = vmatpush.bf16.msrb.mxu0 %v7632_v4  ;;  %v7768_v4 = vor.u32 %v10153_v61, %v7765_v1  ;;  %v7948_v44 = vor.u32 %v10201_v41, %v7947_v40  ;;  %v7829_v61 = vld [vmem:[#allocation5 + $0x1b8] sm:$0xf0]  ;;  %v10199_v40 = vld [vmem:[#allocation7 + $0xa4] sm:$0xf]  ;;  %v7995_v53 = vld [vmem:[#allocation7 + $0x100] sm:$0xf] }
 0x1e0   :  { %2310 = vmatpush.bf16.msrb.mxu1 %v7696_v9  ;;  %v10177_v9 = vld [vmem:[#allocation5 + $0x1f4] sm:$0xf]  ;;  %v10163_v41 = vld [vmem:[#allocation5 + $0x184] sm:$0xf] }
 0x1e1   :  { %v7864_v14 = vor.u32 %v10177_v9, %v7861_v11  ;;  %v7821_v9 = vld [vmem:[#allocation5 + $0x1a8] sm:$0xf0] }
 0x1e2   :  { %2319 = vmatpush.bf16.msrb.mxu2 %v7792_v45  ;;  %2285 = vmatpush.bf16.msra.mxu3 %v7812_v0  ;;  %v10193_v0 = vld [vmem:[#allocation7 + $0x6c] sm:$0xf0] }
 0x1e3   :  { %2298 = vmatpush.bf16.msrb.mxu0 %v7624_v20  ;;  %v8108_v20 = vor.u32 %v10241_v19, %v8107_v18  ;;  %v10221_v18 = vld [vmem:[#allocation7 + $0x14c] sm:$0xf0] }
 0x1e4   :  { %2311 = vmatpush.bf16.msrb.mxu1 %v7688_v23  ;;  %v10205_v23 = vld [vmem:[#allocation7 + $0xcc] sm:$0xf0] }
 0x1e5   :  { %v7964_v28 = vor.u32 %v10205_v23, %v7963_v34  ;;  %v10165_v34 = vld [vmem:[#allocation5 + $0x194] sm:$0xf] }
 0x1e6   :  { %2320 = vmatpush.bf16.msrb.mxu2 %v7784_v52  ;;  %2286 = vmatpush.bf16.msra.mxu3 %v7804_v8  ;;  %v10167_v8 = vld [vmem:[#allocation5 + $0x1a4] sm:$0xf] }
 0x1e7   :  { %2299 = vmatpush.bf16.msrb.mxu0 %v7616_v30  ;;  %v1695_v48 = vpop.f32.mrf.mxu0  ;;  %v10237_v30 = vld [vmem:[#allocation7 + $0x1cc] sm:$0xf0] }
 0x1e8   :  { %2312 = vmatpush.bf16.msrb.mxu1 %v7680_v33  ;;  %v11519_v51 = vpop.f32.mrf.mxu1  ;;  %v1696_v22 = vadd.f32 %v1695_v48, %v564_v43  ;;  %v8092_v33 = vor.u32 %v10237_v30, %v8091_v29  ;;  %v8075_v48 = vld [vmem:[#allocation7 + $0x1a0] sm:$0xf] }
 0x1e9   :  { %v8076_v52 = vor.u32 %v10233_v49, %v8075_v48  ;;  %v7987_v49 = vld [vmem:[#allocation7 + $0xe8] sm:$0xf] }
 0x1ea   :  { %2300 = vmatmul.bf16.vlgmr.msrb.gmra.mxu0 %v11514_v10  ;;  %v7773_v10 = vld [vmem:[#allocation5 + $0x148] sm:$0xf0]  ;;  %2331 = vmatpush.bf16.msrb.mxu3 %v7864_v14  ;;  %v1709_v45 = vadd.f32 %v11519_v51, %v1696_v22  ;;  %v7899_v14 = vld [vmem:[#allocation7 + $0x40] sm:$0xf] }
 0x1eb   :  { %2313 = vmatmul.bf16.vlgmr.msrb.gmra.mxu1 %v1847_v21  ;;  %v7776_v58 = vor.u32 %v10155_v56, %v7773_v10  ;;  %v7853_v21 = vld [vmem:[#allocation5 + $0x1e8] sm:$0xf0]  ;;  %2749 = vmatpush.bf16.msra.mxu0 %v7980_v16  ;;  %v10197_v56 = vld [vmem:[#allocation7 + $0x8c] sm:$0xf0]  ;;  %v7900_v35 = vor.u32 %v10189_v15, %v7899_v14  ;;  %v10187_v14 = vld [vmem:[#allocation7 + $0x44] sm:$0xf] }
 0x1ec   :  { %v7856_v27 = vor.u32 %v10175_v42, %v7853_v21  ;;  %2762 = vmatpush.bf16.msra.mxu1 %v8108_v20  ;;  %v7932_v10 = vor.u32 %v10197_v56, %v7931_v55  ;;  %v8028_v20 = vor.u32 %v10221_v18, %v8027_v17  ;;  %v10203_v42 = vld [vmem:[#allocation7 + $0xc4] sm:$0xf]  ;;  %v7965_v21 = vld [vmem:[#allocation7 + $0xd0] sm:$0xf0]  ;;  %v10213_v55 = vld [vmem:[#allocation7 + $0x10c] sm:$0xf0] }
 0x1ed   :  { %2321 = vmatpush.bf16.msrb.mxu2 %v7776_v58  ;;  %v8059_v58 = vld [vmem:[#allocation7 + $0x180] sm:$0xf]  ;;  %v7901_v15 = vld [vmem:[#allocation7 + $0x50] sm:$0xf0]  ;;  %v10198_v17 = vld [vmem:[#allocation7 + $0x94] sm:$0xf0] }
 0x1ee   :  { %2332 = vmatpush.bf16.msrb.mxu3 %v7856_v27  ;;  %v8060_v60 = vor.u32 %v10229_v36, %v8059_v58  ;;  %v10195_v36 = vld [vmem:[#allocation7 + $0x84] sm:$0xf] }
 0x1ef   :  { %v11521_v59 = vpop.f32.mrf.mxu2  ;;  %v1697_v62 = vpop.f32.mrf.mxu0  ;;  %2750 = vmatpush.bf16.msra.mxu0 %v7964_v28  ;;  %v7816_v28 = vor.u32 %v10165_v34, %v7813_v37  ;;  %v7885_v34 = vld [vmem:[#allocation7 + $0x30] sm:$0xf0] }
 0x1f0   :  { %v11524_v63 = vpop.f32.mrf.mxu3  ;;  %v1710_v3 = vpop.f32.mrf.mxu1  ;;  %2763 = vmatpush.bf16.msra.mxu1 %v8092_v33  ;;  %v1722_v38 = vadd.f32 %v11521_v59, %v1709_v45  ;;  %v10169_v59 = vld [vmem:[#allocation5 + $0x1b4] sm:$0xf]  ;;  %v7915_v62 = vld [vmem:[#allocation7 + $0x60] sm:$0xf]  ;;  %v7968_v33 = vor.u32 %v10203_v42, %v7965_v21  ;;  %v8067_v42 = vld [vmem:[#allocation7 + $0x188] sm:$0xf] }
 0x1f1   :  { %2322 = vmatpush.bf16.msrb.mxu2 %v7768_v4  ;;  %v7832_v43 = vor.u32 %v10169_v59, %v7829_v61  ;;  %v7916_v2 = vor.u32 %v10193_v0, %v7915_v62  ;;  %v8043_v3 = vld [vmem:[#allocation7 + $0x160] sm:$0xf]  ;;  %v10225_v4 = vld [vmem:[#allocation7 + $0x16c] sm:$0xf0]  ;;  %v7949_v45 = vld [vmem:[#allocation7 + $0xb0] sm:$0xf0] }
 0x1f2   :  { %2333 = vmatpush.bf16.msrb.mxu3 %v7848_v47  ;;  %v1735_v51 = vadd.f32 %v11524_v63, %v1722_v38  ;;  %v8044_v7 = vor.u32 %v10225_v4, %v8043_v3  ;;  %v10207_v63 = vld [vmem:[#allocation7 + $0xe4] sm:$0xf]  ;;  %v7867_v47 = vld [vmem:[#allocation7] sm:$0xf]  ;;  %v10181_v38 = vld [vmem:[#allocation7 + $0xc] sm:$0xf0]  ;;  %v7952_v56 = vor.u32 %v10199_v40, %v7949_v45 }
 0x1f3   :  { %2751 = vmatpush.bf16.msra.mxu0 %v7948_v44  ;;  %v7984_v19 = vor.u32 %v10207_v63, %v7981_v12  ;;  %v7805_v44 = vld [vmem:[#allocation5 + $0x188] sm:$0xf0]  ;;  %v7868_v48 = vor.u32 %v10181_v38, %v7867_v47  ;;  %v10206_v62 = vld [vmem:[#allocation7 + $0xd4] sm:$0xf0]  ;;  %v10191_v4 = vld [vmem:[#allocation7 + $0x64] sm:$0xf] }
 0x1f4   :  { %2764 = vmatpush.bf16.msra.mxu1 %v8076_v52  ;;  %v7988_v52 = vor.u32 %v10210_v50, %v7987_v49  ;;  %v10238_v3 = vld [vmem:[#allocation7 + $0x1d4] sm:$0xf0]  ;;  %v8083_v12 = vld [vmem:[#allocation7 + $0x1a8] sm:$0xf]  ;;  %v10179_v40 = vld [vmem:[#allocation7 + $0x4] sm:$0xf] }
 0x1f5   :  { %2323 = vmatpush.bf16.msrb.mxu2 %v7760_v13  ;;  %v7824_v13 = vor.u32 %v10167_v8, %v7821_v9  ;;  %v10202_v63 = vld [vmem:[#allocation7 + $0xb4] sm:$0xf0]  ;;  %v565_v8 = vperm.slane %v11504_v54, 3  ;;  %v7904_v54 = vor.u32 %v10187_v14, %v7901_v15  ;;  %v7869_v45 = vld [vmem:[#allocation7 + $0x10] sm:$0xf0] }
 0x1f6   :  { %2334 = vmatpush.bf16.msrb.mxu3 %v7840_v57  ;;  %v7996_v57 = vor.u32 %v10213_v55, %v7995_v53  ;;  %v10230_v21 = vld [vmem:[#allocation7 + $0x194] sm:$0xf0]  ;;  %v10208_v47 = vld [vmem:[#allocation7 + $0xec] sm:$0xf]  ;;  %v7989_v38 = vld [vmem:[#allocation7 + $0xf8] sm:$0xf0]  ;;  %v7872_v50 = vor.u32 %v10179_v40, %v7869_v45 }
 0x1f7   :  { %v1723_v25 = vpop.f32.mrf.mxu2  ;;  %2752 = vmatpush.bf16.msra.mxu0 %v7932_v10  ;;  %v8115_v10 = vld [vmem:[#allocation7 + $0x1e8] sm:$0xf]  ;;  %v8068_v37 = vor.u32 %v10230_v21, %v8067_v42  ;;  %v10190_v49 = vld [vmem:[#allocation7 + $0x54] sm:$0xf0]  ;;  %v10196_v21 = vld [vmem:[#allocation7 + $0x8c] sm:$0xf] }
 0x1f8   :  { %v1736_v32 = vpop.f32.mrf.mxu3  ;;  %2765 = vmatpush.bf16.msra.mxu1 %v8060_v60  ;;  %v10185_v25 = vld [vmem:[#allocation7 + $0x2c] sm:$0xf0]  ;;  %v7933_v60 = vld [vmem:[#allocation7 + $0x90] sm:$0xf0]  ;;  %v8035_v53 = vld [vmem:[#allocation7 + $0x148] sm:$0xf] }
 0x1f9   :  { %2324 = vmatpush.bf16.msrb.mxu2 %v7752_v26  ;;  %v7884_v29 = vor.u32 %v10185_v25, %v7883_v24  ;;  %v10217_v32 = vld [vmem:[#allocation7 + $0x12c] sm:$0xf0]  ;;  %v2349_v24 = vld.sshfl [vmem:[#allocation1] sm:$0xff pattern:$0x73625140] }
 0x1fa   :  { %2335 = vmatpush.bf16.msrb.mxu3 %v7832_v43  ;;  %v8012_v39 = vor.u32 %v10217_v32, %v8011_v31  ;;  %v7971_v43 = vld [vmem:[#allocation7 + $0xc8] sm:$0xf]  ;;  %v11539_v25 = vpack.c.bf16 %v2349_v24, %v2349_v24  ;;  %v10222_v55 = vld [vmem:[#allocation7 + $0x154] sm:$0xf0]  ;;  %v10188_v40 = vld [vmem:[#allocation7 + $0x4c] sm:$0xf] }
 0x1fb   :  { %2753 = vmatpush.bf16.msra.mxu0 %v7916_v2  ;;  %v7972_v0 = vor.u32 %v10206_v62, %v7971_v43  ;;  %v8099_v2 = vld [vmem:[#allocation7 + $0x1c8] sm:$0xf]  ;;  %v10223_v45 = vld [vmem:[#allocation7 + $0x164] sm:$0xf] }
 0x1fc   :  { %2766 = vmatpush.bf16.msra.mxu1 %v8044_v7  ;;  %v7955_v7 = vld [vmem:[#allocation7 + $0xa8] sm:$0xf] }
 0x1fd   :  { %2325 = vmatpush.bf16.msrb.mxu2 %v7744_v46  ;;  %v7808_v46 = vor.u32 %v10163_v41, %v7805_v44  ;;  %v7956_v9 = vor.u32 %v10202_v63, %v7955_v7  ;;  %v8051_v41 = vld [vmem:[#allocation7 + $0x168] sm:$0xf] }
 0x1fe   :  { %2336 = vmatpush.bf16.msrb.mxu3 %v7824_v13  ;;  %v10234_v13 = vld [vmem:[#allocation7 + $0x1b4] sm:$0xf0] }
 0x1ff   :  { %2754 = vmatpush.bf16.msra.mxu0 %v7900_v35  ;;  %v8084_v35 = vor.u32 %v10234_v13, %v8083_v12  ;;  %v10182_v12 = vld [vmem:[#allocation7 + $0x14] sm:$0xf0] }
 0x200   :  { %2767 = vmatpush.bf16.msra.mxu1 %v8028_v20  ;;  %v10183_v20 = vld [vmem:[#allocation7 + $0x24] sm:$0xf] }
 0x201   :  { %v7888_v32 = vor.u32 %v10183_v20, %v7885_v34  ;;  %v7941_v34 = vld [vmem:[#allocation7 + $0x98] sm:$0xf0] }
 0x202   :  { %2337 = vmatpush.bf16.msrb.mxu3 %v7816_v28  ;;  %v10194_v28 = vld [vmem:[#allocation7 + $0x74] sm:$0xf0] }
 0x203   :  { %2755 = vmatpush.bf16.msra.mxu0 %v7884_v29 }
 0x204   :  { %2768 = vmatpush.bf16.msra.mxu1 %v8012_v39  ;;  %v3357_v39 = vld [vmem:[%s11838_s9] sm:$0xff] }
 0x206   :  { %2338 = vmatpush.bf16.msrb.mxu3 %v7808_v46  ;;  %v10226_v46 = vld [vmem:[#allocation7 + $0x174] sm:$0xf0] }
 0x207   :  { %v1747_v1 = vpop.f32.mrf.mxu0  ;;  %2756 = vmatpush.bf16.msra.mxu0 %v7868_v48  ;;  %v7907_v48 = vld [vmem:[#allocation7 + $0x48] sm:$0xf] }
 0x208   :  { %v1748_v5 = vadd.f32 %v1747_v1, %v1735_v51  ;;  %v1760_v6 = vpop.f32.mrf.mxu1  ;;  %v10242_v51 = vld [vmem:[#allocation7 + $0x1f4] sm:$0xf0]  ;;  %2769 = vmatpush.bf16.msra.mxu1 %v7996_v57  ;;  %v7936_v1 = vor.u32 %v10195_v36, %v7933_v60  ;;  %v7992_v57 = vor.u32 %v10208_v47, %v7989_v38  ;;  %v7973_v36 = vld [vmem:[#allocation7 + $0xd8] sm:$0xf0]  ;;  %v7891_v60 = vld [vmem:[#allocation7 + $0x28] sm:$0xf] }
 0x209   :  { %v8116_v59 = vor.u32 %v10242_v51, %v8115_v10  ;;  %v8036_v10 = vor.u32 %v10222_v55, %v8035_v53  ;;  %v10204_v51 = vld [vmem:[#allocation7 + $0xcc] sm:$0xf]  ;;  %v7893_v38 = vld [vmem:[#allocation7 + $0x38] sm:$0xf0] }
 0x20a   :  { %v1761_v11 = vadd.f32 %v1760_v6, %v1748_v5  ;;  %v7917_v5 = vld [vmem:[#allocation7 + $0x70] sm:$0xf0]  ;;  %v8100_v6 = vor.u32 %v10238_v3, %v8099_v2  ;;  %2757 = vmatmul.bf16.vlgmr.msra.gmra.mxu0 %v11539_v25  ;;  %v8019_v2 = vld [vmem:[#allocation7 + $0x128] sm:$0xf]  ;;  %v10218_v3 = vld [vmem:[#allocation7 + $0x134] sm:$0xf0]  ;;  %v7976_v7 = vor.u32 %v10204_v51, %v7973_v36 }
 0x20b   :  { %2801 = vmatpush.bf16.msrb.mxu0 %v7988_v52  ;;  %v7908_v52 = vor.u32 %v10190_v49, %v7907_v48  ;;  %v8020_v63 = vor.u32 %v10218_v3, %v8019_v2  ;;  %v10184_v47 = vld [vmem:[#allocation7 + $0x2c] sm:$0xf]  ;;  %v8013_v51 = vld [vmem:[#allocation7 + $0x130] sm:$0xf0]  ;;  %v1914_v2 = vld [vmem:[%s11839_s13] sm:$0x3] }
 0x20c   :  { %v1844_v16 = vmax.f32 %v1761_v11, 0.0  ;;  %2814 = vmatpush.bf16.msrb.mxu1 %v8116_v59  ;;  %v7920_v11 = vor.u32 %v10191_v4, %v7917_v5  ;;  %v10186_v59 = vld [vmem:[#allocation7 + $0x34] sm:$0xf0]  ;;  %v10239_v5 = vld [vmem:[#allocation7 + $0x1e4] sm:$0xf]  ;;  %v7896_v53 = vor.u32 %v10184_v47, %v7893_v38 }
 0x20d   :  { %v10180_v55 = vld [vmem:[#allocation7 + $0xc] sm:$0xf]  ;;  %v8307_v38 = vld [vmem:[#allocation8 + $0x170] sm:$0xf] }
 0x20e   :  { %v11529_v22 = vpack.c.bf16 %v1844_v16, %v1844_v16  ;;  %v7939_v16 = vld [vmem:[#allocation7 + $0x88] sm:$0xf]  ;;  %v10236_v3 = vld [vmem:[#allocation7 + $0x1cc] sm:$0xf] }
 0x20f   :  { %v11531_v23 = vpop.f32.mrf.mxu2  ;;  %v1749_v27 = vpop.f32.mrf.mxu0  ;;  %2802 = vmatpush.bf16.msrb.mxu0 %v7972_v0  ;;  %v7892_v0 = vor.u32 %v10186_v59, %v7891_v60  ;;  %v10211_v59 = vld [vmem:[#allocation7 + $0x104] sm:$0xf] }
 0x210   :  { %v11533_v26 = vpop.f32.mrf.mxu3  ;;  %2274 = vmatmul.bf16.vlgmr.msra.gmra.mxu2 %v11529_v22  ;;  %v1762_v30 = vpop.f32.mrf.mxu1  ;;  %2815 = vmatpush.bf16.msrb.mxu1 %v8100_v6  ;;  %v1774_v18 = vadd.f32 %v11531_v23, %v565_v8  ;;  %v7923_v27 = vld [vmem:[#allocation7 + $0x68] sm:$0xf]  ;;  %v8109_v6 = vld [vmem:[#allocation7 + $0x1f0] sm:$0xf0]  ;;  %v10200_v8 = vld [vmem:[#allocation7 + $0xac] sm:$0xf] }
 0x211   :  { %2775 = vmatpush.bf16.msra.mxu2 %v7984_v19  ;;  %v7940_v19 = vor.u32 %v10198_v17, %v7939_v16  ;;  %v2350_v30 = vld.sshfl [vmem:[#allocation1 + $0x8] sm:$0xff pattern:$0x73625140]  ;;  %v8112_v15 = vor.u32 %v10239_v5, %v8109_v6  ;;  %v10214_v16 = vld [vmem:[#allocation7 + $0x114] sm:$0xf0]  ;;  %v1916_v5 = vperm.slane %v1914_v2, 0 }
 0x212   :  { %v1787_v23 = vadd.f32 %v11533_v26, %v1774_v18  ;;  %3359 = vst [vmem:[#allocation1] ss:$4 sm:$0xff] %v3357_v39  ;;  %v8052_v26 = vor.u32 %v10226_v46, %v8051_v41  ;;  %v10235_v18 = vld [vmem:[#allocation7 + $0x1c4] sm:$0xf]  ;;  %v7909_v41 = vld [vmem:[#allocation7 + $0x58] sm:$0xf0] }
 0x213   :  { %2803 = vmatpush.bf16.msrb.mxu0 %v7956_v9  ;;  %v7957_v9 = vld [vmem:[#allocation7 + $0xb8] sm:$0xf0]  ;;  %v8045_v46 = vld [vmem:[#allocation7 + $0x170] sm:$0xf0] }
 0x214   :  { %2816 = vmatpush.bf16.msrb.mxu1 %v8084_v35  ;;  %v8003_v35 = vld [vmem:[#allocation7 + $0x108] sm:$0xf]  ;;  %v8048_v48 = vor.u32 %v10223_v45, %v8045_v46  ;;  %v8163_v46 = vld [vmem:[#allocation8 + $0x50] sm:$0xf] }
 0x215   :  { %2776 = vmatpush.bf16.msra.mxu2 %v7968_v33  ;;  %v11543_v33 = vpack.c.bf16 %v2350_v30, %v2350_v30  ;;  %v8004_v20 = vor.u32 %v10214_v16, %v8003_v35  ;;  %v8053_v35 = vld [vmem:[#allocation7 + $0x178] sm:$0xf0] }
 0x217   :  { %v1775_v58 = vpop.f32.mrf.mxu2  ;;  %2804 = vmatpush.bf16.msrb.mxu0 %v7940_v19  ;;  %2770 = vmatmul.bf16.vlgmr.msra.gmra.mxu1 %v11543_v33  ;;  %v8093_v19 = vld [vmem:[#allocation7 + $0x1d0] sm:$0xf0] }
 0x218   :  { %v1788_v61 = vpop.f32.mrf.mxu3  ;;  %2817 = vmatpush.bf16.msrb.mxu1 %v8068_v37  ;;  %v8096_v24 = vor.u32 %v10235_v18, %v8093_v19  ;;  %v10220_v19 = vld [vmem:[#allocation7 + $0x14c] sm:$0xf] }
 0x219   :  { %2777 = vmatpush.bf16.msra.mxu2 %v7952_v56 }
 0x21c   :  { %2818 = vmatpush.bf16.msrb.mxu1 %v8052_v26  ;;  %v7912_v26 = vor.u32 %v10188_v40, %v7909_v41  ;;  %v8171_v41 = vld [vmem:[#allocation8 + $0x60] sm:$0xf] }
 0x21d   :  { %2778 = vmatpush.bf16.msra.mxu2 %v7936_v1 }
 0x220   :  { %2326 = vmatmul.bf16.vlgmr.msrb.gmra.mxu2 %v11529_v22  ;;  %v7924_v22 = vor.u32 %v10194_v28, %v7923_v27  ;;  %2819 = vmatpush.bf16.msrb.mxu1 %v8036_v10  ;;  %v10231_v27 = vld [vmem:[#allocation7 + $0x1a4] sm:$0xf]  ;;  %v8077_v28 = vld [vmem:[#allocation7 + $0x1b0] sm:$0xf0] }
 0x221   :  { %2779 = vmatpush.bf16.msra.mxu2 %v7920_v11  ;;  %v7875_v11 = vld [vmem:[#allocation7 + $0x8] sm:$0xf]  ;;  %v8080_v30 = vor.u32 %v10231_v27, %v8077_v28  ;;  %v10215_v10 = vld [vmem:[#allocation7 + $0x124] sm:$0xf] }
 0x222   :  { %2805 = vmatpush.bf16.msrb.mxu0 %v7924_v22  ;;  %v7876_v14 = vor.u32 %v10182_v12, %v7875_v11  ;;  %v7925_v22 = vld [vmem:[#allocation7 + $0x78] sm:$0xf0]  ;;  %v8016_v36 = vor.u32 %v10215_v10, %v8013_v51  ;;  %v10228_v12 = vld [vmem:[#allocation7 + $0x18c] sm:$0xf]  ;;  %v10288_v10 = vld [vmem:[#allocation8 + $0x164] sm:$0xf0] }
 0x223   :  { %v8147_v51 = vld [vmem:[#allocation8 + $0x30] sm:$0xf] }
 0x224   :  { %2820 = vmatpush.bf16.msrb.mxu1 %v8020_v63  ;;  %v8085_v63 = vld [vmem:[#allocation7 + $0x1b8] sm:$0xf0] }
 0x225   :  { %2780 = vmatpush.bf16.msra.mxu2 %v7904_v54  ;;  %v7960_v54 = vor.u32 %v10200_v8, %v7957_v9 }
 0x226   :  { %2806 = vmatpush.bf16.msrb.mxu0 %v7908_v52  ;;  %v8029_v52 = vld [vmem:[#allocation7 + $0x150] sm:$0xf0] }
 0x227   :  { %v1799_v29 = vpop.f32.mrf.mxu0 }
 0x228   :  { %v1812_v31 = vpop.f32.mrf.mxu1  ;;  %v1800_v44 = vadd.f32 %v1799_v29, %v1787_v23  ;;  %2821 = vmatpush.bf16.msrb.mxu1 %v8004_v20  ;;  %v7944_v23 = vor.u32 %v10196_v21, %v7941_v34  ;;  %v10192_v29 = vld [vmem:[#allocation7 + $0x6c] sm:$0xf]  ;;  %v1917_v20 = vperm.slane %v1914_v2, 1  ;;  %v8021_v34 = vld [vmem:[#allocation7 + $0x138] sm:$0xf0] }
 0x229   :  { %2781 = vmatpush.bf16.msra.mxu2 %v7888_v32  ;;  %v8061_v32 = vld [vmem:[#allocation7 + $0x190] sm:$0xf0]  ;;  %v7928_v39 = vor.u32 %v10192_v29, %v7925_v22  ;;  %v10216_v21 = vld [vmem:[#allocation7 + $0x12c] sm:$0xf]  ;;  %v8005_v29 = vld [vmem:[#allocation7 + $0x118] sm:$0xf0] }
 0x22a   :  { %v1813_v56 = vadd.f32 %v1812_v31, %v1800_v44  ;;  %2807 = vmatpush.bf16.msrb.mxu0 %v7892_v0  ;;  %v10227_v31 = vld [vmem:[#allocation7 + $0x184] sm:$0xf] }
 0x22b   :  { %2822 = vmatmul.bf16.vlgmr.msrb.gmra.mxu1 %v11543_v33  ;;  %v8064_v44 = vor.u32 %v10227_v31, %v8061_v32  ;;  %v8179_v32 = vld [vmem:[#allocation8 + $0x70] sm:$0xf] }
 0x22d   :  { %2782 = vmatpush.bf16.msra.mxu2 %v7872_v50  ;;  %v10219_v50 = vld [vmem:[#allocation7 + $0x144] sm:$0xf] }
 0x22e   :  { %2808 = vmatpush.bf16.msrb.mxu0 %v7876_v14 }
 0x22f   :  { %v1825_v58 = vpop.f32.mrf.mxu2  ;;  %v1801_v62 = vpop.f32.mrf.mxu0 }
 0x230   :  { %v1826_v61 = vadd.f32 %v1825_v58, %v1813_v56  ;;  %v1838_v43 = vpop.f32.mrf.mxu3  ;;  %v1814_v1 = vpop.f32.mrf.mxu1  ;;  %2783 = vmatmul.bf16.vlgmr.msra.gmra.mxu2 %v11539_v25  ;;  %v7877_v56 = vld [vmem:[#allocation7 + $0x18] sm:$0xf0] }
 0x231   :  { %2827 = vmatpush.bf16.msrb.mxu2 %v7992_v57  ;;  %2809 = vmatmul.bf16.vlgmr.msrb.gmra.mxu0 %v11539_v25  ;;  %v8032_v57 = vor.u32 %v10219_v50, %v8029_v52  ;;  %v7880_v58 = vor.u32 %v10180_v55, %v7877_v56  ;;  %v8117_v62 = vld [vmem:[#allocation7 + $0x1f8] sm:$0xf0]  ;;  %v10252_v52 = vld [vmem:[#allocation8 + $0x44] sm:$0xf0]  ;;  %v10274_v55 = vld [vmem:[#allocation8 + $0xf4] sm:$0xf0] }
 0x232   :  { %v1839_v4 = vadd.f32 %v1838_v43, %v1826_v61  ;;  %v7997_v61 = vld [vmem:[#allocation7 + $0x110] sm:$0xf0]  ;;  %v10240_v43 = vld [vmem:[#allocation7 + $0x1ec] sm:$0xf] }
 0x233   :  { %v8000_v0 = vor.u32 %v10211_v59, %v7997_v61  ;;  %v8120_v1 = vor.u32 %v10240_v43, %v8117_v62  ;;  %v10272_v59 = vld [vmem:[#allocation8 + $0xe4] sm:$0xf0]  ;;  %v8291_v43 = vld [vmem:[#allocation8 + $0x150] sm:$0xf]  ;;  %v10286_v62 = vld [vmem:[#allocation8 + $0x154] sm:$0xf0] }
 0x234   :  { %v1845_v13 = vmax.f32 %v1839_v4, 0.0  ;;  %v8101_v4 = vld [vmem:[#allocation7 + $0x1d8] sm:$0xf0] }
 0x235   :  { %2828 = vmatpush.bf16.msrb.mxu2 %v7976_v7  ;;  %v8104_v6 = vor.u32 %v10236_v3, %v8101_v4  ;;  %v10232_v7 = vld [vmem:[#allocation7 + $0x1ac] sm:$0xf]  ;;  %v8139_v4 = vld [vmem:[#allocation8 + $0x20] sm:$0xf] }
 0x236   :  { %v1849_v17 = vpack.c.bf16 %v1845_v13, %v1845_v13  ;;  %v8088_v9 = vor.u32 %v10232_v7, %v8085_v63  ;;  %v8069_v13 = vld [vmem:[#allocation7 + $0x198] sm:$0xf0]  ;;  %v8227_v7 = vld [vmem:[#allocation8 + $0xd0] sm:$0xf]  ;;  %v10270_v63 = vld [vmem:[#allocation8 + $0xd4] sm:$0xf0] }
 0x237   :  { %v1827_v42 = vpop.f32.mrf.mxu2 }
 0x238   :  { %v1840_v37 = vpop.f32.mrf.mxu3  ;;  %2287 = vmatmul.bf16.vlgmr.msra.gmra.mxu3 %v1849_v17 }
 0x239   :  { %2788 = vmatpush.bf16.msra.mxu3 %v8112_v15  ;;  %2829 = vmatpush.bf16.msrb.mxu2 %v7960_v54  ;;  %v10224_v15 = vld [vmem:[#allocation7 + $0x16c] sm:$0xf]  ;;  %v8037_v54 = vld [vmem:[#allocation7 + $0x158] sm:$0xf0] }
 0x23a   :  { %v8056_v16 = vor.u32 %v10224_v15, %v8053_v35  ;;  %v8040_v42 = vor.u32 %v10220_v19, %v8037_v54  ;;  %v8219_v15 = vld [vmem:[#allocation8 + $0xc0] sm:$0xf] }
 0x23d   :  { %2789 = vmatpush.bf16.msra.mxu3 %v8096_v24  ;;  %2830 = vmatpush.bf16.msrb.mxu2 %v7944_v23  ;;  %v8024_v24 = vor.u32 %v10216_v21, %v8021_v34  ;;  %v10212_v23 = vld [vmem:[#allocation7 + $0x10c] sm:$0xf]  ;;  %v8371_v21 = vld [vmem:[#allocation8 + $0x1f0] sm:$0xf] }
 0x241   :  { %2790 = vmatpush.bf16.msra.mxu3 %v8080_v30  ;;  %2831 = vmatpush.bf16.msrb.mxu2 %v7928_v39  ;;  %v8008_v30 = vor.u32 %v10212_v23, %v8005_v29  ;;  %v10258_v39 = vld [vmem:[#allocation8 + $0x74] sm:$0xf0]  ;;  %v8181_v29 = vld [vmem:[#allocation8 + $0x78] sm:$0xf0] }
 0x242   :  { %v8180_v40 = vor.u32 %v10258_v39, %v8179_v32  ;;  %v10266_v32 = vld [vmem:[#allocation8 + $0xb4] sm:$0xf0]  ;;  %v8267_v39 = vld [vmem:[#allocation8 + $0x120] sm:$0xf] }
 0x244   :  { %3251 = vmatpush.bf16.msra.mxu0 %v8180_v40  ;;  %v10280_v40 = vld [vmem:[#allocation8 + $0x124] sm:$0xf0] }
 0x245   :  { %2791 = vmatpush.bf16.msra.mxu3 %v8064_v44  ;;  %2832 = vmatpush.bf16.msrb.mxu2 %v7912_v26  ;;  %v10256_v44 = vld [vmem:[#allocation8 + $0x64] sm:$0xf0]  ;;  %v10254_v26 = vld [vmem:[#allocation8 + $0x54] sm:$0xf0] }
 0x246   :  { %v8172_v45 = vor.u32 %v10256_v44, %v8171_v41  ;;  %v8164_v47 = vor.u32 %v10254_v26, %v8163_v46  ;;  %v8363_v46 = vld [vmem:[#allocation8 + $0x1e0] sm:$0xf]  ;;  %v10304_v26 = vld [vmem:[#allocation8 + $0x1e4] sm:$0xf0] }
 0x247   :  { %v2249_v49 = vpop.f32.mrf.mxu0 }
 0x248   :  { %2339 = vmatmul.bf16.vlgmr.msrb.gmra.mxu3 %v1849_v17  ;;  %v2250_v8 = vadd.f32 %v2249_v49, %v1916_v5  ;;  %3252 = vmatpush.bf16.msra.mxu0 %v8172_v45  ;;  %v8155_v49 = vld [vmem:[#allocation8 + $0x40] sm:$0xf]  ;;  %v10248_v5 = vld [vmem:[#allocation8 + $0x24] sm:$0xf0]  ;;  %v8268_v45 = vor.u32 %v10280_v40, %v8267_v39  ;;  %v8149_v39 = vld [vmem:[#allocation8 + $0x38] sm:$0xf0] }
 0x249   :  { %2792 = vmatpush.bf16.msra.mxu3 %v8048_v48  ;;  %2833 = vmatpush.bf16.msrb.mxu2 %v7896_v53  ;;  %v10290_v48 = vld [vmem:[#allocation8 + $0x174] sm:$0xf0]  ;;  %v8243_v53 = vld [vmem:[#allocation8 + $0xf0] sm:$0xf] }
 0x24a   :  { %v8308_v50 = vor.u32 %v10290_v48, %v8307_v38  ;;  %v8244_v56 = vor.u32 %v10274_v55, %v8243_v53  ;;  %v10264_v53 = vld [vmem:[#allocation8 + $0xa4] sm:$0xf0] }
 0x24c   :  { %3253 = vmatpush.bf16.msra.mxu0 %v8164_v47  ;;  %3264 = vmatpush.bf16.msra.mxu1 %v8244_v56  ;;  %v10255_v47 = vld [vmem:[#allocation8 + $0x64] sm:$0xf] }
 0x24d   :  { %2793 = vmatpush.bf16.msra.mxu3 %v8032_v57  ;;  %2834 = vmatpush.bf16.msrb.mxu2 %v7880_v58  ;;  %v8299_v57 = vld [vmem:[#allocation8 + $0x160] sm:$0xf] }
 0x24e   :  { %v8300_v58 = vor.u32 %v10288_v10, %v8299_v57  ;;  %v8259_v10 = vld [vmem:[#allocation8 + $0x110] sm:$0xf] }
 0x24f   :  { %v2251_v60 = vpop.f32.mrf.mxu0 }
 0x250   :  { %2835 = vmatmul.bf16.vlgmr.msrb.gmra.mxu2 %v11539_v25  ;;  %v8072_v25 = vor.u32 %v10228_v12, %v8069_v13  ;;  %v8235_v60 = vld [vmem:[#allocation8 + $0xe0] sm:$0xf]  ;;  %v8131_v13 = vld [vmem:[#allocation8 + $0x10] sm:$0xf] }
 0x251   :  { %2794 = vmatpush.bf16.msra.mxu3 %v8016_v36  ;;  %3277 = vmatpush.bf16.msra.mxu2 %v8308_v50  ;;  %v10250_v36 = vld [vmem:[#allocation8 + $0x34] sm:$0xf0]  ;;  %v8236_v61 = vor.u32 %v10272_v59, %v8235_v60  ;;  %v8173_v50 = vld [vmem:[#allocation8 + $0x68] sm:$0xf0]  ;;  %v8355_v60 = vld [vmem:[#allocation8 + $0x1d0] sm:$0xf] }
 0x252   :  { %v8176_v56 = vor.u32 %v10255_v47, %v8173_v50  ;;  %v10302_v59 = vld [vmem:[#allocation8 + $0x1d4] sm:$0xf0]  ;;  %v8331_v47 = vld [vmem:[#allocation8 + $0x1a0] sm:$0xf]  ;;  %v10247_v50 = vld [vmem:[#allocation8 + $0x24] sm:$0xf] }
 0x253   :  { %3265 = vmatpush.bf16.msra.mxu1 %v8236_v61 }
 0x255   :  { %2795 = vmatpush.bf16.msra.mxu3 %v8000_v0  ;;  %v8148_v0 = vor.u32 %v10250_v36, %v8147_v51  ;;  %3278 = vmatpush.bf16.msra.mxu2 %v8300_v58  ;;  %v10278_v51 = vld [vmem:[#allocation8 + $0x114] sm:$0xf0] }
 0x256   :  { %v2262_v11 = vpop.f32.mrf.mxu1  ;;  %v8260_v36 = vor.u32 %v10278_v51, %v8259_v10  ;;  %v10269_v51 = vld [vmem:[#allocation8 + $0xd4] sm:$0xf] }
 0x257   :  { %v11553_v14 = vadd.f32 %v2262_v11, %v2250_v8  ;;  %v8283_v8 = vld [vmem:[#allocation8 + $0x140] sm:$0xf]  ;;  %v10284_v11 = vld [vmem:[#allocation8 + $0x144] sm:$0xf0] }
 0x258   :  { %2796 = vmatmul.bf16.vlgmr.msra.gmra.mxu3 %v11543_v33  ;;  %v8284_v12 = vor.u32 %v10284_v11, %v8283_v8  ;;  %v8309_v8 = vld [vmem:[#allocation8 + $0x178] sm:$0xf0] }
 0x259   :  { %2840 = vmatpush.bf16.msrb.mxu3 %v8120_v1  ;;  %v8292_v1 = vor.u32 %v10286_v62, %v8291_v43  ;;  %v8356_v43 = vor.u32 %v10302_v59, %v8355_v60  ;;  %v10253_v62 = vld [vmem:[#allocation8 + $0x54] sm:$0xf] }
 0x25b   :  { %3279 = vmatpush.bf16.msra.mxu2 %v8292_v1  ;;  %v8195_v1 = vld [vmem:[#allocation8 + $0x90] sm:$0xf] }
 0x25d   :  { %2841 = vmatpush.bf16.msrb.mxu3 %v8104_v6  ;;  %v8140_v6 = vor.u32 %v10248_v5, %v8139_v4  ;;  %v8251_v4 = vld [vmem:[#allocation8 + $0x100] sm:$0xf] }
 0x25e   :  { %v2264_v18 = vpop.f32.mrf.mxu1 }
 0x25f   :  { %v10282_v18 = vld [vmem:[#allocation8 + $0x134] sm:$0xf0]  ;;  %3280 = vmatpush.bf16.msra.mxu2 %v8284_v12 }
 0x261   :  { %2842 = vmatpush.bf16.msrb.mxu3 %v8088_v9  ;;  %v8228_v9 = vor.u32 %v10270_v63, %v8227_v7  ;;  %v10276_v7 = vld [vmem:[#allocation8 + $0x104] sm:$0xf0]  ;;  %v10289_v63 = vld [vmem:[#allocation8 + $0x174] sm:$0xf] }
 0x262   :  { %v8252_v11 = vor.u32 %v10276_v7, %v8251_v4  ;;  %v8312_v12 = vor.u32 %v10289_v63, %v8309_v8  ;;  %v8133_v4 = vld [vmem:[#allocation8 + $0x18] sm:$0xf0]  ;;  %v10267_v8 = vld [vmem:[#allocation8 + $0xc4] sm:$0xf] }
 0x263   :  { %3266 = vmatpush.bf16.msra.mxu1 %v8228_v9 }
 0x265   :  { %2843 = vmatpush.bf16.msrb.mxu3 %v8072_v25  ;;  %v10246_v25 = vld [vmem:[#allocation8 + $0x14] sm:$0xf0] }
 0x267   :  { %v2301_v17 = vpop.f32.mrf.mxu0 }
 0x268   :  { %v2302_v37 = vadd.f32 %v2301_v17, %v1917_v20  ;;  %v2314_v28 = vpop.f32.mrf.mxu1  ;;  %v8275_v17 = vld [vmem:[#allocation8 + $0x130] sm:$0xf]  ;;  %v8123_v20 = vld [vmem:[#allocation8] sm:$0xf] }
 0x269   :  { %2844 = vmatpush.bf16.msrb.mxu3 %v8056_v16  ;;  %v10268_v16 = vld [vmem:[#allocation8 + $0xc4] sm:$0xf0]  ;;  %v8276_v54 = vor.u32 %v10282_v18, %v8275_v17  ;;  %v8187_v17 = vld [vmem:[#allocation8 + $0x80] sm:$0xf] }
 0x26a   :  { %v11555_v22 = vadd.f32 %v2314_v28, %v2302_v37  ;;  %v8220_v19 = vor.u32 %v10268_v16, %v8219_v15  ;;  %v10306_v37 = vld [vmem:[#allocation8 + $0x1f4] sm:$0xf0]  ;;  %v10251_v15 = vld [vmem:[#allocation8 + $0x44] sm:$0xf]  ;;  %v8157_v16 = vld [vmem:[#allocation8 + $0x48] sm:$0xf0] }
 0x26b   :  { %3281 = vmatpush.bf16.msra.mxu2 %v8276_v54  ;;  %v8372_v28 = vor.u32 %v10306_v37, %v8371_v21  ;;  %v10260_v18 = vld [vmem:[#allocation8 + $0x84] sm:$0xf0]  ;;  %v8160_v54 = vor.u32 %v10251_v15, %v8157_v16  ;;  %v8245_v21 = vld [vmem:[#allocation8 + $0xf8] sm:$0xf0]  ;;  %v8315_v15 = vld [vmem:[#allocation8 + $0x180] sm:$0xf] }
 0x26c   :  { %3267 = vmatpush.bf16.msra.mxu1 %v8220_v19  ;;  %v10243_v16 = vld [vmem:[#allocation8 + $0x4] sm:$0xf] }
 0x26d   :  { %2845 = vmatpush.bf16.msrb.mxu3 %v8040_v42  ;;  %v10244_v42 = vld [vmem:[#allocation8 + $0x4] sm:$0xf0] }
 0x26e   :  { %v8124_v34 = vor.u32 %v10244_v42, %v8123_v20  ;;  %v8188_v20 = vor.u32 %v10260_v18, %v8187_v17  ;;  %v10273_v42 = vld [vmem:[#allocation8 + $0xf4] sm:$0xf]  ;;  %v8125_v17 = vld [vmem:[#allocation8 + $0x8] sm:$0xf0] }
 0x26f   :  { %v2303_v27 = vpop.f32.mrf.mxu0  ;;  %3282 = vmatpush.bf16.msra.mxu2 %v8268_v45  ;;  %v8248_v37 = vor.u32 %v10273_v42, %v8245_v21  ;;  %v10285_v45 = vld [vmem:[#allocation8 + $0x154] sm:$0xf]  ;;  %v8373_v42 = vld [vmem:[#allocation8 + $0x1f8] sm:$0xf0] }
 0x270   :  { %v2316_v31 = vpop.f32.mrf.mxu1  ;;  %v10257_v27 = vld [vmem:[#allocation8 + $0x74] sm:$0xf] }
 0x271   :  { %2846 = vmatpush.bf16.msrb.mxu3 %v8024_v24  ;;  %v11562_v24 = vld [vmem:[%s11840_s12] sm:$0xf]  ;;  %v8184_v31 = vor.u32 %v10257_v27, %v8181_v29  ;;  %v8301_v27 = vld [vmem:[#allocation8 + $0x168] sm:$0xf0] }
 0x272   :  { %v2421_v23 = vperm.slane %v11562_v24, 0 }
 0x273   :  { %3283 = vmatpush.bf16.msra.mxu2 %v8260_v36  ;;  %v10283_v36 = vld [vmem:[#allocation8 + $0x144] sm:$0xf] }
 0x275   :  { %2847 = vmatpush.bf16.msrb.mxu3 %v8008_v30  ;;  %v8211_v30 = vld [vmem:[#allocation8 + $0xb0] sm:$0xf] }
 0x276   :  { %v8212_v44 = vor.u32 %v10266_v32, %v8211_v30  ;;  %v10249_v32 = vld [vmem:[#allocation8 + $0x34] sm:$0xf] }
 0x277   :  { %3284 = vmatpush.bf16.msra.mxu2 %v8252_v11  ;;  %v8152_v40 = vor.u32 %v10249_v32, %v8149_v39  ;;  %v10281_v11 = vld [vmem:[#allocation8 + $0x134] sm:$0xf] }
 0x278   :  { %2848 = vmatmul.bf16.vlgmr.msrb.gmra.mxu3 %v11543_v33  ;;  %v8156_v33 = vor.u32 %v10252_v52, %v8155_v49  ;;  %v8364_v49 = vor.u32 %v10304_v26, %v8363_v46  ;;  %v8203_v52 = vld [vmem:[#allocation8 + $0xa0] sm:$0xf]  ;;  %3268 = vmatpush.bf16.msra.mxu1 %v8212_v44  ;;  %v8237_v44 = vld [vmem:[#allocation8 + $0xe8] sm:$0xf0]  ;;  %v8293_v26 = vld [vmem:[#allocation8 + $0x158] sm:$0xf0] }
 0x279   :  { %3290 = vmatpush.bf16.msra.mxu3 %v8372_v28  ;;  %v8204_v57 = vor.u32 %v10264_v53, %v8203_v52  ;;  %v8339_v28 = vld [vmem:[#allocation8 + $0x1b0] sm:$0xf]  ;;  %v8141_v52 = vld [vmem:[#allocation8 + $0x28] sm:$0xf0] }
 0x27a   :  { %3254 = vmatpush.bf16.msra.mxu0 %v8156_v33 }
 0x27b   :  { %3329 = vmatpush.bf16.msrb.mxu2 %v8312_v12 }
 0x27c   :  { %3269 = vmatpush.bf16.msra.mxu1 %v8204_v57 }
 0x27d   :  { %3291 = vmatpush.bf16.msra.mxu3 %v8364_v49 }
 0x27e   :  { %3255 = vmatpush.bf16.msra.mxu0 %v8148_v0  ;;  %v8165_v0 = vld [vmem:[#allocation8 + $0x58] sm:$0xf0] }
 0x281   :  { %3292 = vmatpush.bf16.msra.mxu3 %v8356_v43  ;;  %v8323_v43 = vld [vmem:[#allocation8 + $0x190] sm:$0xf] }
 0x282   :  { %3256 = vmatpush.bf16.msra.mxu0 %v8140_v6 }
 0x287   :  { %v2758_v41 = vpop.f32.mrf.mxu0 }
 0x288   :  { %v2759_v48 = vadd.f32 %v2758_v41, %v2421_v23  ;;  %v10298_v23 = vld [vmem:[#allocation8 + $0x1b4] sm:$0xf0]  ;;  %v10271_v41 = vld [vmem:[#allocation8 + $0xe4] sm:$0xf] }
 0x289   :  { %v8340_v30 = vor.u32 %v10298_v23, %v8339_v28  ;;  %v8240_v46 = vor.u32 %v10271_v41, %v8237_v44  ;;  %v10263_v41 = vld [vmem:[#allocation8 + $0xa4] sm:$0xf]  ;;  %v8205_v44 = vld [vmem:[#allocation8 + $0xa8] sm:$0xf0] }
 0x28f   :  { %v2760_v9 = vpop.f32.mrf.mxu0 }
 0x290   :  { %v8221_v9 = vld [vmem:[#allocation8 + $0xc8] sm:$0xf0] }
 0x293   :  { %v2275_v2 = vpop.f32.mrf.mxu2 }
 0x294   :  { %v11559_v3 = vadd.f32 %v2275_v2, %v11553_v14  ;;  %v8132_v14 = vor.u32 %v10246_v25, %v8131_v13  ;;  %v2771_v33 = vpop.f32.mrf.mxu1  ;;  %v10262_v2 = vld [vmem:[#allocation8 + $0x94] sm:$0xf0]  ;;  %v8347_v13 = vld [vmem:[#allocation8 + $0x1c0] sm:$0xf]  ;;  %v10300_v25 = vld [vmem:[#allocation8 + $0x1c4] sm:$0xf0] }
 0x295   :  { %v2772_v58 = vadd.f32 %v2771_v33, %v2759_v48  ;;  %v8196_v6 = vor.u32 %v10262_v2, %v8195_v1  ;;  %v8296_v48 = vor.u32 %v10285_v45, %v8293_v26  ;;  %v10245_v2 = vld [vmem:[#allocation8 + $0x14] sm:$0xf] }
 0x296   :  { %3257 = vmatpush.bf16.msra.mxu0 %v8132_v14  ;;  %v8348_v14 = vor.u32 %v10300_v25, %v8347_v13  ;;  %v8136_v63 = vor.u32 %v10245_v2, %v8133_v4  ;;  %v8224_v13 = vor.u32 %v10267_v8, %v8221_v9  ;;  %v8277_v25 = vld [vmem:[#allocation8 + $0x138] sm:$0xf0]  ;;  %v10277_v45 = vld [vmem:[#allocation8 + $0x114] sm:$0xf]  ;;  %v10401_v2 = vld [vmem:[#allocation10 + $0x2ec] sm:$0xf0] }
 0x297   :  { %v2853_v61 = vmax.f32 %v2772_v58, 0.0  ;;  %3270 = vmatpush.bf16.msra.mxu1 %v8196_v6  ;;  %v8229_v58 = vld [vmem:[#allocation8 + $0xd8] sm:$0xf0]  ;;  %v10301_v26 = vld [vmem:[#allocation8 + $0x1d4] sm:$0xf] }
 0x298   :  { %3293 = vmatpush.bf16.msra.mxu3 %v8348_v14  ;;  %v8232_v59 = vor.u32 %v10269_v51, %v8229_v58  ;;  %v10292_v14 = vld [vmem:[#allocation8 + $0x184] sm:$0xf0]  ;;  %v10295_v4 = vld [vmem:[#allocation8 + $0x1a4] sm:$0xf]  ;;  %v8333_v8 = vld [vmem:[#allocation8 + $0x1a8] sm:$0xf0] }
 0x299   :  { %v11568_v5 = vpack.c.bf16 %v2853_v61, %v2853_v61  ;;  %v8285_v61 = vld [vmem:[#allocation8 + $0x148] sm:$0xf0]  ;;  %v8491_v9 = vld [vmem:[#allocation10 + $0xe0] sm:$0xf] }
 0x29a   :  { %3258 = vmatpush.bf16.msra.mxu0 %v8124_v34  ;;  %v10287_v34 = vld [vmem:[#allocation8 + $0x164] sm:$0xf] }
 0x29b   :  { %v2277_v35 = vpop.f32.mrf.mxu2  ;;  %v8304_v29 = vor.u32 %v10287_v34, %v8301_v27  ;;  %3271 = vmatpush.bf16.msra.mxu1 %v8188_v20  ;;  %v10305_v20 = vld [vmem:[#allocation8 + $0x1f4] sm:$0xf]  ;;  %v10279_v27 = vld [vmem:[#allocation8 + $0x124] sm:$0xf] }
 0x29c   :  { %v2773_v19 = vpop.f32.mrf.mxu1  ;;  %3294 = vmatpush.bf16.msra.mxu3 %v8340_v30  ;;  %v8376_v21 = vor.u32 %v10305_v20, %v8373_v42  ;;  %v10265_v34 = vld [vmem:[#allocation8 + $0xb4] sm:$0xf]  ;;  %v10303_v30 = vld [vmem:[#allocation8 + $0x1e4] sm:$0xf]  ;;  %v8619_v42 = vld [vmem:[#allocation10 + $0x1e0] sm:$0xf] }
 0x29d   :  { %3259 = vmatmul.bf16.vlgmr.msra.gmra.mxu0 %v11568_v5  ;;  %3330 = vmatpush.bf16.msrb.mxu2 %v8304_v29  ;;  %v8316_v19 = vor.u32 %v10292_v14, %v8315_v15  ;;  %v8269_v29 = vld [vmem:[#allocation8 + $0x128] sm:$0xf0]  ;;  %v10293_v14 = vld [vmem:[#allocation8 + $0x194] sm:$0xf] }
 0x29e   :  { %3303 = vmatpush.bf16.msrb.mxu0 %v8184_v31  ;;  %v2423_v31 = vperm.slane %v11562_v24, 2  ;;  %v8272_v39 = vor.u32 %v10279_v27, %v8269_v29  ;;  %v10291_v27 = vld [vmem:[#allocation8 + $0x184] sm:$0xf] }
 0x29f   :  { %3316 = vmatpush.bf16.msrb.mxu1 %v8248_v37  ;;  %v8213_v37 = vld [vmem:[#allocation8 + $0xb8] sm:$0xf0] }
 0x2a0   :  { %v8216_v23 = vor.u32 %v10265_v34, %v8213_v37  ;;  %v10393_v37 = vld [vmem:[#allocation10 + $0x2ac] sm:$0xf0] }
 0x2a1   :  { %3331 = vmatpush.bf16.msrb.mxu2 %v8296_v48 }
 0x2a2   :  { %3304 = vmatpush.bf16.msrb.mxu0 %v8176_v56  ;;  %v8144_v56 = vor.u32 %v10247_v50, %v8141_v52  ;;  %v8197_v50 = vld [vmem:[#allocation8 + $0x98] sm:$0xf0]  ;;  %v10275_v52 = vld [vmem:[#allocation8 + $0x104] sm:$0xf] }
 0x2a3   :  { %v2327_v38 = vpop.f32.mrf.mxu2  ;;  %3317 = vmatpush.bf16.msrb.mxu1 %v8240_v46  ;;  %v8261_v46 = vld [vmem:[#allocation8 + $0x118] sm:$0xf0] }
 0x2a4   :  { %v11566_v55 = vadd.f32 %v2327_v38, %v11555_v22  ;;  %v8168_v22 = vor.u32 %v10253_v62, %v8165_v0  ;;  %v10296_v38 = vld [vmem:[#allocation8 + $0x1a4] sm:$0xf0]  ;;  %v10294_v62 = vld [vmem:[#allocation8 + $0x194] sm:$0xf0]  ;;  %v8264_v48 = vor.u32 %v10277_v45, %v8261_v46  ;;  %v8603_v45 = vld [vmem:[#allocation10 + $0x1c0] sm:$0xf] }
 0x2a5   :  { %v8332_v49 = vor.u32 %v10296_v38, %v8331_v47  ;;  %v8324_v1 = vor.u32 %v10294_v62, %v8323_v43  ;;  %v8357_v47 = vld [vmem:[#allocation8 + $0x1d8] sm:$0xf0]  ;;  %v8208_v38 = vor.u32 %v10263_v41, %v8205_v44  ;;  %v10365_v46 = vld [vmem:[#allocation10 + $0x1cc] sm:$0xf0] }
 0x2a6   :  { %3305 = vmatpush.bf16.msrb.mxu0 %v8168_v22  ;;  %v8288_v22 = vor.u32 %v10283_v36, %v8285_v61  ;;  %v10259_v36 = vld [vmem:[#allocation8 + $0x84] sm:$0xf]  ;;  %v8341_v62 = vld [vmem:[#allocation8 + $0x1b8] sm:$0xf0] }
 0x2a7   :  { %3295 = vmatpush.bf16.msra.mxu3 %v8332_v49  ;;  %3318 = vmatpush.bf16.msrb.mxu1 %v8232_v59  ;;  %v10261_v49 = vld [vmem:[#allocation8 + $0x94] sm:$0xf] }
 0x2a8   :  { %v2823_v10 = vpop.f32.mrf.mxu1  ;;  %3332 = vmatpush.bf16.msrb.mxu2 %v8288_v22  ;;  %v8200_v51 = vor.u32 %v10261_v49, %v8197_v50  ;;  %v10325_v49 = vld [vmem:[#allocation10 + $0x8c] sm:$0xf0] }
 0x2aa   :  { %3306 = vmatpush.bf16.msrb.mxu0 %v8160_v54  ;;  %v8128_v54 = vor.u32 %v10243_v16, %v8125_v17  ;;  %v8325_v16 = vld [vmem:[#allocation8 + $0x198] sm:$0xf0] }
 0x2ab   :  { %v2329_v35 = vpop.f32.mrf.mxu2  ;;  %3296 = vmatpush.bf16.msra.mxu3 %v8324_v1  ;;  %3319 = vmatpush.bf16.msrb.mxu1 %v8224_v13  ;;  %v8747_v1 = vld [vmem:[#allocation10 + $0x2e0] sm:$0xf] }
 0x2ac   :  { %v8280_v35 = vor.u32 %v10281_v11, %v8277_v25  ;;  %v2422_v11 = vperm.slane %v11562_v24, 1  ;;  %v8336_v25 = vor.u32 %v10295_v4, %v8333_v8  ;;  %v10317_v4 = vld [vmem:[#allocation10 + $0x4c] sm:$0xf0] }
 0x2ae   :  { %v2810_v53 = vpop.f32.mrf.mxu0  ;;  %3307 = vmatpush.bf16.msrb.mxu0 %v8152_v40  ;;  %3333 = vmatpush.bf16.msrb.mxu2 %v8280_v35  ;;  %v8731_v35 = vld [vmem:[#allocation10 + $0x2c0] sm:$0xf] }
 0x2af   :  { %v2811_v57 = vadd.f32 %v2810_v53, %v2423_v31  ;;  %3297 = vmatpush.bf16.msra.mxu3 %v8316_v19  ;;  %v8365_v31 = vld [vmem:[#allocation8 + $0x1e8] sm:$0xf0]  ;;  %3320 = vmatpush.bf16.msrb.mxu1 %v8216_v23  ;;  %v8475_v19 = vld [vmem:[#allocation10 + $0xc0] sm:$0xf] }
 0x2b0   :  { %v2825_v28 = vpop.f32.mrf.mxu1  ;;  %v8368_v40 = vor.u32 %v10303_v30, %v8365_v31  ;;  %v8253_v53 = vld [vmem:[#allocation8 + $0x108] sm:$0xf0]  ;;  %v10369_v30 = vld [vmem:[#allocation10 + $0x1ec] sm:$0xf0] }
 0x2b1   :  { %v2824_v60 = vadd.f32 %v2823_v10, %v2811_v57  ;;  %v10299_v57 = vld [vmem:[#allocation8 + $0x1c4] sm:$0xf]  ;;  %v8349_v10 = vld [vmem:[#allocation8 + $0x1c8] sm:$0xf0]  ;;  %v8256_v58 = vor.u32 %v10275_v52, %v8253_v53  ;;  %v8620_v44 = vor.u32 %v10369_v30, %v8619_v42  ;;  %v2424_v42 = vperm.slane %v11562_v24, 3 }
 0x2b2   :  { %3308 = vmatpush.bf16.msrb.mxu0 %v8144_v56  ;;  %3334 = vmatpush.bf16.msrb.mxu2 %v8272_v39  ;;  %v8360_v56 = vor.u32 %v10301_v26, %v8357_v47  ;;  %v8352_v61 = vor.u32 %v10299_v57, %v8349_v10  ;;  %v8317_v28 = vld [vmem:[#allocation8 + $0x188] sm:$0xf0]  ;;  %v10329_v39 = vld [vmem:[#allocation10 + $0xac] sm:$0xf0]  ;;  %v8699_v26 = vld [vmem:[#allocation10 + $0x280] sm:$0xf] }
 0x2b3   :  { %v11572_v33 = vpop.f32.mrf.mxu2  ;;  %v2855_v7 = vmax.f32 %v2824_v60, 0.0  ;;  %3342 = vmatpush.bf16.msrb.mxu3 %v8376_v21  ;;  %3321 = vmatpush.bf16.msrb.mxu1 %v8208_v38  ;;  %v8189_v60 = vld [vmem:[#allocation8 + $0x88] sm:$0xf0]  ;;  %v8715_v21 = vld [vmem:[#allocation10 + $0x2a0] sm:$0xf] }
 0x2b4   :  { %v2785_v17 = vadd.f32 %v11572_v33, %v2422_v11  ;;  %v8716_v31 = vor.u32 %v10393_v37, %v8715_v21  ;;  %v8459_v33 = vld [vmem:[#allocation10 + $0xa0] sm:$0xf]  ;;  %v10389_v38 = vld [vmem:[#allocation10 + $0x28c] sm:$0xf0]  ;;  %v8733_v24 = vld [vmem:[#allocation10 + $0x2d0] sm:$0xf0] }
 0x2b5   :  { %v11577_v12 = vpack.c.bf16 %v2855_v7, %v2855_v7  ;;  %v8700_v50 = vor.u32 %v10389_v38, %v8699_v26  ;;  %v8587_v57 = vld [vmem:[#allocation10 + $0x1a0] sm:$0xf]  ;;  %v10361_v10 = vld [vmem:[#allocation10 + $0x1ac] sm:$0xf0] }
 0x2b6   :  { %3309 = vmatpush.bf16.msrb.mxu0 %v8136_v63  ;;  %v2812_v18 = vpop.f32.mrf.mxu0  ;;  %3335 = vmatpush.bf16.msrb.mxu2 %v8264_v48  ;;  %v8748_v63 = vor.u32 %v10401_v2, %v8747_v1  ;;  %v8443_v48 = vld [vmem:[#allocation10 + $0x80] sm:$0xf]  ;;  %v10381_v1 = vld [vmem:[#allocation10 + $0x24c] sm:$0xf0] }
 0x2b7   :  { %3285 = vmatmul.bf16.vlgmr.msra.gmra.mxu2 %v11577_v12  ;;  %3343 = vmatpush.bf16.msrb.mxu3 %v8368_v40  ;;  %v8328_v18 = vor.u32 %v10293_v14, %v8325_v16  ;;  %v8460_v40 = vor.u32 %v10329_v39, %v8459_v33  ;;  %v8444_v52 = vor.u32 %v10325_v49, %v8443_v48  ;;  %v8411_v2 = vld [vmem:[#allocation10 + $0x40] sm:$0xf]  ;;  %v10353_v11 = vld [vmem:[#allocation10 + $0x16c] sm:$0xf0]  ;;  %v10395_v39 = vld [vmem:[#allocation10 + $0x2c4] sm:$0xf] }
 0x2b8   :  { %3322 = vmatpush.bf16.msrb.mxu1 %v8200_v51  ;;  %v8683_v51 = vld [vmem:[#allocation10 + $0x260] sm:$0xf]  ;;  %v10345_v33 = vld [vmem:[#allocation10 + $0x12c] sm:$0xf0] }
 0x2b9   :  { %v8379_v37 = vld [vmem:[#allocation10] sm:$0xf]  ;;  %v10433_v26 = vld [vmem:[#allocation10 + $0x3ec] sm:$0xf0] }
 0x2ba   :  { %3310 = vmatpush.bf16.msrb.mxu0 %v8128_v54  ;;  %3336 = vmatpush.bf16.msrb.mxu2 %v8256_v58  ;;  %v10333_v54 = vld [vmem:[#allocation10 + $0xcc] sm:$0xf0]  ;;  %v8507_v49 = vld [vmem:[#allocation10 + $0x100] sm:$0xf] }
 0x2bb   :  { %v2288_v0 = vpop.f32.mrf.mxu3  ;;  %3344 = vmatpush.bf16.msrb.mxu3 %v8360_v56  ;;  %v8476_v20 = vor.u32 %v10333_v54, %v8475_v19  ;;  %v8604_v56 = vor.u32 %v10365_v46, %v8603_v45  ;;  %v10385_v58 = vld [vmem:[#allocation10 + $0x26c] sm:$0xf0]  ;;  %v10399_v54 = vld [vmem:[#allocation10 + $0x2e4] sm:$0xf]  ;;  %v8477_v45 = vld [vmem:[#allocation10 + $0xd0] sm:$0xf0] }
 0x2bc   :  { %v11575_v6 = vadd.f32 %v2288_v0, %v11559_v3  ;;  %v2786_v3 = vpop.f32.mrf.mxu2  ;;  %v8192_v0 = vor.u32 %v10259_v36, %v8189_v60  ;;  %v8427_v36 = vld [vmem:[#allocation10 + $0x60] sm:$0xf]  ;;  %v10321_v60 = vld [vmem:[#allocation10 + $0x6c] sm:$0xf0] }
 0x2bd   :  { %3311 = vmatmul.bf16.vlgmr.msrb.gmra.mxu0 %v11568_v5  ;;  %v10297_v5 = vld [vmem:[#allocation8 + $0x1b4] sm:$0xf]  ;;  %v10373_v19 = vld [vmem:[#allocation10 + $0x20c] sm:$0xf0]  ;;  %v8875_v46 = vld [vmem:[#allocation10 + $0x3e0] sm:$0xf] }
 0x2be   :  { %v8344_v22 = vor.u32 %v10297_v5, %v8341_v62  ;;  %3323 = vmatpush.bf16.msrb.mxu1 %v8192_v0  ;;  %4176 = vmatpush.bf16.msra.mxu2 %v8748_v63  ;;  %v8588_v5 = vor.u32 %v10361_v10, %v8587_v57  ;;  %v8571_v62 = vld [vmem:[#allocation10 + $0x180] sm:$0xf]  ;;  %v10357_v0 = vld [vmem:[#allocation10 + $0x18c] sm:$0xf0]  ;;  %v8412_v63 = vor.u32 %v10317_v4, %v8411_v2  ;;  %v8621_v57 = vld [vmem:[#allocation10 + $0x1f0] sm:$0xf0] }
 0x2bf   :  { %3345 = vmatpush.bf16.msrb.mxu3 %v8352_v61  ;;  %v8428_v61 = vor.u32 %v10321_v60, %v8427_v36  ;;  %v8572_v8 = vor.u32 %v10357_v0, %v8571_v62  ;;  %v8859_v60 = vld [vmem:[#allocation10 + $0x3c0] sm:$0xf]  ;;  %v3362_v62 = vld.sshfl [vmem:[#allocation1 + $0x10] sm:$0xff pattern:$0x73625140]  ;;  %v8876_v0 = vor.u32 %v10433_v26, %v8875_v46 }
 0x2c0   :  { %v8605_v2 = vld [vmem:[#allocation10 + $0x1d0] sm:$0xf0]  ;;  %v11591_v4 = vpack.c.bf16 %v3362_v62, %v3362_v62  ;;  %v8811_v26 = vld [vmem:[#allocation10 + $0x360] sm:$0xf] }
 0x2c1   :  { %v8637_v62 = vld [vmem:[#allocation10 + $0x210] sm:$0xf0] }
 0x2c3   :  { %v2290_v32 = vpop.f32.mrf.mxu3  ;;  %3346 = vmatpush.bf16.msrb.mxu3 %v8344_v22  ;;  %v8667_v22 = vld [vmem:[#allocation10 + $0x240] sm:$0xf] }
 0x2c4   :  { %v8320_v32 = vor.u32 %v10291_v27, %v8317_v28  ;;  %v10309_v27 = vld [vmem:[#allocation10 + $0xc] sm:$0xf0] }
 0x2c5   :  { %v8380_v28 = vor.u32 %v10309_v27, %v8379_v37  ;;  %v10319_v37 = vld [vmem:[#allocation10 + $0x64] sm:$0xf]  ;;  %v8827_v27 = vld [vmem:[#allocation10 + $0x380] sm:$0xf] }
 0x2c7   :  { %3337 = vmatmul.bf16.vlgmr.msrb.gmra.mxu2 %v11577_v12  ;;  %3347 = vmatpush.bf16.msrb.mxu3 %v8336_v25  ;;  %v10397_v12 = vld [vmem:[#allocation10 + $0x2cc] sm:$0xf0] }
 0x2c8   :  { %v8732_v3 = vor.u32 %v10397_v12, %v8731_v35  ;;  %v10377_v25 = vld [vmem:[#allocation10 + $0x22c] sm:$0xf0]  ;;  %v8395_v35 = vld [vmem:[#allocation10 + $0x20] sm:$0xf] }
 0x2c9   :  { %v10313_v12 = vld [vmem:[#allocation10 + $0x2c] sm:$0xf0] }
 0x2ca   :  { %4177 = vmatpush.bf16.msra.mxu2 %v8732_v3  ;;  %v8396_v14 = vor.u32 %v10313_v12, %v8395_v35  ;;  %v10349_v3 = vld [vmem:[#allocation10 + $0x14c] sm:$0xf0]  ;;  %v8445_v12 = vld [vmem:[#allocation10 + $0x90] sm:$0xf0] }
 0x2cb   :  { %v2340_v59 = vpop.f32.mrf.mxu3  ;;  %3348 = vmatpush.bf16.msrb.mxu3 %v8328_v18  ;;  %v8635_v18 = vld [vmem:[#allocation10 + $0x200] sm:$0xf]  ;;  %v10425_v35 = vld [vmem:[#allocation10 + $0x3ac] sm:$0xf0] }
 0x2cc   :  { %v11582_v43 = vadd.f32 %v2340_v59, %v11566_v55  ;;  %v10337_v55 = vld [vmem:[#allocation10 + $0xec] sm:$0xf0]  ;;  %v8684_v59 = vor.u32 %v10385_v58, %v8683_v51  ;;  %v8636_v21 = vor.u32 %v10373_v19, %v8635_v18  ;;  %v10327_v51 = vld [vmem:[#allocation10 + $0xa4] sm:$0xf]  ;;  %v8461_v58 = vld [vmem:[#allocation10 + $0xb0] sm:$0xf0] }
 0x2cd   :  { %v8492_v15 = vor.u32 %v10337_v55, %v8491_v9  ;;  %v8651_v9 = vld [vmem:[#allocation10 + $0x220] sm:$0xf] }
 0x2ce   :  { %4178 = vmatpush.bf16.msra.mxu2 %v8716_v31  ;;  %v8555_v55 = vld [vmem:[#allocation10 + $0x160] sm:$0xf] }
 0x2cf   :  { %4150 = vmatpush.bf16.msra.mxu0 %v8492_v15  ;;  %3349 = vmatpush.bf16.msrb.mxu3 %v8320_v32  ;;  %v8652_v15 = vor.u32 %v10377_v25, %v8651_v9  ;;  %v8556_v16 = vor.u32 %v10353_v11, %v8555_v55  ;;  %v8523_v32 = vld [vmem:[#allocation10 + $0x120] sm:$0xf]  ;;  %v3360_v9 = vld.sshfl [vmem:[#allocation1] sm:$0xff pattern:$0x73625140] }
 0x2d0   :  { %v11596_v11 = vpack.c.bf16 %v3360_v9, %v3360_v9  ;;  %v10323_v25 = vld [vmem:[#allocation10 + $0x84] sm:$0xf] }
 0x2d1   :  { %v8448_v18 = vor.u32 %v10323_v25, %v8445_v12  ;;  %v3361_v19 = vld.sshfl [vmem:[#allocation1 + $0x8] sm:$0xff pattern:$0x73625140]  ;;  %v10338_v25 = vld [vmem:[#allocation10 + $0xf4] sm:$0xf0] }
 0x2d2   :  { %4179 = vmatpush.bf16.msra.mxu2 %v8700_v50  ;;  %v10341_v50 = vld [vmem:[#allocation10 + $0x10c] sm:$0xf0] }
 0x2d3   :  { %v2342_v7 = vpop.f32.mrf.mxu3  ;;  %v11586_v13 = vpop.f32.mrf.mxu2  ;;  %4151 = vmatpush.bf16.msra.mxu0 %v8476_v20  ;;  %v8749_v20 = vld [vmem:[#allocation10 + $0x2f0] sm:$0xf0]  ;;  %v10409_v12 = vld [vmem:[#allocation10 + $0x32c] sm:$0xf0] }
 0x2d4   :  { %v8668_v7 = vor.u32 %v10381_v1, %v8667_v22  ;;  %v10363_v1 = vld [vmem:[#allocation10 + $0x1c4] sm:$0xf] }
 0x2d6   :  { %4180 = vmatpush.bf16.msra.mxu2 %v8684_v59  ;;  %v10429_v59 = vld [vmem:[#allocation10 + $0x3cc] sm:$0xf0] }
 0x2d7   :  { %4152 = vmatpush.bf16.msra.mxu0 %v8460_v40  ;;  %v2837_v40 = vadd.f32 %v11586_v13, %v2424_v42  ;;  %v8717_v13 = vld [vmem:[#allocation10 + $0x2b0] sm:$0xf0]  ;;  %v5855_v42 = vld [vmem:[%s11841_s15] sm:$0xff] }
 0x2d8   :  { %5863 = vst [vmem:[#allocation1] ss:$2 sm:$0xff] %v5855_v42  ;;  %v8483_v42 = vld [vmem:[#allocation10 + $0xc8] sm:$0xf] }
 0x2da   :  { %4181 = vmatpush.bf16.msra.mxu2 %v8668_v7  ;;  %v10387_v7 = vld [vmem:[#allocation10 + $0x284] sm:$0xf] }
 0x2db   :  { %v2797_v34 = vpop.f32.mrf.mxu3  ;;  %v2838_v29 = vpop.f32.mrf.mxu2  ;;  %4153 = vmatpush.bf16.msra.mxu0 %v8444_v52  ;;  %v10391_v52 = vld [vmem:[#allocation10 + $0x2a4] sm:$0xf] }
 0x2dc   :  { %v2798_v23 = vadd.f32 %v2797_v34, %v2785_v17  ;;  %v8539_v17 = vld [vmem:[#allocation10 + $0x140] sm:$0xf]  ;;  %v8752_v34 = vor.u32 %v10399_v54, %v8749_v20  ;;  %v8493_v29 = vld [vmem:[#allocation10 + $0xf0] sm:$0xf0]  ;;  %v8720_v10 = vor.u32 %v10391_v52, %v8717_v13  ;;  %v11600_v20 = vpack.c.bf16 %v3361_v19, %v3361_v19  ;;  %v10375_v52 = vld [vmem:[#allocation10 + $0x224] sm:$0xf] }
 0x2dd   :  { %v8540_v30 = vor.u32 %v10349_v3, %v8539_v17  ;;  %v8608_v17 = vor.u32 %v10363_v1, %v8605_v2  ;;  %v10359_v3 = vld [vmem:[#allocation10 + $0x1a4] sm:$0xf]  ;;  %v8589_v54 = vld [vmem:[#allocation10 + $0x1b0] sm:$0xf0]  ;;  %v10398_v19 = vld [vmem:[#allocation10 + $0x2d4] sm:$0xf0] }
 0x2de   :  { %v2854_v41 = vmax.f32 %v2798_v23, 0.0  ;;  %4182 = vmatpush.bf16.msra.mxu2 %v8652_v15  ;;  %v10335_v23 = vld [vmem:[#allocation10 + $0xe4] sm:$0xf]  ;;  %v8843_v15 = vld [vmem:[#allocation10 + $0x3a0] sm:$0xf] }
 0x2df   :  { %4154 = vmatpush.bf16.msra.mxu0 %v8428_v61  ;;  %v8496_v31 = vor.u32 %v10335_v23, %v8493_v29  ;;  %v8508_v61 = vor.u32 %v10341_v50, %v8507_v49  ;;  %v8429_v29 = vld [vmem:[#allocation10 + $0x70] sm:$0xf0]  ;;  %v10351_v49 = vld [vmem:[#allocation10 + $0x164] sm:$0xf] }
 0x2e0   :  { %v2858_v47 = vpack.c.bf16 %v2854_v41, %v2854_v41  ;;  %v8736_v41 = vor.u32 %v10395_v39, %v8733_v24  ;;  %v8432_v39 = vor.u32 %v10319_v37, %v8429_v29  ;;  %v8669_v24 = vld [vmem:[#allocation10 + $0x250] sm:$0xf0]  ;;  %v10405_v37 = vld [vmem:[#allocation10 + $0x30c] sm:$0xf0] }
 0x2e1   :  { %v8557_v50 = vld [vmem:[#allocation10 + $0x170] sm:$0xf0] }
 0x2e2   :  { %3272 = vmatmul.bf16.vlgmr.msra.gmra.mxu1 %v2858_v47  ;;  %4183 = vmatpush.bf16.msra.mxu2 %v8636_v21  ;;  %v10383_v21 = vld [vmem:[#allocation10 + $0x264] sm:$0xf] }
 0x2e3   :  { %v2799_v53 = vpop.f32.mrf.mxu3  ;;  %4163 = vmatpush.bf16.msra.mxu1 %v8620_v44  ;;  %4155 = vmatpush.bf16.msra.mxu0 %v8412_v63  ;;  %v10331_v44 = vld [vmem:[#allocation10 + $0xc4] sm:$0xf] }
 0x2e4   :  { %v8480_v38 = vor.u32 %v10331_v44, %v8477_v45  ;;  %v8413_v44 = vld [vmem:[#allocation10 + $0x50] sm:$0xf0] }
 0x2e5   :  { %4184 = vmatmul.bf16.vlgmr.msra.gmra.mxu2 %v11591_v4 }
 0x2e6   :  { %4228 = vmatpush.bf16.msrb.mxu2 %v8752_v34  ;;  %v8685_v34 = vld [vmem:[#allocation10 + $0x270] sm:$0xf0] }
 0x2e7   :  { %4164 = vmatpush.bf16.msra.mxu1 %v8604_v56  ;;  %4156 = vmatpush.bf16.msra.mxu0 %v8396_v14  ;;  %v10367_v56 = vld [vmem:[#allocation10 + $0x1e4] sm:$0xf]  ;;  %v8688_v23 = vor.u32 %v10383_v21, %v8685_v34  ;;  %v10334_v21 = vld [vmem:[#allocation10 + $0xd4] sm:$0xf0] }
 0x2e8   :  { %v8624_v22 = vor.u32 %v10367_v56, %v8621_v57  ;;  %v10311_v56 = vld [vmem:[#allocation10 + $0x24] sm:$0xf]  ;;  %v8397_v57 = vld [vmem:[#allocation10 + $0x30] sm:$0xf0]  ;;  %v8484_v29 = vor.u32 %v10334_v21, %v8483_v42 }
 0x2ea   :  { %4229 = vmatpush.bf16.msrb.mxu2 %v8736_v41  ;;  %v10315_v41 = vld [vmem:[#allocation10 + $0x44] sm:$0xf] }
 0x2eb   :  { %4165 = vmatpush.bf16.msra.mxu1 %v8588_v5  ;;  %4157 = vmatpush.bf16.msra.mxu0 %v8380_v28  ;;  %v8464_v5 = vor.u32 %v10327_v51, %v8461_v58  ;;  %v10421_v28 = vld [vmem:[#allocation10 + $0x38c] sm:$0xf0]  ;;  %v8416_v46 = vor.u32 %v10315_v41, %v8413_v44  ;;  %v8795_v51 = vld [vmem:[#allocation10 + $0x340] sm:$0xf]  ;;  %v8467_v41 = vld [vmem:[#allocation10 + $0xa8] sm:$0xf] }
 0x2ec   :  { %v10413_v58 = vld [vmem:[#allocation10 + $0x34c] sm:$0xf0]  ;;  %v10330_v44 = vld [vmem:[#allocation10 + $0xb4] sm:$0xf0] }
 0x2ee   :  { %4230 = vmatpush.bf16.msrb.mxu2 %v8720_v10  ;;  %4158 = vmatmul.bf16.vlgmr.msra.gmra.mxu0 %v11596_v11  ;;  %v8400_v10 = vor.u32 %v10311_v56, %v8397_v57  ;;  %v10366_v56 = vld [vmem:[#allocation10 + $0x1d4] sm:$0xf0] }
 0x2ef   :  { %4166 = vmatpush.bf16.msra.mxu1 %v8572_v8  ;;  %4202 = vmatpush.bf16.msrb.mxu0 %v8496_v31  ;;  %v8701_v8 = vld [vmem:[#allocation10 + $0x290] sm:$0xf0]  ;;  %v8592_v31 = vor.u32 %v10359_v3, %v8589_v54  ;;  %v8763_v54 = vld [vmem:[#allocation10 + $0x300] sm:$0xf]  ;;  %v10390_v57 = vld [vmem:[#allocation10 + $0x294] sm:$0xf0] }
 0x2f0   :  { %v8704_v55 = vor.u32 %v10387_v7, %v8701_v8  ;;  %v10307_v7 = vld [vmem:[#allocation10 + $0x4] sm:$0xf]  ;;  %v8381_v8 = vld [vmem:[#allocation10 + $0x10] sm:$0xf0] }
 0x2f1   :  { %v8384_v9 = vor.u32 %v10307_v7, %v8381_v8  ;;  %v8525_v3 = vld [vmem:[#allocation10 + $0x130] sm:$0xf0]  ;;  %v10322_v7 = vld [vmem:[#allocation10 + $0x74] sm:$0xf0] }
 0x2f2   :  { %3324 = vmatmul.bf16.vlgmr.msrb.gmra.mxu1 %v2858_v47  ;;  %v8524_v47 = vor.u32 %v10345_v33, %v8523_v32  ;;  %4231 = vmatpush.bf16.msrb.mxu2 %v8704_v55  ;;  %v10355_v32 = vld [vmem:[#allocation10 + $0x184] sm:$0xf]  ;;  %v8573_v33 = vld [vmem:[#allocation10 + $0x190] sm:$0xf0]  ;;  %v8499_v55 = vld [vmem:[#allocation10 + $0xe8] sm:$0xf] }
 0x2f3   :  { %4167 = vmatpush.bf16.msra.mxu1 %v8556_v16  ;;  %4203 = vmatpush.bf16.msrb.mxu0 %v8480_v38  ;;  %v8860_v16 = vor.u32 %v10429_v59, %v8859_v60  ;;  %v8828_v38 = vor.u32 %v10421_v28, %v8827_v27  ;;  %v8560_v60 = vor.u32 %v10351_v49, %v8557_v50  ;;  %v10347_v59 = vld [vmem:[#allocation10 + $0x144] sm:$0xf]  ;;  %v8877_v28 = vld [vmem:[#allocation10 + $0x3f0] sm:$0xf0] }
 0x2f4   :  { %v10431_v27 = vld [vmem:[#allocation10 + $0x3e4] sm:$0xf]  ;;  %v8861_v49 = vld [vmem:[#allocation10 + $0x3d0] sm:$0xf0] }
 0x2f6   :  { %4232 = vmatpush.bf16.msrb.mxu2 %v8688_v23 }
 0x2f7   :  { %4168 = vmatpush.bf16.msra.mxu1 %v8540_v30  ;;  %4204 = vmatpush.bf16.msrb.mxu0 %v8464_v5  ;;  %v8844_v30 = vor.u32 %v10425_v35, %v8843_v15  ;;  %v10371_v5 = vld [vmem:[#allocation10 + $0x204] sm:$0xf]  ;;  %v8796_v15 = vor.u32 %v10413_v58, %v8795_v51  ;;  %v8779_v35 = vld [vmem:[#allocation10 + $0x320] sm:$0xf]  ;;  %v8451_v51 = vld [vmem:[#allocation10 + $0x88] sm:$0xf] }
 0x2f8   :  { %v8640_v1 = vor.u32 %v10371_v5, %v8637_v62  ;;  %v8780_v34 = vor.u32 %v10409_v12, %v8779_v35  ;;  %v10326_v58 = vld [vmem:[#allocation10 + $0x94] sm:$0xf0]  ;;  %v8595_v62 = vld [vmem:[#allocation10 + $0x1a8] sm:$0xf] }
 0x2f9   :  { %v8579_v12 = vld [vmem:[#allocation10 + $0x188] sm:$0xf] }
 0x2fb   :  { %v2849_v48 = vpop.f32.mrf.mxu3  ;;  %4169 = vmatpush.bf16.msra.mxu1 %v8524_v47  ;;  %4205 = vmatpush.bf16.msrb.mxu0 %v8448_v18  ;;  %v10417_v47 = vld [vmem:[#allocation10 + $0x36c] sm:$0xf0]  ;;  %v8739_v18 = vld [vmem:[#allocation10 + $0x2c8] sm:$0xf] }
 0x2fc   :  { %v2850_v53 = vadd.f32 %v2849_v48, %v2837_v40  ;;  %v10379_v40 = vld [vmem:[#allocation10 + $0x244] sm:$0xf]  ;;  %v8576_v48 = vor.u32 %v10355_v32, %v8573_v33  ;;  %v8723_v32 = vld [vmem:[#allocation10 + $0x2a8] sm:$0xf] }
 0x2fd   :  { %v8672_v45 = vor.u32 %v10379_v40, %v8669_v24  ;;  %v8627_v33 = vld [vmem:[#allocation10 + $0x1e8] sm:$0xf]  ;;  %v10394_v40 = vld [vmem:[#allocation10 + $0x2b4] sm:$0xf0] }
 0x2fe   :  { %v2856_v36 = vmax.f32 %v2850_v53, 0.0  ;;  %v8653_v53 = vld [vmem:[#allocation10 + $0x230] sm:$0xf0]  ;;  %v8724_v24 = vor.u32 %v10394_v40, %v8723_v32  ;;  %v10411_v32 = vld [vmem:[#allocation10 + $0x344] sm:$0xf] }
 0x2ff   :  { %4170 = vmatpush.bf16.msra.mxu1 %v8508_v61  ;;  %4206 = vmatpush.bf16.msrb.mxu0 %v8432_v39  ;;  %v8656_v13 = vor.u32 %v10375_v52, %v8653_v53  ;;  %v8541_v61 = vld [vmem:[#allocation10 + $0x150] sm:$0xf0]  ;;  %v10370_v39 = vld [vmem:[#allocation10 + $0x1f4] sm:$0xf0]  ;;  %v8707_v52 = vld [vmem:[#allocation10 + $0x288] sm:$0xf] }
 0x300   :  { %v11593_v63 = vpack.c.bf16 %v2856_v36, %v2856_v36  ;;  %4233 = vmatpush.bf16.msrb.mxu2 %v8672_v45  ;;  %v8812_v36 = vor.u32 %v10417_v47, %v8811_v26  ;;  %v8764_v45 = vor.u32 %v10405_v37, %v8763_v54  ;;  %v8468_v47 = vor.u32 %v10330_v44, %v8467_v41  ;;  %v8611_v53 = vld [vmem:[#allocation10 + $0x1c8] sm:$0xf]  ;;  %v10415_v54 = vld [vmem:[#allocation10 + $0x364] sm:$0xf]  ;;  %v10350_v44 = vld [vmem:[#allocation10 + $0x154] sm:$0xf0] }
 0x301   :  { %v8628_v50 = vor.u32 %v10370_v39, %v8627_v33  ;;  %v8612_v5 = vor.u32 %v10366_v56, %v8611_v53  ;;  %v8563_v37 = vld [vmem:[#allocation10 + $0x168] sm:$0xf]  ;;  %v8797_v33 = vld [vmem:[#allocation10 + $0x350] sm:$0xf0]  ;;  %v10336_v53 = vld [vmem:[#allocation10 + $0xec] sm:$0xf] }
 0x302   :  { %3298 = vmatmul.bf16.vlgmr.msra.gmra.mxu3 %v11593_v63  ;;  %4171 = vmatmul.bf16.vlgmr.msra.gmra.mxu1 %v11600_v20  ;;  %v8547_v41 = vld [vmem:[#allocation10 + $0x148] sm:$0xf]  ;;  %v8501_v56 = vld [vmem:[#allocation10 + $0xf8] sm:$0xf0] }
 0x303   :  { %4189 = vmatpush.bf16.msra.mxu3 %v8876_v0  ;;  %v2851_v14 = vpop.f32.mrf.mxu3  ;;  %4215 = vmatpush.bf16.msrb.mxu1 %v8624_v22  ;;  %v8755_v0 = vld [vmem:[#allocation10 + $0x2e8] sm:$0xf]  ;;  %v10402_v22 = vld [vmem:[#allocation10 + $0x2f4] sm:$0xf0] }
 0x304   :  { %4207 = vmatpush.bf16.msrb.mxu0 %v8416_v46  ;;  %4234 = vmatpush.bf16.msrb.mxu2 %v8656_v13  ;;  %v8756_v2 = vor.u32 %v10402_v22, %v8755_v0  ;;  %v8544_v14 = vor.u32 %v10347_v59, %v8541_v61  ;;  %v3363_v46 = vld.sshfl [vmem:[#allocation1 + $0x18] sm:$0xff pattern:$0x73625140]  ;;  %v8452_v59 = vor.u32 %v10326_v58, %v8451_v51  ;;  %v10362_v0 = vld [vmem:[#allocation10 + $0x1b4] sm:$0xf0] }
 0x305   :  { %v11607_v13 = vpack.c.bf16 %v3363_v46, %v3363_v46  ;;  %v8691_v22 = vld [vmem:[#allocation10 + $0x268] sm:$0xf]  ;;  %v8596_v35 = vor.u32 %v10362_v0, %v8595_v62  ;;  %v10374_v46 = vld [vmem:[#allocation10 + $0x214] sm:$0xf0]  ;;  %v8781_v51 = vld [vmem:[#allocation10 + $0x330] sm:$0xf0]  ;;  %v8548_v58 = vor.u32 %v10350_v44, %v8547_v41 }
 0x306   :  { %v10403_v62 = vld [vmem:[#allocation10 + $0x304] sm:$0xf]  ;;  %v10426_v41 = vld [vmem:[#allocation10 + $0x3b4] sm:$0xf0] }
 0x307   :  { %4190 = vmatpush.bf16.msra.mxu3 %v8860_v16  ;;  %4216 = vmatpush.bf16.msrb.mxu1 %v8608_v17  ;;  %v8500_v16 = vor.u32 %v10338_v25, %v8499_v55  ;;  %v10343_v17 = vld [vmem:[#allocation10 + $0x124] sm:$0xf]  ;;  %v8829_v55 = vld [vmem:[#allocation10 + $0x390] sm:$0xf0] }
 0x308   :  { %4208 = vmatpush.bf16.msrb.mxu0 %v8400_v10  ;;  %4235 = vmatpush.bf16.msrb.mxu2 %v8640_v1  ;;  %v8528_v23 = vor.u32 %v10343_v17, %v8525_v3  ;;  %v8708_v10 = vor.u32 %v10390_v57, %v8707_v52  ;;  %v10386_v1 = vld [vmem:[#allocation10 + $0x274] sm:$0xf0]  ;;  %v8419_v3 = vld [vmem:[#allocation10 + $0x48] sm:$0xf]  ;;  %v8800_v57 = vor.u32 %v10411_v32, %v8797_v33  ;;  %v10324_v33 = vld [vmem:[#allocation10 + $0x8c] sm:$0xf] }
 0x309   :  { %v8692_v8 = vor.u32 %v10386_v1, %v8691_v22  ;;  %v10382_v17 = vld [vmem:[#allocation10 + $0x254] sm:$0xf0]  ;;  %v10332_v22 = vld [vmem:[#allocation10 + $0xcc] sm:$0xf]  ;;  %v8485_v1 = vld [vmem:[#allocation10 + $0xd8] sm:$0xf0] }
 0x30b   :  { %4191 = vmatpush.bf16.msra.mxu3 %v8844_v30  ;;  %4217 = vmatpush.bf16.msrb.mxu1 %v8592_v31  ;;  %v10339_v30 = vld [vmem:[#allocation10 + $0x104] sm:$0xf]  ;;  %v8509_v31 = vld [vmem:[#allocation10 + $0x110] sm:$0xf0] }
 0x30c   :  { %4280 = vmatpush.bf16.msra.mxu2 %v8756_v2  ;;  %4209 = vmatpush.bf16.msrb.mxu0 %v8384_v9  ;;  %v8512_v26 = vor.u32 %v10339_v30, %v8509_v31  ;;  %v8435_v2 = vld [vmem:[#allocation10 + $0x68] sm:$0xf]  ;;  %v10419_v9 = vld [vmem:[#allocation10 + $0x384] sm:$0xf]  ;;  %v10314_v30 = vld [vmem:[#allocation10 + $0x34] sm:$0xf0] }
 0x30d   :  { %4236 = vmatmul.bf16.vlgmr.msrb.gmra.mxu2 %v11591_v4  ;;  %v8436_v25 = vor.u32 %v10322_v7, %v8435_v2  ;;  %v8832_v21 = vor.u32 %v10419_v9, %v8829_v55  ;;  %v8765_v7 = vld [vmem:[#allocation10 + $0x310] sm:$0xf0]  ;;  %v10434_v9 = vld [vmem:[#allocation10 + $0x3f4] sm:$0xf0] }
 0x30f   :  { %4192 = vmatpush.bf16.msra.mxu3 %v8828_v38  ;;  %4218 = vmatpush.bf16.msrb.mxu1 %v8576_v48  ;;  %v8880_v38 = vor.u32 %v10431_v27, %v8877_v28  ;;  %v10427_v48 = vld [vmem:[#allocation10 + $0x3c4] sm:$0xf]  ;;  %v10354_v27 = vld [vmem:[#allocation10 + $0x174] sm:$0xf0]  ;;  %v8659_v28 = vld [vmem:[#allocation10 + $0x228] sm:$0xf] }
 0x310   :  { %4254 = vmatpush.bf16.msra.mxu0 %v8500_v16  ;;  %v8864_v61 = vor.u32 %v10427_v48, %v8861_v49  ;;  %v8675_v16 = vld [vmem:[#allocation10 + $0x248] sm:$0xf] }
 0x311   :  { %4210 = vmatmul.bf16.vlgmr.msrb.gmra.mxu0 %v11596_v11  ;;  %v8387_v49 = vld [vmem:[#allocation10 + $0x8] sm:$0xf] }
 0x312   :  { %3350 = vmatmul.bf16.vlgmr.msrb.gmra.mxu3 %v11593_v63  ;;  %v8740_v63 = vor.u32 %v10398_v19, %v8739_v18  ;;  %v10318_v18 = vld [vmem:[#allocation10 + $0x54] sm:$0xf0]  ;;  %v8676_v19 = vor.u32 %v10382_v17, %v8675_v16  ;;  %v8629_v16 = vld [vmem:[#allocation10 + $0x1f8] sm:$0xf0]  ;;  %v10392_v17 = vld [vmem:[#allocation10 + $0x2ac] sm:$0xf] }
 0x313   :  { %4193 = vmatpush.bf16.msra.mxu3 %v8812_v36  ;;  %4219 = vmatpush.bf16.msrb.mxu1 %v8560_v60  ;;  %v10423_v36 = vld [vmem:[#allocation10 + $0x3a4] sm:$0xf]  ;;  %v8845_v60 = vld [vmem:[#allocation10 + $0x3b0] sm:$0xf0]  ;;  %v8420_v42 = vor.u32 %v10318_v18, %v8419_v3  ;;  %v8725_v3 = vld [vmem:[#allocation10 + $0x2b8] sm:$0xf0] }
 0x314   :  { %4281 = vmatpush.bf16.msra.mxu2 %v8740_v63  ;;  %4255 = vmatpush.bf16.msra.mxu0 %v8484_v29  ;;  %v8813_v63 = vld [vmem:[#allocation10 + $0x370] sm:$0xf0]  ;;  %v8403_v29 = vld [vmem:[#allocation10 + $0x28] sm:$0xf]  ;;  %v8728_v18 = vor.u32 %v10392_v17, %v8725_v3  ;;  %v8405_v17 = vld [vmem:[#allocation10 + $0x38] sm:$0xf0] }
 0x315   :  { %v8404_v39 = vor.u32 %v10314_v30, %v8403_v29  ;;  %v8816_v40 = vor.u32 %v10415_v54, %v8813_v63  ;;  %v8768_v54 = vor.u32 %v10403_v62, %v8765_v7  ;;  %v8613_v29 = vld [vmem:[#allocation10 + $0x1d8] sm:$0xf0]  ;;  %v10352_v7 = vld [vmem:[#allocation10 + $0x16c] sm:$0xf] }
 0x316   :  { %v8421_v62 = vld [vmem:[#allocation10 + $0x58] sm:$0xf0] }
 0x317   :  { %4194 = vmatpush.bf16.msra.mxu3 %v8796_v15  ;;  %4220 = vmatpush.bf16.msrb.mxu1 %v8544_v14  ;;  %v8848_v15 = vor.u32 %v10423_v36, %v8845_v60  ;;  %v10358_v14 = vld [vmem:[#allocation10 + $0x194] sm:$0xf0]  ;;  %v8531_v36 = vld [vmem:[#allocation10 + $0x128] sm:$0xf] }
 0x318   :  { %4282 = vmatpush.bf16.msra.mxu2 %v8724_v24  ;;  %4256 = vmatpush.bf16.msra.mxu0 %v8468_v47  ;;  %v8564_v24 = vor.u32 %v10354_v27, %v8563_v37  ;;  %v8757_v47 = vld [vmem:[#allocation10 + $0x2f8] sm:$0xf0]  ;;  %v10346_v60 = vld [vmem:[#allocation10 + $0x134] sm:$0xf0] }
 0x319   :  { %v8532_v55 = vor.u32 %v10346_v60, %v8531_v36  ;;  %v10430_v37 = vld [vmem:[#allocation10 + $0x3d4] sm:$0xf0]  ;;  %v8581_v36 = vld [vmem:[#allocation10 + $0x198] sm:$0xf0] }
 0x31b   :  { %4195 = vmatpush.bf16.msra.mxu3 %v8780_v34  ;;  %4221 = vmatpush.bf16.msrb.mxu1 %v8528_v23  ;;  %v8580_v34 = vor.u32 %v10358_v14, %v8579_v12  ;;  %v10378_v23 = vld [vmem:[#allocation10 + $0x234] sm:$0xf0]  ;;  %v11611_v12 = vpop.f32.mrf.mxu0  ;;  %v8488_v14 = vor.u32 %v10332_v22, %v8485_v1  ;;  %v8819_v22 = vld [vmem:[#allocation10 + $0x368] sm:$0xf] }
 0x31c   :  { %4283 = vmatpush.bf16.msra.mxu2 %v8708_v10  ;;  %4257 = vmatpush.bf16.msra.mxu0 %v8452_v59  ;;  %v8660_v31 = vor.u32 %v10378_v23, %v8659_v28  ;;  %v10407_v10 = vld [vmem:[#allocation10 + $0x324] sm:$0xf]  ;;  %v8504_v59 = vor.u32 %v10336_v53, %v8501_v56  ;;  %v10388_v28 = vld [vmem:[#allocation10 + $0x28c] sm:$0xf]  ;;  %v8835_v56 = vld [vmem:[#allocation10 + $0x388] sm:$0xf] }
 0x31d   :  { %v8784_v2 = vor.u32 %v10407_v10, %v8781_v51  ;;  %v10364_v23 = vld [vmem:[#allocation10 + $0x1cc] sm:$0xf]  ;;  %v10418_v1 = vld [vmem:[#allocation10 + $0x374] sm:$0xf0] }
 0x31e   :  { %v8616_v44 = vor.u32 %v10364_v23, %v8613_v29  ;;  %v10380_v51 = vld [vmem:[#allocation10 + $0x24c] sm:$0xf]  ;;  %v8820_v3 = vor.u32 %v10418_v1, %v8819_v22  ;;  %v8389_v23 = vld [vmem:[#allocation10 + $0x18] sm:$0xf0]  ;;  %v8955_v22 = vld [vmem:[#allocation11 + $0x80] sm:$0xf] }
 0x31f   :  { %4196 = vmatpush.bf16.msra.mxu3 %v8764_v45  ;;  %4222 = vmatpush.bf16.msrb.mxu1 %v8512_v26  ;;  %v8643_v45 = vld [vmem:[#allocation10 + $0x208] sm:$0xf]  ;;  %v10400_v26 = vld [vmem:[#allocation10 + $0x2ec] sm:$0xf]  ;;  %v10453_v1 = vld [vmem:[#allocation11 + $0x8c] sm:$0xf0] }
 0x320   :  { %4284 = vmatpush.bf16.msra.mxu2 %v8692_v8  ;;  %4258 = vmatpush.bf16.msra.mxu0 %v8436_v25  ;;  %v8760_v48 = vor.u32 %v10400_v26, %v8757_v47  ;;  %v8883_v8 = vld [vmem:[#allocation10 + $0x3e8] sm:$0xf]  ;;  %v10360_v26 = vld [vmem:[#allocation10 + $0x1ac] sm:$0xf]  ;;  %v8597_v47 = vld [vmem:[#allocation10 + $0x1b8] sm:$0xf0] }
 0x321   :  { %v8515_v25 = vld [vmem:[#allocation10 + $0x108] sm:$0xf]  ;;  %v8600_v10 = vor.u32 %v10360_v26, %v8597_v47 }
 0x322   :  { %4197 = vmatmul.bf16.vlgmr.msra.gmra.mxu3 %v11607_v13  ;;  %4223 = vmatmul.bf16.vlgmr.msrb.gmra.mxu1 %v11600_v20  ;;  %v8771_v26 = vld [vmem:[#allocation10 + $0x308] sm:$0xf] }
 0x323   :  { %4241 = vmatpush.bf16.msrb.mxu3 %v8880_v38  ;;  %4267 = vmatpush.bf16.msra.mxu1 %v8628_v50  ;;  %v8644_v38 = vor.u32 %v10374_v46, %v8643_v45  ;;  %v10310_v50 = vld [vmem:[#allocation10 + $0x14] sm:$0xf0]  ;;  %v3262_v45 = vpop.f32.mrf.mxu0  ;;  %v10384_v46 = vld [vmem:[#allocation10 + $0x26c] sm:$0xf] }
 0x324   :  { %4285 = vmatpush.bf16.msra.mxu2 %v8676_v19  ;;  %4259 = vmatpush.bf16.msra.mxu0 %v8420_v42  ;;  %v8388_v52 = vor.u32 %v10310_v50, %v8387_v49  ;;  %v10328_v19 = vld [vmem:[#allocation10 + $0xac] sm:$0xf]  ;;  %v8469_v42 = vld [vmem:[#allocation10 + $0xb8] sm:$0xf0]  ;;  %v10465_v45 = vld [vmem:[#allocation11 + $0xec] sm:$0xf0] }
 0x325   :  { %v8472_v30 = vor.u32 %v10328_v19, %v8469_v42  ;;  %v10320_v50 = vld [vmem:[#allocation10 + $0x6c] sm:$0xf]  ;;  %v10414_v19 = vld [vmem:[#allocation10 + $0x354] sm:$0xf0] }
 0x326   :  { %v10348_v42 = vld [vmem:[#allocation10 + $0x14c] sm:$0xf] }
 0x327   :  { %4242 = vmatpush.bf16.msrb.mxu3 %v8864_v61  ;;  %4268 = vmatpush.bf16.msra.mxu1 %v8612_v5  ;;  %v10396_v61 = vld [vmem:[#allocation10 + $0x2cc] sm:$0xf]  ;;  %v8741_v5 = vld [vmem:[#allocation10 + $0x2d8] sm:$0xf0] }
 0x328   :  { %4286 = vmatpush.bf16.msra.mxu2 %v8660_v31  ;;  %4260 = vmatpush.bf16.msra.mxu0 %v8404_v39  ;;  %v8744_v0 = vor.u32 %v10396_v61, %v8741_v5  ;;  %v8709_v31 = vld [vmem:[#allocation10 + $0x298] sm:$0xf0]  ;;  %v10316_v5 = vld [vmem:[#allocation10 + $0x4c] sm:$0xf] }
 0x329   :  { %v8712_v32 = vor.u32 %v10388_v28, %v8709_v31  ;;  %v8453_v39 = vld [vmem:[#allocation10 + $0x98] sm:$0xf0]  ;;  %v10308_v28 = vld [vmem:[#allocation10 + $0xc] sm:$0xf] }
 0x32b   :  { %4243 = vmatpush.bf16.msrb.mxu3 %v8848_v15  ;;  %4269 = vmatpush.bf16.msra.mxu1 %v8596_v35  ;;  %v10342_v15 = vld [vmem:[#allocation10 + $0x114] sm:$0xf0]  ;;  %v10368_v35 = vld [vmem:[#allocation10 + $0x1ec] sm:$0xf] }
 0x32c   :  { %4287 = vmatpush.bf16.msra.mxu2 %v8644_v38  ;;  %4261 = vmatpush.bf16.msra.mxu0 %v8388_v52  ;;  %v8516_v63 = vor.u32 %v10342_v15, %v8515_v25  ;;  %v8632_v27 = vor.u32 %v10368_v35, %v8629_v16  ;;  %v8456_v38 = vor.u32 %v10324_v33, %v8453_v39  ;;  %v8437_v52 = vld [vmem:[#allocation10 + $0x78] sm:$0xf0]  ;;  %v10376_v15 = vld [vmem:[#allocation10 + $0x22c] sm:$0xf] }
 0x32d   :  { %v8440_v60 = vor.u32 %v10320_v50, %v8437_v52  ;;  %v8424_v25 = vor.u32 %v10316_v5, %v8421_v62  ;;  %v8661_v35 = vld [vmem:[#allocation10 + $0x238] sm:$0xf0]  ;;  %v10312_v16 = vld [vmem:[#allocation10 + $0x2c] sm:$0xf]  ;;  %v10457_v5 = vld [vmem:[#allocation11 + $0xac] sm:$0xf0] }
 0x32e   :  { %v10344_v33 = vld [vmem:[#allocation10 + $0x12c] sm:$0xf]  ;;  %v8533_v39 = vld [vmem:[#allocation10 + $0x138] sm:$0xf0] }
 0x32f   :  { %4244 = vmatpush.bf16.msrb.mxu3 %v8832_v21  ;;  %4270 = vmatpush.bf16.msra.mxu1 %v8580_v34  ;;  %v8884_v21 = vor.u32 %v10434_v9, %v8883_v8  ;;  %v8867_v34 = vld [vmem:[#allocation10 + $0x3c8] sm:$0xf]  ;;  %v8565_v8 = vld [vmem:[#allocation10 + $0x178] sm:$0xf0]  ;;  %v8536_v47 = vor.u32 %v10344_v33, %v8533_v39  ;;  %v10432_v52 = vld [vmem:[#allocation10 + $0x3ec] sm:$0xf] }
 0x330   :  { %4332 = vmatpush.bf16.msrb.mxu2 %v8760_v48  ;;  %4306 = vmatpush.bf16.msrb.mxu0 %v8504_v59  ;;  %v8693_v48 = vld [vmem:[#allocation10 + $0x278] sm:$0xf0]  ;;  %v10408_v33 = vld [vmem:[#allocation10 + $0x32c] sm:$0xf] }
 0x331   :  { %4288 = vmatmul.bf16.vlgmr.msra.gmra.mxu2 %v11591_v4  ;;  %4262 = vmatmul.bf16.vlgmr.msra.gmra.mxu0 %v11596_v11  ;;  %v8696_v49 = vor.u32 %v10384_v46, %v8693_v48  ;;  %v8677_v59 = vld [vmem:[#allocation10 + $0x258] sm:$0xf0]  ;;  %v10406_v48 = vld [vmem:[#allocation10 + $0x314] sm:$0xf0] }
 0x332   :  { %v8680_v61 = vor.u32 %v10380_v51, %v8677_v59  ;;  %v8517_v50 = vld [vmem:[#allocation10 + $0x118] sm:$0xf0]  ;;  %v10428_v59 = vld [vmem:[#allocation10 + $0x3cc] sm:$0xf] }
 0x333   :  { %4245 = vmatpush.bf16.msrb.mxu3 %v8816_v40  ;;  %4271 = vmatpush.bf16.msra.mxu1 %v8564_v24  ;;  %v8868_v40 = vor.u32 %v10430_v37, %v8867_v34  ;;  %v8851_v24 = vld [vmem:[#allocation10 + $0x3a8] sm:$0xf]  ;;  %v8408_v34 = vor.u32 %v10312_v16, %v8405_v17  ;;  %v8645_v37 = vld [vmem:[#allocation10 + $0x218] sm:$0xf0] }
 0x334   :  { %4333 = vmatpush.bf16.msrb.mxu2 %v8744_v0  ;;  %4307 = vmatpush.bf16.msrb.mxu0 %v8488_v14  ;;  %v8852_v53 = vor.u32 %v10426_v41, %v8851_v24  ;;  %v8664_v14 = vor.u32 %v10376_v15, %v8661_v35  ;;  %v8392_v41 = vor.u32 %v10308_v28, %v8389_v23  ;;  %v8837_v16 = vld [vmem:[#allocation10 + $0x398] sm:$0xf0]  ;;  %v8907_v28 = vld [vmem:[#allocation11 + $0x20] sm:$0xf]  ;;  %v10441_v23 = vld [vmem:[#allocation11 + $0x2c] sm:$0xf0] }
 0x335   :  { %v8789_v39 = vld [vmem:[#allocation10 + $0x338] sm:$0xf0] }
 0x337   :  { %4246 = vmatpush.bf16.msrb.mxu3 %v8800_v57  ;;  %4272 = vmatpush.bf16.msra.mxu1 %v8548_v58  ;;  %v10422_v57 = vld [vmem:[#allocation10 + $0x394] sm:$0xf0]  ;;  %v10356_v58 = vld [vmem:[#allocation10 + $0x18c] sm:$0xf] }
 0x338   :  { %4334 = vmatpush.bf16.msrb.mxu2 %v8728_v18  ;;  %4308 = vmatpush.bf16.msrb.mxu0 %v8472_v30  ;;  %v8836_v0 = vor.u32 %v10422_v57, %v8835_v56  ;;  %v8803_v18 = vld [vmem:[#allocation10 + $0x348] sm:$0xf]  ;;  %v8987_v56 = vld [vmem:[#allocation11 + $0xc0] sm:$0xf]  ;;  %v10461_v57 = vld [vmem:[#allocation11 + $0xcc] sm:$0xf0] }
 0x339   :  { %v8804_v29 = vor.u32 %v10414_v19, %v8803_v18  ;;  %v8787_v30 = vld [vmem:[#allocation10 + $0x328] sm:$0xf]  ;;  %v10416_v19 = vld [vmem:[#allocation10 + $0x36c] sm:$0xf] }
 0x33a   :  { %v11617_v9 = vpop.f32.mrf.mxu2 }
 0x33b   :  { %4247 = vmatpush.bf16.msrb.mxu3 %v8784_v2  ;;  %4273 = vmatpush.bf16.msra.mxu1 %v8532_v55  ;;  %v8584_v2 = vor.u32 %v10356_v58, %v8581_v36  ;;  %v11619_v55 = vpop.f32.mrf.mxu0  ;;  %v8988_v58 = vor.u32 %v10461_v57, %v8987_v56  ;;  %v8773_v56 = vld [vmem:[#allocation10 + $0x318] sm:$0xf0]  ;;  %v8989_v57 = vld [vmem:[#allocation11 + $0xd0] sm:$0xf0] }
 0x33c   :  { %4335 = vmatpush.bf16.msrb.mxu2 %v8712_v32  ;;  %4309 = vmatpush.bf16.msrb.mxu0 %v8456_v38  ;;  %v10410_v32 = vld [vmem:[#allocation10 + $0x334] sm:$0xf0] }
 0x33d   :  { %v8788_v46 = vor.u32 %v10410_v32, %v8787_v30 }
 0x33f   :  { %4248 = vmatpush.bf16.msrb.mxu3 %v8768_v54  ;;  %4274 = vmatpush.bf16.msra.mxu1 %v8516_v63  ;;  %v8568_v54 = vor.u32 %v10352_v7, %v8565_v8  ;;  %v10372_v63 = vld [vmem:[#allocation10 + $0x20c] sm:$0xf]  ;;  %v8853_v7 = vld [vmem:[#allocation10 + $0x3b8] sm:$0xf0]  ;;  %v8956_v8 = vor.u32 %v10453_v1, %v8955_v22  ;;  %v8973_v22 = vld [vmem:[#allocation11 + $0xb0] sm:$0xf0] }
 0x340   :  { %4336 = vmatpush.bf16.msrb.mxu2 %v8696_v49  ;;  %4310 = vmatpush.bf16.msrb.mxu0 %v8440_v60  ;;  %v10340_v49 = vld [vmem:[#allocation10 + $0x10c] sm:$0xf] }
 0x341   :  { %v8520_v51 = vor.u32 %v10340_v49, %v8517_v50  ;;  %v9115_v49 = vld [vmem:[#allocation11 + $0x1c0] sm:$0xf]  ;;  %v10493_v50 = vld [vmem:[#allocation11 + $0x1cc] sm:$0xf0] }
 0x342   :  { %4249 = vmatmul.bf16.vlgmr.msrb.gmra.mxu3 %v11607_v13  ;;  %4275 = vmatmul.bf16.vlgmr.msra.gmra.mxu1 %v11600_v20 }
 0x343   :  { %4293 = vmatpush.bf16.msra.mxu3 %v8884_v21  ;;  %4319 = vmatpush.bf16.msrb.mxu1 %v8632_v27  ;;  %v8549_v21 = vld [vmem:[#allocation10 + $0x158] sm:$0xf0]  ;;  %v8648_v27 = vor.u32 %v10372_v63, %v8645_v37  ;;  %v3314_v24 = vpop.f32.mrf.mxu0  ;;  %v8923_v63 = vld [vmem:[#allocation11 + $0x40] sm:$0xf] }
 0x344   :  { %4337 = vmatpush.bf16.msrb.mxu2 %v8680_v61  ;;  %4311 = vmatpush.bf16.msrb.mxu0 %v8424_v25  ;;  %v8552_v31 = vor.u32 %v10348_v42, %v8549_v21  ;;  %v8869_v61 = vld [vmem:[#allocation10 + $0x3d8] sm:$0xf0]  ;;  %v10449_v25 = vld [vmem:[#allocation11 + $0x6c] sm:$0xf0] }
 0x345   :  { %v10445_v42 = vld [vmem:[#allocation11 + $0x4c] sm:$0xf0]  ;;  %v8805_v37 = vld [vmem:[#allocation10 + $0x358] sm:$0xf0] }
 0x346   :  { %v10437_v24 = vld [vmem:[#allocation11 + $0xc] sm:$0xf0] }
 0x347   :  { %4294 = vmatpush.bf16.msra.mxu3 %v8868_v40  ;;  %4320 = vmatpush.bf16.msrb.mxu1 %v8616_v44  ;;  %v3288_v40 = vpop.f32.mrf.mxu2  ;;  %v9003_v44 = vld [vmem:[#allocation11 + $0xe0] sm:$0xf] }
 0x348   :  { %4338 = vmatpush.bf16.msrb.mxu2 %v8664_v14  ;;  %4312 = vmatpush.bf16.msrb.mxu0 %v8408_v34  ;;  %v9004_v38 = vor.u32 %v10465_v45, %v9003_v44  ;;  %v10420_v14 = vld [vmem:[#allocation10 + $0x38c] sm:$0xf]  ;;  %v8891_v40 = vld [vmem:[#allocation11] sm:$0xf]  ;;  %v10497_v45 = vld [vmem:[#allocation11 + $0x1ec] sm:$0xf0] }
 0x349   :  { %v8840_v18 = vor.u32 %v10420_v14, %v8837_v16  ;;  %v10412_v34 = vld [vmem:[#allocation10 + $0x34c] sm:$0xf]  ;;  %v8892_v44 = vor.u32 %v10437_v24, %v8891_v40  ;;  %v9067_v16 = vld [vmem:[#allocation11 + $0x160] sm:$0xf] }
 0x34b   :  { %4295 = vmatpush.bf16.msra.mxu3 %v8852_v53  ;;  %4321 = vmatpush.bf16.msrb.mxu1 %v8600_v10  ;;  %v8885_v53 = vld [vmem:[#allocation10 + $0x3f8] sm:$0xf0]  ;;  %v8772_v10 = vor.u32 %v10406_v48, %v8771_v26  ;;  %v9005_v26 = vld [vmem:[#allocation11 + $0xf0] sm:$0xf0] }
 0x34c   :  { %4339 = vmatpush.bf16.msrb.mxu2 %v8648_v27  ;;  %4313 = vmatpush.bf16.msrb.mxu0 %v8392_v41  ;;  %v8888_v36 = vor.u32 %v10432_v52, %v8885_v53  ;;  %v2925_v27 = vld [vmem:[%s11842_s26] sm:$0x3]  ;;  %v9131_v41 = vld [vmem:[#allocation11 + $0x1e0] sm:$0xf]  ;;  %v10459_v52 = vld [vmem:[#allocation11 + $0xc4] sm:$0xf] }
 0x34d   :  { %v2928_v32 = vperm.slane %v2925_v27, 1  ;;  %v10404_v53 = vld [vmem:[#allocation10 + $0x30c] sm:$0xf] }
 0x34f   :  { %4296 = vmatpush.bf16.msra.mxu3 %v8836_v0  ;;  %4322 = vmatpush.bf16.msrb.mxu1 %v8584_v2  ;;  %v11623_v60 = vpop.f32.mrf.mxu2  ;;  %v8872_v0 = vor.u32 %v10428_v59, %v8869_v61  ;;  %v10424_v2 = vld [vmem:[#allocation10 + $0x3ac] sm:$0xf]  ;;  %v8776_v59 = vor.u32 %v10404_v53, %v8773_v56  ;;  %v10495_v53 = vld [vmem:[#allocation11 + $0x1e4] sm:$0xf]  ;;  %v9133_v56 = vld [vmem:[#allocation11 + $0x1f0] sm:$0xf0] }
 0x350   :  { %4340 = vmatmul.bf16.vlgmr.msrb.gmra.mxu2 %v11591_v4  ;;  %5144 = vmatpush.bf16.msra.mxu0 %v9004_v38  ;;  %v8971_v4 = vld [vmem:[#allocation11 + $0xa0] sm:$0xf]  ;;  %v8856_v15 = vor.u32 %v10424_v2, %v8853_v7  ;;  %v9132_v38 = vor.u32 %v10497_v45, %v9131_v41  ;;  %v2927_v2 = vperm.slane %v2925_v27, 0  ;;  %v2344_v41 = vmax.f32 %v11575_v6, 0.0 }
 0x351   :  { %4314 = vmatmul.bf16.vlgmr.msrb.gmra.mxu0 %v11596_v11  ;;  %v8972_v62 = vor.u32 %v10457_v5, %v8971_v4  ;;  %v8939_v11 = vld [vmem:[#allocation11 + $0x60] sm:$0xf]  ;;  %v10489_v5 = vld [vmem:[#allocation11 + $0x1ac] sm:$0xf0] }
 0x352   :  { %v8940_v17 = vor.u32 %v10449_v25, %v8939_v11  ;;  %v9099_v4 = vld [vmem:[#allocation11 + $0x1a0] sm:$0xf]  ;;  %v10451_v11 = vld [vmem:[#allocation11 + $0x84] sm:$0xf]  ;;  %v8957_v25 = vld [vmem:[#allocation11 + $0x90] sm:$0xf0]  ;;  %v3261_v14 = vadd.f32 %v11611_v12, %v2927_v2 }
 0x353   :  { %4297 = vmatpush.bf16.msra.mxu3 %v8820_v3  ;;  %4323 = vmatpush.bf16.msrb.mxu1 %v8568_v54  ;;  %v8821_v54 = vld [vmem:[#allocation10 + $0x378] sm:$0xf0]  ;;  %v9083_v7 = vld [vmem:[#allocation11 + $0x180] sm:$0xf]  ;;  %v10487_v2 = vld [vmem:[#allocation11 + $0x1a4] sm:$0xf] }
 0x354   :  { %5145 = vmatpush.bf16.msra.mxu0 %v8988_v58  ;;  %v8824_v21 = vor.u32 %v10416_v19, %v8821_v54  ;;  %v3313_v58 = vadd.f32 %v11619_v55, %v2928_v32  ;;  %v10447_v19 = vld [vmem:[#allocation11 + $0x64] sm:$0xf]  ;;  %v8941_v54 = vld [vmem:[#allocation11 + $0x70] sm:$0xf0]  ;;  %v9019_v45 = vld [vmem:[#allocation11 + $0x100] sm:$0xf] }
 0x357   :  { %4298 = vmatpush.bf16.msra.mxu3 %v8804_v29  ;;  %4324 = vmatpush.bf16.msrb.mxu1 %v8552_v31  ;;  %v3340_v35 = vpop.f32.mrf.mxu2  ;;  %v8908_v29 = vor.u32 %v10441_v23, %v8907_v28  ;;  %v8808_v31 = vor.u32 %v10412_v34, %v8805_v37  ;;  %v8925_v34 = vld [vmem:[#allocation11 + $0x50] sm:$0xf0] }
 0x358   :  { %5146 = vmatpush.bf16.msra.mxu0 %v8972_v62  ;;  %v9100_v62 = vor.u32 %v10489_v5, %v9099_v4  ;;  %v8960_v35 = vor.u32 %v10451_v11, %v8957_v25  ;;  %v10491_v4 = vld [vmem:[#allocation11 + $0x1c4] sm:$0xf] }
 0x35b   :  { %4299 = vmatpush.bf16.msra.mxu3 %v8788_v46  ;;  %4325 = vmatpush.bf16.msrb.mxu1 %v8536_v47  ;;  %v10463_v46 = vld [vmem:[#allocation11 + $0xe4] sm:$0xf]  ;;  %v8792_v47 = vor.u32 %v10408_v33, %v8789_v39 }
 0x35c   :  { %5147 = vmatpush.bf16.msra.mxu0 %v8956_v8  ;;  %v9008_v48 = vor.u32 %v10463_v46, %v9005_v26  ;;  %v10485_v8 = vld [vmem:[#allocation11 + $0x18c] sm:$0xf0]  ;;  %v10439_v39 = vld [vmem:[#allocation11 + $0x24] sm:$0xf]  ;;  %v9259_v26 = vld [vmem:[#allocation11 + $0x2e0] sm:$0xf] }
 0x35d   :  { %v9084_v55 = vor.u32 %v10485_v8, %v9083_v7  ;;  %v10469_v46 = vld [vmem:[#allocation11 + $0x10c] sm:$0xf0]  ;;  %v9101_v8 = vld [vmem:[#allocation11 + $0x1b0] sm:$0xf0] }
 0x35e   :  { %v9104_v11 = vor.u32 %v10487_v2, %v9101_v8  ;;  %v10462_v8 = vld [vmem:[#allocation11 + $0xd4] sm:$0xf0] }
 0x35f   :  { %4300 = vmatpush.bf16.msra.mxu3 %v8772_v10  ;;  %4326 = vmatpush.bf16.msrb.mxu1 %v8520_v51  ;;  %v11627_v3 = vpop.f32.mrf.mxu1  ;;  %v9116_v10 = vor.u32 %v10493_v50, %v9115_v49  ;;  %v8992_v51 = vor.u32 %v10459_v52, %v8989_v57  ;;  %v8893_v52 = vld [vmem:[#allocation11 + $0x10] sm:$0xf0] }
 0x360   :  { %5148 = vmatpush.bf16.msra.mxu0 %v8940_v17  ;;  %v10481_v17 = vld [vmem:[#allocation11 + $0x16c] sm:$0xf0] }
 0x362   :  { %4301 = vmatmul.bf16.vlgmr.msra.gmra.mxu3 %v11607_v13  ;;  %4327 = vmatmul.bf16.vlgmr.msrb.gmra.mxu1 %v11600_v20  ;;  %v8924_v20 = vor.u32 %v10445_v42, %v8923_v63  ;;  %v8944_v63 = vor.u32 %v10447_v19, %v8941_v54  ;;  %v9051_v42 = vld [vmem:[#allocation11 + $0x140] sm:$0xf]  ;;  %v9085_v54 = vld [vmem:[#allocation11 + $0x190] sm:$0xf0] }
 0x363   :  { %4345 = vmatpush.bf16.msrb.mxu3 %v8888_v36  ;;  %5157 = vmatpush.bf16.msra.mxu1 %v9132_v38  ;;  %v10435_v38 = vld [vmem:[#allocation11 + $0x4] sm:$0xf] }
 0x364   :  { %5149 = vmatpush.bf16.msra.mxu0 %v8924_v20  ;;  %v10477_v20 = vld [vmem:[#allocation11 + $0x14c] sm:$0xf0]  ;;  %v8896_v57 = vor.u32 %v10435_v38, %v8893_v52  ;;  %v9037_v38 = vld [vmem:[#allocation11 + $0x130] sm:$0xf0]  ;;  %v10466_v52 = vld [vmem:[#allocation11 + $0xf4] sm:$0xf0] }
 0x365   :  { %v9052_v37 = vor.u32 %v10477_v20, %v9051_v42  ;;  %v2345_v42 = vmax.f32 %v11582_v43, 0.0  ;;  %v9179_v43 = vld [vmem:[#allocation11 + $0x240] sm:$0xf] }
 0x367   :  { %4346 = vmatpush.bf16.msrb.mxu3 %v8872_v0  ;;  %v3275_v30 = vpop.f32.mrf.mxu1  ;;  %5158 = vmatpush.bf16.msra.mxu1 %v9116_v10  ;;  %v10455_v0 = vld [vmem:[#allocation11 + $0xa4] sm:$0xf]  ;;  %v9136_v10 = vor.u32 %v10495_v53, %v9133_v56  ;;  %v9147_v53 = vld [vmem:[#allocation11 + $0x200] sm:$0xf]  ;;  %v10501_v56 = vld [vmem:[#allocation11 + $0x20c] sm:$0xf0] }
 0x368   :  { %5150 = vmatpush.bf16.msra.mxu0 %v8908_v29  ;;  %v8976_v1 = vor.u32 %v10455_v0, %v8973_v22  ;;  %v11641_v29 = vpop.f32.mrf.mxu2  ;;  %v9035_v30 = vld [vmem:[#allocation11 + $0x120] sm:$0xf] }
 0x369   :  { %v9227_v22 = vld [vmem:[#allocation11 + $0x2a0] sm:$0xf] }
 0x36b   :  { %4347 = vmatpush.bf16.msrb.mxu3 %v8856_v15  ;;  %5159 = vmatpush.bf16.msra.mxu1 %v9100_v62  ;;  %v11636_v28 = vpop.f32.mrf.mxu0  ;;  %v9117_v62 = vld [vmem:[#allocation11 + $0x1d0] sm:$0xf0] }
 0x36c   :  { %5151 = vmatpush.bf16.msra.mxu0 %v8892_v44  ;;  %v9120_v0 = vor.u32 %v10491_v4, %v9117_v62  ;;  %v9261_v62 = vld [vmem:[#allocation11 + $0x2f0] sm:$0xf0] }
 0x36f   :  { %4348 = vmatpush.bf16.msrb.mxu3 %v8840_v18  ;;  %v3325_v36 = vpop.f32.mrf.mxu1  ;;  %5160 = vmatpush.bf16.msra.mxu1 %v9084_v55  ;;  %v9068_v18 = vor.u32 %v10481_v17, %v9067_v16  ;;  %v11647_v55 = vld [vmem:[%s11843_s18] sm:$0xf]  ;;  %v10483_v16 = vld [vmem:[#allocation11 + $0x184] sm:$0xf] }
 0x370   :  { %5196 = vmatpush.bf16.msrb.mxu0 %v9008_v48  ;;  %v11631_v61 = vadd.f32 %v3325_v36, %v3313_v58  ;;  %v4187_v6 = vpop.f32.mrf.mxu2  ;;  %v9243_v36 = vld [vmem:[#allocation11 + $0x2c0] sm:$0xf] }
 0x371   :  { %v9148_v6 = vor.u32 %v10501_v56, %v9147_v53  ;;  %v8931_v53 = vld [vmem:[#allocation11 + $0x48] sm:$0xf]  ;;  %v10446_v56 = vld [vmem:[#allocation11 + $0x54] sm:$0xf0] }
 0x372   :  { %v3339_v25 = vadd.f32 %v11623_v60, %v11631_v61  ;;  %v9195_v60 = vld [vmem:[#allocation11 + $0x260] sm:$0xf]  ;;  %v10513_v61 = vld [vmem:[#allocation11 + $0x26c] sm:$0xf0] }
 0x373   :  { %4349 = vmatpush.bf16.msrb.mxu3 %v8824_v21  ;;  %v10443_v21 = vld [vmem:[#allocation11 + $0x44] sm:$0xf]  ;;  %5161 = vmatpush.bf16.msra.mxu1 %v9068_v18  ;;  %v4161_v48 = vpop.f32.mrf.mxu0  ;;  %v3502_v18 = vperm.slane %v11647_v55, 0 }
 0x374   :  { %5197 = vmatpush.bf16.msrb.mxu0 %v8992_v51  ;;  %v8928_v27 = vor.u32 %v10443_v21, %v8925_v34 }
 0x377   :  { %4350 = vmatpush.bf16.msrb.mxu3 %v8808_v31  ;;  %v3327_v15 = vpop.f32.mrf.mxu1  ;;  %5162 = vmatpush.bf16.msra.mxu1 %v9052_v37  ;;  %v10473_v31 = vld [vmem:[#allocation11 + $0x12c] sm:$0xf0]  ;;  %v9196_v37 = vor.u32 %v10513_v61, %v9195_v60  ;;  %v10519_v60 = vld [vmem:[#allocation11 + $0x2a4] sm:$0xf] }
 0x378   :  { %5198 = vmatpush.bf16.msrb.mxu0 %v8976_v1  ;;  %v9036_v33 = vor.u32 %v10473_v31, %v9035_v30  ;;  %v10521_v1 = vld [vmem:[#allocation11 + $0x2ac] sm:$0xf0] }
 0x379   :  { %v9228_v7 = vor.u32 %v10521_v1, %v9227_v22 }
 0x37b   :  { %4351 = vmatpush.bf16.msrb.mxu3 %v8792_v47  ;;  %5163 = vmatpush.bf16.msra.mxu1 %v9036_v33  ;;  %v10529_v47 = vld [vmem:[#allocation11 + $0x2ec] sm:$0xf0] }
 0x37c   :  { %5199 = vmatpush.bf16.msrb.mxu0 %v8960_v35  ;;  %v9260_v50 = vor.u32 %v10529_v47, %v9259_v26  ;;  %v9211_v35 = vld [vmem:[#allocation11 + $0x280] sm:$0xf]  ;;  %v10509_v33 = vld [vmem:[#allocation11 + $0x24c] sm:$0xf0] }
 0x37e   :  { %5170 = vmatpush.bf16.msra.mxu2 %v9260_v50  ;;  %v9011_v50 = vld [vmem:[#allocation11 + $0xe8] sm:$0xf] }
 0x37f   :  { %4352 = vmatpush.bf16.msrb.mxu3 %v8776_v59  ;;  %v11638_v12 = vpop.f32.mrf.mxu1  ;;  %v10525_v59 = vld [vmem:[#allocation11 + $0x2cc] sm:$0xf0]  ;;  %v9012_v2 = vor.u32 %v10466_v52, %v9011_v50  ;;  %v9197_v50 = vld [vmem:[#allocation11 + $0x270] sm:$0xf0] }
 0x380   :  { %5200 = vmatpush.bf16.msrb.mxu0 %v8944_v63  ;;  %v9244_v5 = vor.u32 %v10525_v59, %v9243_v36  ;;  %v9088_v63 = vor.u32 %v10483_v16, %v9085_v54  ;;  %v9387_v36 = vld [vmem:[#allocation11 + $0x3e0] sm:$0xf]  ;;  %v10561_v59 = vld [vmem:[#allocation11 + $0x3ec] sm:$0xf0]  ;;  %v9245_v16 = vld [vmem:[#allocation11 + $0x2d0] sm:$0xf0] }
 0x381   :  { %v10458_v54 = vld [vmem:[#allocation11 + $0xb4] sm:$0xf0] }
 0x382   :  { %4353 = vmatmul.bf16.vlgmr.msrb.gmra.mxu3 %v11607_v13  ;;  %v3274_v13 = vadd.f32 %v11627_v3, %v3261_v14  ;;  %v8909_v3 = vld [vmem:[#allocation11 + $0x30] sm:$0xf0]  ;;  %5171 = vmatpush.bf16.msra.mxu2 %v9244_v5  ;;  %v10517_v14 = vld [vmem:[#allocation11 + $0x28c] sm:$0xf0]  ;;  %v9388_v5 = vor.u32 %v10561_v59, %v9387_v36 }
 0x383   :  { %v8912_v24 = vor.u32 %v10439_v39, %v8909_v3  ;;  %v9212_v19 = vor.u32 %v10517_v14, %v9211_v35  ;;  %v10475_v39 = vld [vmem:[#allocation11 + $0x144] sm:$0xf]  ;;  %v9181_v59 = vld [vmem:[#allocation11 + $0x250] sm:$0xf0] }
 0x384   :  { %v3287_v23 = vadd.f32 %v11617_v9, %v3274_v13  ;;  %5201 = vmatpush.bf16.msrb.mxu0 %v8928_v27  ;;  %v9020_v9 = vor.u32 %v10469_v46, %v9019_v45  ;;  %v4160_v13 = vadd.f32 %v11636_v28, %v3502_v18  ;;  %v10479_v27 = vld [vmem:[#allocation11 + $0x164] sm:$0xf]  ;;  %v9163_v28 = vld [vmem:[#allocation11 + $0x220] sm:$0xf]  ;;  %v10505_v45 = vld [vmem:[#allocation11 + $0x22c] sm:$0xf0]  ;;  %5183 = vmatpush.bf16.msra.mxu3 %v9388_v5 }
 0x385   :  { %v3299_v32 = vpop.f32.mrf.mxu3  ;;  %v10471_v46 = vld [vmem:[#allocation11 + $0x124] sm:$0xf]  ;;  %v9164_v47 = vor.u32 %v10505_v45, %v9163_v28  ;;  %v8947_v28 = vld [vmem:[#allocation11 + $0x68] sm:$0xf]  ;;  %v10450_v45 = vld [vmem:[#allocation11 + $0x74] sm:$0xf0]  ;;  %v8932_v5 = vor.u32 %v10446_v56, %v8931_v53 }
 0x386   :  { %v3300_v40 = vadd.f32 %v3299_v32, %v3287_v23  ;;  %5164 = vmatpush.bf16.msra.mxu1 %v9020_v9  ;;  %5172 = vmatpush.bf16.msra.mxu2 %v9228_v7  ;;  %v9069_v23 = vld [vmem:[#allocation11 + $0x170] sm:$0xf0]  ;;  %v4173_v3 = vadd.f32 %v11638_v12, %v4160_v13  ;;  %v9040_v48 = vor.u32 %v10471_v46, %v9037_v38  ;;  %v8995_v7 = vld [vmem:[#allocation11 + $0xc8] sm:$0xf]  ;;  %v10523_v35 = vld [vmem:[#allocation11 + $0x2c4] sm:$0xf] }
 0x387   :  { %v4174_v51 = vpop.f32.mrf.mxu1  ;;  %v9072_v30 = vor.u32 %v10479_v27, %v9069_v23  ;;  %v8996_v18 = vor.u32 %v10462_v8, %v8995_v7  ;;  %v9229_v13 = vld [vmem:[#allocation11 + $0x2b0] sm:$0xf0]  ;;  %v8963_v23 = vld [vmem:[#allocation11 + $0x88] sm:$0xf]  ;;  %v10503_v7 = vld [vmem:[#allocation11 + $0x224] sm:$0xf] }
 0x388   :  { %v3355_v44 = vmax.f32 %v3300_v40, 0.0  ;;  %5202 = vmatpush.bf16.msrb.mxu0 %v8912_v24  ;;  %v9180_v40 = vor.u32 %v10509_v33, %v9179_v43  ;;  %v9053_v24 = vld [vmem:[#allocation11 + $0x150] sm:$0xf0]  ;;  %v4186_v26 = vadd.f32 %v11641_v29, %v4173_v3  ;;  %v10527_v29 = vld [vmem:[#allocation11 + $0x2e4] sm:$0xf] }
 0x389   :  { %v9264_v1 = vor.u32 %v10527_v29, %v9261_v62  ;;  %v10549_v43 = vld [vmem:[#allocation11 + $0x38c] sm:$0xf0]  ;;  %v10515_v33 = vld [vmem:[#allocation11 + $0x284] sm:$0xf]  ;;  %v8915_v29 = vld [vmem:[#allocation11 + $0x28] sm:$0xf] }
 0x38a   :  { %v11644_v49 = vadd.f32 %v3355_v44, %v2344_v41  ;;  %5209 = vmatpush.bf16.msrb.mxu1 %v9136_v10  ;;  %5173 = vmatpush.bf16.msra.mxu2 %v9212_v19  ;;  %v9056_v44 = vor.u32 %v10475_v39, %v9053_v24  ;;  %v8979_v19 = vld [vmem:[#allocation11 + $0xa8] sm:$0xf]  ;;  %v3503_v39 = vperm.slane %v11647_v55, 1  ;;  %v10442_v62 = vld [vmem:[#allocation11 + $0x34] sm:$0xf0] }
 0x38b   :  { %v8980_v27 = vor.u32 %v10458_v54, %v8979_v19  ;;  %v9165_v8 = vld [vmem:[#allocation11 + $0x230] sm:$0xf0]  ;;  %v10464_v19 = vld [vmem:[#allocation11 + $0xec] sm:$0xf]  ;;  %v9013_v54 = vld [vmem:[#allocation11 + $0xf8] sm:$0xf0] }
 0x38c   :  { %5203 = vmatpush.bf16.msrb.mxu0 %v8896_v57  ;;  %v10467_v57 = vld [vmem:[#allocation11 + $0x104] sm:$0xf]  ;;  %v10456_v53 = vld [vmem:[#allocation11 + $0xac] sm:$0xf]  ;;  %v8981_v56 = vld [vmem:[#allocation11 + $0xb8] sm:$0xf0] }
 0x38d   :  { %v3301_v58 = vpop.f32.mrf.mxu3 }
 0x38e   :  { %5210 = vmatpush.bf16.msrb.mxu1 %v9120_v0  ;;  %v11653_v21 = vpop.f32.mrf.mxu0  ;;  %5174 = vmatpush.bf16.msra.mxu2 %v9196_v37  ;;  %v9021_v58 = vld [vmem:[#allocation11 + $0x110] sm:$0xf0]  ;;  %v9232_v37 = vor.u32 %v10519_v60, %v9229_v13  ;;  %v10499_v60 = vld [vmem:[#allocation11 + $0x204] sm:$0xf] }
 0x38f   :  { %v9024_v4 = vor.u32 %v10467_v57, %v9021_v58  ;;  %v9149_v13 = vld [vmem:[#allocation11 + $0x210] sm:$0xf0] }
 0x390   :  { %v11658_v32 = vpop.f32.mrf.mxu2 }
 0x392   :  { %5211 = vmatpush.bf16.msrb.mxu1 %v9104_v11  ;;  %5175 = vmatpush.bf16.msra.mxu2 %v9180_v40  ;;  %v9213_v40 = vld [vmem:[#allocation11 + $0x290] sm:$0xf0] }
 0x393   :  { %v9216_v24 = vor.u32 %v10515_v33, %v9213_v40 }
 0x395   :  { %v3351_v15 = vpop.f32.mrf.mxu3 }
 0x396   :  { %v3352_v17 = vadd.f32 %v3351_v15, %v3339_v25  ;;  %5212 = vmatpush.bf16.msrb.mxu1 %v9088_v63  ;;  %v4213_v9 = vpop.f32.mrf.mxu0  ;;  %5176 = vmatpush.bf16.msra.mxu2 %v9164_v47  ;;  %v9371_v25 = vld [vmem:[#allocation11 + $0x3c0] sm:$0xf]  ;;  %v10557_v15 = vld [vmem:[#allocation11 + $0x3cc] sm:$0xf0]  ;;  %v4212_v47 = vadd.f32 %v11653_v21, %v3503_v39  ;;  %v9016_v39 = vor.u32 %v10464_v19, %v9013_v54 }
 0x397   :  { %v9372_v14 = vor.u32 %v10557_v15, %v9371_v25  ;;  %v9323_v9 = vld [vmem:[#allocation11 + $0x360] sm:$0xf]  ;;  %v8916_v25 = vor.u32 %v10442_v62, %v8915_v29  ;;  %v8899_v15 = vld [vmem:[#allocation11 + $0x8] sm:$0xf]  ;;  %v8965_v29 = vld [vmem:[#allocation11 + $0x98] sm:$0xf0] }
 0x398   :  { %v3356_v20 = vmax.f32 %v3352_v17, 0.0  ;;  %v4239_v10 = vpop.f32.mrf.mxu2  ;;  %v9248_v17 = vor.u32 %v10523_v35, %v9245_v16  ;;  %v10438_v35 = vld [vmem:[#allocation11 + $0x14] sm:$0xf0]  ;;  %v9168_v16 = vor.u32 %v10503_v7, %v9165_v8  ;;  %v3504_v62 = vperm.slane %v11647_v55, 2 }
 0x399   :  { %5184 = vmatpush.bf16.msra.mxu3 %v9372_v14  ;;  %v9307_v10 = vld [vmem:[#allocation11 + $0x340] sm:$0xf]  ;;  %v9139_v14 = vld [vmem:[#allocation11 + $0x1e8] sm:$0xf]  ;;  %v10482_v8 = vld [vmem:[#allocation11 + $0x174] sm:$0xf0] }
 0x39a   :  { %v11655_v34 = vadd.f32 %v3356_v20, %v2345_v42  ;;  %5213 = vmatpush.bf16.msrb.mxu1 %v9072_v30  ;;  %5177 = vmatpush.bf16.msra.mxu2 %v9148_v6  ;;  %v9355_v42 = vld [vmem:[#allocation11 + $0x3a0] sm:$0xf]  ;;  %v10553_v20 = vld [vmem:[#allocation11 + $0x3ac] sm:$0xf0]  ;;  %v10454_v30 = vld [vmem:[#allocation11 + $0x94] sm:$0xf0] }
 0x39b   :  { %v9356_v61 = vor.u32 %v10553_v20, %v9355_v42  ;;  %v10507_v6 = vld [vmem:[#allocation11 + $0x244] sm:$0xf]  ;;  %v10533_v20 = vld [vmem:[#allocation11 + $0x30c] sm:$0xf0] }
 0x39d   :  { %v3353_v31 = vpop.f32.mrf.mxu3  ;;  %5185 = vmatpush.bf16.msra.mxu3 %v9356_v61 }
 0x39e   :  { %5214 = vmatpush.bf16.msrb.mxu1 %v9056_v44  ;;  %5222 = vmatpush.bf16.msrb.mxu2 %v9264_v1  ;;  %v9339_v31 = vld [vmem:[#allocation11 + $0x380] sm:$0xf]  ;;  %v8964_v44 = vor.u32 %v10454_v30, %v8963_v23  ;;  %v8900_v23 = vor.u32 %v10438_v35, %v8899_v15  ;;  %v9152_v30 = vor.u32 %v10499_v60, %v9149_v13  ;;  %v8949_v15 = vld [vmem:[#allocation11 + $0x78] sm:$0xf0]  ;;  %v10539_v13 = vld [vmem:[#allocation11 + $0x344] sm:$0xf] }
 0x39f   :  { %v11661_v41 = vpop.f32.mrf.mxu1  ;;  %v9340_v3 = vor.u32 %v10549_v43, %v9339_v31  ;;  %v9291_v1 = vld [vmem:[#allocation11 + $0x320] sm:$0xf]  ;;  %v10559_v31 = vld [vmem:[#allocation11 + $0x3e4] sm:$0xf]  ;;  %v9389_v43 = vld [vmem:[#allocation11 + $0x3f0] sm:$0xf0] }
 0x3a0   :  { %v4225_v58 = vadd.f32 %v11661_v41, %v4212_v47  ;;  %v9392_v40 = vor.u32 %v10559_v31, %v9389_v43  ;;  %v8933_v60 = vld [vmem:[#allocation11 + $0x58] sm:$0xf0]  ;;  %v9043_v31 = vld [vmem:[#allocation11 + $0x128] sm:$0xf]  ;;  %v10474_v43 = vld [vmem:[#allocation11 + $0x134] sm:$0xf0] }
 0x3a1   :  { %5186 = vmatpush.bf16.msra.mxu3 %v9340_v3  ;;  %v9123_v3 = vld [vmem:[#allocation11 + $0x1c8] sm:$0xf] }
 0x3a2   :  { %5215 = vmatpush.bf16.msrb.mxu1 %v9040_v48  ;;  %5223 = vmatpush.bf16.msrb.mxu2 %v9248_v17  ;;  %v10511_v48 = vld [vmem:[#allocation11 + $0x264] sm:$0xf] }
 0x3a3   :  { %v9200_v52 = vor.u32 %v10511_v48, %v9197_v50  ;;  %v9107_v48 = vld [vmem:[#allocation11 + $0x1a8] sm:$0xf] }
 0x3a5   :  { %v4198_v12 = vpop.f32.mrf.mxu3 }
 0x3a6   :  { %v4199_v51 = vadd.f32 %v4198_v12, %v4186_v26  ;;  %5216 = vmatpush.bf16.msrb.mxu1 %v9024_v4  ;;  %5224 = vmatpush.bf16.msrb.mxu2 %v9232_v37  ;;  %v10545_v26 = vld [vmem:[#allocation11 + $0x36c] sm:$0xf0]  ;;  %v8948_v12 = vor.u32 %v10450_v45, %v8947_v28  ;;  %v9184_v4 = vor.u32 %v10507_v6, %v9181_v59  ;;  %v10460_v28 = vld [vmem:[#allocation11 + $0xcc] sm:$0xf]  ;;  %v8997_v45 = vld [vmem:[#allocation11 + $0xd8] sm:$0xf0] }
 0x3a7   :  { %v4226_v0 = vpop.f32.mrf.mxu1  ;;  %v9324_v38 = vor.u32 %v10545_v26, %v9323_v9  ;;  %v10555_v9 = vld [vmem:[#allocation11 + $0x3c4] sm:$0xf]  ;;  %v9373_v26 = vld [vmem:[#allocation11 + $0x3d0] sm:$0xf0]  ;;  %v9091_v59 = vld [vmem:[#allocation11 + $0x188] sm:$0xf] }
 0x3a8   :  { %v4358_v22 = vmax.f32 %v4199_v51, 0.0  ;;  %v10541_v51 = vld [vmem:[#allocation11 + $0x34c] sm:$0xf0] }
 0x3a9   :  { %5187 = vmatpush.bf16.msra.mxu3 %v9324_v38  ;;  %v9308_v36 = vor.u32 %v10541_v51, %v9307_v10  ;;  %v9000_v38 = vor.u32 %v10460_v28, %v8997_v45  ;;  %v10551_v10 = vld [vmem:[#allocation11 + $0x3a4] sm:$0xf]  ;;  %v9357_v51 = vld [vmem:[#allocation11 + $0x3b0] sm:$0xf0]  ;;  %v9044_v45 = vor.u32 %v10474_v43, %v9043_v31 }
 0x3aa   :  { %v11664_v11 = vpack.c.bf16 %v4358_v22, %v4358_v22  ;;  %5225 = vmatpush.bf16.msrb.mxu2 %v9216_v24  ;;  %v4238_v22 = vadd.f32 %v11658_v32, %v4225_v58  ;;  %v9275_v32 = vld [vmem:[#allocation11 + $0x300] sm:$0xf]  ;;  %v9360_v6 = vor.u32 %v10551_v10, %v9357_v51  ;;  %v9293_v28 = vld [vmem:[#allocation11 + $0x330] sm:$0xf0]  ;;  %v10496_v10 = vld [vmem:[#allocation11 + $0x1ec] sm:$0xf] }
 0x3ab   :  { %v9276_v61 = vor.u32 %v10533_v20, %v9275_v32  ;;  %v10478_v32 = vld [vmem:[#allocation11 + $0x154] sm:$0xf0]  ;;  %v10444_v20 = vld [vmem:[#allocation11 + $0x4c] sm:$0xf] }
 0x3ac   :  { %5152 = vmatmul.bf16.vlgmr.msra.gmra.mxu0 %v11664_v11 }
 0x3ad   :  { %5248 = vmatpush.bf16.msra.mxu0 %v9012_v2  ;;  %v4200_v63 = vpop.f32.mrf.mxu3  ;;  %5188 = vmatpush.bf16.msra.mxu3 %v9308_v36  ;;  %v10537_v2 = vld [vmem:[#allocation11 + $0x32c] sm:$0xf0]  ;;  %v8984_v36 = vor.u32 %v10456_v53, %v8981_v56  ;;  %v10436_v53 = vld [vmem:[#allocation11 + $0xc] sm:$0xf]  ;;  %v8901_v56 = vld [vmem:[#allocation11 + $0x18] sm:$0xf0] }
 0x3ae   :  { %v11668_v46 = vpop.f32.mrf.mxu0  ;;  %5226 = vmatpush.bf16.msrb.mxu2 %v9200_v52  ;;  %v9292_v41 = vor.u32 %v10537_v2, %v9291_v1  ;;  %v9376_v52 = vor.u32 %v10555_v9, %v9373_v26  ;;  %v9027_v26 = vld [vmem:[#allocation11 + $0x108] sm:$0xf] }
 0x3b1   :  { %5249 = vmatpush.bf16.msra.mxu0 %v8996_v18  ;;  %v10498_v18 = vld [vmem:[#allocation11 + $0x1f4] sm:$0xf0]  ;;  %5189 = vmatpush.bf16.msra.mxu3 %v9292_v41  ;;  %v9075_v41 = vld [vmem:[#allocation11 + $0x168] sm:$0xf] }
 0x3b2   :  { %5227 = vmatpush.bf16.msrb.mxu2 %v9184_v4  ;;  %v9140_v33 = vor.u32 %v10498_v18, %v9139_v14  ;;  %v10486_v4 = vld [vmem:[#allocation11 + $0x194] sm:$0xf0]  ;;  %v4264_v14 = vadd.f32 %v11668_v46, %v3504_v62  ;;  %v9325_v18 = vld [vmem:[#allocation11 + $0x370] sm:$0xf0]  ;;  %v9076_v19 = vor.u32 %v10482_v8, %v9075_v41 }
 0x3b3   :  { %v9092_v2 = vor.u32 %v10486_v4, %v9091_v59 }
 0x3b4   :  { %v11671_v57 = vpop.f32.mrf.mxu2 }
 0x3b5   :  { %5250 = vmatpush.bf16.msra.mxu0 %v8980_v27  ;;  %5190 = vmatpush.bf16.msra.mxu3 %v9276_v61 }
 0x3b6   :  { %v4265_v0 = vpop.f32.mrf.mxu0  ;;  %5228 = vmatpush.bf16.msrb.mxu2 %v9168_v16 }
 0x3b7   :  { %v10547_v0 = vld [vmem:[#allocation11 + $0x384] sm:$0xf] }
 0x3b9   :  { %5251 = vmatpush.bf16.msra.mxu0 %v8964_v44  ;;  %v10494_v44 = vld [vmem:[#allocation11 + $0x1d4] sm:$0xf0]  ;;  %5235 = vmatpush.bf16.msrb.mxu3 %v9392_v40 }
 0x3ba   :  { %5229 = vmatpush.bf16.msrb.mxu2 %v9152_v30  ;;  %v9124_v47 = vor.u32 %v10494_v44, %v9123_v3  ;;  %v8936_v30 = vor.u32 %v10444_v20, %v8933_v60  ;;  %v10535_v44 = vld [vmem:[#allocation11 + $0x324] sm:$0xf]  ;;  %v10484_v20 = vld [vmem:[#allocation11 + $0x18c] sm:$0xf]  ;;  %v9093_v60 = vld [vmem:[#allocation11 + $0x198] sm:$0xf0] }
 0x3bc   :  { %5204 = vmatmul.bf16.vlgmr.msrb.gmra.mxu0 %v11664_v11  ;;  %v4291_v63 = vpop.f32.mrf.mxu2 }
 0x3bd   :  { %5252 = vmatpush.bf16.msra.mxu0 %v8948_v12  ;;  %v10490_v12 = vld [vmem:[#allocation11 + $0x1b4] sm:$0xf0]  ;;  %5236 = vmatpush.bf16.msrb.mxu3 %v9376_v52  ;;  %v9059_v63 = vld [vmem:[#allocation11 + $0x148] sm:$0xf] }
 0x3be   :  { %v9108_v58 = vor.u32 %v10490_v12, %v9107_v48  ;;  %v10470_v48 = vld [vmem:[#allocation11 + $0x114] sm:$0xf0] }
 0x3bf   :  { %v11675_v21 = vpop.f32.mrf.mxu1  ;;  %v10530_v52 = vld [vmem:[#allocation11 + $0x2f4] sm:$0xf0]  ;;  %v9028_v59 = vor.u32 %v10470_v48, %v9027_v26  ;;  %v9045_v26 = vld [vmem:[#allocation11 + $0x138] sm:$0xf0] }
 0x3c0   :  { %v4277_v61 = vadd.f32 %v11675_v21, %v4264_v14  ;;  %v10522_v14 = vld [vmem:[#allocation11 + $0x2b4] sm:$0xf0] }
 0x3c1   :  { %5253 = vmatpush.bf16.msra.mxu0 %v8932_v5  ;;  %v10452_v5 = vld [vmem:[#allocation11 + $0x8c] sm:$0xf]  ;;  %5237 = vmatpush.bf16.msrb.mxu3 %v9360_v6  ;;  %v10531_v6 = vld [vmem:[#allocation11 + $0x304] sm:$0xf] }
 0x3c2   :  { %v8968_v7 = vor.u32 %v10452_v5, %v8965_v29  ;;  %v4290_v40 = vadd.f32 %v11671_v57, %v4277_v61  ;;  %v9141_v57 = vld [vmem:[#allocation11 + $0x1f8] sm:$0xf0]  ;;  %v8904_v29 = vor.u32 %v10436_v53, %v8901_v56  ;;  %v9395_v56 = vld [vmem:[#allocation11 + $0x3e8] sm:$0xf] }
 0x3c3   :  { %v9029_v53 = vld [vmem:[#allocation11 + $0x118] sm:$0xf0] }
 0x3c5   :  { %v4250_v17 = vpop.f32.mrf.mxu3  ;;  %5254 = vmatpush.bf16.msra.mxu0 %v8916_v25  ;;  %v10448_v25 = vld [vmem:[#allocation11 + $0x6c] sm:$0xf] }
 0x3c6   :  { %v4251_v42 = vadd.f32 %v4250_v17, %v4238_v22  ;;  %v9341_v22 = vld [vmem:[#allocation11 + $0x390] sm:$0xf0]  ;;  %v10543_v17 = vld [vmem:[#allocation11 + $0x364] sm:$0xf]  ;;  %v8952_v54 = vor.u32 %v10448_v25, %v8949_v15  ;;  %v9235_v15 = vld [vmem:[#allocation11 + $0x2a8] sm:$0xf] }
 0x3c7   :  { %v4278_v37 = vpop.f32.mrf.mxu1  ;;  %v9344_v1 = vor.u32 %v10547_v0, %v9341_v22  ;;  %v9144_v0 = vor.u32 %v10496_v10, %v9141_v57  ;;  %v9251_v22 = vld [vmem:[#allocation11 + $0x2c8] sm:$0xf]  ;;  %v10562_v10 = vld [vmem:[#allocation11 + $0x3f4] sm:$0xf0]  ;;  %v10528_v57 = vld [vmem:[#allocation11 + $0x2ec] sm:$0xf] }
 0x3c8   :  { %v4359_v27 = vmax.f32 %v4251_v42, 0.0  ;;  %v9328_v42 = vor.u32 %v10543_v17, %v9325_v18  ;;  %v9309_v37 = vld [vmem:[#allocation11 + $0x350] sm:$0xf0]  ;;  %v10488_v17 = vld [vmem:[#allocation11 + $0x1ac] sm:$0xf] }
 0x3c9   :  { %5255 = vmatpush.bf16.msra.mxu0 %v8900_v23  ;;  %5238 = vmatpush.bf16.msrb.mxu3 %v9344_v1  ;;  %v9060_v23 = vor.u32 %v10478_v32, %v9059_v63  ;;  %v10526_v1 = vld [vmem:[#allocation11 + $0x2d4] sm:$0xf0]  ;;  %v9109_v18 = vld [vmem:[#allocation11 + $0x1b8] sm:$0xf0]  ;;  %v9219_v63 = vld [vmem:[#allocation11 + $0x288] sm:$0xf] }
 0x3ca   :  { %v11678_v24 = vpack.c.bf16 %v4359_v27, %v4359_v27  ;;  %v9312_v27 = vor.u32 %v10539_v13, %v9309_v37  ;;  %v9252_v41 = vor.u32 %v10526_v1, %v9251_v22  ;;  %v3505_v32 = vperm.slane %v11647_v55, 3  ;;  %v9203_v37 = vld [vmem:[#allocation11 + $0x268] sm:$0xf]  ;;  %v9253_v22 = vld [vmem:[#allocation11 + $0x2d8] sm:$0xf0] }
 0x3cb   :  { %v9096_v13 = vor.u32 %v10484_v20, %v9093_v60  ;;  %v9331_v20 = vld [vmem:[#allocation11 + $0x368] sm:$0xf]  ;;  %v10546_v60 = vld [vmem:[#allocation11 + $0x374] sm:$0xf0] }
 0x3cc   :  { %5165 = vmatmul.bf16.vlgmr.msra.gmra.mxu1 %v11678_v24  ;;  %5256 = vmatmul.bf16.vlgmr.msra.gmra.mxu0 %v11664_v11 }
 0x3cd   :  { %5261 = vmatpush.bf16.msra.mxu1 %v9140_v33  ;;  %5300 = vmatpush.bf16.msrb.mxu0 %v9016_v39  ;;  %v4252_v50 = vpop.f32.mrf.mxu3  ;;  %v10440_v33 = vld [vmem:[#allocation11 + $0x2c] sm:$0xf]  ;;  %v8917_v39 = vld [vmem:[#allocation11 + $0x38] sm:$0xf0] }
 0x3ce   :  { %v11683_v35 = vpop.f32.mrf.mxu0  ;;  %5239 = vmatpush.bf16.msrb.mxu3 %v9328_v42  ;;  %v8920_v9 = vor.u32 %v10440_v33, %v8917_v39  ;;  %v9267_v50 = vld [vmem:[#allocation11 + $0x2e8] sm:$0xf]  ;;  %v10518_v42 = vld [vmem:[#allocation11 + $0x294] sm:$0xf0] }
 0x3cf   :  { %v9268_v5 = vor.u32 %v10530_v52, %v9267_v50  ;;  %v9220_v61 = vor.u32 %v10518_v42, %v9219_v63  ;;  %v9187_v33 = vld [vmem:[#allocation11 + $0x248] sm:$0xf]  ;;  %v10510_v39 = vld [vmem:[#allocation11 + $0x254] sm:$0xf0]  ;;  %v10468_v52 = vld [vmem:[#allocation11 + $0x10c] sm:$0xf] }
 0x3d0   :  { %v10502_v50 = vld [vmem:[#allocation11 + $0x214] sm:$0xf0]  ;;  %v9221_v63 = vld [vmem:[#allocation11 + $0x298] sm:$0xf0] }
 0x3d1   :  { %5262 = vmatpush.bf16.msra.mxu1 %v9124_v47  ;;  %5301 = vmatpush.bf16.msrb.mxu0 %v9000_v38  ;;  %v9296_v47 = vor.u32 %v10535_v44, %v9293_v28  ;;  %v9171_v28 = vld [vmem:[#allocation11 + $0x228] sm:$0xf] }
 0x3d2   :  { %5240 = vmatpush.bf16.msrb.mxu3 %v9312_v27  ;;  %v10514_v27 = vld [vmem:[#allocation11 + $0x274] sm:$0xf0] }
 0x3d3   :  { %v11686_v16 = vpop.f32.mrf.mxu2  ;;  %v9204_v31 = vor.u32 %v10514_v27, %v9203_v37  ;;  %v9332_v37 = vor.u32 %v10546_v60, %v9331_v20  ;;  %v9315_v27 = vld [vmem:[#allocation11 + $0x348] sm:$0xf] }
 0x3d5   :  { %5263 = vmatpush.bf16.msra.mxu1 %v9108_v58  ;;  %5302 = vmatpush.bf16.msrb.mxu0 %v8984_v36  ;;  %v9277_v58 = vld [vmem:[#allocation11 + $0x310] sm:$0xf0] }
 0x3d6   :  { %v4317_v3 = vpop.f32.mrf.mxu0  ;;  %5241 = vmatpush.bf16.msrb.mxu3 %v9296_v47  ;;  %v9280_v4 = vor.u32 %v10531_v6, %v9277_v58 }
 0x3d7   :  { %v10476_v3 = vld [vmem:[#allocation11 + $0x14c] sm:$0xf] }
 0x3d9   :  { %5264 = vmatpush.bf16.msra.mxu1 %v9092_v2  ;;  %5303 = vmatpush.bf16.msrb.mxu0 %v8968_v7  ;;  %v10492_v2 = vld [vmem:[#allocation11 + $0x1cc] sm:$0xf]  ;;  %v9125_v7 = vld [vmem:[#allocation11 + $0x1d8] sm:$0xf0] }
 0x3da   :  { %5242 = vmatpush.bf16.msrb.mxu3 %v9280_v4  ;;  %v9128_v25 = vor.u32 %v10492_v2, %v9125_v7 }
 0x3db   :  { %v4343_v21 = vpop.f32.mrf.mxu2 }
 0x3dc   :  { %5217 = vmatmul.bf16.vlgmr.msrb.gmra.mxu1 %v11678_v24  ;;  %v9188_v21 = vor.u32 %v10510_v39, %v9187_v33  ;;  %v9299_v33 = vld [vmem:[#allocation11 + $0x328] sm:$0xf]  ;;  %v10538_v39 = vld [vmem:[#allocation11 + $0x334] sm:$0xf0] }
 0x3dd   :  { %5265 = vmatpush.bf16.msra.mxu1 %v9076_v19  ;;  %5304 = vmatpush.bf16.msrb.mxu0 %v8952_v54  ;;  %v9236_v19 = vor.u32 %v10522_v14, %v9235_v15  ;;  %v9112_v54 = vor.u32 %v10488_v17, %v9109_v18  ;;  %v9237_v15 = vld [vmem:[#allocation11 + $0x2b8] sm:$0xf0]  ;;  %v9347_v18 = vld [vmem:[#allocation11 + $0x388] sm:$0xf] }
 0x3df   :  { %v11690_v46 = vpop.f32.mrf.mxu1 }
 0x3e1   :  { %5266 = vmatpush.bf16.msra.mxu1 %v9060_v23  ;;  %5305 = vmatpush.bf16.msrb.mxu0 %v8936_v30  ;;  %v4316_v23 = vadd.f32 %v11683_v35, %v3505_v32  ;;  %v10480_v30 = vld [vmem:[#allocation11 + $0x16c] sm:$0xf]  ;;  %v10506_v35 = vld [vmem:[#allocation11 + $0x234] sm:$0xf0] }
 0x3e2   :  { %v9172_v47 = vor.u32 %v10506_v35, %v9171_v28  ;;  %v10534_v28 = vld [vmem:[#allocation11 + $0x314] sm:$0xf0]  ;;  %v10500_v35 = vld [vmem:[#allocation11 + $0x20c] sm:$0xf] }
 0x3e3   :  { %v4329_v55 = vadd.f32 %v11690_v46, %v4316_v23  ;;  %v9155_v46 = vld [vmem:[#allocation11 + $0x208] sm:$0xf]  ;;  %v10542_v23 = vld [vmem:[#allocation11 + $0x354] sm:$0xf0] }
 0x3e4   :  { %v9156_v58 = vor.u32 %v10502_v50, %v9155_v46  ;;  %v10556_v46 = vld [vmem:[#allocation11 + $0x3cc] sm:$0xf]  ;;  %v9381_v50 = vld [vmem:[#allocation11 + $0x3d8] sm:$0xf0] }
 0x3e5   :  { %v4302_v38 = vpop.f32.mrf.mxu3  ;;  %5267 = vmatpush.bf16.msra.mxu1 %v9044_v45  ;;  %5306 = vmatpush.bf16.msrb.mxu0 %v8920_v9  ;;  %v4342_v45 = vadd.f32 %v11686_v16, %v4329_v55  ;;  %v10472_v9 = vld [vmem:[#allocation11 + $0x12c] sm:$0xf]  ;;  %v9032_v16 = vor.u32 %v10468_v52, %v9029_v53  ;;  %v9384_v52 = vor.u32 %v10556_v46, %v9381_v50  ;;  %v9365_v53 = vld [vmem:[#allocation11 + $0x3b8] sm:$0xf0]  ;;  %v9499_v46 = vld [vmem:[#allocation13 + $0xc0] sm:$0xf] }
 0x3e6   :  { %v4303_v12 = vadd.f32 %v4302_v38, %v4290_v40  ;;  %v9061_v40 = vld [vmem:[#allocation11 + $0x158] sm:$0xf0]  ;;  %v9048_v48 = vor.u32 %v10472_v9, %v9045_v26  ;;  %v10504_v55 = vld [vmem:[#allocation11 + $0x22c] sm:$0xf] }
 0x3e7   :  { %v4330_v51 = vpop.f32.mrf.mxu1  ;;  %v9064_v44 = vor.u32 %v10476_v3, %v9061_v40  ;;  %v9173_v3 = vld [vmem:[#allocation11 + $0x238] sm:$0xf0]  ;;  %v9300_v40 = vor.u32 %v10538_v39, %v9299_v33  ;;  %v10560_v9 = vld [vmem:[#allocation11 + $0x3ec] sm:$0xf]  ;;  %v10568_v33 = vld [vmem:[#allocation13 + $0x24] sm:$0xf0] }
 0x3e8   :  { %v4360_v36 = vmax.f32 %v4303_v12, 0.0  ;;  %v9269_v51 = vld [vmem:[#allocation11 + $0x2f8] sm:$0xf0] }
 0x3e9   :  { %5268 = vmatpush.bf16.msra.mxu1 %v9028_v59  ;;  %5307 = vmatpush.bf16.msrb.mxu0 %v8904_v29  ;;  %v9272_v4 = vor.u32 %v10528_v57, %v9269_v51  ;;  %v10558_v29 = vld [vmem:[#allocation11 + $0x3d4] sm:$0xf0]  ;;  %v9397_v26 = vld [vmem:[#allocation11 + $0x3f8] sm:$0xf0] }
 0x3ea   :  { %v11693_v62 = vpack.c.bf16 %v4360_v36, %v4360_v36  ;;  %v9396_v36 = vor.u32 %v10562_v10, %v9395_v56  ;;  %v10548_v10 = vld [vmem:[#allocation11 + $0x38c] sm:$0xf]  ;;  %v9349_v57 = vld [vmem:[#allocation11 + $0x398] sm:$0xf0] }
 0x3ec   :  { %5178 = vmatmul.bf16.vlgmr.msra.gmra.mxu2 %v11693_v62  ;;  %5269 = vmatmul.bf16.vlgmr.msra.gmra.mxu1 %v11678_v24 }
 0x3ed   :  { %5274 = vmatpush.bf16.msra.mxu2 %v9268_v5  ;;  %v4304_v8 = vpop.f32.mrf.mxu3  ;;  %5313 = vmatpush.bf16.msrb.mxu1 %v9144_v0  ;;  %v9379_v5 = vld [vmem:[#allocation11 + $0x3c8] sm:$0xf]  ;;  %v10524_v0 = vld [vmem:[#allocation11 + $0x2cc] sm:$0xf] }
 0x3ee   :  { %5308 = vmatmul.bf16.vlgmr.msrb.gmra.mxu0 %v11664_v11  ;;  %v9077_v11 = vld [vmem:[#allocation11 + $0x178] sm:$0xf0]  ;;  %v9380_v2 = vor.u32 %v10558_v29, %v9379_v5  ;;  %v9256_v7 = vor.u32 %v10524_v0, %v9253_v22  ;;  %v10554_v8 = vld [vmem:[#allocation11 + $0x3b4] sm:$0xf0]  ;;  %v10536_v22 = vld [vmem:[#allocation11 + $0x32c] sm:$0xf] }
 0x3ef   :  { %v9080_v43 = vor.u32 %v10480_v30, %v9077_v11  ;;  %v10508_v30 = vld [vmem:[#allocation11 + $0x24c] sm:$0xf]  ;;  %v9189_v11 = vld [vmem:[#allocation11 + $0x258] sm:$0xf0] }
 0x3f0   :  { %v9317_v5 = vld [vmem:[#allocation11 + $0x358] sm:$0xf0] }
 0x3f1   :  { %5275 = vmatpush.bf16.msra.mxu2 %v9252_v41  ;;  %5314 = vmatpush.bf16.msrb.mxu1 %v9128_v25  ;;  %v9363_v41 = vld [vmem:[#allocation11 + $0x3a8] sm:$0xf]  ;;  %v10520_v25 = vld [vmem:[#allocation11 + $0x2ac] sm:$0xf] }
 0x3f2   :  { %v9364_v14 = vor.u32 %v10554_v8, %v9363_v41  ;;  %v9240_v17 = vor.u32 %v10520_v25, %v9237_v15  ;;  %v9459_v25 = vld [vmem:[#allocation13 + $0x70] sm:$0xf]  ;;  %v10578_v15 = vld [vmem:[#allocation13 + $0x74] sm:$0xf0] }
 0x3f5   :  { %5276 = vmatpush.bf16.msra.mxu2 %v9236_v19  ;;  %5315 = vmatpush.bf16.msrb.mxu1 %v9112_v54  ;;  %v10550_v19 = vld [vmem:[#allocation11 + $0x394] sm:$0xf0]  ;;  %v10516_v54 = vld [vmem:[#allocation11 + $0x28c] sm:$0xf] }
 0x3f6   :  { %v9348_v42 = vor.u32 %v10550_v19, %v9347_v18  ;;  %v9224_v32 = vor.u32 %v10516_v54, %v9221_v63  ;;  %v10576_v18 = vld [vmem:[#allocation13 + $0x64] sm:$0xf0] }
 0x3f9   :  { %5277 = vmatpush.bf16.msra.mxu2 %v9220_v61  ;;  %5316 = vmatpush.bf16.msrb.mxu1 %v9096_v13  ;;  %v10512_v61 = vld [vmem:[#allocation11 + $0x26c] sm:$0xf]  ;;  %v9205_v13 = vld [vmem:[#allocation11 + $0x278] sm:$0xf0] }
 0x3fc   :  { %5230 = vmatmul.bf16.vlgmr.msrb.gmra.mxu2 %v11693_v62 }
 0x3fd   :  { %5278 = vmatpush.bf16.msra.mxu2 %v9204_v31  ;;  %5317 = vmatpush.bf16.msrb.mxu1 %v9080_v43  ;;  %v9316_v31 = vor.u32 %v10542_v23, %v9315_v27  ;;  %v9192_v43 = vor.u32 %v10508_v30, %v9189_v11  ;;  %v9427_v27 = vld [vmem:[#allocation13 + $0x30] sm:$0xf]  ;;  %v10570_v23 = vld [vmem:[#allocation13 + $0x34] sm:$0xf0] }
 0x3fe   :  { %v9428_v11 = vor.u32 %v10570_v23, %v9427_v27 }
 0x401   :  { %5279 = vmatpush.bf16.msra.mxu2 %v9188_v21  ;;  %5318 = vmatpush.bf16.msrb.mxu1 %v9064_v44  ;;  %v9176_v21 = vor.u32 %v10504_v55, %v9173_v3  ;;  %v9283_v44 = vld [vmem:[#allocation11 + $0x308] sm:$0xf]  ;;  %v9515_v55 = vld [vmem:[#allocation13 + $0xe0] sm:$0xf] }
 0x402   :  { %v10592_v3 = vld [vmem:[#allocation13 + $0xe4] sm:$0xf0] }
 0x405   :  { %v4354_v38 = vpop.f32.mrf.mxu3  ;;  %5280 = vmatpush.bf16.msra.mxu2 %v9172_v47  ;;  %5319 = vmatpush.bf16.msrb.mxu1 %v9048_v48  ;;  %v9284_v47 = vor.u32 %v10534_v28, %v9283_v44  ;;  %v9400_v48 = vor.u32 %v10560_v9, %v9397_v26  ;;  %v9411_v28 = vld [vmem:[#allocation13 + $0x10] sm:$0xf]  ;;  %v10590_v26 = vld [vmem:[#allocation13 + $0xd4] sm:$0xf0] }
 0x406   :  { %v4355_v12 = vadd.f32 %v4354_v38, %v4342_v45  ;;  %v9157_v45 = vld [vmem:[#allocation11 + $0x218] sm:$0xf0] }
 0x407   :  { %v9160_v38 = vor.u32 %v10500_v35, %v9157_v45  ;;  %v10566_v35 = vld [vmem:[#allocation13 + $0x14] sm:$0xf0]  ;;  %v9507_v45 = vld [vmem:[#allocation13 + $0xd0] sm:$0xf] }
 0x408   :  { %v4361_v6 = vmax.f32 %v4355_v12, 0.0  ;;  %v10552_v12 = vld [vmem:[#allocation11 + $0x3ac] sm:$0xf]  ;;  %v9412_v9 = vor.u32 %v10566_v35, %v9411_v28  ;;  %v9525_v28 = vld [vmem:[#allocation13 + $0xf8] sm:$0xf0] }
 0x409   :  { %5281 = vmatpush.bf16.msra.mxu2 %v9156_v58  ;;  %5320 = vmatpush.bf16.msrb.mxu1 %v9032_v16  ;;  %v9368_v56 = vor.u32 %v10552_v12, %v9365_v53  ;;  %v10544_v58 = vld [vmem:[#allocation11 + $0x36c] sm:$0xf]  ;;  %v9333_v16 = vld [vmem:[#allocation11 + $0x378] sm:$0xf0]  ;;  %v10577_v12 = vld [vmem:[#allocation13 + $0x74] sm:$0xf] }
 0x40a   :  { %v11703_v59 = vpack.c.bf16 %v4361_v6, %v4361_v6  ;;  %v9352_v6 = vor.u32 %v10548_v10, %v9349_v57  ;;  %v9461_v53 = vld [vmem:[#allocation13 + $0x78] sm:$0xf0] }
 0x40b   :  { %v9464_v10 = vor.u32 %v10577_v12, %v9461_v53  ;;  %v9517_v12 = vld [vmem:[#allocation13 + $0xe8] sm:$0xf0]  ;;  %v9547_v53 = vld [vmem:[#allocation13 + $0x120] sm:$0xf] }
 0x40c   :  { %5191 = vmatmul.bf16.vlgmr.msra.gmra.mxu3 %v11703_v59  ;;  %5282 = vmatmul.bf16.vlgmr.msra.gmra.mxu2 %v11693_v62 }
 0x40d   :  { %5287 = vmatpush.bf16.msra.mxu3 %v9396_v36  ;;  %v4356_v1 = vpop.f32.mrf.mxu3  ;;  %5326 = vmatpush.bf16.msrb.mxu2 %v9272_v4  ;;  %v9336_v36 = vor.u32 %v10544_v58, %v9333_v16  ;;  %v10540_v4 = vld [vmem:[#allocation11 + $0x34c] sm:$0xf]  ;;  %v10586_v58 = vld [vmem:[#allocation13 + $0xb4] sm:$0xf0]  ;;  %v9587_v16 = vld [vmem:[#allocation13 + $0x170] sm:$0xf] }
 0x40e   :  { %5321 = vmatmul.bf16.vlgmr.msrb.gmra.mxu1 %v11678_v24  ;;  %v9208_v24 = vor.u32 %v10512_v61, %v9205_v13  ;;  %v9320_v0 = vor.u32 %v10540_v4, %v9317_v5  ;;  %v9301_v1 = vld [vmem:[#allocation11 + $0x338] sm:$0xf0]  ;;  %v9435_v61 = vld [vmem:[#allocation13 + $0x40] sm:$0xf]  ;;  %v10572_v13 = vld [vmem:[#allocation13 + $0x44] sm:$0xf0] }
 0x40f   :  { %v10610_v4 = vld [vmem:[#allocation13 + $0x174] sm:$0xf0]  ;;  %v10575_v5 = vld [vmem:[#allocation13 + $0x64] sm:$0xf] }
 0x411   :  { %5288 = vmatpush.bf16.msra.mxu3 %v9380_v2  ;;  %5327 = vmatpush.bf16.msrb.mxu2 %v9256_v7  ;;  %v10532_v2 = vld [vmem:[#allocation11 + $0x30c] sm:$0xf]  ;;  %v9285_v7 = vld [vmem:[#allocation11 + $0x318] sm:$0xf0] }
 0x412   :  { %v9288_v8 = vor.u32 %v10532_v2, %v9285_v7  ;;  %v9579_v2 = vld [vmem:[#allocation13 + $0x160] sm:$0xf] }
 0x415   :  { %5289 = vmatpush.bf16.msra.mxu3 %v9364_v14  ;;  %5328 = vmatpush.bf16.msrb.mxu2 %v9240_v17  ;;  %v9451_v14 = vld [vmem:[#allocation13 + $0x60] sm:$0xf]  ;;  %v9460_v17 = vor.u32 %v10578_v15, %v9459_v25  ;;  %v10573_v25 = vld [vmem:[#allocation13 + $0x54] sm:$0xf]  ;;  %v9445_v15 = vld [vmem:[#allocation13 + $0x58] sm:$0xf0] }
 0x416   :  { %v9452_v54 = vor.u32 %v10576_v18, %v9451_v14  ;;  %v9448_v18 = vor.u32 %v10573_v25, %v9445_v15  ;;  %v9501_v15 = vld [vmem:[#allocation13 + $0xc8] sm:$0xf0] }
 0x417   :  { %5750 = vmatpush.bf16.msra.mxu0 %v9460_v17 }
 0x419   :  { %5290 = vmatpush.bf16.msra.mxu3 %v9348_v42  ;;  %5329 = vmatpush.bf16.msrb.mxu2 %v9224_v32  ;;  %v9443_v42 = vld [vmem:[#allocation13 + $0x50] sm:$0xf]  ;;  %v10574_v32 = vld [vmem:[#allocation13 + $0x54] sm:$0xf0] }
 0x41a   :  { %v9444_v60 = vor.u32 %v10574_v32, %v9443_v42  ;;  %v10582_v42 = vld [vmem:[#allocation13 + $0x94] sm:$0xf0]  ;;  %v9571_v32 = vld [vmem:[#allocation13 + $0x150] sm:$0xf] }
 0x41b   :  { %5751 = vmatpush.bf16.msra.mxu0 %v9452_v54  ;;  %v9475_v54 = vld [vmem:[#allocation13 + $0x90] sm:$0xf] }
 0x41c   :  { %5243 = vmatmul.bf16.vlgmr.msrb.gmra.mxu3 %v11703_v59 }
 0x41d   :  { %5291 = vmatpush.bf16.msra.mxu3 %v9332_v37  ;;  %5330 = vmatpush.bf16.msrb.mxu2 %v9208_v24  ;;  %v9436_v37 = vor.u32 %v10572_v13, %v9435_v61  ;;  %v9476_v61 = vor.u32 %v10582_v42, %v9475_v54  ;;  %v10606_v13 = vld [vmem:[#allocation13 + $0x154] sm:$0xf0]  ;;  %v9531_v54 = vld [vmem:[#allocation13 + $0x100] sm:$0xf]  ;;  %v10596_v42 = vld [vmem:[#allocation13 + $0x104] sm:$0xf0] }
 0x41e   :  { %v9572_v27 = vor.u32 %v10606_v13, %v9571_v32  ;;  %v9651_v32 = vld [vmem:[#allocation13 + $0x1f0] sm:$0xf]  ;;  %v10626_v13 = vld [vmem:[#allocation13 + $0x1f4] sm:$0xf0] }
 0x41f   :  { %5752 = vmatpush.bf16.msra.mxu0 %v9444_v60 }
 0x421   :  { %5292 = vmatpush.bf16.msra.mxu3 %v9316_v31  ;;  %5331 = vmatpush.bf16.msrb.mxu2 %v9192_v43  ;;  %v10594_v31 = vld [vmem:[#allocation13 + $0xf4] sm:$0xf0]  ;;  %v9419_v43 = vld [vmem:[#allocation13 + $0x20] sm:$0xf] }
 0x423   :  { %5753 = vmatpush.bf16.msra.mxu0 %v9436_v37  ;;  %v10571_v37 = vld [vmem:[#allocation13 + $0x44] sm:$0xf] }
 0x425   :  { %5293 = vmatpush.bf16.msra.mxu3 %v9300_v40  ;;  %5332 = vmatpush.bf16.msrb.mxu2 %v9176_v21  ;;  %v9420_v40 = vor.u32 %v10568_v33, %v9419_v43  ;;  %v9516_v21 = vor.u32 %v10592_v3, %v9515_v55  ;;  %v10604_v43 = vld [vmem:[#allocation13 + $0x144] sm:$0xf0]  ;;  %v10569_v33 = vld [vmem:[#allocation13 + $0x34] sm:$0xf] }
 0x427   :  { %5754 = vmatpush.bf16.msra.mxu0 %v9428_v11  ;;  %v9563_v11 = vld [vmem:[#allocation13 + $0x140] sm:$0xf] }
 0x428   :  { %v9564_v3 = vor.u32 %v10604_v43, %v9563_v11  ;;  %v9643_v11 = vld [vmem:[#allocation13 + $0x1e0] sm:$0xf] }
 0x429   :  { %5294 = vmatpush.bf16.msra.mxu3 %v9284_v47  ;;  %5333 = vmatpush.bf16.msrb.mxu2 %v9160_v38  ;;  %v11711_v51 = vpop.f32.mrf.mxu0  ;;  %v9508_v47 = vor.u32 %v10590_v26, %v9507_v45  ;;  %v9403_v38 = vld [vmem:[#allocation13] sm:$0xf]  ;;  %v10602_v26 = vld [vmem:[#allocation13 + $0x134] sm:$0xf0] }
 0x42b   :  { %5755 = vmatpush.bf16.msra.mxu0 %v9420_v40 }
 0x42c   :  { %5295 = vmatmul.bf16.vlgmr.msra.gmra.mxu3 %v11703_v59  ;;  %5334 = vmatmul.bf16.vlgmr.msrb.gmra.mxu2 %v11693_v62  ;;  %v9304_v62 = vor.u32 %v10536_v22, %v9301_v1  ;;  %v9483_v1 = vld [vmem:[#allocation13 + $0xa0] sm:$0xf] }
 0x42d   :  { %5339 = vmatpush.bf16.msrb.mxu3 %v9400_v48  ;;  %v10564_v48 = vld [vmem:[#allocation13 + $0x4] sm:$0xf0] }
 0x42e   :  { %v9404_v50 = vor.u32 %v10564_v48, %v9403_v38  ;;  %v10567_v48 = vld [vmem:[#allocation13 + $0x24] sm:$0xf] }
 0x42f   :  { %5756 = vmatpush.bf16.msra.mxu0 %v9412_v9  ;;  %v9555_v9 = vld [vmem:[#allocation13 + $0x130] sm:$0xf] }
 0x430   :  { %v9556_v38 = vor.u32 %v10602_v26, %v9555_v9 }
 0x431   :  { %5340 = vmatpush.bf16.msrb.mxu3 %v9384_v52  ;;  %v5155_v29 = vpop.f32.mrf.mxu0  ;;  %v10588_v52 = vld [vmem:[#allocation13 + $0xc4] sm:$0xf0] }
 0x432   :  { %v9453_v29 = vld [vmem:[#allocation13 + $0x68] sm:$0xf0] }
 0x433   :  { %5757 = vmatpush.bf16.msra.mxu0 %v9404_v50  ;;  %v9456_v22 = vor.u32 %v10575_v5, %v9453_v29  ;;  %v10591_v50 = vld [vmem:[#allocation13 + $0xe4] sm:$0xf]  ;;  %v11729_v29 = vld [vmem:[%s11844_s27] sm:$0xf] }
 0x435   :  { %5341 = vmatpush.bf16.msrb.mxu3 %v9368_v56  ;;  %v9500_v56 = vor.u32 %v10588_v52, %v9499_v46  ;;  %v9421_v46 = vld [vmem:[#allocation13 + $0x28] sm:$0xf0] }
 0x436   :  { %v9424_v52 = vor.u32 %v10567_v48, %v9421_v46  ;;  %v10581_v46 = vld [vmem:[#allocation13 + $0x94] sm:$0xf] }
 0x437   :  { %5802 = vmatpush.bf16.msrb.mxu0 %v9464_v10  ;;  %v9520_v10 = vor.u32 %v10591_v50, %v9517_v12  ;;  %v9477_v50 = vld [vmem:[#allocation13 + $0x98] sm:$0xf0] }
 0x439   :  { %5342 = vmatpush.bf16.msrb.mxu3 %v9352_v6  ;;  %v11713_v41 = vpop.f32.mrf.mxu0  ;;  %v9491_v6 = vld [vmem:[#allocation13 + $0xb0] sm:$0xf] }
 0x43b   :  { %5803 = vmatpush.bf16.msrb.mxu0 %v9456_v22  ;;  %v10598_v22 = vld [vmem:[#allocation13 + $0x114] sm:$0xf0] }
 0x43d   :  { %5343 = vmatpush.bf16.msrb.mxu3 %v9336_v36  ;;  %v9492_v36 = vor.u32 %v10586_v58, %v9491_v6  ;;  %v10565_v6 = vld [vmem:[#allocation13 + $0x14] sm:$0xf]  ;;  %v9413_v58 = vld [vmem:[#allocation13 + $0x18] sm:$0xf0] }
 0x43f   :  { %5804 = vmatpush.bf16.msrb.mxu0 %v9448_v18 }
 0x441   :  { %5344 = vmatpush.bf16.msrb.mxu3 %v9320_v0  ;;  %v5207_v19 = vpop.f32.mrf.mxu0  ;;  %v9588_v0 = vor.u32 %v10610_v4, %v9587_v16  ;;  %v10589_v16 = vld [vmem:[#allocation13 + $0xd4] sm:$0xf]  ;;  %v9509_v4 = vld [vmem:[#allocation13 + $0xd8] sm:$0xf0] }
 0x442   :  { %v9512_v5 = vor.u32 %v10589_v16, %v9509_v4  ;;  %v9469_v4 = vld [vmem:[#allocation13 + $0x88] sm:$0xf0] }
 0x443   :  { %5776 = vmatpush.bf16.msra.mxu2 %v9588_v0  ;;  %v9539_v0 = vld [vmem:[#allocation13 + $0x110] sm:$0xf] }
 0x445   :  { %5345 = vmatpush.bf16.msrb.mxu3 %v9304_v62  ;;  %v10584_v62 = vld [vmem:[#allocation13 + $0xa4] sm:$0xf0] }
 0x446   :  { %v9484_v7 = vor.u32 %v10584_v62, %v9483_v1  ;;  %v9540_v62 = vor.u32 %v10598_v22, %v9539_v0  ;;  %v10603_v0 = vld [vmem:[#allocation13 + $0x144] sm:$0xf]  ;;  %v9565_v22 = vld [vmem:[#allocation13 + $0x148] sm:$0xf0] }
 0x449   :  { %5346 = vmatpush.bf16.msrb.mxu3 %v9288_v8  ;;  %v11716_v63 = vpop.f32.mrf.mxu1  ;;  %v11718_v20 = vpop.f32.mrf.mxu0  ;;  %v10608_v8 = vld [vmem:[#allocation13 + $0x164] sm:$0xf0] }
 0x44a   :  { %v9580_v17 = vor.u32 %v10608_v8, %v9579_v2  ;;  %v10563_v2 = vld [vmem:[#allocation13 + $0x4] sm:$0xf] }
 0x44b   :  { %v10587_v8 = vld [vmem:[#allocation13 + $0xc4] sm:$0xf] }
 0x44c   :  { %5347 = vmatmul.bf16.vlgmr.msrb.gmra.mxu3 %v11703_v59  ;;  %v9523_v59 = vld [vmem:[#allocation13 + $0xf0] sm:$0xf]  ;;  %5777 = vmatpush.bf16.msra.mxu2 %v9580_v17  ;;  %v4496_v17 = vperm.slane %v11729_v29, 0  ;;  %v9504_v18 = vor.u32 %v10587_v8, %v9501_v15  ;;  %v10618_v15 = vld [vmem:[#allocation13 + $0x1b4] sm:$0xf0] }
 0x44d   :  { %v9524_v39 = vor.u32 %v10594_v31, %v9523_v59  ;;  %v9467_v59 = vld [vmem:[#allocation13 + $0x80] sm:$0xf] }
 0x44f   :  { %5763 = vmatpush.bf16.msra.mxu1 %v9524_v39  ;;  %v9429_v39 = vld [vmem:[#allocation13 + $0x38] sm:$0xf0] }
 0x450   :  { %5778 = vmatpush.bf16.msra.mxu2 %v9572_v27  ;;  %v9432_v40 = vor.u32 %v10569_v33, %v9429_v39  ;;  %v9652_v27 = vor.u32 %v10626_v13, %v9651_v32  ;;  %v10624_v33 = vld [vmem:[#allocation13 + $0x1e4] sm:$0xf0]  ;;  %v10583_v39 = vld [vmem:[#allocation13 + $0xa4] sm:$0xf]  ;;  %v9611_v13 = vld [vmem:[#allocation13 + $0x1a0] sm:$0xf] }
 0x451   :  { %v5168_v24 = vpop.f32.mrf.mxu1  ;;  %v5259_v30 = vpop.f32.mrf.mxu0 }
 0x452   :  { %v9437_v24 = vld [vmem:[#allocation13 + $0x48] sm:$0xf0]  ;;  %v10580_v30 = vld [vmem:[#allocation13 + $0x84] sm:$0xf0]  ;;  %5789 = vmatpush.bf16.msra.mxu3 %v9652_v27 }
 0x453   :  { %5764 = vmatpush.bf16.msra.mxu1 %v9516_v21  ;;  %v9440_v23 = vor.u32 %v10571_v37, %v9437_v24  ;;  %v9468_v31 = vor.u32 %v10580_v30, %v9467_v59  ;;  %v10593_v21 = vld [vmem:[#allocation13 + $0xf4] sm:$0xf]  ;;  %v9493_v24 = vld [vmem:[#allocation13 + $0xb8] sm:$0xf0] }
 0x454   :  { %v9528_v45 = vor.u32 %v10593_v21, %v9525_v28  ;;  %5779 = vmatpush.bf16.msra.mxu2 %v9564_v3  ;;  %v10585_v37 = vld [vmem:[#allocation13 + $0xb4] sm:$0xf]  ;;  %v9589_v30 = vld [vmem:[#allocation13 + $0x178] sm:$0xf0]  ;;  %v9644_v3 = vor.u32 %v10624_v33, %v9643_v11  ;;  %v9581_v21 = vld [vmem:[#allocation13 + $0x168] sm:$0xf0] }
 0x455   :  { %5805 = vmatpush.bf16.msrb.mxu0 %v9440_v23  ;;  %v9496_v23 = vor.u32 %v10585_v37, %v9493_v24  ;;  %v10609_v59 = vld [vmem:[#allocation13 + $0x174] sm:$0xf]  ;;  %v10616_v37 = vld [vmem:[#allocation13 + $0x1a4] sm:$0xf0]  ;;  %v10599_v24 = vld [vmem:[#allocation13 + $0x124] sm:$0xf] }
 0x456   :  { %v9592_v43 = vor.u32 %v10609_v59, %v9589_v30  ;;  %5790 = vmatpush.bf16.msra.mxu3 %v9644_v3  ;;  %v9612_v27 = vor.u32 %v10616_v37, %v9611_v13  ;;  %v9603_v11 = vld [vmem:[#allocation13 + $0x190] sm:$0xf]  ;;  %v10613_v13 = vld [vmem:[#allocation13 + $0x194] sm:$0xf]  ;;  %v9605_v37 = vld [vmem:[#allocation13 + $0x198] sm:$0xf0] }
 0x457   :  { %5765 = vmatpush.bf16.msra.mxu1 %v9508_v47 }
 0x458   :  { %5780 = vmatpush.bf16.msra.mxu2 %v9556_v38 }
 0x459   :  { %v11720_v44 = vpop.f32.mrf.mxu1  ;;  %5806 = vmatpush.bf16.msrb.mxu0 %v9432_v40  ;;  %v10607_v40 = vld [vmem:[#allocation13 + $0x164] sm:$0xf] }
 0x45b   :  { %5766 = vmatpush.bf16.msra.mxu1 %v9500_v56  ;;  %v10600_v56 = vld [vmem:[#allocation13 + $0x124] sm:$0xf0] }
 0x45d   :  { %5807 = vmatpush.bf16.msrb.mxu0 %v9424_v52  ;;  %v10605_v52 = vld [vmem:[#allocation13 + $0x154] sm:$0xf] }
 0x45f   :  { %5767 = vmatpush.bf16.msra.mxu1 %v9492_v36  ;;  %v9416_v36 = vor.u32 %v10565_v6, %v9413_v58  ;;  %v10620_v6 = vld [vmem:[#allocation13 + $0x1c4] sm:$0xf0] }
 0x461   :  { %v5220_v57 = vpop.f32.mrf.mxu1  ;;  %5808 = vmatpush.bf16.msrb.mxu0 %v9416_v36  ;;  %v10579_v36 = vld [vmem:[#allocation13 + $0x84] sm:$0xf] }
 0x462   :  { %v9548_v57 = vor.u32 %v10600_v56, %v9547_v53  ;;  %v9480_v53 = vor.u32 %v10581_v46, %v9477_v50  ;;  %v9573_v56 = vld [vmem:[#allocation13 + $0x158] sm:$0xf0] }
 0x463   :  { %5768 = vmatpush.bf16.msra.mxu1 %v9484_v7  ;;  %v9405_v7 = vld [vmem:[#allocation13 + $0x8] sm:$0xf0] }
 0x464   :  { %5781 = vmatpush.bf16.msra.mxu2 %v9548_v57  ;;  %v9408_v25 = vor.u32 %v10563_v2, %v9405_v7  ;;  %v9576_v57 = vor.u32 %v10605_v52, %v9573_v56  ;;  %v9568_v2 = vor.u32 %v10603_v0, %v9565_v22  ;;  %v5864_v7 = vld.sshfl [vmem:[#allocation1] sm:$0xff pattern:$0x75316420]  ;;  %v9645_v56 = vld [vmem:[#allocation13 + $0x1e8] sm:$0xf0] }
 0x465   :  { %v9629_v0 = vld [vmem:[#allocation13 + $0x1c8] sm:$0xf0] }
 0x466   :  { %5809 = vmatpush.bf16.msrb.mxu0 %v9408_v25  ;;  %v9619_v25 = vld [vmem:[#allocation13 + $0x1b0] sm:$0xf] }
 0x467   :  { %5769 = vmatpush.bf16.msra.mxu1 %v9476_v61  ;;  %v9532_v61 = vor.u32 %v10596_v42, %v9531_v54  ;;  %v10601_v54 = vld [vmem:[#allocation13 + $0x134] sm:$0xf]  ;;  %v9557_v42 = vld [vmem:[#allocation13 + $0x138] sm:$0xf0] }
 0x468   :  { %5782 = vmatpush.bf16.msra.mxu2 %v9540_v62 }
 0x469   :  { %v11722_v14 = vpop.f32.mrf.mxu1 }
 0x46b   :  { %v11724_v19 = vpop.f32.mrf.mxu0  ;;  %5770 = vmatpush.bf16.msra.mxu1 %v9468_v31  ;;  %v5154_v31 = vadd.f32 %v11711_v51, %v4496_v17  ;;  %v9635_v51 = vld [vmem:[#allocation13 + $0x1d0] sm:$0xf]  ;;  %v4497_v17 = vperm.slane %v11729_v29, 1 }
 0x46c   :  { %5783 = vmatpush.bf16.msra.mxu2 %v9532_v61  ;;  %v9560_v61 = vor.u32 %v10601_v54, %v9557_v42  ;;  %v10615_v54 = vld [vmem:[#allocation13 + $0x1a4] sm:$0xf] }
 0x46d   :  { %v5167_v9 = vadd.f32 %v11716_v63, %v5154_v31  ;;  %v9627_v63 = vld [vmem:[#allocation13 + $0x1c0] sm:$0xf]  ;;  %v5206_v59 = vadd.f32 %v11713_v41, %v4497_v17  ;;  %v10614_v31 = vld [vmem:[#allocation13 + $0x194] sm:$0xf0] }
 0x46e   :  { %v9604_v3 = vor.u32 %v10614_v31, %v9603_v11  ;;  %v4499_v11 = vperm.slane %v11729_v29, 3  ;;  %v5917_v31 = vld [vmem:[%s11846_s21 + $0x8] sm:$0x1f] }
 0x46f   :  { %v11726_v60 = vpop.f32.mrf.mxu2  ;;  %5815 = vmatpush.bf16.msrb.mxu1 %v9528_v45  ;;  %v9584_v45 = vor.u32 %v10607_v40, %v9581_v21  ;;  %v5219_v33 = vadd.f32 %v11720_v44, %v5206_v59  ;;  %v9595_v21 = vld [vmem:[#allocation13 + $0x180] sm:$0xf]  ;;  %v9597_v59 = vld [vmem:[#allocation13 + $0x188] sm:$0xf0] }
 0x470   :  { %5828 = vmatpush.bf16.msrb.mxu2 %v9592_v43  ;;  %v5180_v38 = vadd.f32 %v11726_v60, %v5167_v9  ;;  %v9628_v60 = vor.u32 %v10620_v6, %v9627_v63  ;;  %v10595_v9 = vld [vmem:[#allocation13 + $0x104] sm:$0xf]  ;;  %v10621_v6 = vld [vmem:[#allocation13 + $0x1d4] sm:$0xf] }
 0x471   :  { %v5272_v55 = vpop.f32.mrf.mxu1 }
 0x472   :  { %v9485_v55 = vld [vmem:[#allocation13 + $0xa8] sm:$0xf0] }
 0x473   :  { %v5311_v35 = vpop.f32.mrf.mxu0  ;;  %5816 = vmatpush.bf16.msrb.mxu1 %v9520_v10 }
 0x474   :  { %v9488_v35 = vor.u32 %v10583_v39, %v9485_v55  ;;  %5829 = vmatpush.bf16.msrb.mxu2 %v9584_v45  ;;  %v10597_v39 = vld [vmem:[#allocation13 + $0x114] sm:$0xf]  ;;  %v9541_v55 = vld [vmem:[#allocation13 + $0x118] sm:$0xf0] }
 0x475   :  { %v9544_v45 = vor.u32 %v10597_v39, %v9541_v55 }
 0x477   :  { %v5181_v47 = vpop.f32.mrf.mxu2  ;;  %5817 = vmatpush.bf16.msrb.mxu1 %v9512_v5  ;;  %v9472_v5 = vor.u32 %v10579_v36, %v9469_v4 }
 0x478   :  { %v10622_v47 = vld [vmem:[#allocation13 + $0x1d4] sm:$0xf0]  ;;  %5830 = vmatpush.bf16.msrb.mxu2 %v9576_v57 }
 0x479   :  { %v9636_v48 = vor.u32 %v10622_v47, %v9635_v51  ;;  %v9533_v51 = vld [vmem:[#allocation13 + $0x108] sm:$0xf0]  ;;  %v10625_v47 = vld [vmem:[#allocation13 + $0x1f4] sm:$0xf] }
 0x47a   :  { %v9536_v44 = vor.u32 %v10595_v9, %v9533_v51  ;;  %v10657_v9 = vld [vmem:[#allocation16 + $0x70] sm:$0xff]  ;;  %v10647_v51 = vld [vmem:[#allocation16 + $0x20] sm:$0xff] }
 0x47b   :  { %5818 = vmatpush.bf16.msrb.mxu1 %v9504_v18  ;;  %5791 = vmatpush.bf16.msra.mxu3 %v9636_v48  ;;  %v9620_v18 = vor.u32 %v10618_v15, %v9619_v25  ;;  %v10617_v25 = vld [vmem:[#allocation13 + $0x1b4] sm:$0xf]  ;;  %v5854_v15 = vld [vmem:[%s11845_s20] sm:$0x3] }
 0x47c   :  { %5831 = vmatpush.bf16.msrb.mxu2 %v9568_v2 }
 0x47f   :  { %v11731_v1 = vpop.f32.mrf.mxu2  ;;  %5819 = vmatpush.bf16.msrb.mxu1 %v9496_v23  ;;  %5792 = vmatpush.bf16.msra.mxu3 %v9628_v60  ;;  %v9549_v23 = vld [vmem:[#allocation13 + $0x128] sm:$0xf0] }
 0x480   :  { %5832 = vmatpush.bf16.msrb.mxu2 %v9560_v61  ;;  %v9552_v43 = vor.u32 %v10599_v24, %v9549_v23  ;;  %v5232_v40 = vadd.f32 %v11731_v1, %v5219_v33  ;;  %v4498_v1 = vperm.slane %v11729_v29, 2  ;;  %v9608_v24 = vor.u32 %v10613_v13, %v9605_v37  ;;  %v10611_v23 = vld [vmem:[#allocation13 + $0x184] sm:$0xf]  ;;  %v10637_v13 = vld [vmem:[#allocation14 + $0x50] sm:$0xff]  ;;  %v10636_v37 = vld [vmem:[#allocation14 + $0x48] sm:$0xff] }
 0x482   :  { %v5258_v63 = vadd.f32 %v11718_v20, %v4498_v1  ;;  %v9621_v20 = vld [vmem:[#allocation13 + $0x1b8] sm:$0xf0] }
 0x483   :  { %5820 = vmatpush.bf16.msrb.mxu1 %v9488_v35  ;;  %5793 = vmatpush.bf16.msra.mxu3 %v9620_v18  ;;  %v9624_v17 = vor.u32 %v10617_v25, %v9621_v20  ;;  %v10641_v25 = vld [vmem:[#allocation14 + $0x70] sm:$0xff] }
 0x484   :  { %5833 = vmatpush.bf16.msrb.mxu2 %v9552_v43  ;;  %v5271_v36 = vadd.f32 %v11722_v14, %v5258_v63  ;;  %v9613_v14 = vld [vmem:[#allocation13 + $0x1a8] sm:$0xf0]  ;;  %v5310_v43 = vadd.f32 %v11724_v19, %v4499_v11  ;;  %v10629_v20 = vld [vmem:[#allocation14 + $0x10] sm:$0xff] }
 0x485   :  { %v10648_v19 = vld [vmem:[#allocation16 + $0x28] sm:$0xff] }
 0x486   :  { %v10632_v63 = vld [vmem:[#allocation14 + $0x28] sm:$0xff] }
 0x487   :  { %v5233_v28 = vpop.f32.mrf.mxu2  ;;  %5821 = vmatpush.bf16.msrb.mxu1 %v9480_v53  ;;  %5794 = vmatpush.bf16.msra.mxu3 %v9612_v27  ;;  %v10623_v53 = vld [vmem:[#allocation13 + $0x1e4] sm:$0xf]  ;;  %v5915_v27 = vld [vmem:[%s11847_s28] sm:$0x3] }
 0x488   :  { %v10612_v28 = vld [vmem:[#allocation13 + $0x184] sm:$0xf0]  ;;  %5834 = vmatpush.bf16.msrb.mxu2 %v9544_v45  ;;  %v9648_v57 = vor.u32 %v10623_v53, %v9645_v56  ;;  %v10649_v45 = vld [vmem:[#allocation16 + $0x30] sm:$0xff] }
 0x489   :  { %v9596_v48 = vor.u32 %v10612_v28, %v9595_v21  ;;  %v10650_v28 = vld [vmem:[#allocation16 + $0x38] sm:$0xff]  ;;  %v10633_v56 = vld [vmem:[#allocation14 + $0x30] sm:$0xff] }
 0x48b   :  { %v11736_v26 = vpop.f32.mrf.mxu1  ;;  %5822 = vmatpush.bf16.msrb.mxu1 %v9472_v5  ;;  %5795 = vmatpush.bf16.msra.mxu3 %v9604_v3  ;;  %v10619_v5 = vld [vmem:[#allocation13 + $0x1c4] sm:$0xf] }
 0x48c   :  { %5835 = vmatpush.bf16.msrb.mxu2 %v9536_v44  ;;  %v5323_v33 = vadd.f32 %v11736_v26, %v5310_v43  ;;  %v10654_v44 = vld [vmem:[#allocation16 + $0x58] sm:$0xff] }
 0x48f   :  { %v5192_v12 = vpop.f32.mrf.mxu3  ;;  %v11739_v16 = vpop.f32.mrf.mxu2  ;;  %5796 = vmatpush.bf16.msra.mxu3 %v9596_v48 }
 0x490   :  { %v5193_v10 = vadd.f32 %v5192_v12, %v5180_v38  ;;  %v9653_v38 = vld [vmem:[#allocation13 + $0x1f8] sm:$0xf0]  ;;  %v5865_v12 = vld.sshfl [vmem:[#allocation1 + $0x8] sm:$0xff pattern:$0x75316420]  ;;  %v5284_v4 = vadd.f32 %v11739_v16, %v5271_v36 }
 0x491   :  { %v9656_v50 = vor.u32 %v10625_v47, %v9653_v38  ;;  %v5916_v16 = vld [vmem:[%s11846_s21] sm:$0x1f]  ;;  %v10655_v47 = vld [vmem:[#allocation16 + $0x60] sm:$0xff] }
 0x492   :  { %v5352_v58 = vmax.f32 %v5193_v10, 0.0  ;;  %v10646_v38 = vld [vmem:[#allocation16 + $0x18] sm:$0xff]  ;;  %v10651_v36 = vld [vmem:[#allocation16 + $0x40] sm:$0xff] }
 0x493   :  { %v5324_v8 = vpop.f32.mrf.mxu1  ;;  %5841 = vmatpush.bf16.msrb.mxu3 %v9656_v50  ;;  %v10645_v50 = vld [vmem:[#allocation16 + $0x10] sm:$0xff] }
 0x494   :  { %v5356_v62 = vpack.c.bf16 %v5352_v58, %v5352_v58  ;;  %v9637_v58 = vld [vmem:[#allocation13 + $0x1d8] sm:$0xf0] }
 0x495   :  { %v9640_v60 = vor.u32 %v10621_v6, %v9637_v58  ;;  %v6144_v6 = vld [vmem:[%s11848_s11] sm:$0xff]  ;;  %v6146_v58 = vld [vmem:[%s11848_s11 + $0x10] sm:$0xff] }
 0x496   :  { %5758 = vmatmul.bf16.vlgmr.msra.gmra.mxu0 %v5356_v62 }
 0x497   :  { %v5194_v32 = vpop.f32.mrf.mxu3  ;;  %9657 = vmatpush.msk.msra.mxu0 %vm5870_vm0, %v5864_v7  ;;  %v5285_v30 = vpop.f32.mrf.mxu2  ;;  %5842 = vmatpush.bf16.msrb.mxu3 %v9648_v57  ;;  %v10643_v57 = vld [vmem:[#allocation16] sm:$0xff] }
 0x498   :  { %v9616_v32 = vor.u32 %v10615_v54, %v9613_v14  ;;  %v9600_v30 = vor.u32 %v10611_v23, %v9597_v59  ;;  %v10635_v23 = vld [vmem:[#allocation14 + $0x40] sm:$0xff]  ;;  %v5856_v59 = vld [vmem:[%s11850_s16] sm:$0x3] }
 0x499   :  { %v5858_v11 = vperm.slane %v5856_v59, 0 }
 0x49b   :  { %5843 = vmatpush.bf16.msrb.mxu3 %v9640_v60  ;;  %v11770_v60 = vpack.c.bf16 %v6146_v58, %v6144_v6 }
 0x49f   :  { %v5244_v35 = vpop.f32.mrf.mxu3 }
 0x4a0   :  { %v5245_v41 = vadd.f32 %v5244_v35, %v5232_v40  ;;  %v10658_v35 = vld [vmem:[#allocation16 + $0x78] sm:$0xff] }
 0x4a2   :  { %v5353_v46 = vmax.f32 %v5245_v41, 0.0  ;;  %v10656_v41 = vld [vmem:[#allocation16 + $0x68] sm:$0xff] }
 0x4a4   :  { %v5357_v52 = vpack.c.bf16 %v5353_v46, %v5353_v46  ;;  %v10634_v46 = vld [vmem:[#allocation14 + $0x38] sm:$0xff] }
 0x4a6   :  { %5771 = vmatmul.bf16.vlgmr.msra.gmra.mxu1 %v5357_v52  ;;  %5810 = vmatmul.bf16.vlgmr.msrb.gmra.mxu0 %v5356_v62  ;;  %v9632_v62 = vor.u32 %v10619_v5, %v9629_v0  ;;  %v6147_v5 = vld [vmem:[%s11848_s11 + $0x18] sm:$0xff]  ;;  %v10631_v0 = vld [vmem:[#allocation14 + $0x20] sm:$0xff] }
 0x4a7   :  { %v5246_v10 = vpop.f32.mrf.mxu3  ;;  %9659 = vmatpush.msk.msra.mxu1 %vm5870_vm0, %v5865_v12  ;;  %9661 = vmatpush.msk.msrb.mxu0 %vm5922_vm2, %v5916_v16  ;;  %v10644_v12 = vld [vmem:[#allocation16 + $0x8] sm:$0xff]  ;;  %v10627_v16 = vld [vmem:[#allocation14] sm:$0xff] }
 0x4a8   :  { %5844 = vmatpush.bf16.msrb.mxu3 %v9632_v62  ;;  %v10652_v10 = vld [vmem:[#allocation16 + $0x48] sm:$0xff] }
 0x4ac   :  { %5845 = vmatpush.bf16.msrb.mxu3 %v9624_v17  ;;  %v10628_v17 = vld [vmem:[#allocation14 + $0x8] sm:$0xff] }
 0x4af   :  { %v5296_v22 = vpop.f32.mrf.mxu3  ;;  %v5335_v2 = vpop.f32.mrf.mxu2 }
 0x4b0   :  { %v5297_v7 = vadd.f32 %v5296_v22, %v5284_v4  ;;  %5846 = vmatpush.bf16.msrb.mxu3 %v9616_v32  ;;  %v5336_v39 = vadd.f32 %v5335_v2, %v5323_v33  ;;  %v6145_v4 = vld [vmem:[%s11848_s11 + $0x8] sm:$0xff]  ;;  %v10642_v2 = vld [vmem:[#allocation14 + $0x78] sm:$0xff] }
 0x4b1   :  { %v10638_v32 = vld [vmem:[#allocation14 + $0x58] sm:$0xff] }
 0x4b2   :  { %v5354_v8 = vmax.f32 %v5297_v7, 0.0  ;;  %v11775_v7 = vpack.c.bf16 %v6147_v5, %v6145_v4 }
 0x4b4   :  { %v5358_v18 = vpack.c.bf16 %v5354_v8, %v5354_v8  ;;  %5847 = vmatpush.bf16.msrb.mxu3 %v9608_v24  ;;  %v10630_v8 = vld [vmem:[#allocation14 + $0x18] sm:$0xff] }
 0x4b6   :  { %5784 = vmatmul.bf16.vlgmr.msra.gmra.mxu2 %v5358_v18  ;;  %5823 = vmatmul.bf16.vlgmr.msrb.gmra.mxu1 %v5357_v52  ;;  %v10653_v52 = vld [vmem:[#allocation16 + $0x50] sm:$0xff] }
 0x4b7   :  { %9658 = vmatmul.msk.f32.vlgmr.msra.gmra.mxu0 %vm5866_vm1, %v5854_v15  ;;  %v5298_v42 = vpop.f32.mrf.mxu3  ;;  %v5337_v61 = vpop.f32.mrf.mxu2  ;;  %9663 = vmatpush.msk.msrb.mxu1 %vm5922_vm2, %v5917_v31 }
 0x4b8   :  { %5848 = vmatpush.bf16.msrb.mxu3 %v9600_v30  ;;  %6282 = vmatpush.bf16.msra.mxu2 %v10650_v28  ;;  %v10639_v42 = vld [vmem:[#allocation14 + $0x60] sm:$0xff] }
 0x4b9   :  { %6118 = vmatpush.bf16.msra.mxu0 %v10634_v46 }
 0x4bc   :  { %6283 = vmatpush.bf16.msra.mxu2 %v10649_v45 }
 0x4bd   :  { %6119 = vmatpush.bf16.msra.mxu0 %v10633_v56 }
 0x4bf   :  { %9662 = vmatmul.msk.f32.vlgmr.msrb.gmra.mxu0 %vm5918_vm3, %v5915_v27 }
 0x4c0   :  { %6284 = vmatpush.bf16.msra.mxu2 %v10648_v19 }
 0x4c1   :  { %6120 = vmatpush.bf16.msra.mxu0 %v10632_v63 }
 0x4c4   :  { %6285 = vmatpush.bf16.msra.mxu2 %v10647_v51  ;;  %v5859_v51 = vperm.slane %v5856_v59, 1 }
 0x4c5   :  { %6121 = vmatpush.bf16.msra.mxu0 %v10631_v0 }
 0x4c6   :  { %5836 = vmatmul.bf16.vlgmr.msrb.gmra.mxu2 %v5358_v18  ;;  %9660 = vmatmul.msk.f32.vlgmr.msra.gmra.mxu1 %vm5866_vm1, %v5854_v15  ;;  %v10640_v18 = vld [vmem:[#allocation14 + $0x68] sm:$0xff] }
 0x4c7   :  { %6131 = vmatpush.bf16.msra.mxu1 %v10642_v2 }
 0x4c8   :  { %6286 = vmatpush.bf16.msra.mxu2 %v10646_v38 }
 0x4c9   :  { %6122 = vmatpush.bf16.msra.mxu0 %v10630_v8  ;;  %v10748_v8 = vld [vmem:[%s11852_s25] ss:$0 sm:$0xff] }
 0x4cb   :  { %6132 = vmatpush.bf16.msra.mxu1 %v10641_v25 }
 0x4cc   :  { %6287 = vmatpush.bf16.msra.mxu2 %v10645_v50 }
 0x4cd   :  { %6123 = vmatpush.bf16.msra.mxu0 %v10629_v20 }
 0x4ce   :  { %9664 = vmatmul.msk.f32.vlgmr.msrb.gmra.mxu1 %vm5918_vm3, %v5915_v27  ;;  %v5424_v27 = vld [vmem:[%s11849_s0] sm:$0x3] }
 0x4cf   :  { %v5348_v55 = vpop.f32.mrf.mxu3  ;;  %6133 = vmatpush.bf16.msra.mxu1 %v10640_v18  ;;  %v5426_v30 = vperm.slane %v5424_v27, 0 }
 0x4d0   :  { %v5349_v3 = vadd.f32 %v5348_v55, %v5336_v39  ;;  %6288 = vmatpush.bf16.msra.mxu2 %v10644_v12 }
 0x4d1   :  { %6124 = vmatpush.bf16.msra.mxu0 %v10628_v17 }
 0x4d2   :  { %v5355_v40 = vmax.f32 %v5349_v3, 0.0 }
 0x4d3   :  { %6134 = vmatpush.bf16.msra.mxu1 %v10639_v42  ;;  %v10673_v42 = vld [vmem:[#allocation17 + $0x70] sm:$0xff] }
 0x4d4   :  { %v5359_v21 = vpack.c.bf16 %v5355_v40, %v5355_v40  ;;  %6289 = vmatpush.bf16.msra.mxu2 %v10643_v57 }
 0x4d5   :  { %6125 = vmatpush.bf16.msra.mxu0 %v10627_v16  ;;  %v10665_v16 = vld [vmem:[#allocation17 + $0x30] sm:$0xff] }
 0x4d6   :  { %5797 = vmatmul.bf16.vlgmr.msra.gmra.mxu3 %v5359_v21 }
 0x4d7   :  { %v5350_v29 = vpop.f32.mrf.mxu3  ;;  %6296 = vmatpush.bf16.msra.mxu3 %v10658_v35  ;;  %6290 = vmatmul.bf16.vlgmr.msra.gmra.mxu2 %v11770_v60 }
 0x4d8   :  { %6135 = vmatpush.bf16.msra.mxu1 %v10638_v32  ;;  %v10664_v32 = vld [vmem:[#allocation17 + $0x28] sm:$0xff] }
 0x4db   :  { %6297 = vmatpush.bf16.msra.mxu3 %v10657_v9  ;;  %v5427_v9 = vperm.slane %v5424_v27, 1  ;;  %v10662_v27 = vld [vmem:[#allocation17 + $0x18] sm:$0xff] }
 0x4dc   :  { %6136 = vmatpush.bf16.msra.mxu1 %v10637_v13  ;;  %v10663_v13 = vld [vmem:[#allocation17 + $0x20] sm:$0xff] }
 0x4df   :  { %6298 = vmatpush.bf16.msra.mxu3 %v10656_v41 }
 0x4e0   :  { %6137 = vmatpush.bf16.msra.mxu1 %v10636_v37  ;;  %v10671_v37 = vld [vmem:[#allocation17 + $0x60] sm:$0xff] }
 0x4e3   :  { %6299 = vmatpush.bf16.msra.mxu3 %v10655_v47 }
 0x4e4   :  { %6138 = vmatpush.bf16.msra.mxu1 %v10635_v23  ;;  %v10670_v23 = vld [vmem:[#allocation17 + $0x58] sm:$0xff] }
 0x4e6   :  { %5849 = vmatmul.bf16.vlgmr.msrb.gmra.mxu3 %v5359_v21 }
 0x4e7   :  { %6300 = vmatpush.bf16.msra.mxu3 %v10654_v44 }
 0x4eb   :  { %6301 = vmatpush.bf16.msra.mxu3 %v10653_v52 }
 0x4ef   :  { %6302 = vmatpush.bf16.msra.mxu3 %v10652_v10 }
 0x4f3   :  { %6303 = vmatpush.bf16.msra.mxu3 %v10651_v36 }
 0x4f6   :  { %6304 = vmatmul.bf16.vlgmr.msra.gmra.mxu3 %v11775_v7 }
 0x513   :  { %v11764_v26 = vpop.f32.mrf.mxu0 }
 0x514   :  { %v5760_v43 = vadd.f32 %v11764_v26, %v5426_v30  ;;  %v10661_v30 = vld [vmem:[#allocation17 + $0x10] sm:$0xff] }
 0x51b   :  { %v5761_v48 = vpop.f32.mrf.mxu0 }
 0x523   :  { %v5772_v1 = vpop.f32.mrf.mxu1  ;;  %v11766_v53 = vpop.f32.mrf.mxu0 }
 0x524   :  { %v5773_v39 = vadd.f32 %v5772_v1, %v5760_v43  ;;  %v5812_v38 = vadd.f32 %v11766_v53, %v5427_v9  ;;  %v10747_v53 = vld [vmem:[%s11851_s3] ss:$0 sm:$0xff] }
 0x52b   :  { %v5774_v22 = vpop.f32.mrf.mxu1  ;;  %v5813_v62 = vpop.f32.mrf.mxu0 }
 0x533   :  { %v5824_v15 = vpop.f32.mrf.mxu1 }
 0x534   :  { %v5892_v31 = vpop.f32.mrf.mxu0  ;;  %v5825_v26 = vadd.f32 %v5824_v15, %v5812_v38 }
 0x535   :  { %v5893_v55 = vadd.f32 %v5892_v31, %v5858_v11  ;;  %v10669_v11 = vld [vmem:[#allocation17 + $0x50] sm:$0xff] }
 0x537   :  { %v5971_v21 = vadd.f32 %v11644_v49, %v5893_v55 }
 0x539   :  { %v5785_v54 = vpop.f32.mrf.mxu2 }
 0x53a   :  { %v5786_v3 = vadd.f32 %v5785_v54, %v5773_v39  ;;  %v10666_v54 = vld [vmem:[#allocation17 + $0x38] sm:$0xff]  ;;  %v10668_v39 = vld [vmem:[#allocation17 + $0x48] sm:$0xff] }
 0x53b   :  { %v5826_v14 = vpop.f32.mrf.mxu1  ;;  %6442 = vmatpush.bf16.msrb.mxu0 %v10666_v54 }
 0x53c   :  { %v5946_v28 = vpop.f32.mrf.mxu0  ;;  %v10674_v14 = vld [vmem:[#allocation17 + $0x78] sm:$0xff] }
 0x53d   :  { %6456 = vmatpush.bf16.msrb.mxu1 %v10674_v14 }
 0x53f   :  { %6443 = vmatpush.bf16.msrb.mxu0 %v10665_v16 }
 0x541   :  { %v5787_v61 = vpop.f32.mrf.mxu2  ;;  %6457 = vmatpush.bf16.msrb.mxu1 %v10673_v42 }
 0x542   :  { %v10672_v61 = vld [vmem:[#allocation17 + $0x68] sm:$0xff] }
 0x543   :  { %v5912_v47 = vpop.f32.mrf.mxu1  ;;  %6444 = vmatpush.bf16.msrb.mxu0 %v10664_v32 }
 0x544   :  { %v5913_v48 = vadd.f32 %v5912_v47, %v5859_v51 }
 0x545   :  { %6458 = vmatpush.bf16.msrb.mxu1 %v10672_v61 }
 0x546   :  { %v5972_v50 = vadd.f32 %v11655_v34, %v5913_v48 }
 0x547   :  { %6445 = vmatpush.bf16.msrb.mxu0 %v10663_v13 }
 0x549   :  { %v5837_v24 = vpop.f32.mrf.mxu2  ;;  %6459 = vmatpush.bf16.msrb.mxu1 %v10671_v37 }
 0x54a   :  { %v5838_v46 = vadd.f32 %v5837_v24, %v5825_v26  ;;  %v6513_v24 = vld [vmem:[%s11853_s4] sm:$0x3]  ;;  %v10749_v26 = vld [vmem:[#allocation19] ss:$0 sm:$0xff] }
 0x54b   :  { %v5966_v52 = vpop.f32.mrf.mxu1  ;;  %v6515_v59 = vrot.slane %v6513_v24, 1  ;;  %6446 = vmatpush.bf16.msrb.mxu0 %v10662_v27  ;;  %vm6517_vm7 = vcmp.gt.f32.partialorder %v6513_v24, 0.5  ;;  %v10684_v24 = vld [vmem:[%s11362_s19 + $0x8] sm:$0xff]  ;;  %v10683_v27 = vld [vmem:[%s11362_s19] sm:$0xff] }
 0x54d   :  { %6460 = vmatpush.bf16.msrb.mxu1 %v10670_v23  ;;  %vm6518_vm5 = vcmp.gt.f32.partialorder %v6515_v59, 0.5  ;;  %v10750_v23 = vld [vmem:[#allocation20] ss:$0 sm:$0xff] }
 0x54f   :  { %6447 = vmatpush.bf16.msrb.mxu0 %v10661_v30 }
 0x551   :  { %v5839_v33 = vpop.f32.mrf.mxu2  ;;  %6461 = vmatpush.bf16.msrb.mxu1 %v10669_v11 }
 0x552   :  { %v10660_v33 = vld [vmem:[#allocation17 + $0x8] sm:$0xff] }
 0x553   :  { %6448 = vmatpush.bf16.msrb.mxu0 %v10660_v33 }
 0x555   :  { %6462 = vmatpush.bf16.msrb.mxu1 %v10668_v39 }
 0x559   :  { %v5798_v40 = vpop.f32.mrf.mxu3 }
 0x55a   :  { %v5799_v29 = vadd.f32 %v5798_v40, %v5786_v3  ;;  %v6291_v6 = vpop.f32.mrf.mxu2  ;;  %v10659_v40 = vld [vmem:[#allocation17] sm:$0xff] }
 0x55b   :  { %v6292_v58 = vadd.f32 %v10747_v53, %v6291_v6  ;;  %6449 = vmatpush.bf16.msrb.mxu0 %v10659_v40 }
 0x55c   :  { %v5973_v35 = vadd.f32 %v5971_v21, %v5799_v29  ;;  %v10667_v21 = vld [vmem:[#allocation17 + $0x40] sm:$0xff] }
 0x55d   :  { %6463 = vmatpush.bf16.msrb.mxu1 %v10667_v21 }
 0x55e   :  { %v5975_v45 = vadd.f32 %v5973_v35, %v5946_v28 }
 0x560   :  { %v5984_v19 = vpack.c.bf16 %v5975_v45, %v5975_v45 }
 0x561   :  { %v5800_v41 = vpop.f32.mrf.mxu3 }
 0x562   :  { %6126 = vmatmul.bf16.vlgmr.msra.gmra.mxu0 %v5984_v19  ;;  %v6293_v5 = vpop.f32.mrf.mxu2 }
 0x563   :  { %v6294_v34 = vadd.f32 %v10747_v53, %v6293_v5 }
 0x569   :  { %v5850_v44 = vpop.f32.mrf.mxu3 }
 0x56a   :  { %v5851_v49 = vadd.f32 %v5850_v44, %v5838_v46 }
 0x56c   :  { %v5974_v12 = vadd.f32 %v5972_v50, %v5851_v49 }
 0x56e   :  { %v5976_v1 = vadd.f32 %v5974_v12, %v5966_v52 }
 0x570   :  { %v5979_v56 = vrot.slane %v5976_v1, 6  ;;  %v5985_v10 = vpack.c.bf16 %v5976_v1, %v5976_v1 }
 0x571   :  { %v5852_v57 = vpop.f32.mrf.mxu3 }
 0x572   :  { %6139 = vmatmul.bf16.vlgmr.msra.gmra.mxu1 %v5985_v10  ;;  %v5981_v63 = vsel %vm5980_vm4, %v5975_v45, %v5979_v56  ;;  %6450 = vmatmul.bf16.vlgmr.msrb.gmra.mxu0 %v11770_v60  ;;  %v10682_v56 = vld [vmem:[%s11854_s7 + $0x38] sm:$0xff]  ;;  %v10681_v10 = vld [vmem:[%s11854_s7 + $0x30] sm:$0xff]  ;;  %v10680_v57 = vld [vmem:[%s11854_s7 + $0x28] sm:$0xff] }
 0x573   :  { %5983 = vst [vmem:[#allocation24] sm:$0xf] %v5981_v63  ;;  %v10679_v63 = vld [vmem:[%s11854_s7 + $0x20] sm:$0xff] }
 0x579   :  { %v6305_v36 = vpop.f32.mrf.mxu3 }
 0x57a   :  { %v6306_v4 = vadd.f32 %v6305_v36, %v6292_v58 }
 0x57c   :  { %6488 = vmatpush.xpose.msrb.mxu2 %v6306_v4 }
 0x581   :  { %v6307_v0 = vpop.f32.mrf.mxu3 }
 0x582   :  { %v6308_v22 = vadd.f32 %v6307_v0, %v6294_v34  ;;  %6464 = vmatmul.bf16.vlgmr.msrb.gmra.mxu1 %v11775_v7  ;;  %v10678_v34 = vld [vmem:[%s11854_s7 + $0x18] sm:$0xff]  ;;  %v10677_v0 = vld [vmem:[%s11854_s7 + $0x10] sm:$0xff] }
 0x584   :  { %6508 = vmatpush.xpose.msrb.mxu3 %v6308_v22  ;;  %v10676_v22 = vld [vmem:[%s11854_s7 + $0x8] sm:$0xff] }
 0x5df   :  { %v6127_v62 = vpop.f32.mrf.mxu0 }
 0x5e0   :  { %v6128_v25 = vadd.f32 %v10748_v8, %v6127_v62  ;;  %v10675_v62 = vld [vmem:[%s11854_s7] sm:$0xff]  ;;  %v10689_v8 = vld [vmem:[%s11362_s19 + $0x30] sm:$0xff] }
 0x5e7   :  { %v6129_v2 = vpop.f32.mrf.mxu0 }
 0x5e8   :  { %v10690_v2 = vld [vmem:[%s11362_s19 + $0x38] sm:$0xff] }
 0x5ef   :  { %v6140_v20 = vpop.f32.mrf.mxu1  ;;  %v6451_v46 = vpop.f32.mrf.mxu0 }
 0x5f0   :  { %v6141_v15 = vadd.f32 %v6140_v20, %v6128_v25  ;;  %v6452_v44 = vadd.f32 %v10749_v26, %v6451_v46  ;;  %v10688_v25 = vld [vmem:[%s11362_s19 + $0x28] sm:$0xff]  ;;  %v10687_v20 = vld [vmem:[%s11362_s19 + $0x20] sm:$0xff] }
 0x5f2   :  { %v6471_v17 = vrot.slane %v6141_v15, 1  ;;  %6489 = vmatmul.f32.vlgmr.msrb.gmra.mxu2 %v6141_v15  ;;  %v10686_v15 = vld [vmem:[%s11362_s19 + $0x18] sm:$0xff] }
 0x5f4   :  { %6509 = vmatmul.f32.vlgmr.msrb.gmra.mxu3 %v6471_v17 }
 0x5f7   :  { %v6142_v18 = vpop.f32.mrf.mxu1  ;;  %v6453_v49 = vpop.f32.mrf.mxu0 }
 0x5f8   :  { %v6454_v12 = vadd.f32 %v10749_v26, %v6453_v49  ;;  %v10685_v18 = vld [vmem:[%s11362_s19 + $0x10] sm:$0xff]  ;;  %s11088_s19 = scalar_lea.hbm %s11377_s8, 4 }
 0x5f9   :  { %p11090_p11 = scmp.lt.s32.totalorder %s11088_s19, %s11086_s29 }
 0x5fb   :  { %p11091_p12 = por %p11090_p11, %p11089_p10 }
 0x5fd   :  { %p11092_p13 = pnand %p11091_p12, %p11087_p9 }
 0x5ff   :  { %v6465_v60 = vpop.f32.mrf.mxu1 }
 0x600   :  { %v6466_v50 = vadd.f32 %v6465_v60, %v6452_v44 }
 0x602   :  { %6563 = vmatpush.msra.mxu2 %v6466_v50 }
 0x604   :  { %6670 = vmatpush.bf16.msrb.mxu2 %v10682_v56 }
 0x607   :  { %v6467_v52 = vpop.f32.mrf.mxu1 }
 0x608   :  { %v6468_v1 = vadd.f32 %v6467_v52, %v6454_v12  ;;  %6671 = vmatpush.bf16.msrb.mxu2 %v10681_v10 }
 0x60a   :  { %6586 = vmatpush.msra.mxu3 %v6468_v1 }
 0x60c   :  { %6672 = vmatpush.bf16.msrb.mxu2 %v10680_v57  ;;  %6753 = vmatpush.bf16.msrb.mxu3 %v10690_v2 }
 0x610   :  { %6673 = vmatpush.bf16.msrb.mxu2 %v10679_v63  ;;  %6754 = vmatpush.bf16.msrb.mxu3 %v10689_v8 }
 0x614   :  { %6674 = vmatpush.bf16.msrb.mxu2 %v10678_v34  ;;  %6755 = vmatpush.bf16.msrb.mxu3 %v10688_v25 }
 0x618   :  { %6675 = vmatpush.bf16.msrb.mxu2 %v10677_v0  ;;  %6756 = vmatpush.bf16.msrb.mxu3 %v10687_v20 }
 0x61c   :  { %6676 = vmatpush.bf16.msrb.mxu2 %v10676_v22  ;;  %6757 = vmatpush.bf16.msrb.mxu3 %v10686_v15 }
 0x620   :  { %6677 = vmatpush.bf16.msrb.mxu2 %v10675_v62  ;;  %6758 = vmatpush.bf16.msrb.mxu3 %v10685_v18 }
 0x624   :  { %6759 = vmatpush.bf16.msrb.mxu3 %v10684_v24 }
 0x628   :  { %6760 = vmatpush.bf16.msrb.mxu3 %v10683_v27 }
 0x675   :  { %v6490_v3 = vpop.f32.mrf.mxu2 }
 0x676   :  { %v6519_v29 = vsel %vm6517_vm7, %v6490_v3, -1e+09 }
 0x677   :  { %v6510_v31 = vpop.f32.mrf.mxu3  ;;  %v6522_v28 = vsel %vm6521_vm6, %v6519_v29, -inf }
 0x678   :  { %v6520_v43 = vsel %vm6518_vm5, %v6510_v31, -1e+09 }
 0x679   :  { %v6525_v55 = vsel %vm6521_vm6, %v6520_v43, -inf }
 0x67a   :  { %6526 = vmax.xlane.f32.xlu0 %v6525_v55 }
 0x682   :  { %6523 = vmax.xlane.f32.xlu0 %v6522_v28 }
 0x6ed   :  { %v6527_v35 = vpop.xlane.xlu0 %6526 }
 0x6ee   :  { %v6529_v45 = vsub.f32 %v6520_v43, %v6527_v35 }
 0x6f0   :  { %v6532_v9 = vmul.f32 1.442695, %v6529_v45 }
 0x6f2   :  { %10752 = vpow2.f32 %v6532_v9 }
 0x6f5   :  { %v6524_v19 = vpop.xlane.xlu0 %6523 }
 0x6f6   :  { %v6528_v41 = vsub.f32 %v6519_v29, %v6524_v19 }
 0x6f8   :  { %v10753_v51 = vpop.eup %10752  ;;  %v6530_v47 = vmul.f32 1.442695, %v6528_v41 }
 0x6f9   :  { %v6537_v38 = vsel %vm6521_vm6, %v10753_v51, 0.0 }
 0x6fa   :  { %10754 = vpow2.f32 %v6530_v47  ;;  %6538 = vadd.xlane.f32.xlu1 %v6537_v38 }
 0x700   :  { %v10755_v48 = vpop.eup %10754 }
 0x701   :  { %v6534_v7 = vsel %vm6521_vm6, %v10755_v48, 0.0 }
 0x702   :  { %6535 = vadd.xlane.f32.xlu1 %v6534_v7 }
 0x76d   :  { %v6539_v53 = vpop.xlane.xlu1 %6538 }
 0x76e   :  { %10756 = vrcp.f32 %v6539_v53 }
 0x774   :  { %v10757_v6 = vpop.eup %10756 }
 0x775   :  { %v6543_v58 = vmul.f32 %v10757_v6, %v10753_v51  ;;  %v6536_v36 = vpop.xlane.xlu1 %6535 }
 0x776   :  { %10758 = vrcp.f32 %v6536_v36 }
 0x777   :  { %9858 = vmatmul.msk.f32.vlgmr.msra.gmra.mxu3 %vm6544_vm8, %v6543_v58 }
 0x77c   :  { %v10759_v4 = vpop.eup %10758 }
 0x77d   :  { %v6542_v5 = vmul.f32 %v10759_v4, %v10755_v48 }
 0x77f   :  { %9857 = vmatmul.msk.f32.vlgmr.msra.gmra.mxu2 %vm6544_vm8, %v6542_v5 }
 0x7fa   :  { %v6588_v17 = vpop.f32.mrf.mxu3 }
 0x7fb   :  { %v6592_v54 = vpack.c.bf16 %v6588_v17, %v6588_v17 }
 0x7fd   :  { %v6616_v14 = vunpack.c.l.b16 %v6592_v54 }
 0x7ff   :  { %v6617_v32 = vrot.slane %v6616_v14, 7 }
 0x802   :  { %v6565_v16 = vpop.f32.mrf.mxu2 }
 0x803   :  { %v6591_v42 = vpack.c.bf16 %v6565_v16, %v6565_v16 }
 0x805   :  { %v6615_v61 = vunpack.c.l.b16 %v6591_v42 }
 0x807   :  { %v6619_v13 = vsel %vm6618_vm9, %v6617_v32, %v6615_v61 }
 0x808   :  { %v6620_v37 = vpack.c.b16 %v6619_v13, %v6619_v13 }
 0x80a   :  { %6678 = vmatmul.bf16.vlgmr.msrb.gmra.mxu2 %v6620_v37 }
 0x88d   :  { %v6679_v59 = vpop.f32.mrf.mxu2 }
 0x88e   :  { %v6680_v30 = vadd.f32 %v10750_v23, %v6679_v59 }
 0x890   :  { %v6683_v11 = vmax.f32 %v6680_v30, 0.0 }
 0x892   :  { %v6684_v31 = vpack.c.bf16 %v6683_v11, %v6683_v11 }
 0x894   :  { %6761 = vmatmul.bf16.vlgmr.msrb.gmra.mxu3 %v6684_v31 }
 0x895   :  { %v6681_v43 = vpop.f32.mrf.mxu2 }
 0x896   :  { %11095 = shalt.err (!%p11092_p13)
}
 0x897   :  { %6788 = dma.vmem_to_hbm [thread:$0]  %s6784_s17, 64, %s6786_s14, [#allocation25]   ;;  %v10751_v33 = vld [vmem:[#allocation22] ss:$0 sm:$0xff] }
 0x898   :  { %s11193_s6 = smov [#allocation23]   ;;  %s6774_s22 = sshll.u32 %s11372_s30, 4  ;;  %s6775_s22 = int_to_ptr.hbm [resolvable:$true] %s6774_s22 }
 0x899   :  { %s6772_s23 = sshll.u32 %s11193_s6, 4  ;;  %s11108_s24 = sshra.s32 %s6775_s22, 4  ;;  %s6773_s23 = int_to_ptr.vmem [resolvable:$true] %s6772_s23  ;;  %s11109_s24 = int_to_ptr.hbm [resolvable:$true] %s11108_s24 }
 0x89a   :  { %s11110_s8 = scalar_lea.hbm %s11109_s24, 2  ;;  %s11112_s2 = scalar_lea.hbm %s11372_s30, 2 }
 0x89b   :  { %p11111_p0 = scmp.ne.s32.totalorder %s11109_s24, %s11110_s8  ;;  %p11113_p1 = scmp.lt.s32.totalorder %s11109_s24, %s11372_s30 }
 0x89c   :  { %p11114_p2 = scmp.lt.s32.totalorder %s11112_s2, %s11110_s8 }
 0x89e   :  { %p11115_p3 = por %p11114_p2, %p11113_p1 }
 0x8a0   :  { %p11116_p4 = pnand %p11115_p3, %p11111_p0 }
 0x917   :  { %v6762_v39 = vpop.f32.mrf.mxu3 }
 0x918   :  { %v6763_v55 = vadd.f32 %v10751_v33, %v6762_v39 }
 0x91a   :  { %6766 = vst [vmem:[#allocation23] sm:$0x3] %v6763_v55 }
 0x91b   :  { %11119 = shalt.err (!%p11116_p4)
}
 0x91c   :  { %6777 = dma.vmem_to_hbm [thread:$0]  %s6773_s23, 32, %s6775_s22, [#allocation4]  }
 0x91f   :  { %v6764_v3 = vpop.f32.mrf.mxu3 }
 0x920   :  { %11134 = dma.done.wait [#allocation4], 32  }
 0x921   :  { %11135 = vsyncadd [#allocation4], 4294967264 }
 0x922   :  { %11136 = dma.done.wait [#allocation25], 64  }
 0x923   :  { %11137 = vsyncadd [#allocation25], 4294967232 }
 0x924   :  { %6797 = vsyncpa [#allocation3], 1 }
 0x925   :  { %6798 = vsyncpa [#allocation6], 1 }
 0x926   :  { %6799 = vsyncpa [#allocation9], 1 }
 0x927   :  { %6800 = vsyncpa [#allocation12], 1 }
 0x928   :  { %6801 = vsyncpa [#allocation15], 1 }
 0x929   :  { %6802 = vsyncpa [#allocation18], 1 }
 0x92a   :  { %6803 = vsyncpa [#allocation21], 1 }
 0x92b   :  { %6804 = vsyncpa [#allocation4], 1 }
 0x92c   :  { %6805 = vsyncpa [#allocation25], 1 }

</bundles_post_ra>
